<compile_context>
chip_gen: v7x
topology: tpu7x:2x2x1
jax: 0.10.0
libtpu: 0.0.40
codegen_flags: <defaults>
</compile_context>

<pallas_src>
import functools

import jax
import jax.numpy as jnp
import numpy as np
from jax import lax
from jax.experimental import pallas as pl
from jax.experimental.pallas import tpu as pltpu


def _spa_kernel(w_ref, x_ref, o_ref, feat_a, feat_m, *, C, D, H, W, KS, PADF):
    # w_ref  : SMEM (2*KS**3,)      flattened conv weight,
    #          idx = c*KS^3 + kd*KS^2 + kh*KS + kw   (c=0: avg, c=1: max)
    # x_ref  : VMEM (1, C, D, H*W)  one batch, (H,W) plane flattened onto lanes
    # o_ref  : VMEM (1, D, H*W)     output slab
    # feat_a : VMEM (D+2p, FLAT)    zero-padded channel-mean map (flat layout)
    # feat_m : VMEM (D+2p, FLAT)    zero-padded channel-max  map (flat layout)
    p = KS // 2
    HW = H * W
    KS2 = KS * KS
    KS3 = KS2 * KS
    WIDE = HW + KS - 1

    # ---- channel mean / max, streamed over C (keeps vreg pressure low) ----
    x0 = x_ref[0, 0].astype(jnp.float32)               # (D, HW)
    csum = x0
    cmax = x0
    for c in range(1, C):
        xc = x_ref[0, c].astype(jnp.float32)
        csum = csum + xc
        cmax = jnp.maximum(cmax, xc)
    cavg = csum * (1.0 / C)

    # ---- scatter into zero-padded, lane-dense feature buffers -------------
    # (zero border == conv "same" padding; mean/max of the zero border over
    #  channels is zero, so this matches pad-after-concat semantics.)
    feat_a[...] = jnp.zeros_like(feat_a)
    feat_m[...] = jnp.zeros_like(feat_m)
    feat_a[pl.ds(p, D), pl.ds(PADF, HW)] = cavg
    feat_m[pl.ds(p, D), pl.ds(PADF, HW)] = cmax

    # ---- per-kw column-validity masks (suppress row wrap of flat layout) --
    col = lax.broadcasted_iota(jnp.int32, (D, HW), 1) % W
    masks = []
    for kw in range(KS):
        off = kw - p
        ok = jnp.logical_and(col + off >= 0, col + off < W)
        masks.append(ok.astype(jnp.float32))

    # ---- fully unrolled 3-D shift-MAC; per-kw WIDE accumulators in vregs --
    # Accumulate on the un-shifted wide windows; do the kw lane extraction
    # only once per kw at the very end (KS slices total instead of 2*KS^3).
    pw = [jnp.zeros((D, WIDE), jnp.float32) for _ in range(KS)]
    for kd in range(KS):
        for kh in range(KS):
            base = PADF + (kh - p) * W - p            # static lane offset
            wide_a = feat_a[pl.ds(kd, D), pl.ds(base, WIDE)]   # (D, WIDE)
            wide_m = feat_m[pl.ds(kd, D), pl.ds(base, WIDE)]
            for kw in range(KS):
                w0 = w_ref[kd * KS2 + kh * KS + kw]            # avg-channel tap
                w1 = w_ref[KS3 + kd * KS2 + kh * KS + kw]      # max-channel tap
                pw[kw] = pw[kw] + (w0 * wide_a + w1 * wide_m)

    acc = jnp.zeros((D, HW), jnp.float32)
    for kw in range(KS):
        acc = acc + masks[kw] * pw[kw][:, kw:kw + HW]

    o_ref[0] = jax.nn.sigmoid(acc).astype(o_ref.dtype)


def spa_forward(x, w):
    """Pallas SPA forward.  x: (N, C, D, H, W), w: (1, 2, KS, KS, KS)."""
    N, C, D, H, W = x.shape
    assert w.shape[0] == 1 and w.shape[1] == 2
    KS = w.shape[-1]
    assert w.shape[2:] == (KS, KS, KS) and KS in (3, 7)
    p = KS // 2
    HW = H * W
    # Flat-plane left zero pad.  Must be >= p*W + p; rounded up to a multiple
    # of 8 so the interior scatter lands at a friendlier lane offset.
    PADF = ((p * W + p + 7) // 8) * 8
    # Total flat width: enough right pad as well, rounded to a lane-tile
    # multiple (128) so scratch rows are lane-dense.
    FLAT = ((HW + 2 * PADF + 127) // 128) * 128
    DP = D + 2 * p

    x_flat = x.reshape(N, C, D, HW)                 # free layout plumbing
    wflat = w.astype(jnp.float32).reshape(-1)       # (2 * KS**3,)

    kernel = functools.partial(_spa_kernel, C=C, D=D, H=H, W=W, KS=KS, PADF=PADF)

    # TODO(synk): for large MG-Net volumes (e.g. 128^3) add D / HW tiling grid
    # axes with a 2p halo and raise vmem_limit_bytes; unnecessary at these sizes.
    out_flat = pl.pallas_call(
        kernel,
        out_shape=jax.ShapeDtypeStruct((N, D, HW), x.dtype),
        grid=(N,),
        in_specs=[
            pl.BlockSpec(memory_space=pltpu.MemorySpace.SMEM),        # conv weights
            pl.BlockSpec((1, C, D, HW), lambda n: (n, 0, 0, 0)),      # one batch
        ],
        out_specs=pl.BlockSpec((1, D, HW), lambda n: (n, 0, 0)),
        scratch_shapes=[
            pltpu.VMEM((DP, FLAT), jnp.float32),
            pltpu.VMEM((DP, FLAT), jnp.float32),
        ],
        compiler_params=pltpu.CompilerParams(dimension_semantics=("parallel",)),
    )(wflat, x_flat)

    return out_flat.reshape(N, 1, D, H, W)


def spa_reference(x, w):
    """Pure-JAX reference matching the PyTorch SPA forward."""
    avg = jnp.mean(x, axis=1, keepdims=True)
    mx = jnp.max(x, axis=1, keepdims=True)
    feat = jnp.concatenate([avg, mx], axis=1)
    p = w.shape[-1] // 2
    out = lax.conv_general_dilated(
        feat, w,
        window_strides=(1, 1, 1),
        padding=[(p, p)] * 3,
        dimension_numbers=("NCDHW", "OIDHW", "NCDHW"),
    )
    return jax.nn.sigmoid(out)


if __name__ == "__main__":
    key = jax.random.PRNGKey(0)

    # Small shapes consistent with the module: x is 5-D (N, C, D, H, W).
    N, C, D, H, W = 2, 4, 8, 8, 8

    for KS in (7, 3):
        kx, kw_key = jax.random.split(jax.random.fold_in(key, KS))
        x = jax.random.normal(kx, (N, C, D, H, W), dtype=jnp.float32)
        # Deterministic Conv3d(2, 1, KS, bias=False) weight, kaiming-uniform-like bound.
        fan_in = 2 * KS ** 3
        bound = 1.0 / float(np.sqrt(fan_in))
        w = jax.random.uniform(kw_key, (1, 2, KS, KS, KS), dtype=jnp.float32,
                               minval=-bound, maxval=bound)

        out = spa_forward(x, w)
        out = jax.block_until_ready(out)

        ref = spa_reference(x, w)
        np.testing.assert_allclose(np.asarray(out), np.asarray(ref),
                                   rtol=1e-4, atol=1e-5)

    print("KERNEL_OK")
</pallas_src>

<mosaic_0001>
module attributes {stable_mosaic.version = 11 : i64} {
  func.func @_spa_kernel(%arg0: i32, %arg1: memref<686xf32, #tpu.memory_space<smem>>, %arg2: memref<1x4x8x64xf32, #tpu.memory_space<vmem>>, %arg3: memref<1x8x64xf32, #tpu.memory_space<vmem>>, %arg4: memref<14x128xf32, #tpu.memory_space<vmem>>, %arg5: memref<14x128xf32, #tpu.memory_space<vmem>>) attributes {dimension_semantics = [#tpu.dimension_semantics<parallel>], iteration_bounds = array<i64: 2>, scalar_prefetch = 0 : i64, scratch_operands = 2 : i64, tpu.core_type = #tpu.core_type<tc>, window_params = [{transform_indices = @transform_0, window_bounds = array<i64: 686>}, {transform_indices = @transform_1, window_bounds = array<i64: 1, 4, 8, 64>}, {transform_indices = @transform_2, window_bounds = array<i64: 1, 8, 64>}]} {
    %c0 = arith.constant 0 : index
    %c0_0 = arith.constant 0 : index
    %c0_1 = arith.constant 0 : index
    %c0_2 = arith.constant 0 : index
    %0 = vector.load %arg2[%c0, %c0_0, %c0_1, %c0_2] : memref<1x4x8x64xf32, #tpu.memory_space<vmem>>, vector<1x1x8x64xf32>
    %1 = vector.shape_cast %0 : vector<1x1x8x64xf32> to vector<8x64xf32>
    %c0_3 = arith.constant 0 : index
    %c1 = arith.constant 1 : index
    %c0_4 = arith.constant 0 : index
    %c0_5 = arith.constant 0 : index
    %2 = vector.load %arg2[%c0_3, %c1, %c0_4, %c0_5] : memref<1x4x8x64xf32, #tpu.memory_space<vmem>>, vector<1x1x8x64xf32>
    %3 = vector.shape_cast %2 : vector<1x1x8x64xf32> to vector<8x64xf32>
    %4 = arith.addf %1, %3 : vector<8x64xf32>
    %5 = arith.maximumf %1, %3 : vector<8x64xf32>
    %c0_6 = arith.constant 0 : index
    %c2 = arith.constant 2 : index
    %c0_7 = arith.constant 0 : index
    %c0_8 = arith.constant 0 : index
    %6 = vector.load %arg2[%c0_6, %c2, %c0_7, %c0_8] : memref<1x4x8x64xf32, #tpu.memory_space<vmem>>, vector<1x1x8x64xf32>
    %7 = vector.shape_cast %6 : vector<1x1x8x64xf32> to vector<8x64xf32>
    %8 = arith.addf %4, %7 : vector<8x64xf32>
    %9 = arith.maximumf %5, %7 : vector<8x64xf32>
    %c0_9 = arith.constant 0 : index
    %c3 = arith.constant 3 : index
    %c0_10 = arith.constant 0 : index
    %c0_11 = arith.constant 0 : index
    %10 = vector.load %arg2[%c0_9, %c3, %c0_10, %c0_11] : memref<1x4x8x64xf32, #tpu.memory_space<vmem>>, vector<1x1x8x64xf32>
    %11 = vector.shape_cast %10 : vector<1x1x8x64xf32> to vector<8x64xf32>
    %12 = arith.addf %8, %11 : vector<8x64xf32>
    %13 = arith.maximumf %9, %11 : vector<8x64xf32>
    %cst = arith.constant 2.500000e-01 : f32
    %14 = vector.broadcast %cst : f32 to vector<8x64xf32>
    %15 = arith.mulf %12, %14 : vector<8x64xf32>
    %cst_12 = arith.constant 0.000000e+00 : f32
    %16 = vector.broadcast %cst_12 : f32 to vector<14x128xf32>
    %c0_13 = arith.constant 0 : index
    %c0_14 = arith.constant 0 : index
    %17 = vector.load %arg4[%c0_13, %c0_14] : memref<14x128xf32, #tpu.memory_space<vmem>>, vector<14x128xf32>
    tpu.vector_store %arg4[%c0_13, %c0_14], %16 {strides = array<i32>} : memref<14x128xf32, #tpu.memory_space<vmem>>, vector<14x128xf32>,
    %cst_15 = arith.constant 0.000000e+00 : f32
    %18 = vector.broadcast %cst_15 : f32 to vector<14x128xf32>
    %c0_16 = arith.constant 0 : index
    %c0_17 = arith.constant 0 : index
    %19 = vector.load %arg5[%c0_16, %c0_17] : memref<14x128xf32, #tpu.memory_space<vmem>>, vector<14x128xf32>
    tpu.vector_store %arg5[%c0_16, %c0_17], %18 {strides = array<i32>} : memref<14x128xf32, #tpu.memory_space<vmem>>, vector<14x128xf32>,
    %c3_18 = arith.constant 3 : index
    %c32 = arith.constant 32 : index
    %20 = vector.load %arg4[%c3_18, %c32] : memref<14x128xf32, #tpu.memory_space<vmem>>, vector<8x64xf32>
    tpu.vector_store %arg4[%c3_18, %c32], %15 {strides = array<i32>} : memref<14x128xf32, #tpu.memory_space<vmem>>, vector<8x64xf32>,
    %c3_19 = arith.constant 3 : index
    %c32_20 = arith.constant 32 : index
    %21 = vector.load %arg5[%c3_19, %c32_20] : memref<14x128xf32, #tpu.memory_space<vmem>>, vector<8x64xf32>
    tpu.vector_store %arg5[%c3_19, %c32_20], %13 {strides = array<i32>} : memref<14x128xf32, #tpu.memory_space<vmem>>, vector<8x64xf32>,
    %22 = tpu.iota {dimensions = array<i32: 1>} : vector<8x64xi32>
    %c8_i32 = arith.constant 8 : i32
    %c0_i32 = arith.constant 0 : i32
    %23 = arith.cmpi eq, %c8_i32, %c0_i32 : i32
    %c1_i32 = arith.constant 1 : i32
    %24 = arith.select %23, %c1_i32, %c8_i32 : i32
    %25 = vector.broadcast %24 : i32 to vector<8x64xi32>
    %26 = arith.remsi %22, %25 : vector<8x64xi32>
    %c0_i32_21 = arith.constant 0 : i32
    %27 = vector.broadcast %c0_i32_21 : i32 to vector<8x64xi32>
    %28 = arith.cmpi ne, %26, %27 : vector<8x64xi32>
    %c0_i32_22 = arith.constant 0 : i32
    %29 = vector.broadcast %c0_i32_22 : i32 to vector<8x64xi32>
    %30 = arith.cmpi slt, %26, %29 : vector<8x64xi32>
    %c0_i32_23 = arith.constant 0 : i32
    %31 = arith.cmpi slt, %24, %c0_i32_23 : i32
    %32 = vector.broadcast %31 : i1 to vector<8x64xi1>
    %33 = vector.broadcast %32 : vector<8x64xi1> to vector<8x64xi1>
    %34 = arith.xori %30, %33 : vector<8x64xi1>
    %35 = arith.andi %34, %28 : vector<8x64xi1>
    %36 = vector.broadcast %24 : i32 to vector<8x64xi32>
    %37 = arith.addi %26, %36 : vector<8x64xi32>
    %38 = arith.select %35, %37, %26 : vector<8x64xi1>, vector<8x64xi32>
    %c-3_i32 = arith.constant -3 : i32
    %39 = vector.broadcast %c-3_i32 : i32 to vector<8x64xi32>
    %40 = arith.addi %38, %39 : vector<8x64xi32>
    %c0_i32_24 = arith.constant 0 : i32
    %41 = vector.broadcast %c0_i32_24 : i32 to vector<8x64xi32>
    %42 = arith.cmpi sge, %40, %41 : vector<8x64xi32>
    %c-3_i32_25 = arith.constant -3 : i32
    %43 = vector.broadcast %c-3_i32_25 : i32 to vector<8x64xi32>
    %44 = arith.addi %38, %43 : vector<8x64xi32>
    %c8_i32_26 = arith.constant 8 : i32
    %45 = vector.broadcast %c8_i32_26 : i32 to vector<8x64xi32>
    %46 = arith.cmpi slt, %44, %45 : vector<8x64xi32>
    %47 = arith.andi %42, %46 : vector<8x64xi1>
    %48 = arith.extui %47 : vector<8x64xi1> to vector<8x64xi32>
    %49 = arith.sitofp %48 : vector<8x64xi32> to vector<8x64xf32>
    %c-2_i32 = arith.constant -2 : i32
    %50 = vector.broadcast %c-2_i32 : i32 to vector<8x64xi32>
    %51 = arith.addi %38, %50 : vector<8x64xi32>
    %c0_i32_27 = arith.constant 0 : i32
    %52 = vector.broadcast %c0_i32_27 : i32 to vector<8x64xi32>
    %53 = arith.cmpi sge, %51, %52 : vector<8x64xi32>
    %c-2_i32_28 = arith.constant -2 : i32
    %54 = vector.broadcast %c-2_i32_28 : i32 to vector<8x64xi32>
    %55 = arith.addi %38, %54 : vector<8x64xi32>
    %c8_i32_29 = arith.constant 8 : i32
    %56 = vector.broadcast %c8_i32_29 : i32 to vector<8x64xi32>
    %57 = arith.cmpi slt, %55, %56 : vector<8x64xi32>
    %58 = arith.andi %53, %57 : vector<8x64xi1>
    %59 = arith.extui %58 : vector<8x64xi1> to vector<8x64xi32>
    %60 = arith.sitofp %59 : vector<8x64xi32> to vector<8x64xf32>
    %c-1_i32 = arith.constant -1 : i32
    %61 = vector.broadcast %c-1_i32 : i32 to vector<8x64xi32>
    %62 = arith.addi %38, %61 : vector<8x64xi32>
    %c0_i32_30 = arith.constant 0 : i32
    %63 = vector.broadcast %c0_i32_30 : i32 to vector<8x64xi32>
    %64 = arith.cmpi sge, %62, %63 : vector<8x64xi32>
    %c-1_i32_31 = arith.constant -1 : i32
    %65 = vector.broadcast %c-1_i32_31 : i32 to vector<8x64xi32>
    %66 = arith.addi %38, %65 : vector<8x64xi32>
    %c8_i32_32 = arith.constant 8 : i32
    %67 = vector.broadcast %c8_i32_32 : i32 to vector<8x64xi32>
    %68 = arith.cmpi slt, %66, %67 : vector<8x64xi32>
    %69 = arith.andi %64, %68 : vector<8x64xi1>
    %70 = arith.extui %69 : vector<8x64xi1> to vector<8x64xi32>
    %71 = arith.sitofp %70 : vector<8x64xi32> to vector<8x64xf32>
    %c0_i32_33 = arith.constant 0 : i32
    %72 = vector.broadcast %c0_i32_33 : i32 to vector<8x64xi32>
    %73 = arith.addi %38, %72 : vector<8x64xi32>
    %c0_i32_34 = arith.constant 0 : i32
    %74 = vector.broadcast %c0_i32_34 : i32 to vector<8x64xi32>
    %75 = arith.cmpi sge, %73, %74 : vector<8x64xi32>
    %c0_i32_35 = arith.constant 0 : i32
    %76 = vector.broadcast %c0_i32_35 : i32 to vector<8x64xi32>
    %77 = arith.addi %38, %76 : vector<8x64xi32>
    %c8_i32_36 = arith.constant 8 : i32
    %78 = vector.broadcast %c8_i32_36 : i32 to vector<8x64xi32>
    %79 = arith.cmpi slt, %77, %78 : vector<8x64xi32>
    %80 = arith.andi %75, %79 : vector<8x64xi1>
    %81 = arith.extui %80 : vector<8x64xi1> to vector<8x64xi32>
    %82 = arith.sitofp %81 : vector<8x64xi32> to vector<8x64xf32>
    %c1_i32_37 = arith.constant 1 : i32
    %83 = vector.broadcast %c1_i32_37 : i32 to vector<8x64xi32>
    %84 = arith.addi %38, %83 : vector<8x64xi32>
    %c0_i32_38 = arith.constant 0 : i32
    %85 = vector.broadcast %c0_i32_38 : i32 to vector<8x64xi32>
    %86 = arith.cmpi sge, %84, %85 : vector<8x64xi32>
    %c1_i32_39 = arith.constant 1 : i32
    %87 = vector.broadcast %c1_i32_39 : i32 to vector<8x64xi32>
    %88 = arith.addi %38, %87 : vector<8x64xi32>
    %c8_i32_40 = arith.constant 8 : i32
    %89 = vector.broadcast %c8_i32_40 : i32 to vector<8x64xi32>
    %90 = arith.cmpi slt, %88, %89 : vector<8x64xi32>
    %91 = arith.andi %86, %90 : vector<8x64xi1>
    %92 = arith.extui %91 : vector<8x64xi1> to vector<8x64xi32>
    %93 = arith.sitofp %92 : vector<8x64xi32> to vector<8x64xf32>
    %c2_i32 = arith.constant 2 : i32
    %94 = vector.broadcast %c2_i32 : i32 to vector<8x64xi32>
    %95 = arith.addi %38, %94 : vector<8x64xi32>
    %c0_i32_41 = arith.constant 0 : i32
    %96 = vector.broadcast %c0_i32_41 : i32 to vector<8x64xi32>
    %97 = arith.cmpi sge, %95, %96 : vector<8x64xi32>
    %c2_i32_42 = arith.constant 2 : i32
    %98 = vector.broadcast %c2_i32_42 : i32 to vector<8x64xi32>
    %99 = arith.addi %38, %98 : vector<8x64xi32>
    %c8_i32_43 = arith.constant 8 : i32
    %100 = vector.broadcast %c8_i32_43 : i32 to vector<8x64xi32>
    %101 = arith.cmpi slt, %99, %100 : vector<8x64xi32>
    %102 = arith.andi %97, %101 : vector<8x64xi1>
    %103 = arith.extui %102 : vector<8x64xi1> to vector<8x64xi32>
    %104 = arith.sitofp %103 : vector<8x64xi32> to vector<8x64xf32>
    %c3_i32 = arith.constant 3 : i32
    %105 = vector.broadcast %c3_i32 : i32 to vector<8x64xi32>
    %106 = arith.addi %38, %105 : vector<8x64xi32>
    %c0_i32_44 = arith.constant 0 : i32
    %107 = vector.broadcast %c0_i32_44 : i32 to vector<8x64xi32>
    %108 = arith.cmpi sge, %106, %107 : vector<8x64xi32>
    %c3_i32_45 = arith.constant 3 : i32
    %109 = vector.broadcast %c3_i32_45 : i32 to vector<8x64xi32>
    %110 = arith.addi %38, %109 : vector<8x64xi32>
    %c8_i32_46 = arith.constant 8 : i32
    %111 = vector.broadcast %c8_i32_46 : i32 to vector<8x64xi32>
    %112 = arith.cmpi slt, %110, %111 : vector<8x64xi32>
    %113 = arith.andi %108, %112 : vector<8x64xi1>
    %114 = arith.extui %113 : vector<8x64xi1> to vector<8x64xi32>
    %115 = arith.sitofp %114 : vector<8x64xi32> to vector<8x64xf32>
    %cst_47 = arith.constant 0.000000e+00 : f32
    %116 = vector.broadcast %cst_47 : f32 to vector<8x70xf32>
    %cst_48 = arith.constant 0.000000e+00 : f32
    %117 = vector.broadcast %cst_48 : f32 to vector<8x70xf32>
    %cst_49 = arith.constant 0.000000e+00 : f32
    %118 = vector.broadcast %cst_49 : f32 to vector<8x70xf32>
    %cst_50 = arith.constant 0.000000e+00 : f32
    %119 = vector.broadcast %cst_50 : f32 to vector<8x70xf32>
    %cst_51 = arith.constant 0.000000e+00 : f32
    %120 = vector.broadcast %cst_51 : f32 to vector<8x70xf32>
    %cst_52 = arith.constant 0.000000e+00 : f32
    %121 = vector.broadcast %cst_52 : f32 to vector<8x70xf32>
    %cst_53 = arith.constant 0.000000e+00 : f32
    %122 = vector.broadcast %cst_53 : f32 to vector<8x70xf32>
    %c0_54 = arith.constant 0 : index
    %c5 = arith.constant 5 : index
    %123 = vector.load %arg4[%c0_54, %c5] : memref<14x128xf32, #tpu.memory_space<vmem>>, vector<8x70xf32>
    %c0_55 = arith.constant 0 : index
    %c5_56 = arith.constant 5 : index
    %124 = vector.load %arg5[%c0_55, %c5_56] : memref<14x128xf32, #tpu.memory_space<vmem>>, vector<8x70xf32>
    %c0_57 = arith.constant 0 : index
    %125 = memref.load %arg1[%c0_57] : memref<686xf32, #tpu.memory_space<smem>>
    %c343 = arith.constant 343 : index
    %126 = memref.load %arg1[%c343] : memref<686xf32, #tpu.memory_space<smem>>
    %127 = vector.broadcast %125 : f32 to vector<8x70xf32>
    %128 = arith.mulf %127, %123 : vector<8x70xf32>
    %129 = vector.broadcast %126 : f32 to vector<8x70xf32>
    %130 = arith.mulf %129, %124 : vector<8x70xf32>
    %131 = arith.addf %128, %130 : vector<8x70xf32>
    %132 = arith.addf %116, %131 : vector<8x70xf32>
    %c1_58 = arith.constant 1 : index
    %133 = memref.load %arg1[%c1_58] : memref<686xf32, #tpu.memory_space<smem>>
    %c344 = arith.constant 344 : index
    %134 = memref.load %arg1[%c344] : memref<686xf32, #tpu.memory_space<smem>>
    %135 = vector.broadcast %133 : f32 to vector<8x70xf32>
    %136 = arith.mulf %135, %123 : vector<8x70xf32>
    %137 = vector.broadcast %134 : f32 to vector<8x70xf32>
    %138 = arith.mulf %137, %124 : vector<8x70xf32>
    %139 = arith.addf %136, %138 : vector<8x70xf32>
    %140 = arith.addf %117, %139 : vector<8x70xf32>
    %c2_59 = arith.constant 2 : index
    %141 = memref.load %arg1[%c2_59] : memref<686xf32, #tpu.memory_space<smem>>
    %c345 = arith.constant 345 : index
    %142 = memref.load %arg1[%c345] : memref<686xf32, #tpu.memory_space<smem>>
    %143 = vector.broadcast %141 : f32 to vector<8x70xf32>
    %144 = arith.mulf %143, %123 : vector<8x70xf32>
    %145 = vector.broadcast %142 : f32 to vector<8x70xf32>
    %146 = arith.mulf %145, %124 : vector<8x70xf32>
    %147 = arith.addf %144, %146 : vector<8x70xf32>
    %148 = arith.addf %118, %147 : vector<8x70xf32>
    %c3_60 = arith.constant 3 : index
    %149 = memref.load %arg1[%c3_60] : memref<686xf32, #tpu.memory_space<smem>>
    %c346 = arith.constant 346 : index
    %150 = memref.load %arg1[%c346] : memref<686xf32, #tpu.memory_space<smem>>
    %151 = vector.broadcast %149 : f32 to vector<8x70xf32>
    %152 = arith.mulf %151, %123 : vector<8x70xf32>
    %153 = vector.broadcast %150 : f32 to vector<8x70xf32>
    %154 = arith.mulf %153, %124 : vector<8x70xf32>
    %155 = arith.addf %152, %154 : vector<8x70xf32>
    %156 = arith.addf %119, %155 : vector<8x70xf32>
    %c4 = arith.constant 4 : index
    %157 = memref.load %arg1[%c4] : memref<686xf32, #tpu.memory_space<smem>>
    %c347 = arith.constant 347 : index
    %158 = memref.load %arg1[%c347] : memref<686xf32, #tpu.memory_space<smem>>
    %159 = vector.broadcast %157 : f32 to vector<8x70xf32>
    %160 = arith.mulf %159, %123 : vector<8x70xf32>
    %161 = vector.broadcast %158 : f32 to vector<8x70xf32>
    %162 = arith.mulf %161, %124 : vector<8x70xf32>
    %163 = arith.addf %160, %162 : vector<8x70xf32>
    %164 = arith.addf %120, %163 : vector<8x70xf32>
    %c5_61 = arith.constant 5 : index
    %165 = memref.load %arg1[%c5_61] : memref<686xf32, #tpu.memory_space<smem>>
    %c348 = arith.constant 348 : index
    %166 = memref.load %arg1[%c348] : memref<686xf32, #tpu.memory_space<smem>>
    %167 = vector.broadcast %165 : f32 to vector<8x70xf32>
    %168 = arith.mulf %167, %123 : vector<8x70xf32>
    %169 = vector.broadcast %166 : f32 to vector<8x70xf32>
    %170 = arith.mulf %169, %124 : vector<8x70xf32>
    %171 = arith.addf %168, %170 : vector<8x70xf32>
    %172 = arith.addf %121, %171 : vector<8x70xf32>
    %c6 = arith.constant 6 : index
    %173 = memref.load %arg1[%c6] : memref<686xf32, #tpu.memory_space<smem>>
    %c349 = arith.constant 349 : index
    %174 = memref.load %arg1[%c349] : memref<686xf32, #tpu.memory_space<smem>>
    %175 = vector.broadcast %173 : f32 to vector<8x70xf32>
    %176 = arith.mulf %175, %123 : vector<8x70xf32>
    %177 = vector.broadcast %174 : f32 to vector<8x70xf32>
    %178 = arith.mulf %177, %124 : vector<8x70xf32>
    %179 = arith.addf %176, %178 : vector<8x70xf32>
    %180 = arith.addf %122, %179 : vector<8x70xf32>
    %c0_62 = arith.constant 0 : index
    %c13 = arith.constant 13 : index
    %181 = vector.load %arg4[%c0_62, %c13] : memref<14x128xf32, #tpu.memory_space<vmem>>, vector<8x70xf32>
    %c0_63 = arith.constant 0 : index
    %c13_64 = arith.constant 13 : index
    %182 = vector.load %arg5[%c0_63, %c13_64] : memref<14x128xf32, #tpu.memory_space<vmem>>, vector<8x70xf32>
    %c7 = arith.constant 7 : index
    %183 = memref.load %arg1[%c7] : memref<686xf32, #tpu.memory_space<smem>>
    %c350 = arith.constant 350 : index
    %184 = memref.load %arg1[%c350] : memref<686xf32, #tpu.memory_space<smem>>
    %185 = vector.broadcast %183 : f32 to vector<8x70xf32>
    %186 = arith.mulf %185, %181 : vector<8x70xf32>
    %187 = vector.broadcast %184 : f32 to vector<8x70xf32>
    %188 = arith.mulf %187, %182 : vector<8x70xf32>
    %189 = arith.addf %186, %188 : vector<8x70xf32>
    %190 = arith.addf %132, %189 : vector<8x70xf32>
    %c8 = arith.constant 8 : index
    %191 = memref.load %arg1[%c8] : memref<686xf32, #tpu.memory_space<smem>>
    %c351 = arith.constant 351 : index
    %192 = memref.load %arg1[%c351] : memref<686xf32, #tpu.memory_space<smem>>
    %193 = vector.broadcast %191 : f32 to vector<8x70xf32>
    %194 = arith.mulf %193, %181 : vector<8x70xf32>
    %195 = vector.broadcast %192 : f32 to vector<8x70xf32>
    %196 = arith.mulf %195, %182 : vector<8x70xf32>
    %197 = arith.addf %194, %196 : vector<8x70xf32>
    %198 = arith.addf %140, %197 : vector<8x70xf32>
    %c9 = arith.constant 9 : index
    %199 = memref.load %arg1[%c9] : memref<686xf32, #tpu.memory_space<smem>>
    %c352 = arith.constant 352 : index
    %200 = memref.load %arg1[%c352] : memref<686xf32, #tpu.memory_space<smem>>
    %201 = vector.broadcast %199 : f32 to vector<8x70xf32>
    %202 = arith.mulf %201, %181 : vector<8x70xf32>
    %203 = vector.broadcast %200 : f32 to vector<8x70xf32>
    %204 = arith.mulf %203, %182 : vector<8x70xf32>
    %205 = arith.addf %202, %204 : vector<8x70xf32>
    %206 = arith.addf %148, %205 : vector<8x70xf32>
    %c10 = arith.constant 10 : index
    %207 = memref.load %arg1[%c10] : memref<686xf32, #tpu.memory_space<smem>>
    %c353 = arith.constant 353 : index
    %208 = memref.load %arg1[%c353] : memref<686xf32, #tpu.memory_space<smem>>
    %209 = vector.broadcast %207 : f32 to vector<8x70xf32>
    %210 = arith.mulf %209, %181 : vector<8x70xf32>
    %211 = vector.broadcast %208 : f32 to vector<8x70xf32>
    %212 = arith.mulf %211, %182 : vector<8x70xf32>
    %213 = arith.addf %210, %212 : vector<8x70xf32>
    %214 = arith.addf %156, %213 : vector<8x70xf32>
    %c11 = arith.constant 11 : index
    %215 = memref.load %arg1[%c11] : memref<686xf32, #tpu.memory_space<smem>>
    %c354 = arith.constant 354 : index
    %216 = memref.load %arg1[%c354] : memref<686xf32, #tpu.memory_space<smem>>
    %217 = vector.broadcast %215 : f32 to vector<8x70xf32>
    %218 = arith.mulf %217, %181 : vector<8x70xf32>
    %219 = vector.broadcast %216 : f32 to vector<8x70xf32>
    %220 = arith.mulf %219, %182 : vector<8x70xf32>
    %221 = arith.addf %218, %220 : vector<8x70xf32>
    %222 = arith.addf %164, %221 : vector<8x70xf32>
    %c12 = arith.constant 12 : index
    %223 = memref.load %arg1[%c12] : memref<686xf32, #tpu.memory_space<smem>>
    %c355 = arith.constant 355 : index
    %224 = memref.load %arg1[%c355] : memref<686xf32, #tpu.memory_space<smem>>
    %225 = vector.broadcast %223 : f32 to vector<8x70xf32>
    %226 = arith.mulf %225, %181 : vector<8x70xf32>
    %227 = vector.broadcast %224 : f32 to vector<8x70xf32>
    %228 = arith.mulf %227, %182 : vector<8x70xf32>
    %229 = arith.addf %226, %228 : vector<8x70xf32>
    %230 = arith.addf %172, %229 : vector<8x70xf32>
    %c13_65 = arith.constant 13 : index
    %231 = memref.load %arg1[%c13_65] : memref<686xf32, #tpu.memory_space<smem>>
    %c356 = arith.constant 356 : index
    %232 = memref.load %arg1[%c356] : memref<686xf32, #tpu.memory_space<smem>>
    %233 = vector.broadcast %231 : f32 to vector<8x70xf32>
    %234 = arith.mulf %233, %181 : vector<8x70xf32>
    %235 = vector.broadcast %232 : f32 to vector<8x70xf32>
    %236 = arith.mulf %235, %182 : vector<8x70xf32>
    %237 = arith.addf %234, %236 : vector<8x70xf32>
    %238 = arith.addf %180, %237 : vector<8x70xf32>
    %c0_66 = arith.constant 0 : index
    %c21 = arith.constant 21 : index
    %239 = vector.load %arg4[%c0_66, %c21] : memref<14x128xf32, #tpu.memory_space<vmem>>, vector<8x70xf32>
    %c0_67 = arith.constant 0 : index
    %c21_68 = arith.constant 21 : index
    %240 = vector.load %arg5[%c0_67, %c21_68] : memref<14x128xf32, #tpu.memory_space<vmem>>, vector<8x70xf32>
    %c14 = arith.constant 14 : index
    %241 = memref.load %arg1[%c14] : memref<686xf32, #tpu.memory_space<smem>>
    %c357 = arith.constant 357 : index
    %242 = memref.load %arg1[%c357] : memref<686xf32, #tpu.memory_space<smem>>
    %243 = vector.broadcast %241 : f32 to vector<8x70xf32>
    %244 = arith.mulf %243, %239 : vector<8x70xf32>
    %245 = vector.broadcast %242 : f32 to vector<8x70xf32>
    %246 = arith.mulf %245, %240 : vector<8x70xf32>
    %247 = arith.addf %244, %246 : vector<8x70xf32>
    %248 = arith.addf %190, %247 : vector<8x70xf32>
    %c15 = arith.constant 15 : index
    %249 = memref.load %arg1[%c15] : memref<686xf32, #tpu.memory_space<smem>>
    %c358 = arith.constant 358 : index
    %250 = memref.load %arg1[%c358] : memref<686xf32, #tpu.memory_space<smem>>
    %251 = vector.broadcast %249 : f32 to vector<8x70xf32>
    %252 = arith.mulf %251, %239 : vector<8x70xf32>
    %253 = vector.broadcast %250 : f32 to vector<8x70xf32>
    %254 = arith.mulf %253, %240 : vector<8x70xf32>
    %255 = arith.addf %252, %254 : vector<8x70xf32>
    %256 = arith.addf %198, %255 : vector<8x70xf32>
    %c16 = arith.constant 16 : index
    %257 = memref.load %arg1[%c16] : memref<686xf32, #tpu.memory_space<smem>>
    %c359 = arith.constant 359 : index
    %258 = memref.load %arg1[%c359] : memref<686xf32, #tpu.memory_space<smem>>
    %259 = vector.broadcast %257 : f32 to vector<8x70xf32>
    %260 = arith.mulf %259, %239 : vector<8x70xf32>
    %261 = vector.broadcast %258 : f32 to vector<8x70xf32>
    %262 = arith.mulf %261, %240 : vector<8x70xf32>
    %263 = arith.addf %260, %262 : vector<8x70xf32>
    %264 = arith.addf %206, %263 : vector<8x70xf32>
    %c17 = arith.constant 17 : index
    %265 = memref.load %arg1[%c17] : memref<686xf32, #tpu.memory_space<smem>>
    %c360 = arith.constant 360 : index
    %266 = memref.load %arg1[%c360] : memref<686xf32, #tpu.memory_space<smem>>
    %267 = vector.broadcast %265 : f32 to vector<8x70xf32>
    %268 = arith.mulf %267, %239 : vector<8x70xf32>
    %269 = vector.broadcast %266 : f32 to vector<8x70xf32>
    %270 = arith.mulf %269, %240 : vector<8x70xf32>
    %271 = arith.addf %268, %270 : vector<8x70xf32>
    %272 = arith.addf %214, %271 : vector<8x70xf32>
    %c18 = arith.constant 18 : index
    %273 = memref.load %arg1[%c18] : memref<686xf32, #tpu.memory_space<smem>>
    %c361 = arith.constant 361 : index
    %274 = memref.load %arg1[%c361] : memref<686xf32, #tpu.memory_space<smem>>
    %275 = vector.broadcast %273 : f32 to vector<8x70xf32>
    %276 = arith.mulf %275, %239 : vector<8x70xf32>
    %277 = vector.broadcast %274 : f32 to vector<8x70xf32>
    %278 = arith.mulf %277, %240 : vector<8x70xf32>
    %279 = arith.addf %276, %278 : vector<8x70xf32>
    %280 = arith.addf %222, %279 : vector<8x70xf32>
    %c19 = arith.constant 19 : index
    %281 = memref.load %arg1[%c19] : memref<686xf32, #tpu.memory_space<smem>>
    %c362 = arith.constant 362 : index
    %282 = memref.load %arg1[%c362] : memref<686xf32, #tpu.memory_space<smem>>
    %283 = vector.broadcast %281 : f32 to vector<8x70xf32>
    %284 = arith.mulf %283, %239 : vector<8x70xf32>
    %285 = vector.broadcast %282 : f32 to vector<8x70xf32>
    %286 = arith.mulf %285, %240 : vector<8x70xf32>
    %287 = arith.addf %284, %286 : vector<8x70xf32>
    %288 = arith.addf %230, %287 : vector<8x70xf32>
    %c20 = arith.constant 20 : index
    %289 = memref.load %arg1[%c20] : memref<686xf32, #tpu.memory_space<smem>>
    %c363 = arith.constant 363 : index
    %290 = memref.load %arg1[%c363] : memref<686xf32, #tpu.memory_space<smem>>
    %291 = vector.broadcast %289 : f32 to vector<8x70xf32>
    %292 = arith.mulf %291, %239 : vector<8x70xf32>
    %293 = vector.broadcast %290 : f32 to vector<8x70xf32>
    %294 = arith.mulf %293, %240 : vector<8x70xf32>
    %295 = arith.addf %292, %294 : vector<8x70xf32>
    %296 = arith.addf %238, %295 : vector<8x70xf32>
    %c0_69 = arith.constant 0 : index
    %c29 = arith.constant 29 : index
    %297 = vector.load %arg4[%c0_69, %c29] : memref<14x128xf32, #tpu.memory_space<vmem>>, vector<8x70xf32>
    %c0_70 = arith.constant 0 : index
    %c29_71 = arith.constant 29 : index
    %298 = vector.load %arg5[%c0_70, %c29_71] : memref<14x128xf32, #tpu.memory_space<vmem>>, vector<8x70xf32>
    %c21_72 = arith.constant 21 : index
    %299 = memref.load %arg1[%c21_72] : memref<686xf32, #tpu.memory_space<smem>>
    %c364 = arith.constant 364 : index
    %300 = memref.load %arg1[%c364] : memref<686xf32, #tpu.memory_space<smem>>
    %301 = vector.broadcast %299 : f32 to vector<8x70xf32>
    %302 = arith.mulf %301, %297 : vector<8x70xf32>
    %303 = vector.broadcast %300 : f32 to vector<8x70xf32>
    %304 = arith.mulf %303, %298 : vector<8x70xf32>
    %305 = arith.addf %302, %304 : vector<8x70xf32>
    %306 = arith.addf %248, %305 : vector<8x70xf32>
    %c22 = arith.constant 22 : index
    %307 = memref.load %arg1[%c22] : memref<686xf32, #tpu.memory_space<smem>>
    %c365 = arith.constant 365 : index
    %308 = memref.load %arg1[%c365] : memref<686xf32, #tpu.memory_space<smem>>
    %309 = vector.broadcast %307 : f32 to vector<8x70xf32>
    %310 = arith.mulf %309, %297 : vector<8x70xf32>
    %311 = vector.broadcast %308 : f32 to vector<8x70xf32>
    %312 = arith.mulf %311, %298 : vector<8x70xf32>
    %313 = arith.addf %310, %312 : vector<8x70xf32>
    %314 = arith.addf %256, %313 : vector<8x70xf32>
    %c23 = arith.constant 23 : index
    %315 = memref.load %arg1[%c23] : memref<686xf32, #tpu.memory_space<smem>>
    %c366 = arith.constant 366 : index
    %316 = memref.load %arg1[%c366] : memref<686xf32, #tpu.memory_space<smem>>
    %317 = vector.broadcast %315 : f32 to vector<8x70xf32>
    %318 = arith.mulf %317, %297 : vector<8x70xf32>
    %319 = vector.broadcast %316 : f32 to vector<8x70xf32>
    %320 = arith.mulf %319, %298 : vector<8x70xf32>
    %321 = arith.addf %318, %320 : vector<8x70xf32>
    %322 = arith.addf %264, %321 : vector<8x70xf32>
    %c24 = arith.constant 24 : index
    %323 = memref.load %arg1[%c24] : memref<686xf32, #tpu.memory_space<smem>>
    %c367 = arith.constant 367 : index
    %324 = memref.load %arg1[%c367] : memref<686xf32, #tpu.memory_space<smem>>
    %325 = vector.broadcast %323 : f32 to vector<8x70xf32>
    %326 = arith.mulf %325, %297 : vector<8x70xf32>
    %327 = vector.broadcast %324 : f32 to vector<8x70xf32>
    %328 = arith.mulf %327, %298 : vector<8x70xf32>
    %329 = arith.addf %326, %328 : vector<8x70xf32>
    %330 = arith.addf %272, %329 : vector<8x70xf32>
    %c25 = arith.constant 25 : index
    %331 = memref.load %arg1[%c25] : memref<686xf32, #tpu.memory_space<smem>>
    %c368 = arith.constant 368 : index
    %332 = memref.load %arg1[%c368] : memref<686xf32, #tpu.memory_space<smem>>
    %333 = vector.broadcast %331 : f32 to vector<8x70xf32>
    %334 = arith.mulf %333, %297 : vector<8x70xf32>
    %335 = vector.broadcast %332 : f32 to vector<8x70xf32>
    %336 = arith.mulf %335, %298 : vector<8x70xf32>
    %337 = arith.addf %334, %336 : vector<8x70xf32>
    %338 = arith.addf %280, %337 : vector<8x70xf32>
    %c26 = arith.constant 26 : index
    %339 = memref.load %arg1[%c26] : memref<686xf32, #tpu.memory_space<smem>>
    %c369 = arith.constant 369 : index
    %340 = memref.load %arg1[%c369] : memref<686xf32, #tpu.memory_space<smem>>
    %341 = vector.broadcast %339 : f32 to vector<8x70xf32>
    %342 = arith.mulf %341, %297 : vector<8x70xf32>
    %343 = vector.broadcast %340 : f32 to vector<8x70xf32>
    %344 = arith.mulf %343, %298 : vector<8x70xf32>
    %345 = arith.addf %342, %344 : vector<8x70xf32>
    %346 = arith.addf %288, %345 : vector<8x70xf32>
    %c27 = arith.constant 27 : index
    %347 = memref.load %arg1[%c27] : memref<686xf32, #tpu.memory_space<smem>>
    %c370 = arith.constant 370 : index
    %348 = memref.load %arg1[%c370] : memref<686xf32, #tpu.memory_space<smem>>
    %349 = vector.broadcast %347 : f32 to vector<8x70xf32>
    %350 = arith.mulf %349, %297 : vector<8x70xf32>
    %351 = vector.broadcast %348 : f32 to vector<8x70xf32>
    %352 = arith.mulf %351, %298 : vector<8x70xf32>
    %353 = arith.addf %350, %352 : vector<8x70xf32>
    %354 = arith.addf %296, %353 : vector<8x70xf32>
    %c0_73 = arith.constant 0 : index
    %c37 = arith.constant 37 : index
    %355 = vector.load %arg4[%c0_73, %c37] : memref<14x128xf32, #tpu.memory_space<vmem>>, vector<8x70xf32>
    %c0_74 = arith.constant 0 : index
    %c37_75 = arith.constant 37 : index
    %356 = vector.load %arg5[%c0_74, %c37_75] : memref<14x128xf32, #tpu.memory_space<vmem>>, vector<8x70xf32>
    %c28 = arith.constant 28 : index
    %357 = memref.load %arg1[%c28] : memref<686xf32, #tpu.memory_space<smem>>
    %c371 = arith.constant 371 : index
    %358 = memref.load %arg1[%c371] : memref<686xf32, #tpu.memory_space<smem>>
    %359 = vector.broadcast %357 : f32 to vector<8x70xf32>
    %360 = arith.mulf %359, %355 : vector<8x70xf32>
    %361 = vector.broadcast %358 : f32 to vector<8x70xf32>
    %362 = arith.mulf %361, %356 : vector<8x70xf32>
    %363 = arith.addf %360, %362 : vector<8x70xf32>
    %364 = arith.addf %306, %363 : vector<8x70xf32>
    %c29_76 = arith.constant 29 : index
    %365 = memref.load %arg1[%c29_76] : memref<686xf32, #tpu.memory_space<smem>>
    %c372 = arith.constant 372 : index
    %366 = memref.load %arg1[%c372] : memref<686xf32, #tpu.memory_space<smem>>
    %367 = vector.broadcast %365 : f32 to vector<8x70xf32>
    %368 = arith.mulf %367, %355 : vector<8x70xf32>
    %369 = vector.broadcast %366 : f32 to vector<8x70xf32>
    %370 = arith.mulf %369, %356 : vector<8x70xf32>
    %371 = arith.addf %368, %370 : vector<8x70xf32>
    %372 = arith.addf %314, %371 : vector<8x70xf32>
    %c30 = arith.constant 30 : index
    %373 = memref.load %arg1[%c30] : memref<686xf32, #tpu.memory_space<smem>>
    %c373 = arith.constant 373 : index
    %374 = memref.load %arg1[%c373] : memref<686xf32, #tpu.memory_space<smem>>
    %375 = vector.broadcast %373 : f32 to vector<8x70xf32>
    %376 = arith.mulf %375, %355 : vector<8x70xf32>
    %377 = vector.broadcast %374 : f32 to vector<8x70xf32>
    %378 = arith.mulf %377, %356 : vector<8x70xf32>
    %379 = arith.addf %376, %378 : vector<8x70xf32>
    %380 = arith.addf %322, %379 : vector<8x70xf32>
    %c31 = arith.constant 31 : index
    %381 = memref.load %arg1[%c31] : memref<686xf32, #tpu.memory_space<smem>>
    %c374 = arith.constant 374 : index
    %382 = memref.load %arg1[%c374] : memref<686xf32, #tpu.memory_space<smem>>
    %383 = vector.broadcast %381 : f32 to vector<8x70xf32>
    %384 = arith.mulf %383, %355 : vector<8x70xf32>
    %385 = vector.broadcast %382 : f32 to vector<8x70xf32>
    %386 = arith.mulf %385, %356 : vector<8x70xf32>
    %387 = arith.addf %384, %386 : vector<8x70xf32>
    %388 = arith.addf %330, %387 : vector<8x70xf32>
    %c32_77 = arith.constant 32 : index
    %389 = memref.load %arg1[%c32_77] : memref<686xf32, #tpu.memory_space<smem>>
    %c375 = arith.constant 375 : index
    %390 = memref.load %arg1[%c375] : memref<686xf32, #tpu.memory_space<smem>>
    %391 = vector.broadcast %389 : f32 to vector<8x70xf32>
    %392 = arith.mulf %391, %355 : vector<8x70xf32>
    %393 = vector.broadcast %390 : f32 to vector<8x70xf32>
    %394 = arith.mulf %393, %356 : vector<8x70xf32>
    %395 = arith.addf %392, %394 : vector<8x70xf32>
    %396 = arith.addf %338, %395 : vector<8x70xf32>
    %c33 = arith.constant 33 : index
    %397 = memref.load %arg1[%c33] : memref<686xf32, #tpu.memory_space<smem>>
    %c376 = arith.constant 376 : index
    %398 = memref.load %arg1[%c376] : memref<686xf32, #tpu.memory_space<smem>>
    %399 = vector.broadcast %397 : f32 to vector<8x70xf32>
    %400 = arith.mulf %399, %355 : vector<8x70xf32>
    %401 = vector.broadcast %398 : f32 to vector<8x70xf32>
    %402 = arith.mulf %401, %356 : vector<8x70xf32>
    %403 = arith.addf %400, %402 : vector<8x70xf32>
    %404 = arith.addf %346, %403 : vector<8x70xf32>
    %c34 = arith.constant 34 : index
    %405 = memref.load %arg1[%c34] : memref<686xf32, #tpu.memory_space<smem>>
    %c377 = arith.constant 377 : index
    %406 = memref.load %arg1[%c377] : memref<686xf32, #tpu.memory_space<smem>>
    %407 = vector.broadcast %405 : f32 to vector<8x70xf32>
    %408 = arith.mulf %407, %355 : vector<8x70xf32>
    %409 = vector.broadcast %406 : f32 to vector<8x70xf32>
    %410 = arith.mulf %409, %356 : vector<8x70xf32>
    %411 = arith.addf %408, %410 : vector<8x70xf32>
    %412 = arith.addf %354, %411 : vector<8x70xf32>
    %c0_78 = arith.constant 0 : index
    %c45 = arith.constant 45 : index
    %413 = vector.load %arg4[%c0_78, %c45] : memref<14x128xf32, #tpu.memory_space<vmem>>, vector<8x70xf32>
    %c0_79 = arith.constant 0 : index
    %c45_80 = arith.constant 45 : index
    %414 = vector.load %arg5[%c0_79, %c45_80] : memref<14x128xf32, #tpu.memory_space<vmem>>, vector<8x70xf32>
    %c35 = arith.constant 35 : index
    %415 = memref.load %arg1[%c35] : memref<686xf32, #tpu.memory_space<smem>>
    %c378 = arith.constant 378 : index
    %416 = memref.load %arg1[%c378] : memref<686xf32, #tpu.memory_space<smem>>
    %417 = vector.broadcast %415 : f32 to vector<8x70xf32>
    %418 = arith.mulf %417, %413 : vector<8x70xf32>
    %419 = vector.broadcast %416 : f32 to vector<8x70xf32>
    %420 = arith.mulf %419, %414 : vector<8x70xf32>
    %421 = arith.addf %418, %420 : vector<8x70xf32>
    %422 = arith.addf %364, %421 : vector<8x70xf32>
    %c36 = arith.constant 36 : index
    %423 = memref.load %arg1[%c36] : memref<686xf32, #tpu.memory_space<smem>>
    %c379 = arith.constant 379 : index
    %424 = memref.load %arg1[%c379] : memref<686xf32, #tpu.memory_space<smem>>
    %425 = vector.broadcast %423 : f32 to vector<8x70xf32>
    %426 = arith.mulf %425, %413 : vector<8x70xf32>
    %427 = vector.broadcast %424 : f32 to vector<8x70xf32>
    %428 = arith.mulf %427, %414 : vector<8x70xf32>
    %429 = arith.addf %426, %428 : vector<8x70xf32>
    %430 = arith.addf %372, %429 : vector<8x70xf32>
    %c37_81 = arith.constant 37 : index
    %431 = memref.load %arg1[%c37_81] : memref<686xf32, #tpu.memory_space<smem>>
    %c380 = arith.constant 380 : index
    %432 = memref.load %arg1[%c380] : memref<686xf32, #tpu.memory_space<smem>>
    %433 = vector.broadcast %431 : f32 to vector<8x70xf32>
    %434 = arith.mulf %433, %413 : vector<8x70xf32>
    %435 = vector.broadcast %432 : f32 to vector<8x70xf32>
    %436 = arith.mulf %435, %414 : vector<8x70xf32>
    %437 = arith.addf %434, %436 : vector<8x70xf32>
    %438 = arith.addf %380, %437 : vector<8x70xf32>
    %c38 = arith.constant 38 : index
    %439 = memref.load %arg1[%c38] : memref<686xf32, #tpu.memory_space<smem>>
    %c381 = arith.constant 381 : index
    %440 = memref.load %arg1[%c381] : memref<686xf32, #tpu.memory_space<smem>>
    %441 = vector.broadcast %439 : f32 to vector<8x70xf32>
    %442 = arith.mulf %441, %413 : vector<8x70xf32>
    %443 = vector.broadcast %440 : f32 to vector<8x70xf32>
    %444 = arith.mulf %443, %414 : vector<8x70xf32>
    %445 = arith.addf %442, %444 : vector<8x70xf32>
    %446 = arith.addf %388, %445 : vector<8x70xf32>
    %c39 = arith.constant 39 : index
    %447 = memref.load %arg1[%c39] : memref<686xf32, #tpu.memory_space<smem>>
    %c382 = arith.constant 382 : index
    %448 = memref.load %arg1[%c382] : memref<686xf32, #tpu.memory_space<smem>>
    %449 = vector.broadcast %447 : f32 to vector<8x70xf32>
    %450 = arith.mulf %449, %413 : vector<8x70xf32>
    %451 = vector.broadcast %448 : f32 to vector<8x70xf32>
    %452 = arith.mulf %451, %414 : vector<8x70xf32>
    %453 = arith.addf %450, %452 : vector<8x70xf32>
    %454 = arith.addf %396, %453 : vector<8x70xf32>
    %c40 = arith.constant 40 : index
    %455 = memref.load %arg1[%c40] : memref<686xf32, #tpu.memory_space<smem>>
    %c383 = arith.constant 383 : index
    %456 = memref.load %arg1[%c383] : memref<686xf32, #tpu.memory_space<smem>>
    %457 = vector.broadcast %455 : f32 to vector<8x70xf32>
    %458 = arith.mulf %457, %413 : vector<8x70xf32>
    %459 = vector.broadcast %456 : f32 to vector<8x70xf32>
    %460 = arith.mulf %459, %414 : vector<8x70xf32>
    %461 = arith.addf %458, %460 : vector<8x70xf32>
    %462 = arith.addf %404, %461 : vector<8x70xf32>
    %c41 = arith.constant 41 : index
    %463 = memref.load %arg1[%c41] : memref<686xf32, #tpu.memory_space<smem>>
    %c384 = arith.constant 384 : index
    %464 = memref.load %arg1[%c384] : memref<686xf32, #tpu.memory_space<smem>>
    %465 = vector.broadcast %463 : f32 to vector<8x70xf32>
    %466 = arith.mulf %465, %413 : vector<8x70xf32>
    %467 = vector.broadcast %464 : f32 to vector<8x70xf32>
    %468 = arith.mulf %467, %414 : vector<8x70xf32>
    %469 = arith.addf %466, %468 : vector<8x70xf32>
    %470 = arith.addf %412, %469 : vector<8x70xf32>
    %c0_82 = arith.constant 0 : index
    %c53 = arith.constant 53 : index
    %471 = vector.load %arg4[%c0_82, %c53] : memref<14x128xf32, #tpu.memory_space<vmem>>, vector<8x70xf32>
    %c0_83 = arith.constant 0 : index
    %c53_84 = arith.constant 53 : index
    %472 = vector.load %arg5[%c0_83, %c53_84] : memref<14x128xf32, #tpu.memory_space<vmem>>, vector<8x70xf32>
    %c42 = arith.constant 42 : index
    %473 = memref.load %arg1[%c42] : memref<686xf32, #tpu.memory_space<smem>>
    %c385 = arith.constant 385 : index
    %474 = memref.load %arg1[%c385] : memref<686xf32, #tpu.memory_space<smem>>
    %475 = vector.broadcast %473 : f32 to vector<8x70xf32>
    %476 = arith.mulf %475, %471 : vector<8x70xf32>
    %477 = vector.broadcast %474 : f32 to vector<8x70xf32>
    %478 = arith.mulf %477, %472 : vector<8x70xf32>
    %479 = arith.addf %476, %478 : vector<8x70xf32>
    %480 = arith.addf %422, %479 : vector<8x70xf32>
    %c43 = arith.constant 43 : index
    %481 = memref.load %arg1[%c43] : memref<686xf32, #tpu.memory_space<smem>>
    %c386 = arith.constant 386 : index
    %482 = memref.load %arg1[%c386] : memref<686xf32, #tpu.memory_space<smem>>
    %483 = vector.broadcast %481 : f32 to vector<8x70xf32>
    %484 = arith.mulf %483, %471 : vector<8x70xf32>
    %485 = vector.broadcast %482 : f32 to vector<8x70xf32>
    %486 = arith.mulf %485, %472 : vector<8x70xf32>
    %487 = arith.addf %484, %486 : vector<8x70xf32>
    %488 = arith.addf %430, %487 : vector<8x70xf32>
    %c44 = arith.constant 44 : index
    %489 = memref.load %arg1[%c44] : memref<686xf32, #tpu.memory_space<smem>>
    %c387 = arith.constant 387 : index
    %490 = memref.load %arg1[%c387] : memref<686xf32, #tpu.memory_space<smem>>
    %491 = vector.broadcast %489 : f32 to vector<8x70xf32>
    %492 = arith.mulf %491, %471 : vector<8x70xf32>
    %493 = vector.broadcast %490 : f32 to vector<8x70xf32>
    %494 = arith.mulf %493, %472 : vector<8x70xf32>
    %495 = arith.addf %492, %494 : vector<8x70xf32>
    %496 = arith.addf %438, %495 : vector<8x70xf32>
    %c45_85 = arith.constant 45 : index
    %497 = memref.load %arg1[%c45_85] : memref<686xf32, #tpu.memory_space<smem>>
    %c388 = arith.constant 388 : index
    %498 = memref.load %arg1[%c388] : memref<686xf32, #tpu.memory_space<smem>>
    %499 = vector.broadcast %497 : f32 to vector<8x70xf32>
    %500 = arith.mulf %499, %471 : vector<8x70xf32>
    %501 = vector.broadcast %498 : f32 to vector<8x70xf32>
    %502 = arith.mulf %501, %472 : vector<8x70xf32>
    %503 = arith.addf %500, %502 : vector<8x70xf32>
    %504 = arith.addf %446, %503 : vector<8x70xf32>
    %c46 = arith.constant 46 : index
    %505 = memref.load %arg1[%c46] : memref<686xf32, #tpu.memory_space<smem>>
    %c389 = arith.constant 389 : index
    %506 = memref.load %arg1[%c389] : memref<686xf32, #tpu.memory_space<smem>>
    %507 = vector.broadcast %505 : f32 to vector<8x70xf32>
    %508 = arith.mulf %507, %471 : vector<8x70xf32>
    %509 = vector.broadcast %506 : f32 to vector<8x70xf32>
    %510 = arith.mulf %509, %472 : vector<8x70xf32>
    %511 = arith.addf %508, %510 : vector<8x70xf32>
    %512 = arith.addf %454, %511 : vector<8x70xf32>
    %c47 = arith.constant 47 : index
    %513 = memref.load %arg1[%c47] : memref<686xf32, #tpu.memory_space<smem>>
    %c390 = arith.constant 390 : index
    %514 = memref.load %arg1[%c390] : memref<686xf32, #tpu.memory_space<smem>>
    %515 = vector.broadcast %513 : f32 to vector<8x70xf32>
    %516 = arith.mulf %515, %471 : vector<8x70xf32>
    %517 = vector.broadcast %514 : f32 to vector<8x70xf32>
    %518 = arith.mulf %517, %472 : vector<8x70xf32>
    %519 = arith.addf %516, %518 : vector<8x70xf32>
    %520 = arith.addf %462, %519 : vector<8x70xf32>
    %c48 = arith.constant 48 : index
    %521 = memref.load %arg1[%c48] : memref<686xf32, #tpu.memory_space<smem>>
    %c391 = arith.constant 391 : index
    %522 = memref.load %arg1[%c391] : memref<686xf32, #tpu.memory_space<smem>>
    %523 = vector.broadcast %521 : f32 to vector<8x70xf32>
    %524 = arith.mulf %523, %471 : vector<8x70xf32>
    %525 = vector.broadcast %522 : f32 to vector<8x70xf32>
    %526 = arith.mulf %525, %472 : vector<8x70xf32>
    %527 = arith.addf %524, %526 : vector<8x70xf32>
    %528 = arith.addf %470, %527 : vector<8x70xf32>
    %c1_86 = arith.constant 1 : index
    %c5_87 = arith.constant 5 : index
    %529 = vector.load %arg4[%c1_86, %c5_87] : memref<14x128xf32, #tpu.memory_space<vmem>>, vector<8x70xf32>
    %c1_88 = arith.constant 1 : index
    %c5_89 = arith.constant 5 : index
    %530 = vector.load %arg5[%c1_88, %c5_89] : memref<14x128xf32, #tpu.memory_space<vmem>>, vector<8x70xf32>
    %c49 = arith.constant 49 : index
    %531 = memref.load %arg1[%c49] : memref<686xf32, #tpu.memory_space<smem>>
    %c392 = arith.constant 392 : index
    %532 = memref.load %arg1[%c392] : memref<686xf32, #tpu.memory_space<smem>>
    %533 = vector.broadcast %531 : f32 to vector<8x70xf32>
    %534 = arith.mulf %533, %529 : vector<8x70xf32>
    %535 = vector.broadcast %532 : f32 to vector<8x70xf32>
    %536 = arith.mulf %535, %530 : vector<8x70xf32>
    %537 = arith.addf %534, %536 : vector<8x70xf32>
    %538 = arith.addf %480, %537 : vector<8x70xf32>
    %c50 = arith.constant 50 : index
    %539 = memref.load %arg1[%c50] : memref<686xf32, #tpu.memory_space<smem>>
    %c393 = arith.constant 393 : index
    %540 = memref.load %arg1[%c393] : memref<686xf32, #tpu.memory_space<smem>>
    %541 = vector.broadcast %539 : f32 to vector<8x70xf32>
    %542 = arith.mulf %541, %529 : vector<8x70xf32>
    %543 = vector.broadcast %540 : f32 to vector<8x70xf32>
    %544 = arith.mulf %543, %530 : vector<8x70xf32>
    %545 = arith.addf %542, %544 : vector<8x70xf32>
    %546 = arith.addf %488, %545 : vector<8x70xf32>
    %c51 = arith.constant 51 : index
    %547 = memref.load %arg1[%c51] : memref<686xf32, #tpu.memory_space<smem>>
    %c394 = arith.constant 394 : index
    %548 = memref.load %arg1[%c394] : memref<686xf32, #tpu.memory_space<smem>>
    %549 = vector.broadcast %547 : f32 to vector<8x70xf32>
    %550 = arith.mulf %549, %529 : vector<8x70xf32>
    %551 = vector.broadcast %548 : f32 to vector<8x70xf32>
    %552 = arith.mulf %551, %530 : vector<8x70xf32>
    %553 = arith.addf %550, %552 : vector<8x70xf32>
    %554 = arith.addf %496, %553 : vector<8x70xf32>
    %c52 = arith.constant 52 : index
    %555 = memref.load %arg1[%c52] : memref<686xf32, #tpu.memory_space<smem>>
    %c395 = arith.constant 395 : index
    %556 = memref.load %arg1[%c395] : memref<686xf32, #tpu.memory_space<smem>>
    %557 = vector.broadcast %555 : f32 to vector<8x70xf32>
    %558 = arith.mulf %557, %529 : vector<8x70xf32>
    %559 = vector.broadcast %556 : f32 to vector<8x70xf32>
    %560 = arith.mulf %559, %530 : vector<8x70xf32>
    %561 = arith.addf %558, %560 : vector<8x70xf32>
    %562 = arith.addf %504, %561 : vector<8x70xf32>
    %c53_90 = arith.constant 53 : index
    %563 = memref.load %arg1[%c53_90] : memref<686xf32, #tpu.memory_space<smem>>
    %c396 = arith.constant 396 : index
    %564 = memref.load %arg1[%c396] : memref<686xf32, #tpu.memory_space<smem>>
    %565 = vector.broadcast %563 : f32 to vector<8x70xf32>
    %566 = arith.mulf %565, %529 : vector<8x70xf32>
    %567 = vector.broadcast %564 : f32 to vector<8x70xf32>
    %568 = arith.mulf %567, %530 : vector<8x70xf32>
    %569 = arith.addf %566, %568 : vector<8x70xf32>
    %570 = arith.addf %512, %569 : vector<8x70xf32>
    %c54 = arith.constant 54 : index
    %571 = memref.load %arg1[%c54] : memref<686xf32, #tpu.memory_space<smem>>
    %c397 = arith.constant 397 : index
    %572 = memref.load %arg1[%c397] : memref<686xf32, #tpu.memory_space<smem>>
    %573 = vector.broadcast %571 : f32 to vector<8x70xf32>
    %574 = arith.mulf %573, %529 : vector<8x70xf32>
    %575 = vector.broadcast %572 : f32 to vector<8x70xf32>
    %576 = arith.mulf %575, %530 : vector<8x70xf32>
    %577 = arith.addf %574, %576 : vector<8x70xf32>
    %578 = arith.addf %520, %577 : vector<8x70xf32>
    %c55 = arith.constant 55 : index
    %579 = memref.load %arg1[%c55] : memref<686xf32, #tpu.memory_space<smem>>
    %c398 = arith.constant 398 : index
    %580 = memref.load %arg1[%c398] : memref<686xf32, #tpu.memory_space<smem>>
    %581 = vector.broadcast %579 : f32 to vector<8x70xf32>
    %582 = arith.mulf %581, %529 : vector<8x70xf32>
    %583 = vector.broadcast %580 : f32 to vector<8x70xf32>
    %584 = arith.mulf %583, %530 : vector<8x70xf32>
    %585 = arith.addf %582, %584 : vector<8x70xf32>
    %586 = arith.addf %528, %585 : vector<8x70xf32>
    %c1_91 = arith.constant 1 : index
    %c13_92 = arith.constant 13 : index
    %587 = vector.load %arg4[%c1_91, %c13_92] : memref<14x128xf32, #tpu.memory_space<vmem>>, vector<8x70xf32>
    %c1_93 = arith.constant 1 : index
    %c13_94 = arith.constant 13 : index
    %588 = vector.load %arg5[%c1_93, %c13_94] : memref<14x128xf32, #tpu.memory_space<vmem>>, vector<8x70xf32>
    %c56 = arith.constant 56 : index
    %589 = memref.load %arg1[%c56] : memref<686xf32, #tpu.memory_space<smem>>
    %c399 = arith.constant 399 : index
    %590 = memref.load %arg1[%c399] : memref<686xf32, #tpu.memory_space<smem>>
    %591 = vector.broadcast %589 : f32 to vector<8x70xf32>
    %592 = arith.mulf %591, %587 : vector<8x70xf32>
    %593 = vector.broadcast %590 : f32 to vector<8x70xf32>
    %594 = arith.mulf %593, %588 : vector<8x70xf32>
    %595 = arith.addf %592, %594 : vector<8x70xf32>
    %596 = arith.addf %538, %595 : vector<8x70xf32>
    %c57 = arith.constant 57 : index
    %597 = memref.load %arg1[%c57] : memref<686xf32, #tpu.memory_space<smem>>
    %c400 = arith.constant 400 : index
    %598 = memref.load %arg1[%c400] : memref<686xf32, #tpu.memory_space<smem>>
    %599 = vector.broadcast %597 : f32 to vector<8x70xf32>
    %600 = arith.mulf %599, %587 : vector<8x70xf32>
    %601 = vector.broadcast %598 : f32 to vector<8x70xf32>
    %602 = arith.mulf %601, %588 : vector<8x70xf32>
    %603 = arith.addf %600, %602 : vector<8x70xf32>
    %604 = arith.addf %546, %603 : vector<8x70xf32>
    %c58 = arith.constant 58 : index
    %605 = memref.load %arg1[%c58] : memref<686xf32, #tpu.memory_space<smem>>
    %c401 = arith.constant 401 : index
    %606 = memref.load %arg1[%c401] : memref<686xf32, #tpu.memory_space<smem>>
    %607 = vector.broadcast %605 : f32 to vector<8x70xf32>
    %608 = arith.mulf %607, %587 : vector<8x70xf32>
    %609 = vector.broadcast %606 : f32 to vector<8x70xf32>
    %610 = arith.mulf %609, %588 : vector<8x70xf32>
    %611 = arith.addf %608, %610 : vector<8x70xf32>
    %612 = arith.addf %554, %611 : vector<8x70xf32>
    %c59 = arith.constant 59 : index
    %613 = memref.load %arg1[%c59] : memref<686xf32, #tpu.memory_space<smem>>
    %c402 = arith.constant 402 : index
    %614 = memref.load %arg1[%c402] : memref<686xf32, #tpu.memory_space<smem>>
    %615 = vector.broadcast %613 : f32 to vector<8x70xf32>
    %616 = arith.mulf %615, %587 : vector<8x70xf32>
    %617 = vector.broadcast %614 : f32 to vector<8x70xf32>
    %618 = arith.mulf %617, %588 : vector<8x70xf32>
    %619 = arith.addf %616, %618 : vector<8x70xf32>
    %620 = arith.addf %562, %619 : vector<8x70xf32>
    %c60 = arith.constant 60 : index
    %621 = memref.load %arg1[%c60] : memref<686xf32, #tpu.memory_space<smem>>
    %c403 = arith.constant 403 : index
    %622 = memref.load %arg1[%c403] : memref<686xf32, #tpu.memory_space<smem>>
    %623 = vector.broadcast %621 : f32 to vector<8x70xf32>
    %624 = arith.mulf %623, %587 : vector<8x70xf32>
    %625 = vector.broadcast %622 : f32 to vector<8x70xf32>
    %626 = arith.mulf %625, %588 : vector<8x70xf32>
    %627 = arith.addf %624, %626 : vector<8x70xf32>
    %628 = arith.addf %570, %627 : vector<8x70xf32>
    %c61 = arith.constant 61 : index
    %629 = memref.load %arg1[%c61] : memref<686xf32, #tpu.memory_space<smem>>
    %c404 = arith.constant 404 : index
    %630 = memref.load %arg1[%c404] : memref<686xf32, #tpu.memory_space<smem>>
    %631 = vector.broadcast %629 : f32 to vector<8x70xf32>
    %632 = arith.mulf %631, %587 : vector<8x70xf32>
    %633 = vector.broadcast %630 : f32 to vector<8x70xf32>
    %634 = arith.mulf %633, %588 : vector<8x70xf32>
    %635 = arith.addf %632, %634 : vector<8x70xf32>
    %636 = arith.addf %578, %635 : vector<8x70xf32>
    %c62 = arith.constant 62 : index
    %637 = memref.load %arg1[%c62] : memref<686xf32, #tpu.memory_space<smem>>
    %c405 = arith.constant 405 : index
    %638 = memref.load %arg1[%c405] : memref<686xf32, #tpu.memory_space<smem>>
    %639 = vector.broadcast %637 : f32 to vector<8x70xf32>
    %640 = arith.mulf %639, %587 : vector<8x70xf32>
    %641 = vector.broadcast %638 : f32 to vector<8x70xf32>
    %642 = arith.mulf %641, %588 : vector<8x70xf32>
    %643 = arith.addf %640, %642 : vector<8x70xf32>
    %644 = arith.addf %586, %643 : vector<8x70xf32>
    %c1_95 = arith.constant 1 : index
    %c21_96 = arith.constant 21 : index
    %645 = vector.load %arg4[%c1_95, %c21_96] : memref<14x128xf32, #tpu.memory_space<vmem>>, vector<8x70xf32>
    %c1_97 = arith.constant 1 : index
    %c21_98 = arith.constant 21 : index
    %646 = vector.load %arg5[%c1_97, %c21_98] : memref<14x128xf32, #tpu.memory_space<vmem>>, vector<8x70xf32>
    %c63 = arith.constant 63 : index
    %647 = memref.load %arg1[%c63] : memref<686xf32, #tpu.memory_space<smem>>
    %c406 = arith.constant 406 : index
    %648 = memref.load %arg1[%c406] : memref<686xf32, #tpu.memory_space<smem>>
    %649 = vector.broadcast %647 : f32 to vector<8x70xf32>
    %650 = arith.mulf %649, %645 : vector<8x70xf32>
    %651 = vector.broadcast %648 : f32 to vector<8x70xf32>
    %652 = arith.mulf %651, %646 : vector<8x70xf32>
    %653 = arith.addf %650, %652 : vector<8x70xf32>
    %654 = arith.addf %596, %653 : vector<8x70xf32>
    %c64 = arith.constant 64 : index
    %655 = memref.load %arg1[%c64] : memref<686xf32, #tpu.memory_space<smem>>
    %c407 = arith.constant 407 : index
    %656 = memref.load %arg1[%c407] : memref<686xf32, #tpu.memory_space<smem>>
    %657 = vector.broadcast %655 : f32 to vector<8x70xf32>
    %658 = arith.mulf %657, %645 : vector<8x70xf32>
    %659 = vector.broadcast %656 : f32 to vector<8x70xf32>
    %660 = arith.mulf %659, %646 : vector<8x70xf32>
    %661 = arith.addf %658, %660 : vector<8x70xf32>
    %662 = arith.addf %604, %661 : vector<8x70xf32>
    %c65 = arith.constant 65 : index
    %663 = memref.load %arg1[%c65] : memref<686xf32, #tpu.memory_space<smem>>
    %c408 = arith.constant 408 : index
    %664 = memref.load %arg1[%c408] : memref<686xf32, #tpu.memory_space<smem>>
    %665 = vector.broadcast %663 : f32 to vector<8x70xf32>
    %666 = arith.mulf %665, %645 : vector<8x70xf32>
    %667 = vector.broadcast %664 : f32 to vector<8x70xf32>
    %668 = arith.mulf %667, %646 : vector<8x70xf32>
    %669 = arith.addf %666, %668 : vector<8x70xf32>
    %670 = arith.addf %612, %669 : vector<8x70xf32>
    %c66 = arith.constant 66 : index
    %671 = memref.load %arg1[%c66] : memref<686xf32, #tpu.memory_space<smem>>
    %c409 = arith.constant 409 : index
    %672 = memref.load %arg1[%c409] : memref<686xf32, #tpu.memory_space<smem>>
    %673 = vector.broadcast %671 : f32 to vector<8x70xf32>
    %674 = arith.mulf %673, %645 : vector<8x70xf32>
    %675 = vector.broadcast %672 : f32 to vector<8x70xf32>
    %676 = arith.mulf %675, %646 : vector<8x70xf32>
    %677 = arith.addf %674, %676 : vector<8x70xf32>
    %678 = arith.addf %620, %677 : vector<8x70xf32>
    %c67 = arith.constant 67 : index
    %679 = memref.load %arg1[%c67] : memref<686xf32, #tpu.memory_space<smem>>
    %c410 = arith.constant 410 : index
    %680 = memref.load %arg1[%c410] : memref<686xf32, #tpu.memory_space<smem>>
    %681 = vector.broadcast %679 : f32 to vector<8x70xf32>
    %682 = arith.mulf %681, %645 : vector<8x70xf32>
    %683 = vector.broadcast %680 : f32 to vector<8x70xf32>
    %684 = arith.mulf %683, %646 : vector<8x70xf32>
    %685 = arith.addf %682, %684 : vector<8x70xf32>
    %686 = arith.addf %628, %685 : vector<8x70xf32>
    %c68 = arith.constant 68 : index
    %687 = memref.load %arg1[%c68] : memref<686xf32, #tpu.memory_space<smem>>
    %c411 = arith.constant 411 : index
    %688 = memref.load %arg1[%c411] : memref<686xf32, #tpu.memory_space<smem>>
    %689 = vector.broadcast %687 : f32 to vector<8x70xf32>
    %690 = arith.mulf %689, %645 : vector<8x70xf32>
    %691 = vector.broadcast %688 : f32 to vector<8x70xf32>
    %692 = arith.mulf %691, %646 : vector<8x70xf32>
    %693 = arith.addf %690, %692 : vector<8x70xf32>
    %694 = arith.addf %636, %693 : vector<8x70xf32>
    %c69 = arith.constant 69 : index
    %695 = memref.load %arg1[%c69] : memref<686xf32, #tpu.memory_space<smem>>
    %c412 = arith.constant 412 : index
    %696 = memref.load %arg1[%c412] : memref<686xf32, #tpu.memory_space<smem>>
    %697 = vector.broadcast %695 : f32 to vector<8x70xf32>
    %698 = arith.mulf %697, %645 : vector<8x70xf32>
    %699 = vector.broadcast %696 : f32 to vector<8x70xf32>
    %700 = arith.mulf %699, %646 : vector<8x70xf32>
    %701 = arith.addf %698, %700 : vector<8x70xf32>
    %702 = arith.addf %644, %701 : vector<8x70xf32>
    %c1_99 = arith.constant 1 : index
    %c29_100 = arith.constant 29 : index
    %703 = vector.load %arg4[%c1_99, %c29_100] : memref<14x128xf32, #tpu.memory_space<vmem>>, vector<8x70xf32>
    %c1_101 = arith.constant 1 : index
    %c29_102 = arith.constant 29 : index
    %704 = vector.load %arg5[%c1_101, %c29_102] : memref<14x128xf32, #tpu.memory_space<vmem>>, vector<8x70xf32>
    %c70 = arith.constant 70 : index
    %705 = memref.load %arg1[%c70] : memref<686xf32, #tpu.memory_space<smem>>
    %c413 = arith.constant 413 : index
    %706 = memref.load %arg1[%c413] : memref<686xf32, #tpu.memory_space<smem>>
    %707 = vector.broadcast %705 : f32 to vector<8x70xf32>
    %708 = arith.mulf %707, %703 : vector<8x70xf32>
    %709 = vector.broadcast %706 : f32 to vector<8x70xf32>
    %710 = arith.mulf %709, %704 : vector<8x70xf32>
    %711 = arith.addf %708, %710 : vector<8x70xf32>
    %712 = arith.addf %654, %711 : vector<8x70xf32>
    %c71 = arith.constant 71 : index
    %713 = memref.load %arg1[%c71] : memref<686xf32, #tpu.memory_space<smem>>
    %c414 = arith.constant 414 : index
    %714 = memref.load %arg1[%c414] : memref<686xf32, #tpu.memory_space<smem>>
    %715 = vector.broadcast %713 : f32 to vector<8x70xf32>
    %716 = arith.mulf %715, %703 : vector<8x70xf32>
    %717 = vector.broadcast %714 : f32 to vector<8x70xf32>
    %718 = arith.mulf %717, %704 : vector<8x70xf32>
    %719 = arith.addf %716, %718 : vector<8x70xf32>
    %720 = arith.addf %662, %719 : vector<8x70xf32>
    %c72 = arith.constant 72 : index
    %721 = memref.load %arg1[%c72] : memref<686xf32, #tpu.memory_space<smem>>
    %c415 = arith.constant 415 : index
    %722 = memref.load %arg1[%c415] : memref<686xf32, #tpu.memory_space<smem>>
    %723 = vector.broadcast %721 : f32 to vector<8x70xf32>
    %724 = arith.mulf %723, %703 : vector<8x70xf32>
    %725 = vector.broadcast %722 : f32 to vector<8x70xf32>
    %726 = arith.mulf %725, %704 : vector<8x70xf32>
    %727 = arith.addf %724, %726 : vector<8x70xf32>
    %728 = arith.addf %670, %727 : vector<8x70xf32>
    %c73 = arith.constant 73 : index
    %729 = memref.load %arg1[%c73] : memref<686xf32, #tpu.memory_space<smem>>
    %c416 = arith.constant 416 : index
    %730 = memref.load %arg1[%c416] : memref<686xf32, #tpu.memory_space<smem>>
    %731 = vector.broadcast %729 : f32 to vector<8x70xf32>
    %732 = arith.mulf %731, %703 : vector<8x70xf32>
    %733 = vector.broadcast %730 : f32 to vector<8x70xf32>
    %734 = arith.mulf %733, %704 : vector<8x70xf32>
    %735 = arith.addf %732, %734 : vector<8x70xf32>
    %736 = arith.addf %678, %735 : vector<8x70xf32>
    %c74 = arith.constant 74 : index
    %737 = memref.load %arg1[%c74] : memref<686xf32, #tpu.memory_space<smem>>
    %c417 = arith.constant 417 : index
    %738 = memref.load %arg1[%c417] : memref<686xf32, #tpu.memory_space<smem>>
    %739 = vector.broadcast %737 : f32 to vector<8x70xf32>
    %740 = arith.mulf %739, %703 : vector<8x70xf32>
    %741 = vector.broadcast %738 : f32 to vector<8x70xf32>
    %742 = arith.mulf %741, %704 : vector<8x70xf32>
    %743 = arith.addf %740, %742 : vector<8x70xf32>
    %744 = arith.addf %686, %743 : vector<8x70xf32>
    %c75 = arith.constant 75 : index
    %745 = memref.load %arg1[%c75] : memref<686xf32, #tpu.memory_space<smem>>
    %c418 = arith.constant 418 : index
    %746 = memref.load %arg1[%c418] : memref<686xf32, #tpu.memory_space<smem>>
    %747 = vector.broadcast %745 : f32 to vector<8x70xf32>
    %748 = arith.mulf %747, %703 : vector<8x70xf32>
    %749 = vector.broadcast %746 : f32 to vector<8x70xf32>
    %750 = arith.mulf %749, %704 : vector<8x70xf32>
    %751 = arith.addf %748, %750 : vector<8x70xf32>
    %752 = arith.addf %694, %751 : vector<8x70xf32>
    %c76 = arith.constant 76 : index
    %753 = memref.load %arg1[%c76] : memref<686xf32, #tpu.memory_space<smem>>
    %c419 = arith.constant 419 : index
    %754 = memref.load %arg1[%c419] : memref<686xf32, #tpu.memory_space<smem>>
    %755 = vector.broadcast %753 : f32 to vector<8x70xf32>
    %756 = arith.mulf %755, %703 : vector<8x70xf32>
    %757 = vector.broadcast %754 : f32 to vector<8x70xf32>
    %758 = arith.mulf %757, %704 : vector<8x70xf32>
    %759 = arith.addf %756, %758 : vector<8x70xf32>
    %760 = arith.addf %702, %759 : vector<8x70xf32>
    %c1_103 = arith.constant 1 : index
    %c37_104 = arith.constant 37 : index
    %761 = vector.load %arg4[%c1_103, %c37_104] : memref<14x128xf32, #tpu.memory_space<vmem>>, vector<8x70xf32>
    %c1_105 = arith.constant 1 : index
    %c37_106 = arith.constant 37 : index
    %762 = vector.load %arg5[%c1_105, %c37_106] : memref<14x128xf32, #tpu.memory_space<vmem>>, vector<8x70xf32>
    %c77 = arith.constant 77 : index
    %763 = memref.load %arg1[%c77] : memref<686xf32, #tpu.memory_space<smem>>
    %c420 = arith.constant 420 : index
    %764 = memref.load %arg1[%c420] : memref<686xf32, #tpu.memory_space<smem>>
    %765 = vector.broadcast %763 : f32 to vector<8x70xf32>
    %766 = arith.mulf %765, %761 : vector<8x70xf32>
    %767 = vector.broadcast %764 : f32 to vector<8x70xf32>
    %768 = arith.mulf %767, %762 : vector<8x70xf32>
    %769 = arith.addf %766, %768 : vector<8x70xf32>
    %770 = arith.addf %712, %769 : vector<8x70xf32>
    %c78 = arith.constant 78 : index
    %771 = memref.load %arg1[%c78] : memref<686xf32, #tpu.memory_space<smem>>
    %c421 = arith.constant 421 : index
    %772 = memref.load %arg1[%c421] : memref<686xf32, #tpu.memory_space<smem>>
    %773 = vector.broadcast %771 : f32 to vector<8x70xf32>
    %774 = arith.mulf %773, %761 : vector<8x70xf32>
    %775 = vector.broadcast %772 : f32 to vector<8x70xf32>
    %776 = arith.mulf %775, %762 : vector<8x70xf32>
    %777 = arith.addf %774, %776 : vector<8x70xf32>
    %778 = arith.addf %720, %777 : vector<8x70xf32>
    %c79 = arith.constant 79 : index
    %779 = memref.load %arg1[%c79] : memref<686xf32, #tpu.memory_space<smem>>
    %c422 = arith.constant 422 : index
    %780 = memref.load %arg1[%c422] : memref<686xf32, #tpu.memory_space<smem>>
    %781 = vector.broadcast %779 : f32 to vector<8x70xf32>
    %782 = arith.mulf %781, %761 : vector<8x70xf32>
    %783 = vector.broadcast %780 : f32 to vector<8x70xf32>
    %784 = arith.mulf %783, %762 : vector<8x70xf32>
    %785 = arith.addf %782, %784 : vector<8x70xf32>
    %786 = arith.addf %728, %785 : vector<8x70xf32>
    %c80 = arith.constant 80 : index
    %787 = memref.load %arg1[%c80] : memref<686xf32, #tpu.memory_space<smem>>
    %c423 = arith.constant 423 : index
    %788 = memref.load %arg1[%c423] : memref<686xf32, #tpu.memory_space<smem>>
    %789 = vector.broadcast %787 : f32 to vector<8x70xf32>
    %790 = arith.mulf %789, %761 : vector<8x70xf32>
    %791 = vector.broadcast %788 : f32 to vector<8x70xf32>
    %792 = arith.mulf %791, %762 : vector<8x70xf32>
    %793 = arith.addf %790, %792 : vector<8x70xf32>
    %794 = arith.addf %736, %793 : vector<8x70xf32>
    %c81 = arith.constant 81 : index
    %795 = memref.load %arg1[%c81] : memref<686xf32, #tpu.memory_space<smem>>
    %c424 = arith.constant 424 : index
    %796 = memref.load %arg1[%c424] : memref<686xf32, #tpu.memory_space<smem>>
    %797 = vector.broadcast %795 : f32 to vector<8x70xf32>
    %798 = arith.mulf %797, %761 : vector<8x70xf32>
    %799 = vector.broadcast %796 : f32 to vector<8x70xf32>
    %800 = arith.mulf %799, %762 : vector<8x70xf32>
    %801 = arith.addf %798, %800 : vector<8x70xf32>
    %802 = arith.addf %744, %801 : vector<8x70xf32>
    %c82 = arith.constant 82 : index
    %803 = memref.load %arg1[%c82] : memref<686xf32, #tpu.memory_space<smem>>
    %c425 = arith.constant 425 : index
    %804 = memref.load %arg1[%c425] : memref<686xf32, #tpu.memory_space<smem>>
    %805 = vector.broadcast %803 : f32 to vector<8x70xf32>
    %806 = arith.mulf %805, %761 : vector<8x70xf32>
    %807 = vector.broadcast %804 : f32 to vector<8x70xf32>
    %808 = arith.mulf %807, %762 : vector<8x70xf32>
    %809 = arith.addf %806, %808 : vector<8x70xf32>
    %810 = arith.addf %752, %809 : vector<8x70xf32>
    %c83 = arith.constant 83 : index
    %811 = memref.load %arg1[%c83] : memref<686xf32, #tpu.memory_space<smem>>
    %c426 = arith.constant 426 : index
    %812 = memref.load %arg1[%c426] : memref<686xf32, #tpu.memory_space<smem>>
    %813 = vector.broadcast %811 : f32 to vector<8x70xf32>
    %814 = arith.mulf %813, %761 : vector<8x70xf32>
    %815 = vector.broadcast %812 : f32 to vector<8x70xf32>
    %816 = arith.mulf %815, %762 : vector<8x70xf32>
    %817 = arith.addf %814, %816 : vector<8x70xf32>
    %818 = arith.addf %760, %817 : vector<8x70xf32>
    %c1_107 = arith.constant 1 : index
    %c45_108 = arith.constant 45 : index
    %819 = vector.load %arg4[%c1_107, %c45_108] : memref<14x128xf32, #tpu.memory_space<vmem>>, vector<8x70xf32>
    %c1_109 = arith.constant 1 : index
    %c45_110 = arith.constant 45 : index
    %820 = vector.load %arg5[%c1_109, %c45_110] : memref<14x128xf32, #tpu.memory_space<vmem>>, vector<8x70xf32>
    %c84 = arith.constant 84 : index
    %821 = memref.load %arg1[%c84] : memref<686xf32, #tpu.memory_space<smem>>
    %c427 = arith.constant 427 : index
    %822 = memref.load %arg1[%c427] : memref<686xf32, #tpu.memory_space<smem>>
    %823 = vector.broadcast %821 : f32 to vector<8x70xf32>
    %824 = arith.mulf %823, %819 : vector<8x70xf32>
    %825 = vector.broadcast %822 : f32 to vector<8x70xf32>
    %826 = arith.mulf %825, %820 : vector<8x70xf32>
    %827 = arith.addf %824, %826 : vector<8x70xf32>
    %828 = arith.addf %770, %827 : vector<8x70xf32>
    %c85 = arith.constant 85 : index
    %829 = memref.load %arg1[%c85] : memref<686xf32, #tpu.memory_space<smem>>
    %c428 = arith.constant 428 : index
    %830 = memref.load %arg1[%c428] : memref<686xf32, #tpu.memory_space<smem>>
    %831 = vector.broadcast %829 : f32 to vector<8x70xf32>
    %832 = arith.mulf %831, %819 : vector<8x70xf32>
    %833 = vector.broadcast %830 : f32 to vector<8x70xf32>
    %834 = arith.mulf %833, %820 : vector<8x70xf32>
    %835 = arith.addf %832, %834 : vector<8x70xf32>
    %836 = arith.addf %778, %835 : vector<8x70xf32>
    %c86 = arith.constant 86 : index
    %837 = memref.load %arg1[%c86] : memref<686xf32, #tpu.memory_space<smem>>
    %c429 = arith.constant 429 : index
    %838 = memref.load %arg1[%c429] : memref<686xf32, #tpu.memory_space<smem>>
    %839 = vector.broadcast %837 : f32 to vector<8x70xf32>
    %840 = arith.mulf %839, %819 : vector<8x70xf32>
    %841 = vector.broadcast %838 : f32 to vector<8x70xf32>
    %842 = arith.mulf %841, %820 : vector<8x70xf32>
    %843 = arith.addf %840, %842 : vector<8x70xf32>
    %844 = arith.addf %786, %843 : vector<8x70xf32>
    %c87 = arith.constant 87 : index
    %845 = memref.load %arg1[%c87] : memref<686xf32, #tpu.memory_space<smem>>
    %c430 = arith.constant 430 : index
    %846 = memref.load %arg1[%c430] : memref<686xf32, #tpu.memory_space<smem>>
    %847 = vector.broadcast %845 : f32 to vector<8x70xf32>
    %848 = arith.mulf %847, %819 : vector<8x70xf32>
    %849 = vector.broadcast %846 : f32 to vector<8x70xf32>
    %850 = arith.mulf %849, %820 : vector<8x70xf32>
    %851 = arith.addf %848, %850 : vector<8x70xf32>
    %852 = arith.addf %794, %851 : vector<8x70xf32>
    %c88 = arith.constant 88 : index
    %853 = memref.load %arg1[%c88] : memref<686xf32, #tpu.memory_space<smem>>
    %c431 = arith.constant 431 : index
    %854 = memref.load %arg1[%c431] : memref<686xf32, #tpu.memory_space<smem>>
    %855 = vector.broadcast %853 : f32 to vector<8x70xf32>
    %856 = arith.mulf %855, %819 : vector<8x70xf32>
    %857 = vector.broadcast %854 : f32 to vector<8x70xf32>
    %858 = arith.mulf %857, %820 : vector<8x70xf32>
    %859 = arith.addf %856, %858 : vector<8x70xf32>
    %860 = arith.addf %802, %859 : vector<8x70xf32>
    %c89 = arith.constant 89 : index
    %861 = memref.load %arg1[%c89] : memref<686xf32, #tpu.memory_space<smem>>
    %c432 = arith.constant 432 : index
    %862 = memref.load %arg1[%c432] : memref<686xf32, #tpu.memory_space<smem>>
    %863 = vector.broadcast %861 : f32 to vector<8x70xf32>
    %864 = arith.mulf %863, %819 : vector<8x70xf32>
    %865 = vector.broadcast %862 : f32 to vector<8x70xf32>
    %866 = arith.mulf %865, %820 : vector<8x70xf32>
    %867 = arith.addf %864, %866 : vector<8x70xf32>
    %868 = arith.addf %810, %867 : vector<8x70xf32>
    %c90 = arith.constant 90 : index
    %869 = memref.load %arg1[%c90] : memref<686xf32, #tpu.memory_space<smem>>
    %c433 = arith.constant 433 : index
    %870 = memref.load %arg1[%c433] : memref<686xf32, #tpu.memory_space<smem>>
    %871 = vector.broadcast %869 : f32 to vector<8x70xf32>
    %872 = arith.mulf %871, %819 : vector<8x70xf32>
    %873 = vector.broadcast %870 : f32 to vector<8x70xf32>
    %874 = arith.mulf %873, %820 : vector<8x70xf32>
    %875 = arith.addf %872, %874 : vector<8x70xf32>
    %876 = arith.addf %818, %875 : vector<8x70xf32>
    %c1_111 = arith.constant 1 : index
    %c53_112 = arith.constant 53 : index
    %877 = vector.load %arg4[%c1_111, %c53_112] : memref<14x128xf32, #tpu.memory_space<vmem>>, vector<8x70xf32>
    %c1_113 = arith.constant 1 : index
    %c53_114 = arith.constant 53 : index
    %878 = vector.load %arg5[%c1_113, %c53_114] : memref<14x128xf32, #tpu.memory_space<vmem>>, vector<8x70xf32>
    %c91 = arith.constant 91 : index
    %879 = memref.load %arg1[%c91] : memref<686xf32, #tpu.memory_space<smem>>
    %c434 = arith.constant 434 : index
    %880 = memref.load %arg1[%c434] : memref<686xf32, #tpu.memory_space<smem>>
    %881 = vector.broadcast %879 : f32 to vector<8x70xf32>
    %882 = arith.mulf %881, %877 : vector<8x70xf32>
    %883 = vector.broadcast %880 : f32 to vector<8x70xf32>
    %884 = arith.mulf %883, %878 : vector<8x70xf32>
    %885 = arith.addf %882, %884 : vector<8x70xf32>
    %886 = arith.addf %828, %885 : vector<8x70xf32>
    %c92 = arith.constant 92 : index
    %887 = memref.load %arg1[%c92] : memref<686xf32, #tpu.memory_space<smem>>
    %c435 = arith.constant 435 : index
    %888 = memref.load %arg1[%c435] : memref<686xf32, #tpu.memory_space<smem>>
    %889 = vector.broadcast %887 : f32 to vector<8x70xf32>
    %890 = arith.mulf %889, %877 : vector<8x70xf32>
    %891 = vector.broadcast %888 : f32 to vector<8x70xf32>
    %892 = arith.mulf %891, %878 : vector<8x70xf32>
    %893 = arith.addf %890, %892 : vector<8x70xf32>
    %894 = arith.addf %836, %893 : vector<8x70xf32>
    %c93 = arith.constant 93 : index
    %895 = memref.load %arg1[%c93] : memref<686xf32, #tpu.memory_space<smem>>
    %c436 = arith.constant 436 : index
    %896 = memref.load %arg1[%c436] : memref<686xf32, #tpu.memory_space<smem>>
    %897 = vector.broadcast %895 : f32 to vector<8x70xf32>
    %898 = arith.mulf %897, %877 : vector<8x70xf32>
    %899 = vector.broadcast %896 : f32 to vector<8x70xf32>
    %900 = arith.mulf %899, %878 : vector<8x70xf32>
    %901 = arith.addf %898, %900 : vector<8x70xf32>
    %902 = arith.addf %844, %901 : vector<8x70xf32>
    %c94 = arith.constant 94 : index
    %903 = memref.load %arg1[%c94] : memref<686xf32, #tpu.memory_space<smem>>
    %c437 = arith.constant 437 : index
    %904 = memref.load %arg1[%c437] : memref<686xf32, #tpu.memory_space<smem>>
    %905 = vector.broadcast %903 : f32 to vector<8x70xf32>
    %906 = arith.mulf %905, %877 : vector<8x70xf32>
    %907 = vector.broadcast %904 : f32 to vector<8x70xf32>
    %908 = arith.mulf %907, %878 : vector<8x70xf32>
    %909 = arith.addf %906, %908 : vector<8x70xf32>
    %910 = arith.addf %852, %909 : vector<8x70xf32>
    %c95 = arith.constant 95 : index
    %911 = memref.load %arg1[%c95] : memref<686xf32, #tpu.memory_space<smem>>
    %c438 = arith.constant 438 : index
    %912 = memref.load %arg1[%c438] : memref<686xf32, #tpu.memory_space<smem>>
    %913 = vector.broadcast %911 : f32 to vector<8x70xf32>
    %914 = arith.mulf %913, %877 : vector<8x70xf32>
    %915 = vector.broadcast %912 : f32 to vector<8x70xf32>
    %916 = arith.mulf %915, %878 : vector<8x70xf32>
    %917 = arith.addf %914, %916 : vector<8x70xf32>
    %918 = arith.addf %860, %917 : vector<8x70xf32>
    %c96 = arith.constant 96 : index
    %919 = memref.load %arg1[%c96] : memref<686xf32, #tpu.memory_space<smem>>
    %c439 = arith.constant 439 : index
    %920 = memref.load %arg1[%c439] : memref<686xf32, #tpu.memory_space<smem>>
    %921 = vector.broadcast %919 : f32 to vector<8x70xf32>
    %922 = arith.mulf %921, %877 : vector<8x70xf32>
    %923 = vector.broadcast %920 : f32 to vector<8x70xf32>
    %924 = arith.mulf %923, %878 : vector<8x70xf32>
    %925 = arith.addf %922, %924 : vector<8x70xf32>
    %926 = arith.addf %868, %925 : vector<8x70xf32>
    %c97 = arith.constant 97 : index
    %927 = memref.load %arg1[%c97] : memref<686xf32, #tpu.memory_space<smem>>
    %c440 = arith.constant 440 : index
    %928 = memref.load %arg1[%c440] : memref<686xf32, #tpu.memory_space<smem>>
    %929 = vector.broadcast %927 : f32 to vector<8x70xf32>
    %930 = arith.mulf %929, %877 : vector<8x70xf32>
    %931 = vector.broadcast %928 : f32 to vector<8x70xf32>
    %932 = arith.mulf %931, %878 : vector<8x70xf32>
    %933 = arith.addf %930, %932 : vector<8x70xf32>
    %934 = arith.addf %876, %933 : vector<8x70xf32>
    %c2_115 = arith.constant 2 : index
    %c5_116 = arith.constant 5 : index
    %935 = vector.load %arg4[%c2_115, %c5_116] : memref<14x128xf32, #tpu.memory_space<vmem>>, vector<8x70xf32>
    %c2_117 = arith.constant 2 : index
    %c5_118 = arith.constant 5 : index
    %936 = vector.load %arg5[%c2_117, %c5_118] : memref<14x128xf32, #tpu.memory_space<vmem>>, vector<8x70xf32>
    %c98 = arith.constant 98 : index
    %937 = memref.load %arg1[%c98] : memref<686xf32, #tpu.memory_space<smem>>
    %c441 = arith.constant 441 : index
    %938 = memref.load %arg1[%c441] : memref<686xf32, #tpu.memory_space<smem>>
    %939 = vector.broadcast %937 : f32 to vector<8x70xf32>
    %940 = arith.mulf %939, %935 : vector<8x70xf32>
    %941 = vector.broadcast %938 : f32 to vector<8x70xf32>
    %942 = arith.mulf %941, %936 : vector<8x70xf32>
    %943 = arith.addf %940, %942 : vector<8x70xf32>
    %944 = arith.addf %886, %943 : vector<8x70xf32>
    %c99 = arith.constant 99 : index
    %945 = memref.load %arg1[%c99] : memref<686xf32, #tpu.memory_space<smem>>
    %c442 = arith.constant 442 : index
    %946 = memref.load %arg1[%c442] : memref<686xf32, #tpu.memory_space<smem>>
    %947 = vector.broadcast %945 : f32 to vector<8x70xf32>
    %948 = arith.mulf %947, %935 : vector<8x70xf32>
    %949 = vector.broadcast %946 : f32 to vector<8x70xf32>
    %950 = arith.mulf %949, %936 : vector<8x70xf32>
    %951 = arith.addf %948, %950 : vector<8x70xf32>
    %952 = arith.addf %894, %951 : vector<8x70xf32>
    %c100 = arith.constant 100 : index
    %953 = memref.load %arg1[%c100] : memref<686xf32, #tpu.memory_space<smem>>
    %c443 = arith.constant 443 : index
    %954 = memref.load %arg1[%c443] : memref<686xf32, #tpu.memory_space<smem>>
    %955 = vector.broadcast %953 : f32 to vector<8x70xf32>
    %956 = arith.mulf %955, %935 : vector<8x70xf32>
    %957 = vector.broadcast %954 : f32 to vector<8x70xf32>
    %958 = arith.mulf %957, %936 : vector<8x70xf32>
    %959 = arith.addf %956, %958 : vector<8x70xf32>
    %960 = arith.addf %902, %959 : vector<8x70xf32>
    %c101 = arith.constant 101 : index
    %961 = memref.load %arg1[%c101] : memref<686xf32, #tpu.memory_space<smem>>
    %c444 = arith.constant 444 : index
    %962 = memref.load %arg1[%c444] : memref<686xf32, #tpu.memory_space<smem>>
    %963 = vector.broadcast %961 : f32 to vector<8x70xf32>
    %964 = arith.mulf %963, %935 : vector<8x70xf32>
    %965 = vector.broadcast %962 : f32 to vector<8x70xf32>
    %966 = arith.mulf %965, %936 : vector<8x70xf32>
    %967 = arith.addf %964, %966 : vector<8x70xf32>
    %968 = arith.addf %910, %967 : vector<8x70xf32>
    %c102 = arith.constant 102 : index
    %969 = memref.load %arg1[%c102] : memref<686xf32, #tpu.memory_space<smem>>
    %c445 = arith.constant 445 : index
    %970 = memref.load %arg1[%c445] : memref<686xf32, #tpu.memory_space<smem>>
    %971 = vector.broadcast %969 : f32 to vector<8x70xf32>
    %972 = arith.mulf %971, %935 : vector<8x70xf32>
    %973 = vector.broadcast %970 : f32 to vector<8x70xf32>
    %974 = arith.mulf %973, %936 : vector<8x70xf32>
    %975 = arith.addf %972, %974 : vector<8x70xf32>
    %976 = arith.addf %918, %975 : vector<8x70xf32>
    %c103 = arith.constant 103 : index
    %977 = memref.load %arg1[%c103] : memref<686xf32, #tpu.memory_space<smem>>
    %c446 = arith.constant 446 : index
    %978 = memref.load %arg1[%c446] : memref<686xf32, #tpu.memory_space<smem>>
    %979 = vector.broadcast %977 : f32 to vector<8x70xf32>
    %980 = arith.mulf %979, %935 : vector<8x70xf32>
    %981 = vector.broadcast %978 : f32 to vector<8x70xf32>
    %982 = arith.mulf %981, %936 : vector<8x70xf32>
    %983 = arith.addf %980, %982 : vector<8x70xf32>
    %984 = arith.addf %926, %983 : vector<8x70xf32>
    %c104 = arith.constant 104 : index
    %985 = memref.load %arg1[%c104] : memref<686xf32, #tpu.memory_space<smem>>
    %c447 = arith.constant 447 : index
    %986 = memref.load %arg1[%c447] : memref<686xf32, #tpu.memory_space<smem>>
    %987 = vector.broadcast %985 : f32 to vector<8x70xf32>
    %988 = arith.mulf %987, %935 : vector<8x70xf32>
    %989 = vector.broadcast %986 : f32 to vector<8x70xf32>
    %990 = arith.mulf %989, %936 : vector<8x70xf32>
    %991 = arith.addf %988, %990 : vector<8x70xf32>
    %992 = arith.addf %934, %991 : vector<8x70xf32>
    %c2_119 = arith.constant 2 : index
    %c13_120 = arith.constant 13 : index
    %993 = vector.load %arg4[%c2_119, %c13_120] : memref<14x128xf32, #tpu.memory_space<vmem>>, vector<8x70xf32>
    %c2_121 = arith.constant 2 : index
    %c13_122 = arith.constant 13 : index
    %994 = vector.load %arg5[%c2_121, %c13_122] : memref<14x128xf32, #tpu.memory_space<vmem>>, vector<8x70xf32>
    %c105 = arith.constant 105 : index
    %995 = memref.load %arg1[%c105] : memref<686xf32, #tpu.memory_space<smem>>
    %c448 = arith.constant 448 : index
    %996 = memref.load %arg1[%c448] : memref<686xf32, #tpu.memory_space<smem>>
    %997 = vector.broadcast %995 : f32 to vector<8x70xf32>
    %998 = arith.mulf %997, %993 : vector<8x70xf32>
    %999 = vector.broadcast %996 : f32 to vector<8x70xf32>
    %1000 = arith.mulf %999, %994 : vector<8x70xf32>
    %1001 = arith.addf %998, %1000 : vector<8x70xf32>
    %1002 = arith.addf %944, %1001 : vector<8x70xf32>
    %c106 = arith.constant 106 : index
    %1003 = memref.load %arg1[%c106] : memref<686xf32, #tpu.memory_space<smem>>
    %c449 = arith.constant 449 : index
    %1004 = memref.load %arg1[%c449] : memref<686xf32, #tpu.memory_space<smem>>
    %1005 = vector.broadcast %1003 : f32 to vector<8x70xf32>
    %1006 = arith.mulf %1005, %993 : vector<8x70xf32>
    %1007 = vector.broadcast %1004 : f32 to vector<8x70xf32>
    %1008 = arith.mulf %1007, %994 : vector<8x70xf32>
    %1009 = arith.addf %1006, %1008 : vector<8x70xf32>
    %1010 = arith.addf %952, %1009 : vector<8x70xf32>
    %c107 = arith.constant 107 : index
    %1011 = memref.load %arg1[%c107] : memref<686xf32, #tpu.memory_space<smem>>
    %c450 = arith.constant 450 : index
    %1012 = memref.load %arg1[%c450] : memref<686xf32, #tpu.memory_space<smem>>
    %1013 = vector.broadcast %1011 : f32 to vector<8x70xf32>
    %1014 = arith.mulf %1013, %993 : vector<8x70xf32>
    %1015 = vector.broadcast %1012 : f32 to vector<8x70xf32>
    %1016 = arith.mulf %1015, %994 : vector<8x70xf32>
    %1017 = arith.addf %1014, %1016 : vector<8x70xf32>
    %1018 = arith.addf %960, %1017 : vector<8x70xf32>
    %c108 = arith.constant 108 : index
    %1019 = memref.load %arg1[%c108] : memref<686xf32, #tpu.memory_space<smem>>
    %c451 = arith.constant 451 : index
    %1020 = memref.load %arg1[%c451] : memref<686xf32, #tpu.memory_space<smem>>
    %1021 = vector.broadcast %1019 : f32 to vector<8x70xf32>
    %1022 = arith.mulf %1021, %993 : vector<8x70xf32>
    %1023 = vector.broadcast %1020 : f32 to vector<8x70xf32>
    %1024 = arith.mulf %1023, %994 : vector<8x70xf32>
    %1025 = arith.addf %1022, %1024 : vector<8x70xf32>
    %1026 = arith.addf %968, %1025 : vector<8x70xf32>
    %c109 = arith.constant 109 : index
    %1027 = memref.load %arg1[%c109] : memref<686xf32, #tpu.memory_space<smem>>
    %c452 = arith.constant 452 : index
    %1028 = memref.load %arg1[%c452] : memref<686xf32, #tpu.memory_space<smem>>
    %1029 = vector.broadcast %1027 : f32 to vector<8x70xf32>
    %1030 = arith.mulf %1029, %993 : vector<8x70xf32>
    %1031 = vector.broadcast %1028 : f32 to vector<8x70xf32>
    %1032 = arith.mulf %1031, %994 : vector<8x70xf32>
    %1033 = arith.addf %1030, %1032 : vector<8x70xf32>
    %1034 = arith.addf %976, %1033 : vector<8x70xf32>
    %c110 = arith.constant 110 : index
    %1035 = memref.load %arg1[%c110] : memref<686xf32, #tpu.memory_space<smem>>
    %c453 = arith.constant 453 : index
    %1036 = memref.load %arg1[%c453] : memref<686xf32, #tpu.memory_space<smem>>
    %1037 = vector.broadcast %1035 : f32 to vector<8x70xf32>
    %1038 = arith.mulf %1037, %993 : vector<8x70xf32>
    %1039 = vector.broadcast %1036 : f32 to vector<8x70xf32>
    %1040 = arith.mulf %1039, %994 : vector<8x70xf32>
    %1041 = arith.addf %1038, %1040 : vector<8x70xf32>
    %1042 = arith.addf %984, %1041 : vector<8x70xf32>
    %c111 = arith.constant 111 : index
    %1043 = memref.load %arg1[%c111] : memref<686xf32, #tpu.memory_space<smem>>
    %c454 = arith.constant 454 : index
    %1044 = memref.load %arg1[%c454] : memref<686xf32, #tpu.memory_space<smem>>
    %1045 = vector.broadcast %1043 : f32 to vector<8x70xf32>
    %1046 = arith.mulf %1045, %993 : vector<8x70xf32>
    %1047 = vector.broadcast %1044 : f32 to vector<8x70xf32>
    %1048 = arith.mulf %1047, %994 : vector<8x70xf32>
    %1049 = arith.addf %1046, %1048 : vector<8x70xf32>
    %1050 = arith.addf %992, %1049 : vector<8x70xf32>
    %c2_123 = arith.constant 2 : index
    %c21_124 = arith.constant 21 : index
    %1051 = vector.load %arg4[%c2_123, %c21_124] : memref<14x128xf32, #tpu.memory_space<vmem>>, vector<8x70xf32>
    %c2_125 = arith.constant 2 : index
    %c21_126 = arith.constant 21 : index
    %1052 = vector.load %arg5[%c2_125, %c21_126] : memref<14x128xf32, #tpu.memory_space<vmem>>, vector<8x70xf32>
    %c112 = arith.constant 112 : index
    %1053 = memref.load %arg1[%c112] : memref<686xf32, #tpu.memory_space<smem>>
    %c455 = arith.constant 455 : index
    %1054 = memref.load %arg1[%c455] : memref<686xf32, #tpu.memory_space<smem>>
    %1055 = vector.broadcast %1053 : f32 to vector<8x70xf32>
    %1056 = arith.mulf %1055, %1051 : vector<8x70xf32>
    %1057 = vector.broadcast %1054 : f32 to vector<8x70xf32>
    %1058 = arith.mulf %1057, %1052 : vector<8x70xf32>
    %1059 = arith.addf %1056, %1058 : vector<8x70xf32>
    %1060 = arith.addf %1002, %1059 : vector<8x70xf32>
    %c113 = arith.constant 113 : index
    %1061 = memref.load %arg1[%c113] : memref<686xf32, #tpu.memory_space<smem>>
    %c456 = arith.constant 456 : index
    %1062 = memref.load %arg1[%c456] : memref<686xf32, #tpu.memory_space<smem>>
    %1063 = vector.broadcast %1061 : f32 to vector<8x70xf32>
    %1064 = arith.mulf %1063, %1051 : vector<8x70xf32>
    %1065 = vector.broadcast %1062 : f32 to vector<8x70xf32>
    %1066 = arith.mulf %1065, %1052 : vector<8x70xf32>
    %1067 = arith.addf %1064, %1066 : vector<8x70xf32>
    %1068 = arith.addf %1010, %1067 : vector<8x70xf32>
    %c114 = arith.constant 114 : index
    %1069 = memref.load %arg1[%c114] : memref<686xf32, #tpu.memory_space<smem>>
    %c457 = arith.constant 457 : index
    %1070 = memref.load %arg1[%c457] : memref<686xf32, #tpu.memory_space<smem>>
    %1071 = vector.broadcast %1069 : f32 to vector<8x70xf32>
    %1072 = arith.mulf %1071, %1051 : vector<8x70xf32>
    %1073 = vector.broadcast %1070 : f32 to vector<8x70xf32>
    %1074 = arith.mulf %1073, %1052 : vector<8x70xf32>
    %1075 = arith.addf %1072, %1074 : vector<8x70xf32>
    %1076 = arith.addf %1018, %1075 : vector<8x70xf32>
    %c115 = arith.constant 115 : index
    %1077 = memref.load %arg1[%c115] : memref<686xf32, #tpu.memory_space<smem>>
    %c458 = arith.constant 458 : index
    %1078 = memref.load %arg1[%c458] : memref<686xf32, #tpu.memory_space<smem>>
    %1079 = vector.broadcast %1077 : f32 to vector<8x70xf32>
    %1080 = arith.mulf %1079, %1051 : vector<8x70xf32>
    %1081 = vector.broadcast %1078 : f32 to vector<8x70xf32>
    %1082 = arith.mulf %1081, %1052 : vector<8x70xf32>
    %1083 = arith.addf %1080, %1082 : vector<8x70xf32>
    %1084 = arith.addf %1026, %1083 : vector<8x70xf32>
    %c116 = arith.constant 116 : index
    %1085 = memref.load %arg1[%c116] : memref<686xf32, #tpu.memory_space<smem>>
    %c459 = arith.constant 459 : index
    %1086 = memref.load %arg1[%c459] : memref<686xf32, #tpu.memory_space<smem>>
    %1087 = vector.broadcast %1085 : f32 to vector<8x70xf32>
    %1088 = arith.mulf %1087, %1051 : vector<8x70xf32>
    %1089 = vector.broadcast %1086 : f32 to vector<8x70xf32>
    %1090 = arith.mulf %1089, %1052 : vector<8x70xf32>
    %1091 = arith.addf %1088, %1090 : vector<8x70xf32>
    %1092 = arith.addf %1034, %1091 : vector<8x70xf32>
    %c117 = arith.constant 117 : index
    %1093 = memref.load %arg1[%c117] : memref<686xf32, #tpu.memory_space<smem>>
    %c460 = arith.constant 460 : index
    %1094 = memref.load %arg1[%c460] : memref<686xf32, #tpu.memory_space<smem>>
    %1095 = vector.broadcast %1093 : f32 to vector<8x70xf32>
    %1096 = arith.mulf %1095, %1051 : vector<8x70xf32>
    %1097 = vector.broadcast %1094 : f32 to vector<8x70xf32>
    %1098 = arith.mulf %1097, %1052 : vector<8x70xf32>
    %1099 = arith.addf %1096, %1098 : vector<8x70xf32>
    %1100 = arith.addf %1042, %1099 : vector<8x70xf32>
    %c118 = arith.constant 118 : index
    %1101 = memref.load %arg1[%c118] : memref<686xf32, #tpu.memory_space<smem>>
    %c461 = arith.constant 461 : index
    %1102 = memref.load %arg1[%c461] : memref<686xf32, #tpu.memory_space<smem>>
    %1103 = vector.broadcast %1101 : f32 to vector<8x70xf32>
    %1104 = arith.mulf %1103, %1051 : vector<8x70xf32>
    %1105 = vector.broadcast %1102 : f32 to vector<8x70xf32>
    %1106 = arith.mulf %1105, %1052 : vector<8x70xf32>
    %1107 = arith.addf %1104, %1106 : vector<8x70xf32>
    %1108 = arith.addf %1050, %1107 : vector<8x70xf32>
    %c2_127 = arith.constant 2 : index
    %c29_128 = arith.constant 29 : index
    %1109 = vector.load %arg4[%c2_127, %c29_128] : memref<14x128xf32, #tpu.memory_space<vmem>>, vector<8x70xf32>
    %c2_129 = arith.constant 2 : index
    %c29_130 = arith.constant 29 : index
    %1110 = vector.load %arg5[%c2_129, %c29_130] : memref<14x128xf32, #tpu.memory_space<vmem>>, vector<8x70xf32>
    %c119 = arith.constant 119 : index
    %1111 = memref.load %arg1[%c119] : memref<686xf32, #tpu.memory_space<smem>>
    %c462 = arith.constant 462 : index
    %1112 = memref.load %arg1[%c462] : memref<686xf32, #tpu.memory_space<smem>>
    %1113 = vector.broadcast %1111 : f32 to vector<8x70xf32>
    %1114 = arith.mulf %1113, %1109 : vector<8x70xf32>
    %1115 = vector.broadcast %1112 : f32 to vector<8x70xf32>
    %1116 = arith.mulf %1115, %1110 : vector<8x70xf32>
    %1117 = arith.addf %1114, %1116 : vector<8x70xf32>
    %1118 = arith.addf %1060, %1117 : vector<8x70xf32>
    %c120 = arith.constant 120 : index
    %1119 = memref.load %arg1[%c120] : memref<686xf32, #tpu.memory_space<smem>>
    %c463 = arith.constant 463 : index
    %1120 = memref.load %arg1[%c463] : memref<686xf32, #tpu.memory_space<smem>>
    %1121 = vector.broadcast %1119 : f32 to vector<8x70xf32>
    %1122 = arith.mulf %1121, %1109 : vector<8x70xf32>
    %1123 = vector.broadcast %1120 : f32 to vector<8x70xf32>
    %1124 = arith.mulf %1123, %1110 : vector<8x70xf32>
    %1125 = arith.addf %1122, %1124 : vector<8x70xf32>
    %1126 = arith.addf %1068, %1125 : vector<8x70xf32>
    %c121 = arith.constant 121 : index
    %1127 = memref.load %arg1[%c121] : memref<686xf32, #tpu.memory_space<smem>>
    %c464 = arith.constant 464 : index
    %1128 = memref.load %arg1[%c464] : memref<686xf32, #tpu.memory_space<smem>>
    %1129 = vector.broadcast %1127 : f32 to vector<8x70xf32>
    %1130 = arith.mulf %1129, %1109 : vector<8x70xf32>
    %1131 = vector.broadcast %1128 : f32 to vector<8x70xf32>
    %1132 = arith.mulf %1131, %1110 : vector<8x70xf32>
    %1133 = arith.addf %1130, %1132 : vector<8x70xf32>
    %1134 = arith.addf %1076, %1133 : vector<8x70xf32>
    %c122 = arith.constant 122 : index
    %1135 = memref.load %arg1[%c122] : memref<686xf32, #tpu.memory_space<smem>>
    %c465 = arith.constant 465 : index
    %1136 = memref.load %arg1[%c465] : memref<686xf32, #tpu.memory_space<smem>>
    %1137 = vector.broadcast %1135 : f32 to vector<8x70xf32>
    %1138 = arith.mulf %1137, %1109 : vector<8x70xf32>
    %1139 = vector.broadcast %1136 : f32 to vector<8x70xf32>
    %1140 = arith.mulf %1139, %1110 : vector<8x70xf32>
    %1141 = arith.addf %1138, %1140 : vector<8x70xf32>
    %1142 = arith.addf %1084, %1141 : vector<8x70xf32>
    %c123 = arith.constant 123 : index
    %1143 = memref.load %arg1[%c123] : memref<686xf32, #tpu.memory_space<smem>>
    %c466 = arith.constant 466 : index
    %1144 = memref.load %arg1[%c466] : memref<686xf32, #tpu.memory_space<smem>>
    %1145 = vector.broadcast %1143 : f32 to vector<8x70xf32>
    %1146 = arith.mulf %1145, %1109 : vector<8x70xf32>
    %1147 = vector.broadcast %1144 : f32 to vector<8x70xf32>
    %1148 = arith.mulf %1147, %1110 : vector<8x70xf32>
    %1149 = arith.addf %1146, %1148 : vector<8x70xf32>
    %1150 = arith.addf %1092, %1149 : vector<8x70xf32>
    %c124 = arith.constant 124 : index
    %1151 = memref.load %arg1[%c124] : memref<686xf32, #tpu.memory_space<smem>>
    %c467 = arith.constant 467 : index
    %1152 = memref.load %arg1[%c467] : memref<686xf32, #tpu.memory_space<smem>>
    %1153 = vector.broadcast %1151 : f32 to vector<8x70xf32>
    %1154 = arith.mulf %1153, %1109 : vector<8x70xf32>
    %1155 = vector.broadcast %1152 : f32 to vector<8x70xf32>
    %1156 = arith.mulf %1155, %1110 : vector<8x70xf32>
    %1157 = arith.addf %1154, %1156 : vector<8x70xf32>
    %1158 = arith.addf %1100, %1157 : vector<8x70xf32>
    %c125 = arith.constant 125 : index
    %1159 = memref.load %arg1[%c125] : memref<686xf32, #tpu.memory_space<smem>>
    %c468 = arith.constant 468 : index
    %1160 = memref.load %arg1[%c468] : memref<686xf32, #tpu.memory_space<smem>>
    %1161 = vector.broadcast %1159 : f32 to vector<8x70xf32>
    %1162 = arith.mulf %1161, %1109 : vector<8x70xf32>
    %1163 = vector.broadcast %1160 : f32 to vector<8x70xf32>
    %1164 = arith.mulf %1163, %1110 : vector<8x70xf32>
    %1165 = arith.addf %1162, %1164 : vector<8x70xf32>
    %1166 = arith.addf %1108, %1165 : vector<8x70xf32>
    %c2_131 = arith.constant 2 : index
    %c37_132 = arith.constant 37 : index
    %1167 = vector.load %arg4[%c2_131, %c37_132] : memref<14x128xf32, #tpu.memory_space<vmem>>, vector<8x70xf32>
    %c2_133 = arith.constant 2 : index
    %c37_134 = arith.constant 37 : index
    %1168 = vector.load %arg5[%c2_133, %c37_134] : memref<14x128xf32, #tpu.memory_space<vmem>>, vector<8x70xf32>
    %c126 = arith.constant 126 : index
    %1169 = memref.load %arg1[%c126] : memref<686xf32, #tpu.memory_space<smem>>
    %c469 = arith.constant 469 : index
    %1170 = memref.load %arg1[%c469] : memref<686xf32, #tpu.memory_space<smem>>
    %1171 = vector.broadcast %1169 : f32 to vector<8x70xf32>
    %1172 = arith.mulf %1171, %1167 : vector<8x70xf32>
    %1173 = vector.broadcast %1170 : f32 to vector<8x70xf32>
    %1174 = arith.mulf %1173, %1168 : vector<8x70xf32>
    %1175 = arith.addf %1172, %1174 : vector<8x70xf32>
    %1176 = arith.addf %1118, %1175 : vector<8x70xf32>
    %c127 = arith.constant 127 : index
    %1177 = memref.load %arg1[%c127] : memref<686xf32, #tpu.memory_space<smem>>
    %c470 = arith.constant 470 : index
    %1178 = memref.load %arg1[%c470] : memref<686xf32, #tpu.memory_space<smem>>
    %1179 = vector.broadcast %1177 : f32 to vector<8x70xf32>
    %1180 = arith.mulf %1179, %1167 : vector<8x70xf32>
    %1181 = vector.broadcast %1178 : f32 to vector<8x70xf32>
    %1182 = arith.mulf %1181, %1168 : vector<8x70xf32>
    %1183 = arith.addf %1180, %1182 : vector<8x70xf32>
    %1184 = arith.addf %1126, %1183 : vector<8x70xf32>
    %c128 = arith.constant 128 : index
    %1185 = memref.load %arg1[%c128] : memref<686xf32, #tpu.memory_space<smem>>
    %c471 = arith.constant 471 : index
    %1186 = memref.load %arg1[%c471] : memref<686xf32, #tpu.memory_space<smem>>
    %1187 = vector.broadcast %1185 : f32 to vector<8x70xf32>
    %1188 = arith.mulf %1187, %1167 : vector<8x70xf32>
    %1189 = vector.broadcast %1186 : f32 to vector<8x70xf32>
    %1190 = arith.mulf %1189, %1168 : vector<8x70xf32>
    %1191 = arith.addf %1188, %1190 : vector<8x70xf32>
    %1192 = arith.addf %1134, %1191 : vector<8x70xf32>
    %c129 = arith.constant 129 : index
    %1193 = memref.load %arg1[%c129] : memref<686xf32, #tpu.memory_space<smem>>
    %c472 = arith.constant 472 : index
    %1194 = memref.load %arg1[%c472] : memref<686xf32, #tpu.memory_space<smem>>
    %1195 = vector.broadcast %1193 : f32 to vector<8x70xf32>
    %1196 = arith.mulf %1195, %1167 : vector<8x70xf32>
    %1197 = vector.broadcast %1194 : f32 to vector<8x70xf32>
    %1198 = arith.mulf %1197, %1168 : vector<8x70xf32>
    %1199 = arith.addf %1196, %1198 : vector<8x70xf32>
    %1200 = arith.addf %1142, %1199 : vector<8x70xf32>
    %c130 = arith.constant 130 : index
    %1201 = memref.load %arg1[%c130] : memref<686xf32, #tpu.memory_space<smem>>
    %c473 = arith.constant 473 : index
    %1202 = memref.load %arg1[%c473] : memref<686xf32, #tpu.memory_space<smem>>
    %1203 = vector.broadcast %1201 : f32 to vector<8x70xf32>
    %1204 = arith.mulf %1203, %1167 : vector<8x70xf32>
    %1205 = vector.broadcast %1202 : f32 to vector<8x70xf32>
    %1206 = arith.mulf %1205, %1168 : vector<8x70xf32>
    %1207 = arith.addf %1204, %1206 : vector<8x70xf32>
    %1208 = arith.addf %1150, %1207 : vector<8x70xf32>
    %c131 = arith.constant 131 : index
    %1209 = memref.load %arg1[%c131] : memref<686xf32, #tpu.memory_space<smem>>
    %c474 = arith.constant 474 : index
    %1210 = memref.load %arg1[%c474] : memref<686xf32, #tpu.memory_space<smem>>
    %1211 = vector.broadcast %1209 : f32 to vector<8x70xf32>
    %1212 = arith.mulf %1211, %1167 : vector<8x70xf32>
    %1213 = vector.broadcast %1210 : f32 to vector<8x70xf32>
    %1214 = arith.mulf %1213, %1168 : vector<8x70xf32>
    %1215 = arith.addf %1212, %1214 : vector<8x70xf32>
    %1216 = arith.addf %1158, %1215 : vector<8x70xf32>
    %c132 = arith.constant 132 : index
    %1217 = memref.load %arg1[%c132] : memref<686xf32, #tpu.memory_space<smem>>
    %c475 = arith.constant 475 : index
    %1218 = memref.load %arg1[%c475] : memref<686xf32, #tpu.memory_space<smem>>
    %1219 = vector.broadcast %1217 : f32 to vector<8x70xf32>
    %1220 = arith.mulf %1219, %1167 : vector<8x70xf32>
    %1221 = vector.broadcast %1218 : f32 to vector<8x70xf32>
    %1222 = arith.mulf %1221, %1168 : vector<8x70xf32>
    %1223 = arith.addf %1220, %1222 : vector<8x70xf32>
    %1224 = arith.addf %1166, %1223 : vector<8x70xf32>
    %c2_135 = arith.constant 2 : index
    %c45_136 = arith.constant 45 : index
    %1225 = vector.load %arg4[%c2_135, %c45_136] : memref<14x128xf32, #tpu.memory_space<vmem>>, vector<8x70xf32>
    %c2_137 = arith.constant 2 : index
    %c45_138 = arith.constant 45 : index
    %1226 = vector.load %arg5[%c2_137, %c45_138] : memref<14x128xf32, #tpu.memory_space<vmem>>, vector<8x70xf32>
    %c133 = arith.constant 133 : index
    %1227 = memref.load %arg1[%c133] : memref<686xf32, #tpu.memory_space<smem>>
    %c476 = arith.constant 476 : index
    %1228 = memref.load %arg1[%c476] : memref<686xf32, #tpu.memory_space<smem>>
    %1229 = vector.broadcast %1227 : f32 to vector<8x70xf32>
    %1230 = arith.mulf %1229, %1225 : vector<8x70xf32>
    %1231 = vector.broadcast %1228 : f32 to vector<8x70xf32>
    %1232 = arith.mulf %1231, %1226 : vector<8x70xf32>
    %1233 = arith.addf %1230, %1232 : vector<8x70xf32>
    %1234 = arith.addf %1176, %1233 : vector<8x70xf32>
    %c134 = arith.constant 134 : index
    %1235 = memref.load %arg1[%c134] : memref<686xf32, #tpu.memory_space<smem>>
    %c477 = arith.constant 477 : index
    %1236 = memref.load %arg1[%c477] : memref<686xf32, #tpu.memory_space<smem>>
    %1237 = vector.broadcast %1235 : f32 to vector<8x70xf32>
    %1238 = arith.mulf %1237, %1225 : vector<8x70xf32>
    %1239 = vector.broadcast %1236 : f32 to vector<8x70xf32>
    %1240 = arith.mulf %1239, %1226 : vector<8x70xf32>
    %1241 = arith.addf %1238, %1240 : vector<8x70xf32>
    %1242 = arith.addf %1184, %1241 : vector<8x70xf32>
    %c135 = arith.constant 135 : index
    %1243 = memref.load %arg1[%c135] : memref<686xf32, #tpu.memory_space<smem>>
    %c478 = arith.constant 478 : index
    %1244 = memref.load %arg1[%c478] : memref<686xf32, #tpu.memory_space<smem>>
    %1245 = vector.broadcast %1243 : f32 to vector<8x70xf32>
    %1246 = arith.mulf %1245, %1225 : vector<8x70xf32>
    %1247 = vector.broadcast %1244 : f32 to vector<8x70xf32>
    %1248 = arith.mulf %1247, %1226 : vector<8x70xf32>
    %1249 = arith.addf %1246, %1248 : vector<8x70xf32>
    %1250 = arith.addf %1192, %1249 : vector<8x70xf32>
    %c136 = arith.constant 136 : index
    %1251 = memref.load %arg1[%c136] : memref<686xf32, #tpu.memory_space<smem>>
    %c479 = arith.constant 479 : index
    %1252 = memref.load %arg1[%c479] : memref<686xf32, #tpu.memory_space<smem>>
    %1253 = vector.broadcast %1251 : f32 to vector<8x70xf32>
    %1254 = arith.mulf %1253, %1225 : vector<8x70xf32>
    %1255 = vector.broadcast %1252 : f32 to vector<8x70xf32>
    %1256 = arith.mulf %1255, %1226 : vector<8x70xf32>
    %1257 = arith.addf %1254, %1256 : vector<8x70xf32>
    %1258 = arith.addf %1200, %1257 : vector<8x70xf32>
    %c137 = arith.constant 137 : index
    %1259 = memref.load %arg1[%c137] : memref<686xf32, #tpu.memory_space<smem>>
    %c480 = arith.constant 480 : index
    %1260 = memref.load %arg1[%c480] : memref<686xf32, #tpu.memory_space<smem>>
    %1261 = vector.broadcast %1259 : f32 to vector<8x70xf32>
    %1262 = arith.mulf %1261, %1225 : vector<8x70xf32>
    %1263 = vector.broadcast %1260 : f32 to vector<8x70xf32>
    %1264 = arith.mulf %1263, %1226 : vector<8x70xf32>
    %1265 = arith.addf %1262, %1264 : vector<8x70xf32>
    %1266 = arith.addf %1208, %1265 : vector<8x70xf32>
    %c138 = arith.constant 138 : index
    %1267 = memref.load %arg1[%c138] : memref<686xf32, #tpu.memory_space<smem>>
    %c481 = arith.constant 481 : index
    %1268 = memref.load %arg1[%c481] : memref<686xf32, #tpu.memory_space<smem>>
    %1269 = vector.broadcast %1267 : f32 to vector<8x70xf32>
    %1270 = arith.mulf %1269, %1225 : vector<8x70xf32>
    %1271 = vector.broadcast %1268 : f32 to vector<8x70xf32>
    %1272 = arith.mulf %1271, %1226 : vector<8x70xf32>
    %1273 = arith.addf %1270, %1272 : vector<8x70xf32>
    %1274 = arith.addf %1216, %1273 : vector<8x70xf32>
    %c139 = arith.constant 139 : index
    %1275 = memref.load %arg1[%c139] : memref<686xf32, #tpu.memory_space<smem>>
    %c482 = arith.constant 482 : index
    %1276 = memref.load %arg1[%c482] : memref<686xf32, #tpu.memory_space<smem>>
    %1277 = vector.broadcast %1275 : f32 to vector<8x70xf32>
    %1278 = arith.mulf %1277, %1225 : vector<8x70xf32>
    %1279 = vector.broadcast %1276 : f32 to vector<8x70xf32>
    %1280 = arith.mulf %1279, %1226 : vector<8x70xf32>
    %1281 = arith.addf %1278, %1280 : vector<8x70xf32>
    %1282 = arith.addf %1224, %1281 : vector<8x70xf32>
    %c2_139 = arith.constant 2 : index
    %c53_140 = arith.constant 53 : index
    %1283 = vector.load %arg4[%c2_139, %c53_140] : memref<14x128xf32, #tpu.memory_space<vmem>>, vector<8x70xf32>
    %c2_141 = arith.constant 2 : index
    %c53_142 = arith.constant 53 : index
    %1284 = vector.load %arg5[%c2_141, %c53_142] : memref<14x128xf32, #tpu.memory_space<vmem>>, vector<8x70xf32>
    %c140 = arith.constant 140 : index
    %1285 = memref.load %arg1[%c140] : memref<686xf32, #tpu.memory_space<smem>>
    %c483 = arith.constant 483 : index
    %1286 = memref.load %arg1[%c483] : memref<686xf32, #tpu.memory_space<smem>>
    %1287 = vector.broadcast %1285 : f32 to vector<8x70xf32>
    %1288 = arith.mulf %1287, %1283 : vector<8x70xf32>
    %1289 = vector.broadcast %1286 : f32 to vector<8x70xf32>
    %1290 = arith.mulf %1289, %1284 : vector<8x70xf32>
    %1291 = arith.addf %1288, %1290 : vector<8x70xf32>
    %1292 = arith.addf %1234, %1291 : vector<8x70xf32>
    %c141 = arith.constant 141 : index
    %1293 = memref.load %arg1[%c141] : memref<686xf32, #tpu.memory_space<smem>>
    %c484 = arith.constant 484 : index
    %1294 = memref.load %arg1[%c484] : memref<686xf32, #tpu.memory_space<smem>>
    %1295 = vector.broadcast %1293 : f32 to vector<8x70xf32>
    %1296 = arith.mulf %1295, %1283 : vector<8x70xf32>
    %1297 = vector.broadcast %1294 : f32 to vector<8x70xf32>
    %1298 = arith.mulf %1297, %1284 : vector<8x70xf32>
    %1299 = arith.addf %1296, %1298 : vector<8x70xf32>
    %1300 = arith.addf %1242, %1299 : vector<8x70xf32>
    %c142 = arith.constant 142 : index
    %1301 = memref.load %arg1[%c142] : memref<686xf32, #tpu.memory_space<smem>>
    %c485 = arith.constant 485 : index
    %1302 = memref.load %arg1[%c485] : memref<686xf32, #tpu.memory_space<smem>>
    %1303 = vector.broadcast %1301 : f32 to vector<8x70xf32>
    %1304 = arith.mulf %1303, %1283 : vector<8x70xf32>
    %1305 = vector.broadcast %1302 : f32 to vector<8x70xf32>
    %1306 = arith.mulf %1305, %1284 : vector<8x70xf32>
    %1307 = arith.addf %1304, %1306 : vector<8x70xf32>
    %1308 = arith.addf %1250, %1307 : vector<8x70xf32>
    %c143 = arith.constant 143 : index
    %1309 = memref.load %arg1[%c143] : memref<686xf32, #tpu.memory_space<smem>>
    %c486 = arith.constant 486 : index
    %1310 = memref.load %arg1[%c486] : memref<686xf32, #tpu.memory_space<smem>>
    %1311 = vector.broadcast %1309 : f32 to vector<8x70xf32>
    %1312 = arith.mulf %1311, %1283 : vector<8x70xf32>
    %1313 = vector.broadcast %1310 : f32 to vector<8x70xf32>
    %1314 = arith.mulf %1313, %1284 : vector<8x70xf32>
    %1315 = arith.addf %1312, %1314 : vector<8x70xf32>
    %1316 = arith.addf %1258, %1315 : vector<8x70xf32>
    %c144 = arith.constant 144 : index
    %1317 = memref.load %arg1[%c144] : memref<686xf32, #tpu.memory_space<smem>>
    %c487 = arith.constant 487 : index
    %1318 = memref.load %arg1[%c487] : memref<686xf32, #tpu.memory_space<smem>>
    %1319 = vector.broadcast %1317 : f32 to vector<8x70xf32>
    %1320 = arith.mulf %1319, %1283 : vector<8x70xf32>
    %1321 = vector.broadcast %1318 : f32 to vector<8x70xf32>
    %1322 = arith.mulf %1321, %1284 : vector<8x70xf32>
    %1323 = arith.addf %1320, %1322 : vector<8x70xf32>
    %1324 = arith.addf %1266, %1323 : vector<8x70xf32>
    %c145 = arith.constant 145 : index
    %1325 = memref.load %arg1[%c145] : memref<686xf32, #tpu.memory_space<smem>>
    %c488 = arith.constant 488 : index
    %1326 = memref.load %arg1[%c488] : memref<686xf32, #tpu.memory_space<smem>>
    %1327 = vector.broadcast %1325 : f32 to vector<8x70xf32>
    %1328 = arith.mulf %1327, %1283 : vector<8x70xf32>
    %1329 = vector.broadcast %1326 : f32 to vector<8x70xf32>
    %1330 = arith.mulf %1329, %1284 : vector<8x70xf32>
    %1331 = arith.addf %1328, %1330 : vector<8x70xf32>
    %1332 = arith.addf %1274, %1331 : vector<8x70xf32>
    %c146 = arith.constant 146 : index
    %1333 = memref.load %arg1[%c146] : memref<686xf32, #tpu.memory_space<smem>>
    %c489 = arith.constant 489 : index
    %1334 = memref.load %arg1[%c489] : memref<686xf32, #tpu.memory_space<smem>>
    %1335 = vector.broadcast %1333 : f32 to vector<8x70xf32>
    %1336 = arith.mulf %1335, %1283 : vector<8x70xf32>
    %1337 = vector.broadcast %1334 : f32 to vector<8x70xf32>
    %1338 = arith.mulf %1337, %1284 : vector<8x70xf32>
    %1339 = arith.addf %1336, %1338 : vector<8x70xf32>
    %1340 = arith.addf %1282, %1339 : vector<8x70xf32>
    %c3_143 = arith.constant 3 : index
    %c5_144 = arith.constant 5 : index
    %1341 = vector.load %arg4[%c3_143, %c5_144] : memref<14x128xf32, #tpu.memory_space<vmem>>, vector<8x70xf32>
    %c3_145 = arith.constant 3 : index
    %c5_146 = arith.constant 5 : index
    %1342 = vector.load %arg5[%c3_145, %c5_146] : memref<14x128xf32, #tpu.memory_space<vmem>>, vector<8x70xf32>
    %c147 = arith.constant 147 : index
    %1343 = memref.load %arg1[%c147] : memref<686xf32, #tpu.memory_space<smem>>
    %c490 = arith.constant 490 : index
    %1344 = memref.load %arg1[%c490] : memref<686xf32, #tpu.memory_space<smem>>
    %1345 = vector.broadcast %1343 : f32 to vector<8x70xf32>
    %1346 = arith.mulf %1345, %1341 : vector<8x70xf32>
    %1347 = vector.broadcast %1344 : f32 to vector<8x70xf32>
    %1348 = arith.mulf %1347, %1342 : vector<8x70xf32>
    %1349 = arith.addf %1346, %1348 : vector<8x70xf32>
    %1350 = arith.addf %1292, %1349 : vector<8x70xf32>
    %c148 = arith.constant 148 : index
    %1351 = memref.load %arg1[%c148] : memref<686xf32, #tpu.memory_space<smem>>
    %c491 = arith.constant 491 : index
    %1352 = memref.load %arg1[%c491] : memref<686xf32, #tpu.memory_space<smem>>
    %1353 = vector.broadcast %1351 : f32 to vector<8x70xf32>
    %1354 = arith.mulf %1353, %1341 : vector<8x70xf32>
    %1355 = vector.broadcast %1352 : f32 to vector<8x70xf32>
    %1356 = arith.mulf %1355, %1342 : vector<8x70xf32>
    %1357 = arith.addf %1354, %1356 : vector<8x70xf32>
    %1358 = arith.addf %1300, %1357 : vector<8x70xf32>
    %c149 = arith.constant 149 : index
    %1359 = memref.load %arg1[%c149] : memref<686xf32, #tpu.memory_space<smem>>
    %c492 = arith.constant 492 : index
    %1360 = memref.load %arg1[%c492] : memref<686xf32, #tpu.memory_space<smem>>
    %1361 = vector.broadcast %1359 : f32 to vector<8x70xf32>
    %1362 = arith.mulf %1361, %1341 : vector<8x70xf32>
    %1363 = vector.broadcast %1360 : f32 to vector<8x70xf32>
    %1364 = arith.mulf %1363, %1342 : vector<8x70xf32>
    %1365 = arith.addf %1362, %1364 : vector<8x70xf32>
    %1366 = arith.addf %1308, %1365 : vector<8x70xf32>
    %c150 = arith.constant 150 : index
    %1367 = memref.load %arg1[%c150] : memref<686xf32, #tpu.memory_space<smem>>
    %c493 = arith.constant 493 : index
    %1368 = memref.load %arg1[%c493] : memref<686xf32, #tpu.memory_space<smem>>
    %1369 = vector.broadcast %1367 : f32 to vector<8x70xf32>
    %1370 = arith.mulf %1369, %1341 : vector<8x70xf32>
    %1371 = vector.broadcast %1368 : f32 to vector<8x70xf32>
    %1372 = arith.mulf %1371, %1342 : vector<8x70xf32>
    %1373 = arith.addf %1370, %1372 : vector<8x70xf32>
    %1374 = arith.addf %1316, %1373 : vector<8x70xf32>
    %c151 = arith.constant 151 : index
    %1375 = memref.load %arg1[%c151] : memref<686xf32, #tpu.memory_space<smem>>
    %c494 = arith.constant 494 : index
    %1376 = memref.load %arg1[%c494] : memref<686xf32, #tpu.memory_space<smem>>
    %1377 = vector.broadcast %1375 : f32 to vector<8x70xf32>
    %1378 = arith.mulf %1377, %1341 : vector<8x70xf32>
    %1379 = vector.broadcast %1376 : f32 to vector<8x70xf32>
    %1380 = arith.mulf %1379, %1342 : vector<8x70xf32>
    %1381 = arith.addf %1378, %1380 : vector<8x70xf32>
    %1382 = arith.addf %1324, %1381 : vector<8x70xf32>
    %c152 = arith.constant 152 : index
    %1383 = memref.load %arg1[%c152] : memref<686xf32, #tpu.memory_space<smem>>
    %c495 = arith.constant 495 : index
    %1384 = memref.load %arg1[%c495] : memref<686xf32, #tpu.memory_space<smem>>
    %1385 = vector.broadcast %1383 : f32 to vector<8x70xf32>
    %1386 = arith.mulf %1385, %1341 : vector<8x70xf32>
    %1387 = vector.broadcast %1384 : f32 to vector<8x70xf32>
    %1388 = arith.mulf %1387, %1342 : vector<8x70xf32>
    %1389 = arith.addf %1386, %1388 : vector<8x70xf32>
    %1390 = arith.addf %1332, %1389 : vector<8x70xf32>
    %c153 = arith.constant 153 : index
    %1391 = memref.load %arg1[%c153] : memref<686xf32, #tpu.memory_space<smem>>
    %c496 = arith.constant 496 : index
    %1392 = memref.load %arg1[%c496] : memref<686xf32, #tpu.memory_space<smem>>
    %1393 = vector.broadcast %1391 : f32 to vector<8x70xf32>
    %1394 = arith.mulf %1393, %1341 : vector<8x70xf32>
    %1395 = vector.broadcast %1392 : f32 to vector<8x70xf32>
    %1396 = arith.mulf %1395, %1342 : vector<8x70xf32>
    %1397 = arith.addf %1394, %1396 : vector<8x70xf32>
    %1398 = arith.addf %1340, %1397 : vector<8x70xf32>
    %c3_147 = arith.constant 3 : index
    %c13_148 = arith.constant 13 : index
    %1399 = vector.load %arg4[%c3_147, %c13_148] : memref<14x128xf32, #tpu.memory_space<vmem>>, vector<8x70xf32>
    %c3_149 = arith.constant 3 : index
    %c13_150 = arith.constant 13 : index
    %1400 = vector.load %arg5[%c3_149, %c13_150] : memref<14x128xf32, #tpu.memory_space<vmem>>, vector<8x70xf32>
    %c154 = arith.constant 154 : index
    %1401 = memref.load %arg1[%c154] : memref<686xf32, #tpu.memory_space<smem>>
    %c497 = arith.constant 497 : index
    %1402 = memref.load %arg1[%c497] : memref<686xf32, #tpu.memory_space<smem>>
    %1403 = vector.broadcast %1401 : f32 to vector<8x70xf32>
    %1404 = arith.mulf %1403, %1399 : vector<8x70xf32>
    %1405 = vector.broadcast %1402 : f32 to vector<8x70xf32>
    %1406 = arith.mulf %1405, %1400 : vector<8x70xf32>
    %1407 = arith.addf %1404, %1406 : vector<8x70xf32>
    %1408 = arith.addf %1350, %1407 : vector<8x70xf32>
    %c155 = arith.constant 155 : index
    %1409 = memref.load %arg1[%c155] : memref<686xf32, #tpu.memory_space<smem>>
    %c498 = arith.constant 498 : index
    %1410 = memref.load %arg1[%c498] : memref<686xf32, #tpu.memory_space<smem>>
    %1411 = vector.broadcast %1409 : f32 to vector<8x70xf32>
    %1412 = arith.mulf %1411, %1399 : vector<8x70xf32>
    %1413 = vector.broadcast %1410 : f32 to vector<8x70xf32>
    %1414 = arith.mulf %1413, %1400 : vector<8x70xf32>
    %1415 = arith.addf %1412, %1414 : vector<8x70xf32>
    %1416 = arith.addf %1358, %1415 : vector<8x70xf32>
    %c156 = arith.constant 156 : index
    %1417 = memref.load %arg1[%c156] : memref<686xf32, #tpu.memory_space<smem>>
    %c499 = arith.constant 499 : index
    %1418 = memref.load %arg1[%c499] : memref<686xf32, #tpu.memory_space<smem>>
    %1419 = vector.broadcast %1417 : f32 to vector<8x70xf32>
    %1420 = arith.mulf %1419, %1399 : vector<8x70xf32>
    %1421 = vector.broadcast %1418 : f32 to vector<8x70xf32>
    %1422 = arith.mulf %1421, %1400 : vector<8x70xf32>
    %1423 = arith.addf %1420, %1422 : vector<8x70xf32>
    %1424 = arith.addf %1366, %1423 : vector<8x70xf32>
    %c157 = arith.constant 157 : index
    %1425 = memref.load %arg1[%c157] : memref<686xf32, #tpu.memory_space<smem>>
    %c500 = arith.constant 500 : index
    %1426 = memref.load %arg1[%c500] : memref<686xf32, #tpu.memory_space<smem>>
    %1427 = vector.broadcast %1425 : f32 to vector<8x70xf32>
    %1428 = arith.mulf %1427, %1399 : vector<8x70xf32>
    %1429 = vector.broadcast %1426 : f32 to vector<8x70xf32>
    %1430 = arith.mulf %1429, %1400 : vector<8x70xf32>
    %1431 = arith.addf %1428, %1430 : vector<8x70xf32>
    %1432 = arith.addf %1374, %1431 : vector<8x70xf32>
    %c158 = arith.constant 158 : index
    %1433 = memref.load %arg1[%c158] : memref<686xf32, #tpu.memory_space<smem>>
    %c501 = arith.constant 501 : index
    %1434 = memref.load %arg1[%c501] : memref<686xf32, #tpu.memory_space<smem>>
    %1435 = vector.broadcast %1433 : f32 to vector<8x70xf32>
    %1436 = arith.mulf %1435, %1399 : vector<8x70xf32>
    %1437 = vector.broadcast %1434 : f32 to vector<8x70xf32>
    %1438 = arith.mulf %1437, %1400 : vector<8x70xf32>
    %1439 = arith.addf %1436, %1438 : vector<8x70xf32>
    %1440 = arith.addf %1382, %1439 : vector<8x70xf32>
    %c159 = arith.constant 159 : index
    %1441 = memref.load %arg1[%c159] : memref<686xf32, #tpu.memory_space<smem>>
    %c502 = arith.constant 502 : index
    %1442 = memref.load %arg1[%c502] : memref<686xf32, #tpu.memory_space<smem>>
    %1443 = vector.broadcast %1441 : f32 to vector<8x70xf32>
    %1444 = arith.mulf %1443, %1399 : vector<8x70xf32>
    %1445 = vector.broadcast %1442 : f32 to vector<8x70xf32>
    %1446 = arith.mulf %1445, %1400 : vector<8x70xf32>
    %1447 = arith.addf %1444, %1446 : vector<8x70xf32>
    %1448 = arith.addf %1390, %1447 : vector<8x70xf32>
    %c160 = arith.constant 160 : index
    %1449 = memref.load %arg1[%c160] : memref<686xf32, #tpu.memory_space<smem>>
    %c503 = arith.constant 503 : index
    %1450 = memref.load %arg1[%c503] : memref<686xf32, #tpu.memory_space<smem>>
    %1451 = vector.broadcast %1449 : f32 to vector<8x70xf32>
    %1452 = arith.mulf %1451, %1399 : vector<8x70xf32>
    %1453 = vector.broadcast %1450 : f32 to vector<8x70xf32>
    %1454 = arith.mulf %1453, %1400 : vector<8x70xf32>
    %1455 = arith.addf %1452, %1454 : vector<8x70xf32>
    %1456 = arith.addf %1398, %1455 : vector<8x70xf32>
    %c3_151 = arith.constant 3 : index
    %c21_152 = arith.constant 21 : index
    %1457 = vector.load %arg4[%c3_151, %c21_152] : memref<14x128xf32, #tpu.memory_space<vmem>>, vector<8x70xf32>
    %c3_153 = arith.constant 3 : index
    %c21_154 = arith.constant 21 : index
    %1458 = vector.load %arg5[%c3_153, %c21_154] : memref<14x128xf32, #tpu.memory_space<vmem>>, vector<8x70xf32>
    %c161 = arith.constant 161 : index
    %1459 = memref.load %arg1[%c161] : memref<686xf32, #tpu.memory_space<smem>>
    %c504 = arith.constant 504 : index
    %1460 = memref.load %arg1[%c504] : memref<686xf32, #tpu.memory_space<smem>>
    %1461 = vector.broadcast %1459 : f32 to vector<8x70xf32>
    %1462 = arith.mulf %1461, %1457 : vector<8x70xf32>
    %1463 = vector.broadcast %1460 : f32 to vector<8x70xf32>
    %1464 = arith.mulf %1463, %1458 : vector<8x70xf32>
    %1465 = arith.addf %1462, %1464 : vector<8x70xf32>
    %1466 = arith.addf %1408, %1465 : vector<8x70xf32>
    %c162 = arith.constant 162 : index
    %1467 = memref.load %arg1[%c162] : memref<686xf32, #tpu.memory_space<smem>>
    %c505 = arith.constant 505 : index
    %1468 = memref.load %arg1[%c505] : memref<686xf32, #tpu.memory_space<smem>>
    %1469 = vector.broadcast %1467 : f32 to vector<8x70xf32>
    %1470 = arith.mulf %1469, %1457 : vector<8x70xf32>
    %1471 = vector.broadcast %1468 : f32 to vector<8x70xf32>
    %1472 = arith.mulf %1471, %1458 : vector<8x70xf32>
    %1473 = arith.addf %1470, %1472 : vector<8x70xf32>
    %1474 = arith.addf %1416, %1473 : vector<8x70xf32>
    %c163 = arith.constant 163 : index
    %1475 = memref.load %arg1[%c163] : memref<686xf32, #tpu.memory_space<smem>>
    %c506 = arith.constant 506 : index
    %1476 = memref.load %arg1[%c506] : memref<686xf32, #tpu.memory_space<smem>>
    %1477 = vector.broadcast %1475 : f32 to vector<8x70xf32>
    %1478 = arith.mulf %1477, %1457 : vector<8x70xf32>
    %1479 = vector.broadcast %1476 : f32 to vector<8x70xf32>
    %1480 = arith.mulf %1479, %1458 : vector<8x70xf32>
    %1481 = arith.addf %1478, %1480 : vector<8x70xf32>
    %1482 = arith.addf %1424, %1481 : vector<8x70xf32>
    %c164 = arith.constant 164 : index
    %1483 = memref.load %arg1[%c164] : memref<686xf32, #tpu.memory_space<smem>>
    %c507 = arith.constant 507 : index
    %1484 = memref.load %arg1[%c507] : memref<686xf32, #tpu.memory_space<smem>>
    %1485 = vector.broadcast %1483 : f32 to vector<8x70xf32>
    %1486 = arith.mulf %1485, %1457 : vector<8x70xf32>
    %1487 = vector.broadcast %1484 : f32 to vector<8x70xf32>
    %1488 = arith.mulf %1487, %1458 : vector<8x70xf32>
    %1489 = arith.addf %1486, %1488 : vector<8x70xf32>
    %1490 = arith.addf %1432, %1489 : vector<8x70xf32>
    %c165 = arith.constant 165 : index
    %1491 = memref.load %arg1[%c165] : memref<686xf32, #tpu.memory_space<smem>>
    %c508 = arith.constant 508 : index
    %1492 = memref.load %arg1[%c508] : memref<686xf32, #tpu.memory_space<smem>>
    %1493 = vector.broadcast %1491 : f32 to vector<8x70xf32>
    %1494 = arith.mulf %1493, %1457 : vector<8x70xf32>
    %1495 = vector.broadcast %1492 : f32 to vector<8x70xf32>
    %1496 = arith.mulf %1495, %1458 : vector<8x70xf32>
    %1497 = arith.addf %1494, %1496 : vector<8x70xf32>
    %1498 = arith.addf %1440, %1497 : vector<8x70xf32>
    %c166 = arith.constant 166 : index
    %1499 = memref.load %arg1[%c166] : memref<686xf32, #tpu.memory_space<smem>>
    %c509 = arith.constant 509 : index
    %1500 = memref.load %arg1[%c509] : memref<686xf32, #tpu.memory_space<smem>>
    %1501 = vector.broadcast %1499 : f32 to vector<8x70xf32>
    %1502 = arith.mulf %1501, %1457 : vector<8x70xf32>
    %1503 = vector.broadcast %1500 : f32 to vector<8x70xf32>
    %1504 = arith.mulf %1503, %1458 : vector<8x70xf32>
    %1505 = arith.addf %1502, %1504 : vector<8x70xf32>
    %1506 = arith.addf %1448, %1505 : vector<8x70xf32>
    %c167 = arith.constant 167 : index
    %1507 = memref.load %arg1[%c167] : memref<686xf32, #tpu.memory_space<smem>>
    %c510 = arith.constant 510 : index
    %1508 = memref.load %arg1[%c510] : memref<686xf32, #tpu.memory_space<smem>>
    %1509 = vector.broadcast %1507 : f32 to vector<8x70xf32>
    %1510 = arith.mulf %1509, %1457 : vector<8x70xf32>
    %1511 = vector.broadcast %1508 : f32 to vector<8x70xf32>
    %1512 = arith.mulf %1511, %1458 : vector<8x70xf32>
    %1513 = arith.addf %1510, %1512 : vector<8x70xf32>
    %1514 = arith.addf %1456, %1513 : vector<8x70xf32>
    %c3_155 = arith.constant 3 : index
    %c29_156 = arith.constant 29 : index
    %1515 = vector.load %arg4[%c3_155, %c29_156] : memref<14x128xf32, #tpu.memory_space<vmem>>, vector<8x70xf32>
    %c3_157 = arith.constant 3 : index
    %c29_158 = arith.constant 29 : index
    %1516 = vector.load %arg5[%c3_157, %c29_158] : memref<14x128xf32, #tpu.memory_space<vmem>>, vector<8x70xf32>
    %c168 = arith.constant 168 : index
    %1517 = memref.load %arg1[%c168] : memref<686xf32, #tpu.memory_space<smem>>
    %c511 = arith.constant 511 : index
    %1518 = memref.load %arg1[%c511] : memref<686xf32, #tpu.memory_space<smem>>
    %1519 = vector.broadcast %1517 : f32 to vector<8x70xf32>
    %1520 = arith.mulf %1519, %1515 : vector<8x70xf32>
    %1521 = vector.broadcast %1518 : f32 to vector<8x70xf32>
    %1522 = arith.mulf %1521, %1516 : vector<8x70xf32>
    %1523 = arith.addf %1520, %1522 : vector<8x70xf32>
    %1524 = arith.addf %1466, %1523 : vector<8x70xf32>
    %c169 = arith.constant 169 : index
    %1525 = memref.load %arg1[%c169] : memref<686xf32, #tpu.memory_space<smem>>
    %c512 = arith.constant 512 : index
    %1526 = memref.load %arg1[%c512] : memref<686xf32, #tpu.memory_space<smem>>
    %1527 = vector.broadcast %1525 : f32 to vector<8x70xf32>
    %1528 = arith.mulf %1527, %1515 : vector<8x70xf32>
    %1529 = vector.broadcast %1526 : f32 to vector<8x70xf32>
    %1530 = arith.mulf %1529, %1516 : vector<8x70xf32>
    %1531 = arith.addf %1528, %1530 : vector<8x70xf32>
    %1532 = arith.addf %1474, %1531 : vector<8x70xf32>
    %c170 = arith.constant 170 : index
    %1533 = memref.load %arg1[%c170] : memref<686xf32, #tpu.memory_space<smem>>
    %c513 = arith.constant 513 : index
    %1534 = memref.load %arg1[%c513] : memref<686xf32, #tpu.memory_space<smem>>
    %1535 = vector.broadcast %1533 : f32 to vector<8x70xf32>
    %1536 = arith.mulf %1535, %1515 : vector<8x70xf32>
    %1537 = vector.broadcast %1534 : f32 to vector<8x70xf32>
    %1538 = arith.mulf %1537, %1516 : vector<8x70xf32>
    %1539 = arith.addf %1536, %1538 : vector<8x70xf32>
    %1540 = arith.addf %1482, %1539 : vector<8x70xf32>
    %c171 = arith.constant 171 : index
    %1541 = memref.load %arg1[%c171] : memref<686xf32, #tpu.memory_space<smem>>
    %c514 = arith.constant 514 : index
    %1542 = memref.load %arg1[%c514] : memref<686xf32, #tpu.memory_space<smem>>
    %1543 = vector.broadcast %1541 : f32 to vector<8x70xf32>
    %1544 = arith.mulf %1543, %1515 : vector<8x70xf32>
    %1545 = vector.broadcast %1542 : f32 to vector<8x70xf32>
    %1546 = arith.mulf %1545, %1516 : vector<8x70xf32>
    %1547 = arith.addf %1544, %1546 : vector<8x70xf32>
    %1548 = arith.addf %1490, %1547 : vector<8x70xf32>
    %c172 = arith.constant 172 : index
    %1549 = memref.load %arg1[%c172] : memref<686xf32, #tpu.memory_space<smem>>
    %c515 = arith.constant 515 : index
    %1550 = memref.load %arg1[%c515] : memref<686xf32, #tpu.memory_space<smem>>
    %1551 = vector.broadcast %1549 : f32 to vector<8x70xf32>
    %1552 = arith.mulf %1551, %1515 : vector<8x70xf32>
    %1553 = vector.broadcast %1550 : f32 to vector<8x70xf32>
    %1554 = arith.mulf %1553, %1516 : vector<8x70xf32>
    %1555 = arith.addf %1552, %1554 : vector<8x70xf32>
    %1556 = arith.addf %1498, %1555 : vector<8x70xf32>
    %c173 = arith.constant 173 : index
    %1557 = memref.load %arg1[%c173] : memref<686xf32, #tpu.memory_space<smem>>
    %c516 = arith.constant 516 : index
    %1558 = memref.load %arg1[%c516] : memref<686xf32, #tpu.memory_space<smem>>
    %1559 = vector.broadcast %1557 : f32 to vector<8x70xf32>
    %1560 = arith.mulf %1559, %1515 : vector<8x70xf32>
    %1561 = vector.broadcast %1558 : f32 to vector<8x70xf32>
    %1562 = arith.mulf %1561, %1516 : vector<8x70xf32>
    %1563 = arith.addf %1560, %1562 : vector<8x70xf32>
    %1564 = arith.addf %1506, %1563 : vector<8x70xf32>
    %c174 = arith.constant 174 : index
    %1565 = memref.load %arg1[%c174] : memref<686xf32, #tpu.memory_space<smem>>
    %c517 = arith.constant 517 : index
    %1566 = memref.load %arg1[%c517] : memref<686xf32, #tpu.memory_space<smem>>
    %1567 = vector.broadcast %1565 : f32 to vector<8x70xf32>
    %1568 = arith.mulf %1567, %1515 : vector<8x70xf32>
    %1569 = vector.broadcast %1566 : f32 to vector<8x70xf32>
    %1570 = arith.mulf %1569, %1516 : vector<8x70xf32>
    %1571 = arith.addf %1568, %1570 : vector<8x70xf32>
    %1572 = arith.addf %1514, %1571 : vector<8x70xf32>
    %c3_159 = arith.constant 3 : index
    %c37_160 = arith.constant 37 : index
    %1573 = vector.load %arg4[%c3_159, %c37_160] : memref<14x128xf32, #tpu.memory_space<vmem>>, vector<8x70xf32>
    %c3_161 = arith.constant 3 : index
    %c37_162 = arith.constant 37 : index
    %1574 = vector.load %arg5[%c3_161, %c37_162] : memref<14x128xf32, #tpu.memory_space<vmem>>, vector<8x70xf32>
    %c175 = arith.constant 175 : index
    %1575 = memref.load %arg1[%c175] : memref<686xf32, #tpu.memory_space<smem>>
    %c518 = arith.constant 518 : index
    %1576 = memref.load %arg1[%c518] : memref<686xf32, #tpu.memory_space<smem>>
    %1577 = vector.broadcast %1575 : f32 to vector<8x70xf32>
    %1578 = arith.mulf %1577, %1573 : vector<8x70xf32>
    %1579 = vector.broadcast %1576 : f32 to vector<8x70xf32>
    %1580 = arith.mulf %1579, %1574 : vector<8x70xf32>
    %1581 = arith.addf %1578, %1580 : vector<8x70xf32>
    %1582 = arith.addf %1524, %1581 : vector<8x70xf32>
    %c176 = arith.constant 176 : index
    %1583 = memref.load %arg1[%c176] : memref<686xf32, #tpu.memory_space<smem>>
    %c519 = arith.constant 519 : index
    %1584 = memref.load %arg1[%c519] : memref<686xf32, #tpu.memory_space<smem>>
    %1585 = vector.broadcast %1583 : f32 to vector<8x70xf32>
    %1586 = arith.mulf %1585, %1573 : vector<8x70xf32>
    %1587 = vector.broadcast %1584 : f32 to vector<8x70xf32>
    %1588 = arith.mulf %1587, %1574 : vector<8x70xf32>
    %1589 = arith.addf %1586, %1588 : vector<8x70xf32>
    %1590 = arith.addf %1532, %1589 : vector<8x70xf32>
    %c177 = arith.constant 177 : index
    %1591 = memref.load %arg1[%c177] : memref<686xf32, #tpu.memory_space<smem>>
    %c520 = arith.constant 520 : index
    %1592 = memref.load %arg1[%c520] : memref<686xf32, #tpu.memory_space<smem>>
    %1593 = vector.broadcast %1591 : f32 to vector<8x70xf32>
    %1594 = arith.mulf %1593, %1573 : vector<8x70xf32>
    %1595 = vector.broadcast %1592 : f32 to vector<8x70xf32>
    %1596 = arith.mulf %1595, %1574 : vector<8x70xf32>
    %1597 = arith.addf %1594, %1596 : vector<8x70xf32>
    %1598 = arith.addf %1540, %1597 : vector<8x70xf32>
    %c178 = arith.constant 178 : index
    %1599 = memref.load %arg1[%c178] : memref<686xf32, #tpu.memory_space<smem>>
    %c521 = arith.constant 521 : index
    %1600 = memref.load %arg1[%c521] : memref<686xf32, #tpu.memory_space<smem>>
    %1601 = vector.broadcast %1599 : f32 to vector<8x70xf32>
    %1602 = arith.mulf %1601, %1573 : vector<8x70xf32>
    %1603 = vector.broadcast %1600 : f32 to vector<8x70xf32>
    %1604 = arith.mulf %1603, %1574 : vector<8x70xf32>
    %1605 = arith.addf %1602, %1604 : vector<8x70xf32>
    %1606 = arith.addf %1548, %1605 : vector<8x70xf32>
    %c179 = arith.constant 179 : index
    %1607 = memref.load %arg1[%c179] : memref<686xf32, #tpu.memory_space<smem>>
    %c522 = arith.constant 522 : index
    %1608 = memref.load %arg1[%c522] : memref<686xf32, #tpu.memory_space<smem>>
    %1609 = vector.broadcast %1607 : f32 to vector<8x70xf32>
    %1610 = arith.mulf %1609, %1573 : vector<8x70xf32>
    %1611 = vector.broadcast %1608 : f32 to vector<8x70xf32>
    %1612 = arith.mulf %1611, %1574 : vector<8x70xf32>
    %1613 = arith.addf %1610, %1612 : vector<8x70xf32>
    %1614 = arith.addf %1556, %1613 : vector<8x70xf32>
    %c180 = arith.constant 180 : index
    %1615 = memref.load %arg1[%c180] : memref<686xf32, #tpu.memory_space<smem>>
    %c523 = arith.constant 523 : index
    %1616 = memref.load %arg1[%c523] : memref<686xf32, #tpu.memory_space<smem>>
    %1617 = vector.broadcast %1615 : f32 to vector<8x70xf32>
    %1618 = arith.mulf %1617, %1573 : vector<8x70xf32>
    %1619 = vector.broadcast %1616 : f32 to vector<8x70xf32>
    %1620 = arith.mulf %1619, %1574 : vector<8x70xf32>
    %1621 = arith.addf %1618, %1620 : vector<8x70xf32>
    %1622 = arith.addf %1564, %1621 : vector<8x70xf32>
    %c181 = arith.constant 181 : index
    %1623 = memref.load %arg1[%c181] : memref<686xf32, #tpu.memory_space<smem>>
    %c524 = arith.constant 524 : index
    %1624 = memref.load %arg1[%c524] : memref<686xf32, #tpu.memory_space<smem>>
    %1625 = vector.broadcast %1623 : f32 to vector<8x70xf32>
    %1626 = arith.mulf %1625, %1573 : vector<8x70xf32>
    %1627 = vector.broadcast %1624 : f32 to vector<8x70xf32>
    %1628 = arith.mulf %1627, %1574 : vector<8x70xf32>
    %1629 = arith.addf %1626, %1628 : vector<8x70xf32>
    %1630 = arith.addf %1572, %1629 : vector<8x70xf32>
    %c3_163 = arith.constant 3 : index
    %c45_164 = arith.constant 45 : index
    %1631 = vector.load %arg4[%c3_163, %c45_164] : memref<14x128xf32, #tpu.memory_space<vmem>>, vector<8x70xf32>
    %c3_165 = arith.constant 3 : index
    %c45_166 = arith.constant 45 : index
    %1632 = vector.load %arg5[%c3_165, %c45_166] : memref<14x128xf32, #tpu.memory_space<vmem>>, vector<8x70xf32>
    %c182 = arith.constant 182 : index
    %1633 = memref.load %arg1[%c182] : memref<686xf32, #tpu.memory_space<smem>>
    %c525 = arith.constant 525 : index
    %1634 = memref.load %arg1[%c525] : memref<686xf32, #tpu.memory_space<smem>>
    %1635 = vector.broadcast %1633 : f32 to vector<8x70xf32>
    %1636 = arith.mulf %1635, %1631 : vector<8x70xf32>
    %1637 = vector.broadcast %1634 : f32 to vector<8x70xf32>
    %1638 = arith.mulf %1637, %1632 : vector<8x70xf32>
    %1639 = arith.addf %1636, %1638 : vector<8x70xf32>
    %1640 = arith.addf %1582, %1639 : vector<8x70xf32>
    %c183 = arith.constant 183 : index
    %1641 = memref.load %arg1[%c183] : memref<686xf32, #tpu.memory_space<smem>>
    %c526 = arith.constant 526 : index
    %1642 = memref.load %arg1[%c526] : memref<686xf32, #tpu.memory_space<smem>>
    %1643 = vector.broadcast %1641 : f32 to vector<8x70xf32>
    %1644 = arith.mulf %1643, %1631 : vector<8x70xf32>
    %1645 = vector.broadcast %1642 : f32 to vector<8x70xf32>
    %1646 = arith.mulf %1645, %1632 : vector<8x70xf32>
    %1647 = arith.addf %1644, %1646 : vector<8x70xf32>
    %1648 = arith.addf %1590, %1647 : vector<8x70xf32>
    %c184 = arith.constant 184 : index
    %1649 = memref.load %arg1[%c184] : memref<686xf32, #tpu.memory_space<smem>>
    %c527 = arith.constant 527 : index
    %1650 = memref.load %arg1[%c527] : memref<686xf32, #tpu.memory_space<smem>>
    %1651 = vector.broadcast %1649 : f32 to vector<8x70xf32>
    %1652 = arith.mulf %1651, %1631 : vector<8x70xf32>
    %1653 = vector.broadcast %1650 : f32 to vector<8x70xf32>
    %1654 = arith.mulf %1653, %1632 : vector<8x70xf32>
    %1655 = arith.addf %1652, %1654 : vector<8x70xf32>
    %1656 = arith.addf %1598, %1655 : vector<8x70xf32>
    %c185 = arith.constant 185 : index
    %1657 = memref.load %arg1[%c185] : memref<686xf32, #tpu.memory_space<smem>>
    %c528 = arith.constant 528 : index
    %1658 = memref.load %arg1[%c528] : memref<686xf32, #tpu.memory_space<smem>>
    %1659 = vector.broadcast %1657 : f32 to vector<8x70xf32>
    %1660 = arith.mulf %1659, %1631 : vector<8x70xf32>
    %1661 = vector.broadcast %1658 : f32 to vector<8x70xf32>
    %1662 = arith.mulf %1661, %1632 : vector<8x70xf32>
    %1663 = arith.addf %1660, %1662 : vector<8x70xf32>
    %1664 = arith.addf %1606, %1663 : vector<8x70xf32>
    %c186 = arith.constant 186 : index
    %1665 = memref.load %arg1[%c186] : memref<686xf32, #tpu.memory_space<smem>>
    %c529 = arith.constant 529 : index
    %1666 = memref.load %arg1[%c529] : memref<686xf32, #tpu.memory_space<smem>>
    %1667 = vector.broadcast %1665 : f32 to vector<8x70xf32>
    %1668 = arith.mulf %1667, %1631 : vector<8x70xf32>
    %1669 = vector.broadcast %1666 : f32 to vector<8x70xf32>
    %1670 = arith.mulf %1669, %1632 : vector<8x70xf32>
    %1671 = arith.addf %1668, %1670 : vector<8x70xf32>
    %1672 = arith.addf %1614, %1671 : vector<8x70xf32>
    %c187 = arith.constant 187 : index
    %1673 = memref.load %arg1[%c187] : memref<686xf32, #tpu.memory_space<smem>>
    %c530 = arith.constant 530 : index
    %1674 = memref.load %arg1[%c530] : memref<686xf32, #tpu.memory_space<smem>>
    %1675 = vector.broadcast %1673 : f32 to vector<8x70xf32>
    %1676 = arith.mulf %1675, %1631 : vector<8x70xf32>
    %1677 = vector.broadcast %1674 : f32 to vector<8x70xf32>
    %1678 = arith.mulf %1677, %1632 : vector<8x70xf32>
    %1679 = arith.addf %1676, %1678 : vector<8x70xf32>
    %1680 = arith.addf %1622, %1679 : vector<8x70xf32>
    %c188 = arith.constant 188 : index
    %1681 = memref.load %arg1[%c188] : memref<686xf32, #tpu.memory_space<smem>>
    %c531 = arith.constant 531 : index
    %1682 = memref.load %arg1[%c531] : memref<686xf32, #tpu.memory_space<smem>>
    %1683 = vector.broadcast %1681 : f32 to vector<8x70xf32>
    %1684 = arith.mulf %1683, %1631 : vector<8x70xf32>
    %1685 = vector.broadcast %1682 : f32 to vector<8x70xf32>
    %1686 = arith.mulf %1685, %1632 : vector<8x70xf32>
    %1687 = arith.addf %1684, %1686 : vector<8x70xf32>
    %1688 = arith.addf %1630, %1687 : vector<8x70xf32>
    %c3_167 = arith.constant 3 : index
    %c53_168 = arith.constant 53 : index
    %1689 = vector.load %arg4[%c3_167, %c53_168] : memref<14x128xf32, #tpu.memory_space<vmem>>, vector<8x70xf32>
    %c3_169 = arith.constant 3 : index
    %c53_170 = arith.constant 53 : index
    %1690 = vector.load %arg5[%c3_169, %c53_170] : memref<14x128xf32, #tpu.memory_space<vmem>>, vector<8x70xf32>
    %c189 = arith.constant 189 : index
    %1691 = memref.load %arg1[%c189] : memref<686xf32, #tpu.memory_space<smem>>
    %c532 = arith.constant 532 : index
    %1692 = memref.load %arg1[%c532] : memref<686xf32, #tpu.memory_space<smem>>
    %1693 = vector.broadcast %1691 : f32 to vector<8x70xf32>
    %1694 = arith.mulf %1693, %1689 : vector<8x70xf32>
    %1695 = vector.broadcast %1692 : f32 to vector<8x70xf32>
    %1696 = arith.mulf %1695, %1690 : vector<8x70xf32>
    %1697 = arith.addf %1694, %1696 : vector<8x70xf32>
    %1698 = arith.addf %1640, %1697 : vector<8x70xf32>
    %c190 = arith.constant 190 : index
    %1699 = memref.load %arg1[%c190] : memref<686xf32, #tpu.memory_space<smem>>
    %c533 = arith.constant 533 : index
    %1700 = memref.load %arg1[%c533] : memref<686xf32, #tpu.memory_space<smem>>
    %1701 = vector.broadcast %1699 : f32 to vector<8x70xf32>
    %1702 = arith.mulf %1701, %1689 : vector<8x70xf32>
    %1703 = vector.broadcast %1700 : f32 to vector<8x70xf32>
    %1704 = arith.mulf %1703, %1690 : vector<8x70xf32>
    %1705 = arith.addf %1702, %1704 : vector<8x70xf32>
    %1706 = arith.addf %1648, %1705 : vector<8x70xf32>
    %c191 = arith.constant 191 : index
    %1707 = memref.load %arg1[%c191] : memref<686xf32, #tpu.memory_space<smem>>
    %c534 = arith.constant 534 : index
    %1708 = memref.load %arg1[%c534] : memref<686xf32, #tpu.memory_space<smem>>
    %1709 = vector.broadcast %1707 : f32 to vector<8x70xf32>
    %1710 = arith.mulf %1709, %1689 : vector<8x70xf32>
    %1711 = vector.broadcast %1708 : f32 to vector<8x70xf32>
    %1712 = arith.mulf %1711, %1690 : vector<8x70xf32>
    %1713 = arith.addf %1710, %1712 : vector<8x70xf32>
    %1714 = arith.addf %1656, %1713 : vector<8x70xf32>
    %c192 = arith.constant 192 : index
    %1715 = memref.load %arg1[%c192] : memref<686xf32, #tpu.memory_space<smem>>
    %c535 = arith.constant 535 : index
    %1716 = memref.load %arg1[%c535] : memref<686xf32, #tpu.memory_space<smem>>
    %1717 = vector.broadcast %1715 : f32 to vector<8x70xf32>
    %1718 = arith.mulf %1717, %1689 : vector<8x70xf32>
    %1719 = vector.broadcast %1716 : f32 to vector<8x70xf32>
    %1720 = arith.mulf %1719, %1690 : vector<8x70xf32>
    %1721 = arith.addf %1718, %1720 : vector<8x70xf32>
    %1722 = arith.addf %1664, %1721 : vector<8x70xf32>
    %c193 = arith.constant 193 : index
    %1723 = memref.load %arg1[%c193] : memref<686xf32, #tpu.memory_space<smem>>
    %c536 = arith.constant 536 : index
    %1724 = memref.load %arg1[%c536] : memref<686xf32, #tpu.memory_space<smem>>
    %1725 = vector.broadcast %1723 : f32 to vector<8x70xf32>
    %1726 = arith.mulf %1725, %1689 : vector<8x70xf32>
    %1727 = vector.broadcast %1724 : f32 to vector<8x70xf32>
    %1728 = arith.mulf %1727, %1690 : vector<8x70xf32>
    %1729 = arith.addf %1726, %1728 : vector<8x70xf32>
    %1730 = arith.addf %1672, %1729 : vector<8x70xf32>
    %c194 = arith.constant 194 : index
    %1731 = memref.load %arg1[%c194] : memref<686xf32, #tpu.memory_space<smem>>
    %c537 = arith.constant 537 : index
    %1732 = memref.load %arg1[%c537] : memref<686xf32, #tpu.memory_space<smem>>
    %1733 = vector.broadcast %1731 : f32 to vector<8x70xf32>
    %1734 = arith.mulf %1733, %1689 : vector<8x70xf32>
    %1735 = vector.broadcast %1732 : f32 to vector<8x70xf32>
    %1736 = arith.mulf %1735, %1690 : vector<8x70xf32>
    %1737 = arith.addf %1734, %1736 : vector<8x70xf32>
    %1738 = arith.addf %1680, %1737 : vector<8x70xf32>
    %c195 = arith.constant 195 : index
    %1739 = memref.load %arg1[%c195] : memref<686xf32, #tpu.memory_space<smem>>
    %c538 = arith.constant 538 : index
    %1740 = memref.load %arg1[%c538] : memref<686xf32, #tpu.memory_space<smem>>
    %1741 = vector.broadcast %1739 : f32 to vector<8x70xf32>
    %1742 = arith.mulf %1741, %1689 : vector<8x70xf32>
    %1743 = vector.broadcast %1740 : f32 to vector<8x70xf32>
    %1744 = arith.mulf %1743, %1690 : vector<8x70xf32>
    %1745 = arith.addf %1742, %1744 : vector<8x70xf32>
    %1746 = arith.addf %1688, %1745 : vector<8x70xf32>
    %c4_171 = arith.constant 4 : index
    %c5_172 = arith.constant 5 : index
    %1747 = vector.load %arg4[%c4_171, %c5_172] : memref<14x128xf32, #tpu.memory_space<vmem>>, vector<8x70xf32>
    %c4_173 = arith.constant 4 : index
    %c5_174 = arith.constant 5 : index
    %1748 = vector.load %arg5[%c4_173, %c5_174] : memref<14x128xf32, #tpu.memory_space<vmem>>, vector<8x70xf32>
    %c196 = arith.constant 196 : index
    %1749 = memref.load %arg1[%c196] : memref<686xf32, #tpu.memory_space<smem>>
    %c539 = arith.constant 539 : index
    %1750 = memref.load %arg1[%c539] : memref<686xf32, #tpu.memory_space<smem>>
    %1751 = vector.broadcast %1749 : f32 to vector<8x70xf32>
    %1752 = arith.mulf %1751, %1747 : vector<8x70xf32>
    %1753 = vector.broadcast %1750 : f32 to vector<8x70xf32>
    %1754 = arith.mulf %1753, %1748 : vector<8x70xf32>
    %1755 = arith.addf %1752, %1754 : vector<8x70xf32>
    %1756 = arith.addf %1698, %1755 : vector<8x70xf32>
    %c197 = arith.constant 197 : index
    %1757 = memref.load %arg1[%c197] : memref<686xf32, #tpu.memory_space<smem>>
    %c540 = arith.constant 540 : index
    %1758 = memref.load %arg1[%c540] : memref<686xf32, #tpu.memory_space<smem>>
    %1759 = vector.broadcast %1757 : f32 to vector<8x70xf32>
    %1760 = arith.mulf %1759, %1747 : vector<8x70xf32>
    %1761 = vector.broadcast %1758 : f32 to vector<8x70xf32>
    %1762 = arith.mulf %1761, %1748 : vector<8x70xf32>
    %1763 = arith.addf %1760, %1762 : vector<8x70xf32>
    %1764 = arith.addf %1706, %1763 : vector<8x70xf32>
    %c198 = arith.constant 198 : index
    %1765 = memref.load %arg1[%c198] : memref<686xf32, #tpu.memory_space<smem>>
    %c541 = arith.constant 541 : index
    %1766 = memref.load %arg1[%c541] : memref<686xf32, #tpu.memory_space<smem>>
    %1767 = vector.broadcast %1765 : f32 to vector<8x70xf32>
    %1768 = arith.mulf %1767, %1747 : vector<8x70xf32>
    %1769 = vector.broadcast %1766 : f32 to vector<8x70xf32>
    %1770 = arith.mulf %1769, %1748 : vector<8x70xf32>
    %1771 = arith.addf %1768, %1770 : vector<8x70xf32>
    %1772 = arith.addf %1714, %1771 : vector<8x70xf32>
    %c199 = arith.constant 199 : index
    %1773 = memref.load %arg1[%c199] : memref<686xf32, #tpu.memory_space<smem>>
    %c542 = arith.constant 542 : index
    %1774 = memref.load %arg1[%c542] : memref<686xf32, #tpu.memory_space<smem>>
    %1775 = vector.broadcast %1773 : f32 to vector<8x70xf32>
    %1776 = arith.mulf %1775, %1747 : vector<8x70xf32>
    %1777 = vector.broadcast %1774 : f32 to vector<8x70xf32>
    %1778 = arith.mulf %1777, %1748 : vector<8x70xf32>
    %1779 = arith.addf %1776, %1778 : vector<8x70xf32>
    %1780 = arith.addf %1722, %1779 : vector<8x70xf32>
    %c200 = arith.constant 200 : index
    %1781 = memref.load %arg1[%c200] : memref<686xf32, #tpu.memory_space<smem>>
    %c543 = arith.constant 543 : index
    %1782 = memref.load %arg1[%c543] : memref<686xf32, #tpu.memory_space<smem>>
    %1783 = vector.broadcast %1781 : f32 to vector<8x70xf32>
    %1784 = arith.mulf %1783, %1747 : vector<8x70xf32>
    %1785 = vector.broadcast %1782 : f32 to vector<8x70xf32>
    %1786 = arith.mulf %1785, %1748 : vector<8x70xf32>
    %1787 = arith.addf %1784, %1786 : vector<8x70xf32>
    %1788 = arith.addf %1730, %1787 : vector<8x70xf32>
    %c201 = arith.constant 201 : index
    %1789 = memref.load %arg1[%c201] : memref<686xf32, #tpu.memory_space<smem>>
    %c544 = arith.constant 544 : index
    %1790 = memref.load %arg1[%c544] : memref<686xf32, #tpu.memory_space<smem>>
    %1791 = vector.broadcast %1789 : f32 to vector<8x70xf32>
    %1792 = arith.mulf %1791, %1747 : vector<8x70xf32>
    %1793 = vector.broadcast %1790 : f32 to vector<8x70xf32>
    %1794 = arith.mulf %1793, %1748 : vector<8x70xf32>
    %1795 = arith.addf %1792, %1794 : vector<8x70xf32>
    %1796 = arith.addf %1738, %1795 : vector<8x70xf32>
    %c202 = arith.constant 202 : index
    %1797 = memref.load %arg1[%c202] : memref<686xf32, #tpu.memory_space<smem>>
    %c545 = arith.constant 545 : index
    %1798 = memref.load %arg1[%c545] : memref<686xf32, #tpu.memory_space<smem>>
    %1799 = vector.broadcast %1797 : f32 to vector<8x70xf32>
    %1800 = arith.mulf %1799, %1747 : vector<8x70xf32>
    %1801 = vector.broadcast %1798 : f32 to vector<8x70xf32>
    %1802 = arith.mulf %1801, %1748 : vector<8x70xf32>
    %1803 = arith.addf %1800, %1802 : vector<8x70xf32>
    %1804 = arith.addf %1746, %1803 : vector<8x70xf32>
    %c4_175 = arith.constant 4 : index
    %c13_176 = arith.constant 13 : index
    %1805 = vector.load %arg4[%c4_175, %c13_176] : memref<14x128xf32, #tpu.memory_space<vmem>>, vector<8x70xf32>
    %c4_177 = arith.constant 4 : index
    %c13_178 = arith.constant 13 : index
    %1806 = vector.load %arg5[%c4_177, %c13_178] : memref<14x128xf32, #tpu.memory_space<vmem>>, vector<8x70xf32>
    %c203 = arith.constant 203 : index
    %1807 = memref.load %arg1[%c203] : memref<686xf32, #tpu.memory_space<smem>>
    %c546 = arith.constant 546 : index
    %1808 = memref.load %arg1[%c546] : memref<686xf32, #tpu.memory_space<smem>>
    %1809 = vector.broadcast %1807 : f32 to vector<8x70xf32>
    %1810 = arith.mulf %1809, %1805 : vector<8x70xf32>
    %1811 = vector.broadcast %1808 : f32 to vector<8x70xf32>
    %1812 = arith.mulf %1811, %1806 : vector<8x70xf32>
    %1813 = arith.addf %1810, %1812 : vector<8x70xf32>
    %1814 = arith.addf %1756, %1813 : vector<8x70xf32>
    %c204 = arith.constant 204 : index
    %1815 = memref.load %arg1[%c204] : memref<686xf32, #tpu.memory_space<smem>>
    %c547 = arith.constant 547 : index
    %1816 = memref.load %arg1[%c547] : memref<686xf32, #tpu.memory_space<smem>>
    %1817 = vector.broadcast %1815 : f32 to vector<8x70xf32>
    %1818 = arith.mulf %1817, %1805 : vector<8x70xf32>
    %1819 = vector.broadcast %1816 : f32 to vector<8x70xf32>
    %1820 = arith.mulf %1819, %1806 : vector<8x70xf32>
    %1821 = arith.addf %1818, %1820 : vector<8x70xf32>
    %1822 = arith.addf %1764, %1821 : vector<8x70xf32>
    %c205 = arith.constant 205 : index
    %1823 = memref.load %arg1[%c205] : memref<686xf32, #tpu.memory_space<smem>>
    %c548 = arith.constant 548 : index
    %1824 = memref.load %arg1[%c548] : memref<686xf32, #tpu.memory_space<smem>>
    %1825 = vector.broadcast %1823 : f32 to vector<8x70xf32>
    %1826 = arith.mulf %1825, %1805 : vector<8x70xf32>
    %1827 = vector.broadcast %1824 : f32 to vector<8x70xf32>
    %1828 = arith.mulf %1827, %1806 : vector<8x70xf32>
    %1829 = arith.addf %1826, %1828 : vector<8x70xf32>
    %1830 = arith.addf %1772, %1829 : vector<8x70xf32>
    %c206 = arith.constant 206 : index
    %1831 = memref.load %arg1[%c206] : memref<686xf32, #tpu.memory_space<smem>>
    %c549 = arith.constant 549 : index
    %1832 = memref.load %arg1[%c549] : memref<686xf32, #tpu.memory_space<smem>>
    %1833 = vector.broadcast %1831 : f32 to vector<8x70xf32>
    %1834 = arith.mulf %1833, %1805 : vector<8x70xf32>
    %1835 = vector.broadcast %1832 : f32 to vector<8x70xf32>
    %1836 = arith.mulf %1835, %1806 : vector<8x70xf32>
    %1837 = arith.addf %1834, %1836 : vector<8x70xf32>
    %1838 = arith.addf %1780, %1837 : vector<8x70xf32>
    %c207 = arith.constant 207 : index
    %1839 = memref.load %arg1[%c207] : memref<686xf32, #tpu.memory_space<smem>>
    %c550 = arith.constant 550 : index
    %1840 = memref.load %arg1[%c550] : memref<686xf32, #tpu.memory_space<smem>>
    %1841 = vector.broadcast %1839 : f32 to vector<8x70xf32>
    %1842 = arith.mulf %1841, %1805 : vector<8x70xf32>
    %1843 = vector.broadcast %1840 : f32 to vector<8x70xf32>
    %1844 = arith.mulf %1843, %1806 : vector<8x70xf32>
    %1845 = arith.addf %1842, %1844 : vector<8x70xf32>
    %1846 = arith.addf %1788, %1845 : vector<8x70xf32>
    %c208 = arith.constant 208 : index
    %1847 = memref.load %arg1[%c208] : memref<686xf32, #tpu.memory_space<smem>>
    %c551 = arith.constant 551 : index
    %1848 = memref.load %arg1[%c551] : memref<686xf32, #tpu.memory_space<smem>>
    %1849 = vector.broadcast %1847 : f32 to vector<8x70xf32>
    %1850 = arith.mulf %1849, %1805 : vector<8x70xf32>
    %1851 = vector.broadcast %1848 : f32 to vector<8x70xf32>
    %1852 = arith.mulf %1851, %1806 : vector<8x70xf32>
    %1853 = arith.addf %1850, %1852 : vector<8x70xf32>
    %1854 = arith.addf %1796, %1853 : vector<8x70xf32>
    %c209 = arith.constant 209 : index
    %1855 = memref.load %arg1[%c209] : memref<686xf32, #tpu.memory_space<smem>>
    %c552 = arith.constant 552 : index
    %1856 = memref.load %arg1[%c552] : memref<686xf32, #tpu.memory_space<smem>>
    %1857 = vector.broadcast %1855 : f32 to vector<8x70xf32>
    %1858 = arith.mulf %1857, %1805 : vector<8x70xf32>
    %1859 = vector.broadcast %1856 : f32 to vector<8x70xf32>
    %1860 = arith.mulf %1859, %1806 : vector<8x70xf32>
    %1861 = arith.addf %1858, %1860 : vector<8x70xf32>
    %1862 = arith.addf %1804, %1861 : vector<8x70xf32>
    %c4_179 = arith.constant 4 : index
    %c21_180 = arith.constant 21 : index
    %1863 = vector.load %arg4[%c4_179, %c21_180] : memref<14x128xf32, #tpu.memory_space<vmem>>, vector<8x70xf32>
    %c4_181 = arith.constant 4 : index
    %c21_182 = arith.constant 21 : index
    %1864 = vector.load %arg5[%c4_181, %c21_182] : memref<14x128xf32, #tpu.memory_space<vmem>>, vector<8x70xf32>
    %c210 = arith.constant 210 : index
    %1865 = memref.load %arg1[%c210] : memref<686xf32, #tpu.memory_space<smem>>
    %c553 = arith.constant 553 : index
    %1866 = memref.load %arg1[%c553] : memref<686xf32, #tpu.memory_space<smem>>
    %1867 = vector.broadcast %1865 : f32 to vector<8x70xf32>
    %1868 = arith.mulf %1867, %1863 : vector<8x70xf32>
    %1869 = vector.broadcast %1866 : f32 to vector<8x70xf32>
    %1870 = arith.mulf %1869, %1864 : vector<8x70xf32>
    %1871 = arith.addf %1868, %1870 : vector<8x70xf32>
    %1872 = arith.addf %1814, %1871 : vector<8x70xf32>
    %c211 = arith.constant 211 : index
    %1873 = memref.load %arg1[%c211] : memref<686xf32, #tpu.memory_space<smem>>
    %c554 = arith.constant 554 : index
    %1874 = memref.load %arg1[%c554] : memref<686xf32, #tpu.memory_space<smem>>
    %1875 = vector.broadcast %1873 : f32 to vector<8x70xf32>
    %1876 = arith.mulf %1875, %1863 : vector<8x70xf32>
    %1877 = vector.broadcast %1874 : f32 to vector<8x70xf32>
    %1878 = arith.mulf %1877, %1864 : vector<8x70xf32>
    %1879 = arith.addf %1876, %1878 : vector<8x70xf32>
    %1880 = arith.addf %1822, %1879 : vector<8x70xf32>
    %c212 = arith.constant 212 : index
    %1881 = memref.load %arg1[%c212] : memref<686xf32, #tpu.memory_space<smem>>
    %c555 = arith.constant 555 : index
    %1882 = memref.load %arg1[%c555] : memref<686xf32, #tpu.memory_space<smem>>
    %1883 = vector.broadcast %1881 : f32 to vector<8x70xf32>
    %1884 = arith.mulf %1883, %1863 : vector<8x70xf32>
    %1885 = vector.broadcast %1882 : f32 to vector<8x70xf32>
    %1886 = arith.mulf %1885, %1864 : vector<8x70xf32>
    %1887 = arith.addf %1884, %1886 : vector<8x70xf32>
    %1888 = arith.addf %1830, %1887 : vector<8x70xf32>
    %c213 = arith.constant 213 : index
    %1889 = memref.load %arg1[%c213] : memref<686xf32, #tpu.memory_space<smem>>
    %c556 = arith.constant 556 : index
    %1890 = memref.load %arg1[%c556] : memref<686xf32, #tpu.memory_space<smem>>
    %1891 = vector.broadcast %1889 : f32 to vector<8x70xf32>
    %1892 = arith.mulf %1891, %1863 : vector<8x70xf32>
    %1893 = vector.broadcast %1890 : f32 to vector<8x70xf32>
    %1894 = arith.mulf %1893, %1864 : vector<8x70xf32>
    %1895 = arith.addf %1892, %1894 : vector<8x70xf32>
    %1896 = arith.addf %1838, %1895 : vector<8x70xf32>
    %c214 = arith.constant 214 : index
    %1897 = memref.load %arg1[%c214] : memref<686xf32, #tpu.memory_space<smem>>
    %c557 = arith.constant 557 : index
    %1898 = memref.load %arg1[%c557] : memref<686xf32, #tpu.memory_space<smem>>
    %1899 = vector.broadcast %1897 : f32 to vector<8x70xf32>
    %1900 = arith.mulf %1899, %1863 : vector<8x70xf32>
    %1901 = vector.broadcast %1898 : f32 to vector<8x70xf32>
    %1902 = arith.mulf %1901, %1864 : vector<8x70xf32>
    %1903 = arith.addf %1900, %1902 : vector<8x70xf32>
    %1904 = arith.addf %1846, %1903 : vector<8x70xf32>
    %c215 = arith.constant 215 : index
    %1905 = memref.load %arg1[%c215] : memref<686xf32, #tpu.memory_space<smem>>
    %c558 = arith.constant 558 : index
    %1906 = memref.load %arg1[%c558] : memref<686xf32, #tpu.memory_space<smem>>
    %1907 = vector.broadcast %1905 : f32 to vector<8x70xf32>
    %1908 = arith.mulf %1907, %1863 : vector<8x70xf32>
    %1909 = vector.broadcast %1906 : f32 to vector<8x70xf32>
    %1910 = arith.mulf %1909, %1864 : vector<8x70xf32>
    %1911 = arith.addf %1908, %1910 : vector<8x70xf32>
    %1912 = arith.addf %1854, %1911 : vector<8x70xf32>
    %c216 = arith.constant 216 : index
    %1913 = memref.load %arg1[%c216] : memref<686xf32, #tpu.memory_space<smem>>
    %c559 = arith.constant 559 : index
    %1914 = memref.load %arg1[%c559] : memref<686xf32, #tpu.memory_space<smem>>
    %1915 = vector.broadcast %1913 : f32 to vector<8x70xf32>
    %1916 = arith.mulf %1915, %1863 : vector<8x70xf32>
    %1917 = vector.broadcast %1914 : f32 to vector<8x70xf32>
    %1918 = arith.mulf %1917, %1864 : vector<8x70xf32>
    %1919 = arith.addf %1916, %1918 : vector<8x70xf32>
    %1920 = arith.addf %1862, %1919 : vector<8x70xf32>
    %c4_183 = arith.constant 4 : index
    %c29_184 = arith.constant 29 : index
    %1921 = vector.load %arg4[%c4_183, %c29_184] : memref<14x128xf32, #tpu.memory_space<vmem>>, vector<8x70xf32>
    %c4_185 = arith.constant 4 : index
    %c29_186 = arith.constant 29 : index
    %1922 = vector.load %arg5[%c4_185, %c29_186] : memref<14x128xf32, #tpu.memory_space<vmem>>, vector<8x70xf32>
    %c217 = arith.constant 217 : index
    %1923 = memref.load %arg1[%c217] : memref<686xf32, #tpu.memory_space<smem>>
    %c560 = arith.constant 560 : index
    %1924 = memref.load %arg1[%c560] : memref<686xf32, #tpu.memory_space<smem>>
    %1925 = vector.broadcast %1923 : f32 to vector<8x70xf32>
    %1926 = arith.mulf %1925, %1921 : vector<8x70xf32>
    %1927 = vector.broadcast %1924 : f32 to vector<8x70xf32>
    %1928 = arith.mulf %1927, %1922 : vector<8x70xf32>
    %1929 = arith.addf %1926, %1928 : vector<8x70xf32>
    %1930 = arith.addf %1872, %1929 : vector<8x70xf32>
    %c218 = arith.constant 218 : index
    %1931 = memref.load %arg1[%c218] : memref<686xf32, #tpu.memory_space<smem>>
    %c561 = arith.constant 561 : index
    %1932 = memref.load %arg1[%c561] : memref<686xf32, #tpu.memory_space<smem>>
    %1933 = vector.broadcast %1931 : f32 to vector<8x70xf32>
    %1934 = arith.mulf %1933, %1921 : vector<8x70xf32>
    %1935 = vector.broadcast %1932 : f32 to vector<8x70xf32>
    %1936 = arith.mulf %1935, %1922 : vector<8x70xf32>
    %1937 = arith.addf %1934, %1936 : vector<8x70xf32>
    %1938 = arith.addf %1880, %1937 : vector<8x70xf32>
    %c219 = arith.constant 219 : index
    %1939 = memref.load %arg1[%c219] : memref<686xf32, #tpu.memory_space<smem>>
    %c562 = arith.constant 562 : index
    %1940 = memref.load %arg1[%c562] : memref<686xf32, #tpu.memory_space<smem>>
    %1941 = vector.broadcast %1939 : f32 to vector<8x70xf32>
    %1942 = arith.mulf %1941, %1921 : vector<8x70xf32>
    %1943 = vector.broadcast %1940 : f32 to vector<8x70xf32>
    %1944 = arith.mulf %1943, %1922 : vector<8x70xf32>
    %1945 = arith.addf %1942, %1944 : vector<8x70xf32>
    %1946 = arith.addf %1888, %1945 : vector<8x70xf32>
    %c220 = arith.constant 220 : index
    %1947 = memref.load %arg1[%c220] : memref<686xf32, #tpu.memory_space<smem>>
    %c563 = arith.constant 563 : index
    %1948 = memref.load %arg1[%c563] : memref<686xf32, #tpu.memory_space<smem>>
    %1949 = vector.broadcast %1947 : f32 to vector<8x70xf32>
    %1950 = arith.mulf %1949, %1921 : vector<8x70xf32>
    %1951 = vector.broadcast %1948 : f32 to vector<8x70xf32>
    %1952 = arith.mulf %1951, %1922 : vector<8x70xf32>
    %1953 = arith.addf %1950, %1952 : vector<8x70xf32>
    %1954 = arith.addf %1896, %1953 : vector<8x70xf32>
    %c221 = arith.constant 221 : index
    %1955 = memref.load %arg1[%c221] : memref<686xf32, #tpu.memory_space<smem>>
    %c564 = arith.constant 564 : index
    %1956 = memref.load %arg1[%c564] : memref<686xf32, #tpu.memory_space<smem>>
    %1957 = vector.broadcast %1955 : f32 to vector<8x70xf32>
    %1958 = arith.mulf %1957, %1921 : vector<8x70xf32>
    %1959 = vector.broadcast %1956 : f32 to vector<8x70xf32>
    %1960 = arith.mulf %1959, %1922 : vector<8x70xf32>
    %1961 = arith.addf %1958, %1960 : vector<8x70xf32>
    %1962 = arith.addf %1904, %1961 : vector<8x70xf32>
    %c222 = arith.constant 222 : index
    %1963 = memref.load %arg1[%c222] : memref<686xf32, #tpu.memory_space<smem>>
    %c565 = arith.constant 565 : index
    %1964 = memref.load %arg1[%c565] : memref<686xf32, #tpu.memory_space<smem>>
    %1965 = vector.broadcast %1963 : f32 to vector<8x70xf32>
    %1966 = arith.mulf %1965, %1921 : vector<8x70xf32>
    %1967 = vector.broadcast %1964 : f32 to vector<8x70xf32>
    %1968 = arith.mulf %1967, %1922 : vector<8x70xf32>
    %1969 = arith.addf %1966, %1968 : vector<8x70xf32>
    %1970 = arith.addf %1912, %1969 : vector<8x70xf32>
    %c223 = arith.constant 223 : index
    %1971 = memref.load %arg1[%c223] : memref<686xf32, #tpu.memory_space<smem>>
    %c566 = arith.constant 566 : index
    %1972 = memref.load %arg1[%c566] : memref<686xf32, #tpu.memory_space<smem>>
    %1973 = vector.broadcast %1971 : f32 to vector<8x70xf32>
    %1974 = arith.mulf %1973, %1921 : vector<8x70xf32>
    %1975 = vector.broadcast %1972 : f32 to vector<8x70xf32>
    %1976 = arith.mulf %1975, %1922 : vector<8x70xf32>
    %1977 = arith.addf %1974, %1976 : vector<8x70xf32>
    %1978 = arith.addf %1920, %1977 : vector<8x70xf32>
    %c4_187 = arith.constant 4 : index
    %c37_188 = arith.constant 37 : index
    %1979 = vector.load %arg4[%c4_187, %c37_188] : memref<14x128xf32, #tpu.memory_space<vmem>>, vector<8x70xf32>
    %c4_189 = arith.constant 4 : index
    %c37_190 = arith.constant 37 : index
    %1980 = vector.load %arg5[%c4_189, %c37_190] : memref<14x128xf32, #tpu.memory_space<vmem>>, vector<8x70xf32>
    %c224 = arith.constant 224 : index
    %1981 = memref.load %arg1[%c224] : memref<686xf32, #tpu.memory_space<smem>>
    %c567 = arith.constant 567 : index
    %1982 = memref.load %arg1[%c567] : memref<686xf32, #tpu.memory_space<smem>>
    %1983 = vector.broadcast %1981 : f32 to vector<8x70xf32>
    %1984 = arith.mulf %1983, %1979 : vector<8x70xf32>
    %1985 = vector.broadcast %1982 : f32 to vector<8x70xf32>
    %1986 = arith.mulf %1985, %1980 : vector<8x70xf32>
    %1987 = arith.addf %1984, %1986 : vector<8x70xf32>
    %1988 = arith.addf %1930, %1987 : vector<8x70xf32>
    %c225 = arith.constant 225 : index
    %1989 = memref.load %arg1[%c225] : memref<686xf32, #tpu.memory_space<smem>>
    %c568 = arith.constant 568 : index
    %1990 = memref.load %arg1[%c568] : memref<686xf32, #tpu.memory_space<smem>>
    %1991 = vector.broadcast %1989 : f32 to vector<8x70xf32>
    %1992 = arith.mulf %1991, %1979 : vector<8x70xf32>
    %1993 = vector.broadcast %1990 : f32 to vector<8x70xf32>
    %1994 = arith.mulf %1993, %1980 : vector<8x70xf32>
    %1995 = arith.addf %1992, %1994 : vector<8x70xf32>
    %1996 = arith.addf %1938, %1995 : vector<8x70xf32>
    %c226 = arith.constant 226 : index
    %1997 = memref.load %arg1[%c226] : memref<686xf32, #tpu.memory_space<smem>>
    %c569 = arith.constant 569 : index
    %1998 = memref.load %arg1[%c569] : memref<686xf32, #tpu.memory_space<smem>>
    %1999 = vector.broadcast %1997 : f32 to vector<8x70xf32>
    %2000 = arith.mulf %1999, %1979 : vector<8x70xf32>
    %2001 = vector.broadcast %1998 : f32 to vector<8x70xf32>
    %2002 = arith.mulf %2001, %1980 : vector<8x70xf32>
    %2003 = arith.addf %2000, %2002 : vector<8x70xf32>
    %2004 = arith.addf %1946, %2003 : vector<8x70xf32>
    %c227 = arith.constant 227 : index
    %2005 = memref.load %arg1[%c227] : memref<686xf32, #tpu.memory_space<smem>>
    %c570 = arith.constant 570 : index
    %2006 = memref.load %arg1[%c570] : memref<686xf32, #tpu.memory_space<smem>>
    %2007 = vector.broadcast %2005 : f32 to vector<8x70xf32>
    %2008 = arith.mulf %2007, %1979 : vector<8x70xf32>
    %2009 = vector.broadcast %2006 : f32 to vector<8x70xf32>
    %2010 = arith.mulf %2009, %1980 : vector<8x70xf32>
    %2011 = arith.addf %2008, %2010 : vector<8x70xf32>
    %2012 = arith.addf %1954, %2011 : vector<8x70xf32>
    %c228 = arith.constant 228 : index
    %2013 = memref.load %arg1[%c228] : memref<686xf32, #tpu.memory_space<smem>>
    %c571 = arith.constant 571 : index
    %2014 = memref.load %arg1[%c571] : memref<686xf32, #tpu.memory_space<smem>>
    %2015 = vector.broadcast %2013 : f32 to vector<8x70xf32>
    %2016 = arith.mulf %2015, %1979 : vector<8x70xf32>
    %2017 = vector.broadcast %2014 : f32 to vector<8x70xf32>
    %2018 = arith.mulf %2017, %1980 : vector<8x70xf32>
    %2019 = arith.addf %2016, %2018 : vector<8x70xf32>
    %2020 = arith.addf %1962, %2019 : vector<8x70xf32>
    %c229 = arith.constant 229 : index
    %2021 = memref.load %arg1[%c229] : memref<686xf32, #tpu.memory_space<smem>>
    %c572 = arith.constant 572 : index
    %2022 = memref.load %arg1[%c572] : memref<686xf32, #tpu.memory_space<smem>>
    %2023 = vector.broadcast %2021 : f32 to vector<8x70xf32>
    %2024 = arith.mulf %2023, %1979 : vector<8x70xf32>
    %2025 = vector.broadcast %2022 : f32 to vector<8x70xf32>
    %2026 = arith.mulf %2025, %1980 : vector<8x70xf32>
    %2027 = arith.addf %2024, %2026 : vector<8x70xf32>
    %2028 = arith.addf %1970, %2027 : vector<8x70xf32>
    %c230 = arith.constant 230 : index
    %2029 = memref.load %arg1[%c230] : memref<686xf32, #tpu.memory_space<smem>>
    %c573 = arith.constant 573 : index
    %2030 = memref.load %arg1[%c573] : memref<686xf32, #tpu.memory_space<smem>>
    %2031 = vector.broadcast %2029 : f32 to vector<8x70xf32>
    %2032 = arith.mulf %2031, %1979 : vector<8x70xf32>
    %2033 = vector.broadcast %2030 : f32 to vector<8x70xf32>
    %2034 = arith.mulf %2033, %1980 : vector<8x70xf32>
    %2035 = arith.addf %2032, %2034 : vector<8x70xf32>
    %2036 = arith.addf %1978, %2035 : vector<8x70xf32>
    %c4_191 = arith.constant 4 : index
    %c45_192 = arith.constant 45 : index
    %2037 = vector.load %arg4[%c4_191, %c45_192] : memref<14x128xf32, #tpu.memory_space<vmem>>, vector<8x70xf32>
    %c4_193 = arith.constant 4 : index
    %c45_194 = arith.constant 45 : index
    %2038 = vector.load %arg5[%c4_193, %c45_194] : memref<14x128xf32, #tpu.memory_space<vmem>>, vector<8x70xf32>
    %c231 = arith.constant 231 : index
    %2039 = memref.load %arg1[%c231] : memref<686xf32, #tpu.memory_space<smem>>
    %c574 = arith.constant 574 : index
    %2040 = memref.load %arg1[%c574] : memref<686xf32, #tpu.memory_space<smem>>
    %2041 = vector.broadcast %2039 : f32 to vector<8x70xf32>
    %2042 = arith.mulf %2041, %2037 : vector<8x70xf32>
    %2043 = vector.broadcast %2040 : f32 to vector<8x70xf32>
    %2044 = arith.mulf %2043, %2038 : vector<8x70xf32>
    %2045 = arith.addf %2042, %2044 : vector<8x70xf32>
    %2046 = arith.addf %1988, %2045 : vector<8x70xf32>
    %c232 = arith.constant 232 : index
    %2047 = memref.load %arg1[%c232] : memref<686xf32, #tpu.memory_space<smem>>
    %c575 = arith.constant 575 : index
    %2048 = memref.load %arg1[%c575] : memref<686xf32, #tpu.memory_space<smem>>
    %2049 = vector.broadcast %2047 : f32 to vector<8x70xf32>
    %2050 = arith.mulf %2049, %2037 : vector<8x70xf32>
    %2051 = vector.broadcast %2048 : f32 to vector<8x70xf32>
    %2052 = arith.mulf %2051, %2038 : vector<8x70xf32>
    %2053 = arith.addf %2050, %2052 : vector<8x70xf32>
    %2054 = arith.addf %1996, %2053 : vector<8x70xf32>
    %c233 = arith.constant 233 : index
    %2055 = memref.load %arg1[%c233] : memref<686xf32, #tpu.memory_space<smem>>
    %c576 = arith.constant 576 : index
    %2056 = memref.load %arg1[%c576] : memref<686xf32, #tpu.memory_space<smem>>
    %2057 = vector.broadcast %2055 : f32 to vector<8x70xf32>
    %2058 = arith.mulf %2057, %2037 : vector<8x70xf32>
    %2059 = vector.broadcast %2056 : f32 to vector<8x70xf32>
    %2060 = arith.mulf %2059, %2038 : vector<8x70xf32>
    %2061 = arith.addf %2058, %2060 : vector<8x70xf32>
    %2062 = arith.addf %2004, %2061 : vector<8x70xf32>
    %c234 = arith.constant 234 : index
    %2063 = memref.load %arg1[%c234] : memref<686xf32, #tpu.memory_space<smem>>
    %c577 = arith.constant 577 : index
    %2064 = memref.load %arg1[%c577] : memref<686xf32, #tpu.memory_space<smem>>
    %2065 = vector.broadcast %2063 : f32 to vector<8x70xf32>
    %2066 = arith.mulf %2065, %2037 : vector<8x70xf32>
    %2067 = vector.broadcast %2064 : f32 to vector<8x70xf32>
    %2068 = arith.mulf %2067, %2038 : vector<8x70xf32>
    %2069 = arith.addf %2066, %2068 : vector<8x70xf32>
    %2070 = arith.addf %2012, %2069 : vector<8x70xf32>
    %c235 = arith.constant 235 : index
    %2071 = memref.load %arg1[%c235] : memref<686xf32, #tpu.memory_space<smem>>
    %c578 = arith.constant 578 : index
    %2072 = memref.load %arg1[%c578] : memref<686xf32, #tpu.memory_space<smem>>
    %2073 = vector.broadcast %2071 : f32 to vector<8x70xf32>
    %2074 = arith.mulf %2073, %2037 : vector<8x70xf32>
    %2075 = vector.broadcast %2072 : f32 to vector<8x70xf32>
    %2076 = arith.mulf %2075, %2038 : vector<8x70xf32>
    %2077 = arith.addf %2074, %2076 : vector<8x70xf32>
    %2078 = arith.addf %2020, %2077 : vector<8x70xf32>
    %c236 = arith.constant 236 : index
    %2079 = memref.load %arg1[%c236] : memref<686xf32, #tpu.memory_space<smem>>
    %c579 = arith.constant 579 : index
    %2080 = memref.load %arg1[%c579] : memref<686xf32, #tpu.memory_space<smem>>
    %2081 = vector.broadcast %2079 : f32 to vector<8x70xf32>
    %2082 = arith.mulf %2081, %2037 : vector<8x70xf32>
    %2083 = vector.broadcast %2080 : f32 to vector<8x70xf32>
    %2084 = arith.mulf %2083, %2038 : vector<8x70xf32>
    %2085 = arith.addf %2082, %2084 : vector<8x70xf32>
    %2086 = arith.addf %2028, %2085 : vector<8x70xf32>
    %c237 = arith.constant 237 : index
    %2087 = memref.load %arg1[%c237] : memref<686xf32, #tpu.memory_space<smem>>
    %c580 = arith.constant 580 : index
    %2088 = memref.load %arg1[%c580] : memref<686xf32, #tpu.memory_space<smem>>
    %2089 = vector.broadcast %2087 : f32 to vector<8x70xf32>
    %2090 = arith.mulf %2089, %2037 : vector<8x70xf32>
    %2091 = vector.broadcast %2088 : f32 to vector<8x70xf32>
    %2092 = arith.mulf %2091, %2038 : vector<8x70xf32>
    %2093 = arith.addf %2090, %2092 : vector<8x70xf32>
    %2094 = arith.addf %2036, %2093 : vector<8x70xf32>
    %c4_195 = arith.constant 4 : index
    %c53_196 = arith.constant 53 : index
    %2095 = vector.load %arg4[%c4_195, %c53_196] : memref<14x128xf32, #tpu.memory_space<vmem>>, vector<8x70xf32>
    %c4_197 = arith.constant 4 : index
    %c53_198 = arith.constant 53 : index
    %2096 = vector.load %arg5[%c4_197, %c53_198] : memref<14x128xf32, #tpu.memory_space<vmem>>, vector<8x70xf32>
    %c238 = arith.constant 238 : index
    %2097 = memref.load %arg1[%c238] : memref<686xf32, #tpu.memory_space<smem>>
    %c581 = arith.constant 581 : index
    %2098 = memref.load %arg1[%c581] : memref<686xf32, #tpu.memory_space<smem>>
    %2099 = vector.broadcast %2097 : f32 to vector<8x70xf32>
    %2100 = arith.mulf %2099, %2095 : vector<8x70xf32>
    %2101 = vector.broadcast %2098 : f32 to vector<8x70xf32>
    %2102 = arith.mulf %2101, %2096 : vector<8x70xf32>
    %2103 = arith.addf %2100, %2102 : vector<8x70xf32>
    %2104 = arith.addf %2046, %2103 : vector<8x70xf32>
    %c239 = arith.constant 239 : index
    %2105 = memref.load %arg1[%c239] : memref<686xf32, #tpu.memory_space<smem>>
    %c582 = arith.constant 582 : index
    %2106 = memref.load %arg1[%c582] : memref<686xf32, #tpu.memory_space<smem>>
    %2107 = vector.broadcast %2105 : f32 to vector<8x70xf32>
    %2108 = arith.mulf %2107, %2095 : vector<8x70xf32>
    %2109 = vector.broadcast %2106 : f32 to vector<8x70xf32>
    %2110 = arith.mulf %2109, %2096 : vector<8x70xf32>
    %2111 = arith.addf %2108, %2110 : vector<8x70xf32>
    %2112 = arith.addf %2054, %2111 : vector<8x70xf32>
    %c240 = arith.constant 240 : index
    %2113 = memref.load %arg1[%c240] : memref<686xf32, #tpu.memory_space<smem>>
    %c583 = arith.constant 583 : index
    %2114 = memref.load %arg1[%c583] : memref<686xf32, #tpu.memory_space<smem>>
    %2115 = vector.broadcast %2113 : f32 to vector<8x70xf32>
    %2116 = arith.mulf %2115, %2095 : vector<8x70xf32>
    %2117 = vector.broadcast %2114 : f32 to vector<8x70xf32>
    %2118 = arith.mulf %2117, %2096 : vector<8x70xf32>
    %2119 = arith.addf %2116, %2118 : vector<8x70xf32>
    %2120 = arith.addf %2062, %2119 : vector<8x70xf32>
    %c241 = arith.constant 241 : index
    %2121 = memref.load %arg1[%c241] : memref<686xf32, #tpu.memory_space<smem>>
    %c584 = arith.constant 584 : index
    %2122 = memref.load %arg1[%c584] : memref<686xf32, #tpu.memory_space<smem>>
    %2123 = vector.broadcast %2121 : f32 to vector<8x70xf32>
    %2124 = arith.mulf %2123, %2095 : vector<8x70xf32>
    %2125 = vector.broadcast %2122 : f32 to vector<8x70xf32>
    %2126 = arith.mulf %2125, %2096 : vector<8x70xf32>
    %2127 = arith.addf %2124, %2126 : vector<8x70xf32>
    %2128 = arith.addf %2070, %2127 : vector<8x70xf32>
    %c242 = arith.constant 242 : index
    %2129 = memref.load %arg1[%c242] : memref<686xf32, #tpu.memory_space<smem>>
    %c585 = arith.constant 585 : index
    %2130 = memref.load %arg1[%c585] : memref<686xf32, #tpu.memory_space<smem>>
    %2131 = vector.broadcast %2129 : f32 to vector<8x70xf32>
    %2132 = arith.mulf %2131, %2095 : vector<8x70xf32>
    %2133 = vector.broadcast %2130 : f32 to vector<8x70xf32>
    %2134 = arith.mulf %2133, %2096 : vector<8x70xf32>
    %2135 = arith.addf %2132, %2134 : vector<8x70xf32>
    %2136 = arith.addf %2078, %2135 : vector<8x70xf32>
    %c243 = arith.constant 243 : index
    %2137 = memref.load %arg1[%c243] : memref<686xf32, #tpu.memory_space<smem>>
    %c586 = arith.constant 586 : index
    %2138 = memref.load %arg1[%c586] : memref<686xf32, #tpu.memory_space<smem>>
    %2139 = vector.broadcast %2137 : f32 to vector<8x70xf32>
    %2140 = arith.mulf %2139, %2095 : vector<8x70xf32>
    %2141 = vector.broadcast %2138 : f32 to vector<8x70xf32>
    %2142 = arith.mulf %2141, %2096 : vector<8x70xf32>
    %2143 = arith.addf %2140, %2142 : vector<8x70xf32>
    %2144 = arith.addf %2086, %2143 : vector<8x70xf32>
    %c244 = arith.constant 244 : index
    %2145 = memref.load %arg1[%c244] : memref<686xf32, #tpu.memory_space<smem>>
    %c587 = arith.constant 587 : index
    %2146 = memref.load %arg1[%c587] : memref<686xf32, #tpu.memory_space<smem>>
    %2147 = vector.broadcast %2145 : f32 to vector<8x70xf32>
    %2148 = arith.mulf %2147, %2095 : vector<8x70xf32>
    %2149 = vector.broadcast %2146 : f32 to vector<8x70xf32>
    %2150 = arith.mulf %2149, %2096 : vector<8x70xf32>
    %2151 = arith.addf %2148, %2150 : vector<8x70xf32>
    %2152 = arith.addf %2094, %2151 : vector<8x70xf32>
    %c5_199 = arith.constant 5 : index
    %c5_200 = arith.constant 5 : index
    %2153 = vector.load %arg4[%c5_199, %c5_200] : memref<14x128xf32, #tpu.memory_space<vmem>>, vector<8x70xf32>
    %c5_201 = arith.constant 5 : index
    %c5_202 = arith.constant 5 : index
    %2154 = vector.load %arg5[%c5_201, %c5_202] : memref<14x128xf32, #tpu.memory_space<vmem>>, vector<8x70xf32>
    %c245 = arith.constant 245 : index
    %2155 = memref.load %arg1[%c245] : memref<686xf32, #tpu.memory_space<smem>>
    %c588 = arith.constant 588 : index
    %2156 = memref.load %arg1[%c588] : memref<686xf32, #tpu.memory_space<smem>>
    %2157 = vector.broadcast %2155 : f32 to vector<8x70xf32>
    %2158 = arith.mulf %2157, %2153 : vector<8x70xf32>
    %2159 = vector.broadcast %2156 : f32 to vector<8x70xf32>
    %2160 = arith.mulf %2159, %2154 : vector<8x70xf32>
    %2161 = arith.addf %2158, %2160 : vector<8x70xf32>
    %2162 = arith.addf %2104, %2161 : vector<8x70xf32>
    %c246 = arith.constant 246 : index
    %2163 = memref.load %arg1[%c246] : memref<686xf32, #tpu.memory_space<smem>>
    %c589 = arith.constant 589 : index
    %2164 = memref.load %arg1[%c589] : memref<686xf32, #tpu.memory_space<smem>>
    %2165 = vector.broadcast %2163 : f32 to vector<8x70xf32>
    %2166 = arith.mulf %2165, %2153 : vector<8x70xf32>
    %2167 = vector.broadcast %2164 : f32 to vector<8x70xf32>
    %2168 = arith.mulf %2167, %2154 : vector<8x70xf32>
    %2169 = arith.addf %2166, %2168 : vector<8x70xf32>
    %2170 = arith.addf %2112, %2169 : vector<8x70xf32>
    %c247 = arith.constant 247 : index
    %2171 = memref.load %arg1[%c247] : memref<686xf32, #tpu.memory_space<smem>>
    %c590 = arith.constant 590 : index
    %2172 = memref.load %arg1[%c590] : memref<686xf32, #tpu.memory_space<smem>>
    %2173 = vector.broadcast %2171 : f32 to vector<8x70xf32>
    %2174 = arith.mulf %2173, %2153 : vector<8x70xf32>
    %2175 = vector.broadcast %2172 : f32 to vector<8x70xf32>
    %2176 = arith.mulf %2175, %2154 : vector<8x70xf32>
    %2177 = arith.addf %2174, %2176 : vector<8x70xf32>
    %2178 = arith.addf %2120, %2177 : vector<8x70xf32>
    %c248 = arith.constant 248 : index
    %2179 = memref.load %arg1[%c248] : memref<686xf32, #tpu.memory_space<smem>>
    %c591 = arith.constant 591 : index
    %2180 = memref.load %arg1[%c591] : memref<686xf32, #tpu.memory_space<smem>>
    %2181 = vector.broadcast %2179 : f32 to vector<8x70xf32>
    %2182 = arith.mulf %2181, %2153 : vector<8x70xf32>
    %2183 = vector.broadcast %2180 : f32 to vector<8x70xf32>
    %2184 = arith.mulf %2183, %2154 : vector<8x70xf32>
    %2185 = arith.addf %2182, %2184 : vector<8x70xf32>
    %2186 = arith.addf %2128, %2185 : vector<8x70xf32>
    %c249 = arith.constant 249 : index
    %2187 = memref.load %arg1[%c249] : memref<686xf32, #tpu.memory_space<smem>>
    %c592 = arith.constant 592 : index
    %2188 = memref.load %arg1[%c592] : memref<686xf32, #tpu.memory_space<smem>>
    %2189 = vector.broadcast %2187 : f32 to vector<8x70xf32>
    %2190 = arith.mulf %2189, %2153 : vector<8x70xf32>
    %2191 = vector.broadcast %2188 : f32 to vector<8x70xf32>
    %2192 = arith.mulf %2191, %2154 : vector<8x70xf32>
    %2193 = arith.addf %2190, %2192 : vector<8x70xf32>
    %2194 = arith.addf %2136, %2193 : vector<8x70xf32>
    %c250 = arith.constant 250 : index
    %2195 = memref.load %arg1[%c250] : memref<686xf32, #tpu.memory_space<smem>>
    %c593 = arith.constant 593 : index
    %2196 = memref.load %arg1[%c593] : memref<686xf32, #tpu.memory_space<smem>>
    %2197 = vector.broadcast %2195 : f32 to vector<8x70xf32>
    %2198 = arith.mulf %2197, %2153 : vector<8x70xf32>
    %2199 = vector.broadcast %2196 : f32 to vector<8x70xf32>
    %2200 = arith.mulf %2199, %2154 : vector<8x70xf32>
    %2201 = arith.addf %2198, %2200 : vector<8x70xf32>
    %2202 = arith.addf %2144, %2201 : vector<8x70xf32>
    %c251 = arith.constant 251 : index
    %2203 = memref.load %arg1[%c251] : memref<686xf32, #tpu.memory_space<smem>>
    %c594 = arith.constant 594 : index
    %2204 = memref.load %arg1[%c594] : memref<686xf32, #tpu.memory_space<smem>>
    %2205 = vector.broadcast %2203 : f32 to vector<8x70xf32>
    %2206 = arith.mulf %2205, %2153 : vector<8x70xf32>
    %2207 = vector.broadcast %2204 : f32 to vector<8x70xf32>
    %2208 = arith.mulf %2207, %2154 : vector<8x70xf32>
    %2209 = arith.addf %2206, %2208 : vector<8x70xf32>
    %2210 = arith.addf %2152, %2209 : vector<8x70xf32>
    %c5_203 = arith.constant 5 : index
    %c13_204 = arith.constant 13 : index
    %2211 = vector.load %arg4[%c5_203, %c13_204] : memref<14x128xf32, #tpu.memory_space<vmem>>, vector<8x70xf32>
    %c5_205 = arith.constant 5 : index
    %c13_206 = arith.constant 13 : index
    %2212 = vector.load %arg5[%c5_205, %c13_206] : memref<14x128xf32, #tpu.memory_space<vmem>>, vector<8x70xf32>
    %c252 = arith.constant 252 : index
    %2213 = memref.load %arg1[%c252] : memref<686xf32, #tpu.memory_space<smem>>
    %c595 = arith.constant 595 : index
    %2214 = memref.load %arg1[%c595] : memref<686xf32, #tpu.memory_space<smem>>
    %2215 = vector.broadcast %2213 : f32 to vector<8x70xf32>
    %2216 = arith.mulf %2215, %2211 : vector<8x70xf32>
    %2217 = vector.broadcast %2214 : f32 to vector<8x70xf32>
    %2218 = arith.mulf %2217, %2212 : vector<8x70xf32>
    %2219 = arith.addf %2216, %2218 : vector<8x70xf32>
    %2220 = arith.addf %2162, %2219 : vector<8x70xf32>
    %c253 = arith.constant 253 : index
    %2221 = memref.load %arg1[%c253] : memref<686xf32, #tpu.memory_space<smem>>
    %c596 = arith.constant 596 : index
    %2222 = memref.load %arg1[%c596] : memref<686xf32, #tpu.memory_space<smem>>
    %2223 = vector.broadcast %2221 : f32 to vector<8x70xf32>
    %2224 = arith.mulf %2223, %2211 : vector<8x70xf32>
    %2225 = vector.broadcast %2222 : f32 to vector<8x70xf32>
    %2226 = arith.mulf %2225, %2212 : vector<8x70xf32>
    %2227 = arith.addf %2224, %2226 : vector<8x70xf32>
    %2228 = arith.addf %2170, %2227 : vector<8x70xf32>
    %c254 = arith.constant 254 : index
    %2229 = memref.load %arg1[%c254] : memref<686xf32, #tpu.memory_space<smem>>
    %c597 = arith.constant 597 : index
    %2230 = memref.load %arg1[%c597] : memref<686xf32, #tpu.memory_space<smem>>
    %2231 = vector.broadcast %2229 : f32 to vector<8x70xf32>
    %2232 = arith.mulf %2231, %2211 : vector<8x70xf32>
    %2233 = vector.broadcast %2230 : f32 to vector<8x70xf32>
    %2234 = arith.mulf %2233, %2212 : vector<8x70xf32>
    %2235 = arith.addf %2232, %2234 : vector<8x70xf32>
    %2236 = arith.addf %2178, %2235 : vector<8x70xf32>
    %c255 = arith.constant 255 : index
    %2237 = memref.load %arg1[%c255] : memref<686xf32, #tpu.memory_space<smem>>
    %c598 = arith.constant 598 : index
    %2238 = memref.load %arg1[%c598] : memref<686xf32, #tpu.memory_space<smem>>
    %2239 = vector.broadcast %2237 : f32 to vector<8x70xf32>
    %2240 = arith.mulf %2239, %2211 : vector<8x70xf32>
    %2241 = vector.broadcast %2238 : f32 to vector<8x70xf32>
    %2242 = arith.mulf %2241, %2212 : vector<8x70xf32>
    %2243 = arith.addf %2240, %2242 : vector<8x70xf32>
    %2244 = arith.addf %2186, %2243 : vector<8x70xf32>
    %c256 = arith.constant 256 : index
    %2245 = memref.load %arg1[%c256] : memref<686xf32, #tpu.memory_space<smem>>
    %c599 = arith.constant 599 : index
    %2246 = memref.load %arg1[%c599] : memref<686xf32, #tpu.memory_space<smem>>
    %2247 = vector.broadcast %2245 : f32 to vector<8x70xf32>
    %2248 = arith.mulf %2247, %2211 : vector<8x70xf32>
    %2249 = vector.broadcast %2246 : f32 to vector<8x70xf32>
    %2250 = arith.mulf %2249, %2212 : vector<8x70xf32>
    %2251 = arith.addf %2248, %2250 : vector<8x70xf32>
    %2252 = arith.addf %2194, %2251 : vector<8x70xf32>
    %c257 = arith.constant 257 : index
    %2253 = memref.load %arg1[%c257] : memref<686xf32, #tpu.memory_space<smem>>
    %c600 = arith.constant 600 : index
    %2254 = memref.load %arg1[%c600] : memref<686xf32, #tpu.memory_space<smem>>
    %2255 = vector.broadcast %2253 : f32 to vector<8x70xf32>
    %2256 = arith.mulf %2255, %2211 : vector<8x70xf32>
    %2257 = vector.broadcast %2254 : f32 to vector<8x70xf32>
    %2258 = arith.mulf %2257, %2212 : vector<8x70xf32>
    %2259 = arith.addf %2256, %2258 : vector<8x70xf32>
    %2260 = arith.addf %2202, %2259 : vector<8x70xf32>
    %c258 = arith.constant 258 : index
    %2261 = memref.load %arg1[%c258] : memref<686xf32, #tpu.memory_space<smem>>
    %c601 = arith.constant 601 : index
    %2262 = memref.load %arg1[%c601] : memref<686xf32, #tpu.memory_space<smem>>
    %2263 = vector.broadcast %2261 : f32 to vector<8x70xf32>
    %2264 = arith.mulf %2263, %2211 : vector<8x70xf32>
    %2265 = vector.broadcast %2262 : f32 to vector<8x70xf32>
    %2266 = arith.mulf %2265, %2212 : vector<8x70xf32>
    %2267 = arith.addf %2264, %2266 : vector<8x70xf32>
    %2268 = arith.addf %2210, %2267 : vector<8x70xf32>
    %c5_207 = arith.constant 5 : index
    %c21_208 = arith.constant 21 : index
    %2269 = vector.load %arg4[%c5_207, %c21_208] : memref<14x128xf32, #tpu.memory_space<vmem>>, vector<8x70xf32>
    %c5_209 = arith.constant 5 : index
    %c21_210 = arith.constant 21 : index
    %2270 = vector.load %arg5[%c5_209, %c21_210] : memref<14x128xf32, #tpu.memory_space<vmem>>, vector<8x70xf32>
    %c259 = arith.constant 259 : index
    %2271 = memref.load %arg1[%c259] : memref<686xf32, #tpu.memory_space<smem>>
    %c602 = arith.constant 602 : index
    %2272 = memref.load %arg1[%c602] : memref<686xf32, #tpu.memory_space<smem>>
    %2273 = vector.broadcast %2271 : f32 to vector<8x70xf32>
    %2274 = arith.mulf %2273, %2269 : vector<8x70xf32>
    %2275 = vector.broadcast %2272 : f32 to vector<8x70xf32>
    %2276 = arith.mulf %2275, %2270 : vector<8x70xf32>
    %2277 = arith.addf %2274, %2276 : vector<8x70xf32>
    %2278 = arith.addf %2220, %2277 : vector<8x70xf32>
    %c260 = arith.constant 260 : index
    %2279 = memref.load %arg1[%c260] : memref<686xf32, #tpu.memory_space<smem>>
    %c603 = arith.constant 603 : index
    %2280 = memref.load %arg1[%c603] : memref<686xf32, #tpu.memory_space<smem>>
    %2281 = vector.broadcast %2279 : f32 to vector<8x70xf32>
    %2282 = arith.mulf %2281, %2269 : vector<8x70xf32>
    %2283 = vector.broadcast %2280 : f32 to vector<8x70xf32>
    %2284 = arith.mulf %2283, %2270 : vector<8x70xf32>
    %2285 = arith.addf %2282, %2284 : vector<8x70xf32>
    %2286 = arith.addf %2228, %2285 : vector<8x70xf32>
    %c261 = arith.constant 261 : index
    %2287 = memref.load %arg1[%c261] : memref<686xf32, #tpu.memory_space<smem>>
    %c604 = arith.constant 604 : index
    %2288 = memref.load %arg1[%c604] : memref<686xf32, #tpu.memory_space<smem>>
    %2289 = vector.broadcast %2287 : f32 to vector<8x70xf32>
    %2290 = arith.mulf %2289, %2269 : vector<8x70xf32>
    %2291 = vector.broadcast %2288 : f32 to vector<8x70xf32>
    %2292 = arith.mulf %2291, %2270 : vector<8x70xf32>
    %2293 = arith.addf %2290, %2292 : vector<8x70xf32>
    %2294 = arith.addf %2236, %2293 : vector<8x70xf32>
    %c262 = arith.constant 262 : index
    %2295 = memref.load %arg1[%c262] : memref<686xf32, #tpu.memory_space<smem>>
    %c605 = arith.constant 605 : index
    %2296 = memref.load %arg1[%c605] : memref<686xf32, #tpu.memory_space<smem>>
    %2297 = vector.broadcast %2295 : f32 to vector<8x70xf32>
    %2298 = arith.mulf %2297, %2269 : vector<8x70xf32>
    %2299 = vector.broadcast %2296 : f32 to vector<8x70xf32>
    %2300 = arith.mulf %2299, %2270 : vector<8x70xf32>
    %2301 = arith.addf %2298, %2300 : vector<8x70xf32>
    %2302 = arith.addf %2244, %2301 : vector<8x70xf32>
    %c263 = arith.constant 263 : index
    %2303 = memref.load %arg1[%c263] : memref<686xf32, #tpu.memory_space<smem>>
    %c606 = arith.constant 606 : index
    %2304 = memref.load %arg1[%c606] : memref<686xf32, #tpu.memory_space<smem>>
    %2305 = vector.broadcast %2303 : f32 to vector<8x70xf32>
    %2306 = arith.mulf %2305, %2269 : vector<8x70xf32>
    %2307 = vector.broadcast %2304 : f32 to vector<8x70xf32>
    %2308 = arith.mulf %2307, %2270 : vector<8x70xf32>
    %2309 = arith.addf %2306, %2308 : vector<8x70xf32>
    %2310 = arith.addf %2252, %2309 : vector<8x70xf32>
    %c264 = arith.constant 264 : index
    %2311 = memref.load %arg1[%c264] : memref<686xf32, #tpu.memory_space<smem>>
    %c607 = arith.constant 607 : index
    %2312 = memref.load %arg1[%c607] : memref<686xf32, #tpu.memory_space<smem>>
    %2313 = vector.broadcast %2311 : f32 to vector<8x70xf32>
    %2314 = arith.mulf %2313, %2269 : vector<8x70xf32>
    %2315 = vector.broadcast %2312 : f32 to vector<8x70xf32>
    %2316 = arith.mulf %2315, %2270 : vector<8x70xf32>
    %2317 = arith.addf %2314, %2316 : vector<8x70xf32>
    %2318 = arith.addf %2260, %2317 : vector<8x70xf32>
    %c265 = arith.constant 265 : index
    %2319 = memref.load %arg1[%c265] : memref<686xf32, #tpu.memory_space<smem>>
    %c608 = arith.constant 608 : index
    %2320 = memref.load %arg1[%c608] : memref<686xf32, #tpu.memory_space<smem>>
    %2321 = vector.broadcast %2319 : f32 to vector<8x70xf32>
    %2322 = arith.mulf %2321, %2269 : vector<8x70xf32>
    %2323 = vector.broadcast %2320 : f32 to vector<8x70xf32>
    %2324 = arith.mulf %2323, %2270 : vector<8x70xf32>
    %2325 = arith.addf %2322, %2324 : vector<8x70xf32>
    %2326 = arith.addf %2268, %2325 : vector<8x70xf32>
    %c5_211 = arith.constant 5 : index
    %c29_212 = arith.constant 29 : index
    %2327 = vector.load %arg4[%c5_211, %c29_212] : memref<14x128xf32, #tpu.memory_space<vmem>>, vector<8x70xf32>
    %c5_213 = arith.constant 5 : index
    %c29_214 = arith.constant 29 : index
    %2328 = vector.load %arg5[%c5_213, %c29_214] : memref<14x128xf32, #tpu.memory_space<vmem>>, vector<8x70xf32>
    %c266 = arith.constant 266 : index
    %2329 = memref.load %arg1[%c266] : memref<686xf32, #tpu.memory_space<smem>>
    %c609 = arith.constant 609 : index
    %2330 = memref.load %arg1[%c609] : memref<686xf32, #tpu.memory_space<smem>>
    %2331 = vector.broadcast %2329 : f32 to vector<8x70xf32>
    %2332 = arith.mulf %2331, %2327 : vector<8x70xf32>
    %2333 = vector.broadcast %2330 : f32 to vector<8x70xf32>
    %2334 = arith.mulf %2333, %2328 : vector<8x70xf32>
    %2335 = arith.addf %2332, %2334 : vector<8x70xf32>
    %2336 = arith.addf %2278, %2335 : vector<8x70xf32>
    %c267 = arith.constant 267 : index
    %2337 = memref.load %arg1[%c267] : memref<686xf32, #tpu.memory_space<smem>>
    %c610 = arith.constant 610 : index
    %2338 = memref.load %arg1[%c610] : memref<686xf32, #tpu.memory_space<smem>>
    %2339 = vector.broadcast %2337 : f32 to vector<8x70xf32>
    %2340 = arith.mulf %2339, %2327 : vector<8x70xf32>
    %2341 = vector.broadcast %2338 : f32 to vector<8x70xf32>
    %2342 = arith.mulf %2341, %2328 : vector<8x70xf32>
    %2343 = arith.addf %2340, %2342 : vector<8x70xf32>
    %2344 = arith.addf %2286, %2343 : vector<8x70xf32>
    %c268 = arith.constant 268 : index
    %2345 = memref.load %arg1[%c268] : memref<686xf32, #tpu.memory_space<smem>>
    %c611 = arith.constant 611 : index
    %2346 = memref.load %arg1[%c611] : memref<686xf32, #tpu.memory_space<smem>>
    %2347 = vector.broadcast %2345 : f32 to vector<8x70xf32>
    %2348 = arith.mulf %2347, %2327 : vector<8x70xf32>
    %2349 = vector.broadcast %2346 : f32 to vector<8x70xf32>
    %2350 = arith.mulf %2349, %2328 : vector<8x70xf32>
    %2351 = arith.addf %2348, %2350 : vector<8x70xf32>
    %2352 = arith.addf %2294, %2351 : vector<8x70xf32>
    %c269 = arith.constant 269 : index
    %2353 = memref.load %arg1[%c269] : memref<686xf32, #tpu.memory_space<smem>>
    %c612 = arith.constant 612 : index
    %2354 = memref.load %arg1[%c612] : memref<686xf32, #tpu.memory_space<smem>>
    %2355 = vector.broadcast %2353 : f32 to vector<8x70xf32>
    %2356 = arith.mulf %2355, %2327 : vector<8x70xf32>
    %2357 = vector.broadcast %2354 : f32 to vector<8x70xf32>
    %2358 = arith.mulf %2357, %2328 : vector<8x70xf32>
    %2359 = arith.addf %2356, %2358 : vector<8x70xf32>
    %2360 = arith.addf %2302, %2359 : vector<8x70xf32>
    %c270 = arith.constant 270 : index
    %2361 = memref.load %arg1[%c270] : memref<686xf32, #tpu.memory_space<smem>>
    %c613 = arith.constant 613 : index
    %2362 = memref.load %arg1[%c613] : memref<686xf32, #tpu.memory_space<smem>>
    %2363 = vector.broadcast %2361 : f32 to vector<8x70xf32>
    %2364 = arith.mulf %2363, %2327 : vector<8x70xf32>
    %2365 = vector.broadcast %2362 : f32 to vector<8x70xf32>
    %2366 = arith.mulf %2365, %2328 : vector<8x70xf32>
    %2367 = arith.addf %2364, %2366 : vector<8x70xf32>
    %2368 = arith.addf %2310, %2367 : vector<8x70xf32>
    %c271 = arith.constant 271 : index
    %2369 = memref.load %arg1[%c271] : memref<686xf32, #tpu.memory_space<smem>>
    %c614 = arith.constant 614 : index
    %2370 = memref.load %arg1[%c614] : memref<686xf32, #tpu.memory_space<smem>>
    %2371 = vector.broadcast %2369 : f32 to vector<8x70xf32>
    %2372 = arith.mulf %2371, %2327 : vector<8x70xf32>
    %2373 = vector.broadcast %2370 : f32 to vector<8x70xf32>
    %2374 = arith.mulf %2373, %2328 : vector<8x70xf32>
    %2375 = arith.addf %2372, %2374 : vector<8x70xf32>
    %2376 = arith.addf %2318, %2375 : vector<8x70xf32>
    %c272 = arith.constant 272 : index
    %2377 = memref.load %arg1[%c272] : memref<686xf32, #tpu.memory_space<smem>>
    %c615 = arith.constant 615 : index
    %2378 = memref.load %arg1[%c615] : memref<686xf32, #tpu.memory_space<smem>>
    %2379 = vector.broadcast %2377 : f32 to vector<8x70xf32>
    %2380 = arith.mulf %2379, %2327 : vector<8x70xf32>
    %2381 = vector.broadcast %2378 : f32 to vector<8x70xf32>
    %2382 = arith.mulf %2381, %2328 : vector<8x70xf32>
    %2383 = arith.addf %2380, %2382 : vector<8x70xf32>
    %2384 = arith.addf %2326, %2383 : vector<8x70xf32>
    %c5_215 = arith.constant 5 : index
    %c37_216 = arith.constant 37 : index
    %2385 = vector.load %arg4[%c5_215, %c37_216] : memref<14x128xf32, #tpu.memory_space<vmem>>, vector<8x70xf32>
    %c5_217 = arith.constant 5 : index
    %c37_218 = arith.constant 37 : index
    %2386 = vector.load %arg5[%c5_217, %c37_218] : memref<14x128xf32, #tpu.memory_space<vmem>>, vector<8x70xf32>
    %c273 = arith.constant 273 : index
    %2387 = memref.load %arg1[%c273] : memref<686xf32, #tpu.memory_space<smem>>
    %c616 = arith.constant 616 : index
    %2388 = memref.load %arg1[%c616] : memref<686xf32, #tpu.memory_space<smem>>
    %2389 = vector.broadcast %2387 : f32 to vector<8x70xf32>
    %2390 = arith.mulf %2389, %2385 : vector<8x70xf32>
    %2391 = vector.broadcast %2388 : f32 to vector<8x70xf32>
    %2392 = arith.mulf %2391, %2386 : vector<8x70xf32>
    %2393 = arith.addf %2390, %2392 : vector<8x70xf32>
    %2394 = arith.addf %2336, %2393 : vector<8x70xf32>
    %c274 = arith.constant 274 : index
    %2395 = memref.load %arg1[%c274] : memref<686xf32, #tpu.memory_space<smem>>
    %c617 = arith.constant 617 : index
    %2396 = memref.load %arg1[%c617] : memref<686xf32, #tpu.memory_space<smem>>
    %2397 = vector.broadcast %2395 : f32 to vector<8x70xf32>
    %2398 = arith.mulf %2397, %2385 : vector<8x70xf32>
    %2399 = vector.broadcast %2396 : f32 to vector<8x70xf32>
    %2400 = arith.mulf %2399, %2386 : vector<8x70xf32>
    %2401 = arith.addf %2398, %2400 : vector<8x70xf32>
    %2402 = arith.addf %2344, %2401 : vector<8x70xf32>
    %c275 = arith.constant 275 : index
    %2403 = memref.load %arg1[%c275] : memref<686xf32, #tpu.memory_space<smem>>
    %c618 = arith.constant 618 : index
    %2404 = memref.load %arg1[%c618] : memref<686xf32, #tpu.memory_space<smem>>
    %2405 = vector.broadcast %2403 : f32 to vector<8x70xf32>
    %2406 = arith.mulf %2405, %2385 : vector<8x70xf32>
    %2407 = vector.broadcast %2404 : f32 to vector<8x70xf32>
    %2408 = arith.mulf %2407, %2386 : vector<8x70xf32>
    %2409 = arith.addf %2406, %2408 : vector<8x70xf32>
    %2410 = arith.addf %2352, %2409 : vector<8x70xf32>
    %c276 = arith.constant 276 : index
    %2411 = memref.load %arg1[%c276] : memref<686xf32, #tpu.memory_space<smem>>
    %c619 = arith.constant 619 : index
    %2412 = memref.load %arg1[%c619] : memref<686xf32, #tpu.memory_space<smem>>
    %2413 = vector.broadcast %2411 : f32 to vector<8x70xf32>
    %2414 = arith.mulf %2413, %2385 : vector<8x70xf32>
    %2415 = vector.broadcast %2412 : f32 to vector<8x70xf32>
    %2416 = arith.mulf %2415, %2386 : vector<8x70xf32>
    %2417 = arith.addf %2414, %2416 : vector<8x70xf32>
    %2418 = arith.addf %2360, %2417 : vector<8x70xf32>
    %c277 = arith.constant 277 : index
    %2419 = memref.load %arg1[%c277] : memref<686xf32, #tpu.memory_space<smem>>
    %c620 = arith.constant 620 : index
    %2420 = memref.load %arg1[%c620] : memref<686xf32, #tpu.memory_space<smem>>
    %2421 = vector.broadcast %2419 : f32 to vector<8x70xf32>
    %2422 = arith.mulf %2421, %2385 : vector<8x70xf32>
    %2423 = vector.broadcast %2420 : f32 to vector<8x70xf32>
    %2424 = arith.mulf %2423, %2386 : vector<8x70xf32>
    %2425 = arith.addf %2422, %2424 : vector<8x70xf32>
    %2426 = arith.addf %2368, %2425 : vector<8x70xf32>
    %c278 = arith.constant 278 : index
    %2427 = memref.load %arg1[%c278] : memref<686xf32, #tpu.memory_space<smem>>
    %c621 = arith.constant 621 : index
    %2428 = memref.load %arg1[%c621] : memref<686xf32, #tpu.memory_space<smem>>
    %2429 = vector.broadcast %2427 : f32 to vector<8x70xf32>
    %2430 = arith.mulf %2429, %2385 : vector<8x70xf32>
    %2431 = vector.broadcast %2428 : f32 to vector<8x70xf32>
    %2432 = arith.mulf %2431, %2386 : vector<8x70xf32>
    %2433 = arith.addf %2430, %2432 : vector<8x70xf32>
    %2434 = arith.addf %2376, %2433 : vector<8x70xf32>
    %c279 = arith.constant 279 : index
    %2435 = memref.load %arg1[%c279] : memref<686xf32, #tpu.memory_space<smem>>
    %c622 = arith.constant 622 : index
    %2436 = memref.load %arg1[%c622] : memref<686xf32, #tpu.memory_space<smem>>
    %2437 = vector.broadcast %2435 : f32 to vector<8x70xf32>
    %2438 = arith.mulf %2437, %2385 : vector<8x70xf32>
    %2439 = vector.broadcast %2436 : f32 to vector<8x70xf32>
    %2440 = arith.mulf %2439, %2386 : vector<8x70xf32>
    %2441 = arith.addf %2438, %2440 : vector<8x70xf32>
    %2442 = arith.addf %2384, %2441 : vector<8x70xf32>
    %c5_219 = arith.constant 5 : index
    %c45_220 = arith.constant 45 : index
    %2443 = vector.load %arg4[%c5_219, %c45_220] : memref<14x128xf32, #tpu.memory_space<vmem>>, vector<8x70xf32>
    %c5_221 = arith.constant 5 : index
    %c45_222 = arith.constant 45 : index
    %2444 = vector.load %arg5[%c5_221, %c45_222] : memref<14x128xf32, #tpu.memory_space<vmem>>, vector<8x70xf32>
    %c280 = arith.constant 280 : index
    %2445 = memref.load %arg1[%c280] : memref<686xf32, #tpu.memory_space<smem>>
    %c623 = arith.constant 623 : index
    %2446 = memref.load %arg1[%c623] : memref<686xf32, #tpu.memory_space<smem>>
    %2447 = vector.broadcast %2445 : f32 to vector<8x70xf32>
    %2448 = arith.mulf %2447, %2443 : vector<8x70xf32>
    %2449 = vector.broadcast %2446 : f32 to vector<8x70xf32>
    %2450 = arith.mulf %2449, %2444 : vector<8x70xf32>
    %2451 = arith.addf %2448, %2450 : vector<8x70xf32>
    %2452 = arith.addf %2394, %2451 : vector<8x70xf32>
    %c281 = arith.constant 281 : index
    %2453 = memref.load %arg1[%c281] : memref<686xf32, #tpu.memory_space<smem>>
    %c624 = arith.constant 624 : index
    %2454 = memref.load %arg1[%c624] : memref<686xf32, #tpu.memory_space<smem>>
    %2455 = vector.broadcast %2453 : f32 to vector<8x70xf32>
    %2456 = arith.mulf %2455, %2443 : vector<8x70xf32>
    %2457 = vector.broadcast %2454 : f32 to vector<8x70xf32>
    %2458 = arith.mulf %2457, %2444 : vector<8x70xf32>
    %2459 = arith.addf %2456, %2458 : vector<8x70xf32>
    %2460 = arith.addf %2402, %2459 : vector<8x70xf32>
    %c282 = arith.constant 282 : index
    %2461 = memref.load %arg1[%c282] : memref<686xf32, #tpu.memory_space<smem>>
    %c625 = arith.constant 625 : index
    %2462 = memref.load %arg1[%c625] : memref<686xf32, #tpu.memory_space<smem>>
    %2463 = vector.broadcast %2461 : f32 to vector<8x70xf32>
    %2464 = arith.mulf %2463, %2443 : vector<8x70xf32>
    %2465 = vector.broadcast %2462 : f32 to vector<8x70xf32>
    %2466 = arith.mulf %2465, %2444 : vector<8x70xf32>
    %2467 = arith.addf %2464, %2466 : vector<8x70xf32>
    %2468 = arith.addf %2410, %2467 : vector<8x70xf32>
    %c283 = arith.constant 283 : index
    %2469 = memref.load %arg1[%c283] : memref<686xf32, #tpu.memory_space<smem>>
    %c626 = arith.constant 626 : index
    %2470 = memref.load %arg1[%c626] : memref<686xf32, #tpu.memory_space<smem>>
    %2471 = vector.broadcast %2469 : f32 to vector<8x70xf32>
    %2472 = arith.mulf %2471, %2443 : vector<8x70xf32>
    %2473 = vector.broadcast %2470 : f32 to vector<8x70xf32>
    %2474 = arith.mulf %2473, %2444 : vector<8x70xf32>
    %2475 = arith.addf %2472, %2474 : vector<8x70xf32>
    %2476 = arith.addf %2418, %2475 : vector<8x70xf32>
    %c284 = arith.constant 284 : index
    %2477 = memref.load %arg1[%c284] : memref<686xf32, #tpu.memory_space<smem>>
    %c627 = arith.constant 627 : index
    %2478 = memref.load %arg1[%c627] : memref<686xf32, #tpu.memory_space<smem>>
    %2479 = vector.broadcast %2477 : f32 to vector<8x70xf32>
    %2480 = arith.mulf %2479, %2443 : vector<8x70xf32>
    %2481 = vector.broadcast %2478 : f32 to vector<8x70xf32>
    %2482 = arith.mulf %2481, %2444 : vector<8x70xf32>
    %2483 = arith.addf %2480, %2482 : vector<8x70xf32>
    %2484 = arith.addf %2426, %2483 : vector<8x70xf32>
    %c285 = arith.constant 285 : index
    %2485 = memref.load %arg1[%c285] : memref<686xf32, #tpu.memory_space<smem>>
    %c628 = arith.constant 628 : index
    %2486 = memref.load %arg1[%c628] : memref<686xf32, #tpu.memory_space<smem>>
    %2487 = vector.broadcast %2485 : f32 to vector<8x70xf32>
    %2488 = arith.mulf %2487, %2443 : vector<8x70xf32>
    %2489 = vector.broadcast %2486 : f32 to vector<8x70xf32>
    %2490 = arith.mulf %2489, %2444 : vector<8x70xf32>
    %2491 = arith.addf %2488, %2490 : vector<8x70xf32>
    %2492 = arith.addf %2434, %2491 : vector<8x70xf32>
    %c286 = arith.constant 286 : index
    %2493 = memref.load %arg1[%c286] : memref<686xf32, #tpu.memory_space<smem>>
    %c629 = arith.constant 629 : index
    %2494 = memref.load %arg1[%c629] : memref<686xf32, #tpu.memory_space<smem>>
    %2495 = vector.broadcast %2493 : f32 to vector<8x70xf32>
    %2496 = arith.mulf %2495, %2443 : vector<8x70xf32>
    %2497 = vector.broadcast %2494 : f32 to vector<8x70xf32>
    %2498 = arith.mulf %2497, %2444 : vector<8x70xf32>
    %2499 = arith.addf %2496, %2498 : vector<8x70xf32>
    %2500 = arith.addf %2442, %2499 : vector<8x70xf32>
    %c5_223 = arith.constant 5 : index
    %c53_224 = arith.constant 53 : index
    %2501 = vector.load %arg4[%c5_223, %c53_224] : memref<14x128xf32, #tpu.memory_space<vmem>>, vector<8x70xf32>
    %c5_225 = arith.constant 5 : index
    %c53_226 = arith.constant 53 : index
    %2502 = vector.load %arg5[%c5_225, %c53_226] : memref<14x128xf32, #tpu.memory_space<vmem>>, vector<8x70xf32>
    %c287 = arith.constant 287 : index
    %2503 = memref.load %arg1[%c287] : memref<686xf32, #tpu.memory_space<smem>>
    %c630 = arith.constant 630 : index
    %2504 = memref.load %arg1[%c630] : memref<686xf32, #tpu.memory_space<smem>>
    %2505 = vector.broadcast %2503 : f32 to vector<8x70xf32>
    %2506 = arith.mulf %2505, %2501 : vector<8x70xf32>
    %2507 = vector.broadcast %2504 : f32 to vector<8x70xf32>
    %2508 = arith.mulf %2507, %2502 : vector<8x70xf32>
    %2509 = arith.addf %2506, %2508 : vector<8x70xf32>
    %2510 = arith.addf %2452, %2509 : vector<8x70xf32>
    %c288 = arith.constant 288 : index
    %2511 = memref.load %arg1[%c288] : memref<686xf32, #tpu.memory_space<smem>>
    %c631 = arith.constant 631 : index
    %2512 = memref.load %arg1[%c631] : memref<686xf32, #tpu.memory_space<smem>>
    %2513 = vector.broadcast %2511 : f32 to vector<8x70xf32>
    %2514 = arith.mulf %2513, %2501 : vector<8x70xf32>
    %2515 = vector.broadcast %2512 : f32 to vector<8x70xf32>
    %2516 = arith.mulf %2515, %2502 : vector<8x70xf32>
    %2517 = arith.addf %2514, %2516 : vector<8x70xf32>
    %2518 = arith.addf %2460, %2517 : vector<8x70xf32>
    %c289 = arith.constant 289 : index
    %2519 = memref.load %arg1[%c289] : memref<686xf32, #tpu.memory_space<smem>>
    %c632 = arith.constant 632 : index
    %2520 = memref.load %arg1[%c632] : memref<686xf32, #tpu.memory_space<smem>>
    %2521 = vector.broadcast %2519 : f32 to vector<8x70xf32>
    %2522 = arith.mulf %2521, %2501 : vector<8x70xf32>
    %2523 = vector.broadcast %2520 : f32 to vector<8x70xf32>
    %2524 = arith.mulf %2523, %2502 : vector<8x70xf32>
    %2525 = arith.addf %2522, %2524 : vector<8x70xf32>
    %2526 = arith.addf %2468, %2525 : vector<8x70xf32>
    %c290 = arith.constant 290 : index
    %2527 = memref.load %arg1[%c290] : memref<686xf32, #tpu.memory_space<smem>>
    %c633 = arith.constant 633 : index
    %2528 = memref.load %arg1[%c633] : memref<686xf32, #tpu.memory_space<smem>>
    %2529 = vector.broadcast %2527 : f32 to vector<8x70xf32>
    %2530 = arith.mulf %2529, %2501 : vector<8x70xf32>
    %2531 = vector.broadcast %2528 : f32 to vector<8x70xf32>
    %2532 = arith.mulf %2531, %2502 : vector<8x70xf32>
    %2533 = arith.addf %2530, %2532 : vector<8x70xf32>
    %2534 = arith.addf %2476, %2533 : vector<8x70xf32>
    %c291 = arith.constant 291 : index
    %2535 = memref.load %arg1[%c291] : memref<686xf32, #tpu.memory_space<smem>>
    %c634 = arith.constant 634 : index
    %2536 = memref.load %arg1[%c634] : memref<686xf32, #tpu.memory_space<smem>>
    %2537 = vector.broadcast %2535 : f32 to vector<8x70xf32>
    %2538 = arith.mulf %2537, %2501 : vector<8x70xf32>
    %2539 = vector.broadcast %2536 : f32 to vector<8x70xf32>
    %2540 = arith.mulf %2539, %2502 : vector<8x70xf32>
    %2541 = arith.addf %2538, %2540 : vector<8x70xf32>
    %2542 = arith.addf %2484, %2541 : vector<8x70xf32>
    %c292 = arith.constant 292 : index
    %2543 = memref.load %arg1[%c292] : memref<686xf32, #tpu.memory_space<smem>>
    %c635 = arith.constant 635 : index
    %2544 = memref.load %arg1[%c635] : memref<686xf32, #tpu.memory_space<smem>>
    %2545 = vector.broadcast %2543 : f32 to vector<8x70xf32>
    %2546 = arith.mulf %2545, %2501 : vector<8x70xf32>
    %2547 = vector.broadcast %2544 : f32 to vector<8x70xf32>
    %2548 = arith.mulf %2547, %2502 : vector<8x70xf32>
    %2549 = arith.addf %2546, %2548 : vector<8x70xf32>
    %2550 = arith.addf %2492, %2549 : vector<8x70xf32>
    %c293 = arith.constant 293 : index
    %2551 = memref.load %arg1[%c293] : memref<686xf32, #tpu.memory_space<smem>>
    %c636 = arith.constant 636 : index
    %2552 = memref.load %arg1[%c636] : memref<686xf32, #tpu.memory_space<smem>>
    %2553 = vector.broadcast %2551 : f32 to vector<8x70xf32>
    %2554 = arith.mulf %2553, %2501 : vector<8x70xf32>
    %2555 = vector.broadcast %2552 : f32 to vector<8x70xf32>
    %2556 = arith.mulf %2555, %2502 : vector<8x70xf32>
    %2557 = arith.addf %2554, %2556 : vector<8x70xf32>
    %2558 = arith.addf %2500, %2557 : vector<8x70xf32>
    %c6_227 = arith.constant 6 : index
    %c5_228 = arith.constant 5 : index
    %2559 = vector.load %arg4[%c6_227, %c5_228] : memref<14x128xf32, #tpu.memory_space<vmem>>, vector<8x70xf32>
    %c6_229 = arith.constant 6 : index
    %c5_230 = arith.constant 5 : index
    %2560 = vector.load %arg5[%c6_229, %c5_230] : memref<14x128xf32, #tpu.memory_space<vmem>>, vector<8x70xf32>
    %c294 = arith.constant 294 : index
    %2561 = memref.load %arg1[%c294] : memref<686xf32, #tpu.memory_space<smem>>
    %c637 = arith.constant 637 : index
    %2562 = memref.load %arg1[%c637] : memref<686xf32, #tpu.memory_space<smem>>
    %2563 = vector.broadcast %2561 : f32 to vector<8x70xf32>
    %2564 = arith.mulf %2563, %2559 : vector<8x70xf32>
    %2565 = vector.broadcast %2562 : f32 to vector<8x70xf32>
    %2566 = arith.mulf %2565, %2560 : vector<8x70xf32>
    %2567 = arith.addf %2564, %2566 : vector<8x70xf32>
    %2568 = arith.addf %2510, %2567 : vector<8x70xf32>
    %c295 = arith.constant 295 : index
    %2569 = memref.load %arg1[%c295] : memref<686xf32, #tpu.memory_space<smem>>
    %c638 = arith.constant 638 : index
    %2570 = memref.load %arg1[%c638] : memref<686xf32, #tpu.memory_space<smem>>
    %2571 = vector.broadcast %2569 : f32 to vector<8x70xf32>
    %2572 = arith.mulf %2571, %2559 : vector<8x70xf32>
    %2573 = vector.broadcast %2570 : f32 to vector<8x70xf32>
    %2574 = arith.mulf %2573, %2560 : vector<8x70xf32>
    %2575 = arith.addf %2572, %2574 : vector<8x70xf32>
    %2576 = arith.addf %2518, %2575 : vector<8x70xf32>
    %c296 = arith.constant 296 : index
    %2577 = memref.load %arg1[%c296] : memref<686xf32, #tpu.memory_space<smem>>
    %c639 = arith.constant 639 : index
    %2578 = memref.load %arg1[%c639] : memref<686xf32, #tpu.memory_space<smem>>
    %2579 = vector.broadcast %2577 : f32 to vector<8x70xf32>
    %2580 = arith.mulf %2579, %2559 : vector<8x70xf32>
    %2581 = vector.broadcast %2578 : f32 to vector<8x70xf32>
    %2582 = arith.mulf %2581, %2560 : vector<8x70xf32>
    %2583 = arith.addf %2580, %2582 : vector<8x70xf32>
    %2584 = arith.addf %2526, %2583 : vector<8x70xf32>
    %c297 = arith.constant 297 : index
    %2585 = memref.load %arg1[%c297] : memref<686xf32, #tpu.memory_space<smem>>
    %c640 = arith.constant 640 : index
    %2586 = memref.load %arg1[%c640] : memref<686xf32, #tpu.memory_space<smem>>
    %2587 = vector.broadcast %2585 : f32 to vector<8x70xf32>
    %2588 = arith.mulf %2587, %2559 : vector<8x70xf32>
    %2589 = vector.broadcast %2586 : f32 to vector<8x70xf32>
    %2590 = arith.mulf %2589, %2560 : vector<8x70xf32>
    %2591 = arith.addf %2588, %2590 : vector<8x70xf32>
    %2592 = arith.addf %2534, %2591 : vector<8x70xf32>
    %c298 = arith.constant 298 : index
    %2593 = memref.load %arg1[%c298] : memref<686xf32, #tpu.memory_space<smem>>
    %c641 = arith.constant 641 : index
    %2594 = memref.load %arg1[%c641] : memref<686xf32, #tpu.memory_space<smem>>
    %2595 = vector.broadcast %2593 : f32 to vector<8x70xf32>
    %2596 = arith.mulf %2595, %2559 : vector<8x70xf32>
    %2597 = vector.broadcast %2594 : f32 to vector<8x70xf32>
    %2598 = arith.mulf %2597, %2560 : vector<8x70xf32>
    %2599 = arith.addf %2596, %2598 : vector<8x70xf32>
    %2600 = arith.addf %2542, %2599 : vector<8x70xf32>
    %c299 = arith.constant 299 : index
    %2601 = memref.load %arg1[%c299] : memref<686xf32, #tpu.memory_space<smem>>
    %c642 = arith.constant 642 : index
    %2602 = memref.load %arg1[%c642] : memref<686xf32, #tpu.memory_space<smem>>
    %2603 = vector.broadcast %2601 : f32 to vector<8x70xf32>
    %2604 = arith.mulf %2603, %2559 : vector<8x70xf32>
    %2605 = vector.broadcast %2602 : f32 to vector<8x70xf32>
    %2606 = arith.mulf %2605, %2560 : vector<8x70xf32>
    %2607 = arith.addf %2604, %2606 : vector<8x70xf32>
    %2608 = arith.addf %2550, %2607 : vector<8x70xf32>
    %c300 = arith.constant 300 : index
    %2609 = memref.load %arg1[%c300] : memref<686xf32, #tpu.memory_space<smem>>
    %c643 = arith.constant 643 : index
    %2610 = memref.load %arg1[%c643] : memref<686xf32, #tpu.memory_space<smem>>
    %2611 = vector.broadcast %2609 : f32 to vector<8x70xf32>
    %2612 = arith.mulf %2611, %2559 : vector<8x70xf32>
    %2613 = vector.broadcast %2610 : f32 to vector<8x70xf32>
    %2614 = arith.mulf %2613, %2560 : vector<8x70xf32>
    %2615 = arith.addf %2612, %2614 : vector<8x70xf32>
    %2616 = arith.addf %2558, %2615 : vector<8x70xf32>
    %c6_231 = arith.constant 6 : index
    %c13_232 = arith.constant 13 : index
    %2617 = vector.load %arg4[%c6_231, %c13_232] : memref<14x128xf32, #tpu.memory_space<vmem>>, vector<8x70xf32>
    %c6_233 = arith.constant 6 : index
    %c13_234 = arith.constant 13 : index
    %2618 = vector.load %arg5[%c6_233, %c13_234] : memref<14x128xf32, #tpu.memory_space<vmem>>, vector<8x70xf32>
    %c301 = arith.constant 301 : index
    %2619 = memref.load %arg1[%c301] : memref<686xf32, #tpu.memory_space<smem>>
    %c644 = arith.constant 644 : index
    %2620 = memref.load %arg1[%c644] : memref<686xf32, #tpu.memory_space<smem>>
    %2621 = vector.broadcast %2619 : f32 to vector<8x70xf32>
    %2622 = arith.mulf %2621, %2617 : vector<8x70xf32>
    %2623 = vector.broadcast %2620 : f32 to vector<8x70xf32>
    %2624 = arith.mulf %2623, %2618 : vector<8x70xf32>
    %2625 = arith.addf %2622, %2624 : vector<8x70xf32>
    %2626 = arith.addf %2568, %2625 : vector<8x70xf32>
    %c302 = arith.constant 302 : index
    %2627 = memref.load %arg1[%c302] : memref<686xf32, #tpu.memory_space<smem>>
    %c645 = arith.constant 645 : index
    %2628 = memref.load %arg1[%c645] : memref<686xf32, #tpu.memory_space<smem>>
    %2629 = vector.broadcast %2627 : f32 to vector<8x70xf32>
    %2630 = arith.mulf %2629, %2617 : vector<8x70xf32>
    %2631 = vector.broadcast %2628 : f32 to vector<8x70xf32>
    %2632 = arith.mulf %2631, %2618 : vector<8x70xf32>
    %2633 = arith.addf %2630, %2632 : vector<8x70xf32>
    %2634 = arith.addf %2576, %2633 : vector<8x70xf32>
    %c303 = arith.constant 303 : index
    %2635 = memref.load %arg1[%c303] : memref<686xf32, #tpu.memory_space<smem>>
    %c646 = arith.constant 646 : index
    %2636 = memref.load %arg1[%c646] : memref<686xf32, #tpu.memory_space<smem>>
    %2637 = vector.broadcast %2635 : f32 to vector<8x70xf32>
    %2638 = arith.mulf %2637, %2617 : vector<8x70xf32>
    %2639 = vector.broadcast %2636 : f32 to vector<8x70xf32>
    %2640 = arith.mulf %2639, %2618 : vector<8x70xf32>
    %2641 = arith.addf %2638, %2640 : vector<8x70xf32>
    %2642 = arith.addf %2584, %2641 : vector<8x70xf32>
    %c304 = arith.constant 304 : index
    %2643 = memref.load %arg1[%c304] : memref<686xf32, #tpu.memory_space<smem>>
    %c647 = arith.constant 647 : index
    %2644 = memref.load %arg1[%c647] : memref<686xf32, #tpu.memory_space<smem>>
    %2645 = vector.broadcast %2643 : f32 to vector<8x70xf32>
    %2646 = arith.mulf %2645, %2617 : vector<8x70xf32>
    %2647 = vector.broadcast %2644 : f32 to vector<8x70xf32>
    %2648 = arith.mulf %2647, %2618 : vector<8x70xf32>
    %2649 = arith.addf %2646, %2648 : vector<8x70xf32>
    %2650 = arith.addf %2592, %2649 : vector<8x70xf32>
    %c305 = arith.constant 305 : index
    %2651 = memref.load %arg1[%c305] : memref<686xf32, #tpu.memory_space<smem>>
    %c648 = arith.constant 648 : index
    %2652 = memref.load %arg1[%c648] : memref<686xf32, #tpu.memory_space<smem>>
    %2653 = vector.broadcast %2651 : f32 to vector<8x70xf32>
    %2654 = arith.mulf %2653, %2617 : vector<8x70xf32>
    %2655 = vector.broadcast %2652 : f32 to vector<8x70xf32>
    %2656 = arith.mulf %2655, %2618 : vector<8x70xf32>
    %2657 = arith.addf %2654, %2656 : vector<8x70xf32>
    %2658 = arith.addf %2600, %2657 : vector<8x70xf32>
    %c306 = arith.constant 306 : index
    %2659 = memref.load %arg1[%c306] : memref<686xf32, #tpu.memory_space<smem>>
    %c649 = arith.constant 649 : index
    %2660 = memref.load %arg1[%c649] : memref<686xf32, #tpu.memory_space<smem>>
    %2661 = vector.broadcast %2659 : f32 to vector<8x70xf32>
    %2662 = arith.mulf %2661, %2617 : vector<8x70xf32>
    %2663 = vector.broadcast %2660 : f32 to vector<8x70xf32>
    %2664 = arith.mulf %2663, %2618 : vector<8x70xf32>
    %2665 = arith.addf %2662, %2664 : vector<8x70xf32>
    %2666 = arith.addf %2608, %2665 : vector<8x70xf32>
    %c307 = arith.constant 307 : index
    %2667 = memref.load %arg1[%c307] : memref<686xf32, #tpu.memory_space<smem>>
    %c650 = arith.constant 650 : index
    %2668 = memref.load %arg1[%c650] : memref<686xf32, #tpu.memory_space<smem>>
    %2669 = vector.broadcast %2667 : f32 to vector<8x70xf32>
    %2670 = arith.mulf %2669, %2617 : vector<8x70xf32>
    %2671 = vector.broadcast %2668 : f32 to vector<8x70xf32>
    %2672 = arith.mulf %2671, %2618 : vector<8x70xf32>
    %2673 = arith.addf %2670, %2672 : vector<8x70xf32>
    %2674 = arith.addf %2616, %2673 : vector<8x70xf32>
    %c6_235 = arith.constant 6 : index
    %c21_236 = arith.constant 21 : index
    %2675 = vector.load %arg4[%c6_235, %c21_236] : memref<14x128xf32, #tpu.memory_space<vmem>>, vector<8x70xf32>
    %c6_237 = arith.constant 6 : index
    %c21_238 = arith.constant 21 : index
    %2676 = vector.load %arg5[%c6_237, %c21_238] : memref<14x128xf32, #tpu.memory_space<vmem>>, vector<8x70xf32>
    %c308 = arith.constant 308 : index
    %2677 = memref.load %arg1[%c308] : memref<686xf32, #tpu.memory_space<smem>>
    %c651 = arith.constant 651 : index
    %2678 = memref.load %arg1[%c651] : memref<686xf32, #tpu.memory_space<smem>>
    %2679 = vector.broadcast %2677 : f32 to vector<8x70xf32>
    %2680 = arith.mulf %2679, %2675 : vector<8x70xf32>
    %2681 = vector.broadcast %2678 : f32 to vector<8x70xf32>
    %2682 = arith.mulf %2681, %2676 : vector<8x70xf32>
    %2683 = arith.addf %2680, %2682 : vector<8x70xf32>
    %2684 = arith.addf %2626, %2683 : vector<8x70xf32>
    %c309 = arith.constant 309 : index
    %2685 = memref.load %arg1[%c309] : memref<686xf32, #tpu.memory_space<smem>>
    %c652 = arith.constant 652 : index
    %2686 = memref.load %arg1[%c652] : memref<686xf32, #tpu.memory_space<smem>>
    %2687 = vector.broadcast %2685 : f32 to vector<8x70xf32>
    %2688 = arith.mulf %2687, %2675 : vector<8x70xf32>
    %2689 = vector.broadcast %2686 : f32 to vector<8x70xf32>
    %2690 = arith.mulf %2689, %2676 : vector<8x70xf32>
    %2691 = arith.addf %2688, %2690 : vector<8x70xf32>
    %2692 = arith.addf %2634, %2691 : vector<8x70xf32>
    %c310 = arith.constant 310 : index
    %2693 = memref.load %arg1[%c310] : memref<686xf32, #tpu.memory_space<smem>>
    %c653 = arith.constant 653 : index
    %2694 = memref.load %arg1[%c653] : memref<686xf32, #tpu.memory_space<smem>>
    %2695 = vector.broadcast %2693 : f32 to vector<8x70xf32>
    %2696 = arith.mulf %2695, %2675 : vector<8x70xf32>
    %2697 = vector.broadcast %2694 : f32 to vector<8x70xf32>
    %2698 = arith.mulf %2697, %2676 : vector<8x70xf32>
    %2699 = arith.addf %2696, %2698 : vector<8x70xf32>
    %2700 = arith.addf %2642, %2699 : vector<8x70xf32>
    %c311 = arith.constant 311 : index
    %2701 = memref.load %arg1[%c311] : memref<686xf32, #tpu.memory_space<smem>>
    %c654 = arith.constant 654 : index
    %2702 = memref.load %arg1[%c654] : memref<686xf32, #tpu.memory_space<smem>>
    %2703 = vector.broadcast %2701 : f32 to vector<8x70xf32>
    %2704 = arith.mulf %2703, %2675 : vector<8x70xf32>
    %2705 = vector.broadcast %2702 : f32 to vector<8x70xf32>
    %2706 = arith.mulf %2705, %2676 : vector<8x70xf32>
    %2707 = arith.addf %2704, %2706 : vector<8x70xf32>
    %2708 = arith.addf %2650, %2707 : vector<8x70xf32>
    %c312 = arith.constant 312 : index
    %2709 = memref.load %arg1[%c312] : memref<686xf32, #tpu.memory_space<smem>>
    %c655 = arith.constant 655 : index
    %2710 = memref.load %arg1[%c655] : memref<686xf32, #tpu.memory_space<smem>>
    %2711 = vector.broadcast %2709 : f32 to vector<8x70xf32>
    %2712 = arith.mulf %2711, %2675 : vector<8x70xf32>
    %2713 = vector.broadcast %2710 : f32 to vector<8x70xf32>
    %2714 = arith.mulf %2713, %2676 : vector<8x70xf32>
    %2715 = arith.addf %2712, %2714 : vector<8x70xf32>
    %2716 = arith.addf %2658, %2715 : vector<8x70xf32>
    %c313 = arith.constant 313 : index
    %2717 = memref.load %arg1[%c313] : memref<686xf32, #tpu.memory_space<smem>>
    %c656 = arith.constant 656 : index
    %2718 = memref.load %arg1[%c656] : memref<686xf32, #tpu.memory_space<smem>>
    %2719 = vector.broadcast %2717 : f32 to vector<8x70xf32>
    %2720 = arith.mulf %2719, %2675 : vector<8x70xf32>
    %2721 = vector.broadcast %2718 : f32 to vector<8x70xf32>
    %2722 = arith.mulf %2721, %2676 : vector<8x70xf32>
    %2723 = arith.addf %2720, %2722 : vector<8x70xf32>
    %2724 = arith.addf %2666, %2723 : vector<8x70xf32>
    %c314 = arith.constant 314 : index
    %2725 = memref.load %arg1[%c314] : memref<686xf32, #tpu.memory_space<smem>>
    %c657 = arith.constant 657 : index
    %2726 = memref.load %arg1[%c657] : memref<686xf32, #tpu.memory_space<smem>>
    %2727 = vector.broadcast %2725 : f32 to vector<8x70xf32>
    %2728 = arith.mulf %2727, %2675 : vector<8x70xf32>
    %2729 = vector.broadcast %2726 : f32 to vector<8x70xf32>
    %2730 = arith.mulf %2729, %2676 : vector<8x70xf32>
    %2731 = arith.addf %2728, %2730 : vector<8x70xf32>
    %2732 = arith.addf %2674, %2731 : vector<8x70xf32>
    %c6_239 = arith.constant 6 : index
    %c29_240 = arith.constant 29 : index
    %2733 = vector.load %arg4[%c6_239, %c29_240] : memref<14x128xf32, #tpu.memory_space<vmem>>, vector<8x70xf32>
    %c6_241 = arith.constant 6 : index
    %c29_242 = arith.constant 29 : index
    %2734 = vector.load %arg5[%c6_241, %c29_242] : memref<14x128xf32, #tpu.memory_space<vmem>>, vector<8x70xf32>
    %c315 = arith.constant 315 : index
    %2735 = memref.load %arg1[%c315] : memref<686xf32, #tpu.memory_space<smem>>
    %c658 = arith.constant 658 : index
    %2736 = memref.load %arg1[%c658] : memref<686xf32, #tpu.memory_space<smem>>
    %2737 = vector.broadcast %2735 : f32 to vector<8x70xf32>
    %2738 = arith.mulf %2737, %2733 : vector<8x70xf32>
    %2739 = vector.broadcast %2736 : f32 to vector<8x70xf32>
    %2740 = arith.mulf %2739, %2734 : vector<8x70xf32>
    %2741 = arith.addf %2738, %2740 : vector<8x70xf32>
    %2742 = arith.addf %2684, %2741 : vector<8x70xf32>
    %c316 = arith.constant 316 : index
    %2743 = memref.load %arg1[%c316] : memref<686xf32, #tpu.memory_space<smem>>
    %c659 = arith.constant 659 : index
    %2744 = memref.load %arg1[%c659] : memref<686xf32, #tpu.memory_space<smem>>
    %2745 = vector.broadcast %2743 : f32 to vector<8x70xf32>
    %2746 = arith.mulf %2745, %2733 : vector<8x70xf32>
    %2747 = vector.broadcast %2744 : f32 to vector<8x70xf32>
    %2748 = arith.mulf %2747, %2734 : vector<8x70xf32>
    %2749 = arith.addf %2746, %2748 : vector<8x70xf32>
    %2750 = arith.addf %2692, %2749 : vector<8x70xf32>
    %c317 = arith.constant 317 : index
    %2751 = memref.load %arg1[%c317] : memref<686xf32, #tpu.memory_space<smem>>
    %c660 = arith.constant 660 : index
    %2752 = memref.load %arg1[%c660] : memref<686xf32, #tpu.memory_space<smem>>
    %2753 = vector.broadcast %2751 : f32 to vector<8x70xf32>
    %2754 = arith.mulf %2753, %2733 : vector<8x70xf32>
    %2755 = vector.broadcast %2752 : f32 to vector<8x70xf32>
    %2756 = arith.mulf %2755, %2734 : vector<8x70xf32>
    %2757 = arith.addf %2754, %2756 : vector<8x70xf32>
    %2758 = arith.addf %2700, %2757 : vector<8x70xf32>
    %c318 = arith.constant 318 : index
    %2759 = memref.load %arg1[%c318] : memref<686xf32, #tpu.memory_space<smem>>
    %c661 = arith.constant 661 : index
    %2760 = memref.load %arg1[%c661] : memref<686xf32, #tpu.memory_space<smem>>
    %2761 = vector.broadcast %2759 : f32 to vector<8x70xf32>
    %2762 = arith.mulf %2761, %2733 : vector<8x70xf32>
    %2763 = vector.broadcast %2760 : f32 to vector<8x70xf32>
    %2764 = arith.mulf %2763, %2734 : vector<8x70xf32>
    %2765 = arith.addf %2762, %2764 : vector<8x70xf32>
    %2766 = arith.addf %2708, %2765 : vector<8x70xf32>
    %c319 = arith.constant 319 : index
    %2767 = memref.load %arg1[%c319] : memref<686xf32, #tpu.memory_space<smem>>
    %c662 = arith.constant 662 : index
    %2768 = memref.load %arg1[%c662] : memref<686xf32, #tpu.memory_space<smem>>
    %2769 = vector.broadcast %2767 : f32 to vector<8x70xf32>
    %2770 = arith.mulf %2769, %2733 : vector<8x70xf32>
    %2771 = vector.broadcast %2768 : f32 to vector<8x70xf32>
    %2772 = arith.mulf %2771, %2734 : vector<8x70xf32>
    %2773 = arith.addf %2770, %2772 : vector<8x70xf32>
    %2774 = arith.addf %2716, %2773 : vector<8x70xf32>
    %c320 = arith.constant 320 : index
    %2775 = memref.load %arg1[%c320] : memref<686xf32, #tpu.memory_space<smem>>
    %c663 = arith.constant 663 : index
    %2776 = memref.load %arg1[%c663] : memref<686xf32, #tpu.memory_space<smem>>
    %2777 = vector.broadcast %2775 : f32 to vector<8x70xf32>
    %2778 = arith.mulf %2777, %2733 : vector<8x70xf32>
    %2779 = vector.broadcast %2776 : f32 to vector<8x70xf32>
    %2780 = arith.mulf %2779, %2734 : vector<8x70xf32>
    %2781 = arith.addf %2778, %2780 : vector<8x70xf32>
    %2782 = arith.addf %2724, %2781 : vector<8x70xf32>
    %c321 = arith.constant 321 : index
    %2783 = memref.load %arg1[%c321] : memref<686xf32, #tpu.memory_space<smem>>
    %c664 = arith.constant 664 : index
    %2784 = memref.load %arg1[%c664] : memref<686xf32, #tpu.memory_space<smem>>
    %2785 = vector.broadcast %2783 : f32 to vector<8x70xf32>
    %2786 = arith.mulf %2785, %2733 : vector<8x70xf32>
    %2787 = vector.broadcast %2784 : f32 to vector<8x70xf32>
    %2788 = arith.mulf %2787, %2734 : vector<8x70xf32>
    %2789 = arith.addf %2786, %2788 : vector<8x70xf32>
    %2790 = arith.addf %2732, %2789 : vector<8x70xf32>
    %c6_243 = arith.constant 6 : index
    %c37_244 = arith.constant 37 : index
    %2791 = vector.load %arg4[%c6_243, %c37_244] : memref<14x128xf32, #tpu.memory_space<vmem>>, vector<8x70xf32>
    %c6_245 = arith.constant 6 : index
    %c37_246 = arith.constant 37 : index
    %2792 = vector.load %arg5[%c6_245, %c37_246] : memref<14x128xf32, #tpu.memory_space<vmem>>, vector<8x70xf32>
    %c322 = arith.constant 322 : index
    %2793 = memref.load %arg1[%c322] : memref<686xf32, #tpu.memory_space<smem>>
    %c665 = arith.constant 665 : index
    %2794 = memref.load %arg1[%c665] : memref<686xf32, #tpu.memory_space<smem>>
    %2795 = vector.broadcast %2793 : f32 to vector<8x70xf32>
    %2796 = arith.mulf %2795, %2791 : vector<8x70xf32>
    %2797 = vector.broadcast %2794 : f32 to vector<8x70xf32>
    %2798 = arith.mulf %2797, %2792 : vector<8x70xf32>
    %2799 = arith.addf %2796, %2798 : vector<8x70xf32>
    %2800 = arith.addf %2742, %2799 : vector<8x70xf32>
    %c323 = arith.constant 323 : index
    %2801 = memref.load %arg1[%c323] : memref<686xf32, #tpu.memory_space<smem>>
    %c666 = arith.constant 666 : index
    %2802 = memref.load %arg1[%c666] : memref<686xf32, #tpu.memory_space<smem>>
    %2803 = vector.broadcast %2801 : f32 to vector<8x70xf32>
    %2804 = arith.mulf %2803, %2791 : vector<8x70xf32>
    %2805 = vector.broadcast %2802 : f32 to vector<8x70xf32>
    %2806 = arith.mulf %2805, %2792 : vector<8x70xf32>
    %2807 = arith.addf %2804, %2806 : vector<8x70xf32>
    %2808 = arith.addf %2750, %2807 : vector<8x70xf32>
    %c324 = arith.constant 324 : index
    %2809 = memref.load %arg1[%c324] : memref<686xf32, #tpu.memory_space<smem>>
    %c667 = arith.constant 667 : index
    %2810 = memref.load %arg1[%c667] : memref<686xf32, #tpu.memory_space<smem>>
    %2811 = vector.broadcast %2809 : f32 to vector<8x70xf32>
    %2812 = arith.mulf %2811, %2791 : vector<8x70xf32>
    %2813 = vector.broadcast %2810 : f32 to vector<8x70xf32>
    %2814 = arith.mulf %2813, %2792 : vector<8x70xf32>
    %2815 = arith.addf %2812, %2814 : vector<8x70xf32>
    %2816 = arith.addf %2758, %2815 : vector<8x70xf32>
    %c325 = arith.constant 325 : index
    %2817 = memref.load %arg1[%c325] : memref<686xf32, #tpu.memory_space<smem>>
    %c668 = arith.constant 668 : index
    %2818 = memref.load %arg1[%c668] : memref<686xf32, #tpu.memory_space<smem>>
    %2819 = vector.broadcast %2817 : f32 to vector<8x70xf32>
    %2820 = arith.mulf %2819, %2791 : vector<8x70xf32>
    %2821 = vector.broadcast %2818 : f32 to vector<8x70xf32>
    %2822 = arith.mulf %2821, %2792 : vector<8x70xf32>
    %2823 = arith.addf %2820, %2822 : vector<8x70xf32>
    %2824 = arith.addf %2766, %2823 : vector<8x70xf32>
    %c326 = arith.constant 326 : index
    %2825 = memref.load %arg1[%c326] : memref<686xf32, #tpu.memory_space<smem>>
    %c669 = arith.constant 669 : index
    %2826 = memref.load %arg1[%c669] : memref<686xf32, #tpu.memory_space<smem>>
    %2827 = vector.broadcast %2825 : f32 to vector<8x70xf32>
    %2828 = arith.mulf %2827, %2791 : vector<8x70xf32>
    %2829 = vector.broadcast %2826 : f32 to vector<8x70xf32>
    %2830 = arith.mulf %2829, %2792 : vector<8x70xf32>
    %2831 = arith.addf %2828, %2830 : vector<8x70xf32>
    %2832 = arith.addf %2774, %2831 : vector<8x70xf32>
    %c327 = arith.constant 327 : index
    %2833 = memref.load %arg1[%c327] : memref<686xf32, #tpu.memory_space<smem>>
    %c670 = arith.constant 670 : index
    %2834 = memref.load %arg1[%c670] : memref<686xf32, #tpu.memory_space<smem>>
    %2835 = vector.broadcast %2833 : f32 to vector<8x70xf32>
    %2836 = arith.mulf %2835, %2791 : vector<8x70xf32>
    %2837 = vector.broadcast %2834 : f32 to vector<8x70xf32>
    %2838 = arith.mulf %2837, %2792 : vector<8x70xf32>
    %2839 = arith.addf %2836, %2838 : vector<8x70xf32>
    %2840 = arith.addf %2782, %2839 : vector<8x70xf32>
    %c328 = arith.constant 328 : index
    %2841 = memref.load %arg1[%c328] : memref<686xf32, #tpu.memory_space<smem>>
    %c671 = arith.constant 671 : index
    %2842 = memref.load %arg1[%c671] : memref<686xf32, #tpu.memory_space<smem>>
    %2843 = vector.broadcast %2841 : f32 to vector<8x70xf32>
    %2844 = arith.mulf %2843, %2791 : vector<8x70xf32>
    %2845 = vector.broadcast %2842 : f32 to vector<8x70xf32>
    %2846 = arith.mulf %2845, %2792 : vector<8x70xf32>
    %2847 = arith.addf %2844, %2846 : vector<8x70xf32>
    %2848 = arith.addf %2790, %2847 : vector<8x70xf32>
    %c6_247 = arith.constant 6 : index
    %c45_248 = arith.constant 45 : index
    %2849 = vector.load %arg4[%c6_247, %c45_248] : memref<14x128xf32, #tpu.memory_space<vmem>>, vector<8x70xf32>
    %c6_249 = arith.constant 6 : index
    %c45_250 = arith.constant 45 : index
    %2850 = vector.load %arg5[%c6_249, %c45_250] : memref<14x128xf32, #tpu.memory_space<vmem>>, vector<8x70xf32>
    %c329 = arith.constant 329 : index
    %2851 = memref.load %arg1[%c329] : memref<686xf32, #tpu.memory_space<smem>>
    %c672 = arith.constant 672 : index
    %2852 = memref.load %arg1[%c672] : memref<686xf32, #tpu.memory_space<smem>>
    %2853 = vector.broadcast %2851 : f32 to vector<8x70xf32>
    %2854 = arith.mulf %2853, %2849 : vector<8x70xf32>
    %2855 = vector.broadcast %2852 : f32 to vector<8x70xf32>
    %2856 = arith.mulf %2855, %2850 : vector<8x70xf32>
    %2857 = arith.addf %2854, %2856 : vector<8x70xf32>
    %2858 = arith.addf %2800, %2857 : vector<8x70xf32>
    %c330 = arith.constant 330 : index
    %2859 = memref.load %arg1[%c330] : memref<686xf32, #tpu.memory_space<smem>>
    %c673 = arith.constant 673 : index
    %2860 = memref.load %arg1[%c673] : memref<686xf32, #tpu.memory_space<smem>>
    %2861 = vector.broadcast %2859 : f32 to vector<8x70xf32>
    %2862 = arith.mulf %2861, %2849 : vector<8x70xf32>
    %2863 = vector.broadcast %2860 : f32 to vector<8x70xf32>
    %2864 = arith.mulf %2863, %2850 : vector<8x70xf32>
    %2865 = arith.addf %2862, %2864 : vector<8x70xf32>
    %2866 = arith.addf %2808, %2865 : vector<8x70xf32>
    %c331 = arith.constant 331 : index
    %2867 = memref.load %arg1[%c331] : memref<686xf32, #tpu.memory_space<smem>>
    %c674 = arith.constant 674 : index
    %2868 = memref.load %arg1[%c674] : memref<686xf32, #tpu.memory_space<smem>>
    %2869 = vector.broadcast %2867 : f32 to vector<8x70xf32>
    %2870 = arith.mulf %2869, %2849 : vector<8x70xf32>
    %2871 = vector.broadcast %2868 : f32 to vector<8x70xf32>
    %2872 = arith.mulf %2871, %2850 : vector<8x70xf32>
    %2873 = arith.addf %2870, %2872 : vector<8x70xf32>
    %2874 = arith.addf %2816, %2873 : vector<8x70xf32>
    %c332 = arith.constant 332 : index
    %2875 = memref.load %arg1[%c332] : memref<686xf32, #tpu.memory_space<smem>>
    %c675 = arith.constant 675 : index
    %2876 = memref.load %arg1[%c675] : memref<686xf32, #tpu.memory_space<smem>>
    %2877 = vector.broadcast %2875 : f32 to vector<8x70xf32>
    %2878 = arith.mulf %2877, %2849 : vector<8x70xf32>
    %2879 = vector.broadcast %2876 : f32 to vector<8x70xf32>
    %2880 = arith.mulf %2879, %2850 : vector<8x70xf32>
    %2881 = arith.addf %2878, %2880 : vector<8x70xf32>
    %2882 = arith.addf %2824, %2881 : vector<8x70xf32>
    %c333 = arith.constant 333 : index
    %2883 = memref.load %arg1[%c333] : memref<686xf32, #tpu.memory_space<smem>>
    %c676 = arith.constant 676 : index
    %2884 = memref.load %arg1[%c676] : memref<686xf32, #tpu.memory_space<smem>>
    %2885 = vector.broadcast %2883 : f32 to vector<8x70xf32>
    %2886 = arith.mulf %2885, %2849 : vector<8x70xf32>
    %2887 = vector.broadcast %2884 : f32 to vector<8x70xf32>
    %2888 = arith.mulf %2887, %2850 : vector<8x70xf32>
    %2889 = arith.addf %2886, %2888 : vector<8x70xf32>
    %2890 = arith.addf %2832, %2889 : vector<8x70xf32>
    %c334 = arith.constant 334 : index
    %2891 = memref.load %arg1[%c334] : memref<686xf32, #tpu.memory_space<smem>>
    %c677 = arith.constant 677 : index
    %2892 = memref.load %arg1[%c677] : memref<686xf32, #tpu.memory_space<smem>>
    %2893 = vector.broadcast %2891 : f32 to vector<8x70xf32>
    %2894 = arith.mulf %2893, %2849 : vector<8x70xf32>
    %2895 = vector.broadcast %2892 : f32 to vector<8x70xf32>
    %2896 = arith.mulf %2895, %2850 : vector<8x70xf32>
    %2897 = arith.addf %2894, %2896 : vector<8x70xf32>
    %2898 = arith.addf %2840, %2897 : vector<8x70xf32>
    %c335 = arith.constant 335 : index
    %2899 = memref.load %arg1[%c335] : memref<686xf32, #tpu.memory_space<smem>>
    %c678 = arith.constant 678 : index
    %2900 = memref.load %arg1[%c678] : memref<686xf32, #tpu.memory_space<smem>>
    %2901 = vector.broadcast %2899 : f32 to vector<8x70xf32>
    %2902 = arith.mulf %2901, %2849 : vector<8x70xf32>
    %2903 = vector.broadcast %2900 : f32 to vector<8x70xf32>
    %2904 = arith.mulf %2903, %2850 : vector<8x70xf32>
    %2905 = arith.addf %2902, %2904 : vector<8x70xf32>
    %2906 = arith.addf %2848, %2905 : vector<8x70xf32>
    %c6_251 = arith.constant 6 : index
    %c53_252 = arith.constant 53 : index
    %2907 = vector.load %arg4[%c6_251, %c53_252] : memref<14x128xf32, #tpu.memory_space<vmem>>, vector<8x70xf32>
    %c6_253 = arith.constant 6 : index
    %c53_254 = arith.constant 53 : index
    %2908 = vector.load %arg5[%c6_253, %c53_254] : memref<14x128xf32, #tpu.memory_space<vmem>>, vector<8x70xf32>
    %c336 = arith.constant 336 : index
    %2909 = memref.load %arg1[%c336] : memref<686xf32, #tpu.memory_space<smem>>
    %c679 = arith.constant 679 : index
    %2910 = memref.load %arg1[%c679] : memref<686xf32, #tpu.memory_space<smem>>
    %2911 = vector.broadcast %2909 : f32 to vector<8x70xf32>
    %2912 = arith.mulf %2911, %2907 : vector<8x70xf32>
    %2913 = vector.broadcast %2910 : f32 to vector<8x70xf32>
    %2914 = arith.mulf %2913, %2908 : vector<8x70xf32>
    %2915 = arith.addf %2912, %2914 : vector<8x70xf32>
    %2916 = arith.addf %2858, %2915 : vector<8x70xf32>
    %c337 = arith.constant 337 : index
    %2917 = memref.load %arg1[%c337] : memref<686xf32, #tpu.memory_space<smem>>
    %c680 = arith.constant 680 : index
    %2918 = memref.load %arg1[%c680] : memref<686xf32, #tpu.memory_space<smem>>
    %2919 = vector.broadcast %2917 : f32 to vector<8x70xf32>
    %2920 = arith.mulf %2919, %2907 : vector<8x70xf32>
    %2921 = vector.broadcast %2918 : f32 to vector<8x70xf32>
    %2922 = arith.mulf %2921, %2908 : vector<8x70xf32>
    %2923 = arith.addf %2920, %2922 : vector<8x70xf32>
    %2924 = arith.addf %2866, %2923 : vector<8x70xf32>
    %c338 = arith.constant 338 : index
    %2925 = memref.load %arg1[%c338] : memref<686xf32, #tpu.memory_space<smem>>
    %c681 = arith.constant 681 : index
    %2926 = memref.load %arg1[%c681] : memref<686xf32, #tpu.memory_space<smem>>
    %2927 = vector.broadcast %2925 : f32 to vector<8x70xf32>
    %2928 = arith.mulf %2927, %2907 : vector<8x70xf32>
    %2929 = vector.broadcast %2926 : f32 to vector<8x70xf32>
    %2930 = arith.mulf %2929, %2908 : vector<8x70xf32>
    %2931 = arith.addf %2928, %2930 : vector<8x70xf32>
    %2932 = arith.addf %2874, %2931 : vector<8x70xf32>
    %c339 = arith.constant 339 : index
    %2933 = memref.load %arg1[%c339] : memref<686xf32, #tpu.memory_space<smem>>
    %c682 = arith.constant 682 : index
    %2934 = memref.load %arg1[%c682] : memref<686xf32, #tpu.memory_space<smem>>
    %2935 = vector.broadcast %2933 : f32 to vector<8x70xf32>
    %2936 = arith.mulf %2935, %2907 : vector<8x70xf32>
    %2937 = vector.broadcast %2934 : f32 to vector<8x70xf32>
    %2938 = arith.mulf %2937, %2908 : vector<8x70xf32>
    %2939 = arith.addf %2936, %2938 : vector<8x70xf32>
    %2940 = arith.addf %2882, %2939 : vector<8x70xf32>
    %c340 = arith.constant 340 : index
    %2941 = memref.load %arg1[%c340] : memref<686xf32, #tpu.memory_space<smem>>
    %c683 = arith.constant 683 : index
    %2942 = memref.load %arg1[%c683] : memref<686xf32, #tpu.memory_space<smem>>
    %2943 = vector.broadcast %2941 : f32 to vector<8x70xf32>
    %2944 = arith.mulf %2943, %2907 : vector<8x70xf32>
    %2945 = vector.broadcast %2942 : f32 to vector<8x70xf32>
    %2946 = arith.mulf %2945, %2908 : vector<8x70xf32>
    %2947 = arith.addf %2944, %2946 : vector<8x70xf32>
    %2948 = arith.addf %2890, %2947 : vector<8x70xf32>
    %c341 = arith.constant 341 : index
    %2949 = memref.load %arg1[%c341] : memref<686xf32, #tpu.memory_space<smem>>
    %c684 = arith.constant 684 : index
    %2950 = memref.load %arg1[%c684] : memref<686xf32, #tpu.memory_space<smem>>
    %2951 = vector.broadcast %2949 : f32 to vector<8x70xf32>
    %2952 = arith.mulf %2951, %2907 : vector<8x70xf32>
    %2953 = vector.broadcast %2950 : f32 to vector<8x70xf32>
    %2954 = arith.mulf %2953, %2908 : vector<8x70xf32>
    %2955 = arith.addf %2952, %2954 : vector<8x70xf32>
    %2956 = arith.addf %2898, %2955 : vector<8x70xf32>
    %c342 = arith.constant 342 : index
    %2957 = memref.load %arg1[%c342] : memref<686xf32, #tpu.memory_space<smem>>
    %c685 = arith.constant 685 : index
    %2958 = memref.load %arg1[%c685] : memref<686xf32, #tpu.memory_space<smem>>
    %2959 = vector.broadcast %2957 : f32 to vector<8x70xf32>
    %2960 = arith.mulf %2959, %2907 : vector<8x70xf32>
    %2961 = vector.broadcast %2958 : f32 to vector<8x70xf32>
    %2962 = arith.mulf %2961, %2908 : vector<8x70xf32>
    %2963 = arith.addf %2960, %2962 : vector<8x70xf32>
    %2964 = arith.addf %2906, %2963 : vector<8x70xf32>
    %cst_255 = arith.constant 0.000000e+00 : f32
    %2965 = vector.broadcast %cst_255 : f32 to vector<8x64xf32>
    %2966 = vector.extract_strided_slice %2916 {offsets = [0, 0], sizes = [8, 64], strides = [1, 1]} : vector<8x70xf32> to vector<8x64xf32>
    %2967 = arith.mulf %49, %2966 : vector<8x64xf32>
    %2968 = arith.addf %2965, %2967 : vector<8x64xf32>
    %2969 = vector.extract_strided_slice %2924 {offsets = [0, 1], sizes = [8, 64], strides = [1, 1]} : vector<8x70xf32> to vector<8x64xf32>
    %2970 = arith.mulf %60, %2969 : vector<8x64xf32>
    %2971 = arith.addf %2968, %2970 : vector<8x64xf32>
    %2972 = vector.extract_strided_slice %2932 {offsets = [0, 2], sizes = [8, 64], strides = [1, 1]} : vector<8x70xf32> to vector<8x64xf32>
    %2973 = arith.mulf %71, %2972 : vector<8x64xf32>
    %2974 = arith.addf %2971, %2973 : vector<8x64xf32>
    %2975 = vector.extract_strided_slice %2940 {offsets = [0, 3], sizes = [8, 64], strides = [1, 1]} : vector<8x70xf32> to vector<8x64xf32>
    %2976 = arith.mulf %82, %2975 : vector<8x64xf32>
    %2977 = arith.addf %2974, %2976 : vector<8x64xf32>
    %2978 = vector.extract_strided_slice %2948 {offsets = [0, 4], sizes = [8, 64], strides = [1, 1]} : vector<8x70xf32> to vector<8x64xf32>
    %2979 = arith.mulf %93, %2978 : vector<8x64xf32>
    %2980 = arith.addf %2977, %2979 : vector<8x64xf32>
    %2981 = vector.extract_strided_slice %2956 {offsets = [0, 5], sizes = [8, 64], strides = [1, 1]} : vector<8x70xf32> to vector<8x64xf32>
    %2982 = arith.mulf %104, %2981 : vector<8x64xf32>
    %2983 = arith.addf %2980, %2982 : vector<8x64xf32>
    %2984 = vector.extract_strided_slice %2964 {offsets = [0, 6], sizes = [8, 64], strides = [1, 1]} : vector<8x70xf32> to vector<8x64xf32>
    %2985 = arith.mulf %115, %2984 : vector<8x64xf32>
    %2986 = arith.addf %2983, %2985 : vector<8x64xf32>
    %2987 = arith.negf %2986 : vector<8x64xf32>
    %2988 = math.exp %2987 : vector<8x64xf32>
    %cst_256 = arith.constant 1.000000e+00 : f32
    %2989 = vector.broadcast %cst_256 : f32 to vector<8x64xf32>
    %2990 = arith.addf %2989, %2988 : vector<8x64xf32>
    %2991 = arith.divf %2989, %2990 : vector<8x64xf32>
    %c0_257 = arith.constant 0 : index
    %c0_258 = arith.constant 0 : index
    %c0_259 = arith.constant 0 : index
    %2992 = vector.load %arg3[%c0_257, %c0_258, %c0_259] : memref<1x8x64xf32, #tpu.memory_space<vmem>>, vector<1x8x64xf32>
    %2993 = vector.shape_cast %2992 : vector<1x8x64xf32> to vector<8x64xf32>
    %2994 = vector.shape_cast %2991 : vector<8x64xf32> to vector<1x8x64xf32>
    tpu.vector_store %arg3[%c0_257, %c0_258, %c0_259], %2994 {strides = array<i32>} : memref<1x8x64xf32, #tpu.memory_space<vmem>>, vector<1x8x64xf32>,
    return
  }
  func.func @transform_0(%arg0: i32) -> i32 {
    %c0_i32 = arith.constant 0 : i32
    %c0_i32_0 = arith.constant 0 : i32
    return %c0_i32 : i32
  }
  func.func @transform_1(%arg0: i32) -> (i32, i32, i32, i32) {
    %c0_i32 = arith.constant 0 : i32
    %c0_i32_0 = arith.constant 0 : i32
    %c0_i32_1 = arith.constant 0 : i32
    %c0_i32_2 = arith.constant 0 : i32
    return %arg0, %c0_i32, %c0_i32_0, %c0_i32_1 : i32, i32, i32, i32
  }
  func.func @transform_2(%arg0: i32) -> (i32, i32, i32) {
    %c0_i32 = arith.constant 0 : i32
    %c0_i32_0 = arith.constant 0 : i32
    %c0_i32_1 = arith.constant 0 : i32
    return %arg0, %c0_i32, %c0_i32_0 : i32, i32, i32
  }
}

</mosaic_0001>

<bundles_post_ra>
// kernel: tpu_custom_call.1
= control target key start
LH: loop header
LB: loop body
LE: loop exit
PB: predicated region body
PF: predicated region fallthrough
CT: control target
= control target key end

     0   :  { %s9866_s0 = inlined_call_operand.hbm [shape: f32[686], index: 0, kind: input, shape index: {}]   ;;  %s9867_s1 = inlined_call_operand.hbm [shape: f32[2,4,8,64], index: 1, kind: input, shape index: {}]   ;;  %s9868_s2 = inlined_call_operand.hbm [shape: f32[2,8,64], index: 2, kind: output, shape index: {}]  }
   0x1   :  { %9951 = sst [smem:[#allocation136_spill]] %s9866_s0 }
   0x2   :  { %9952 = sst [smem:[#allocation137_spill]] %s9867_s1 }
   0x3   :  { %9953 = sst [smem:[#allocation138_spill]] %s9868_s2 }
   0x4   :  { %7 = vsyncpa [#allocation7], 0 }
   0x5   :  { %8 = vsyncpa [#allocation5], 0 }
   0x6   :  { %10 = vsyncpa [#allocation5 + $0x1], 0 }
   0x7   :  { %11 = vsyncpa [#allocation6], 0 }
   0x8   :  { %13 = vsyncpa [#allocation6 + $0x1], 0  ;;  %s5285_s9 = smov 0   ;;  %s5287_s10 = smov 0  }
   0x9   :  { %s5289_s11 = smov 0   ;;  %s5291_s12 = smov 0  }
   0xa LB: > { %9954 = sst [smem:[#allocation13_spill]] %s5237_s9  ;;  %s5306_s13 = sadd.s32 4294967295, %s5249_s12   ;;  %s5249_s12 = sphi %s5291_s12, %s10365_s12   ;;  %s5245_s11 = sphi %s5289_s11, %s10368_s11   ;;  %s5241_s10 = sphi %s5287_s10, %s10367_s10   ;;  %s5237_s9 = sphi %s5285_s9, %s10366_s9  }
   0xb   : > { %9955 = sst [smem:[#allocation14_spill]] %s5241_s10  ;;  %s4338_s14 = sadd.s32 4294967294, %s5249_s12  }
   0xc   : > { %9956 = sst [smem:[#allocation15_spill]] %s5245_s11  ;;  %s5310_s15 = sadd.s32 1, %s5249_s12  }
   0xd   : > { %9957 = sst [smem:[#allocation16_spill]] %s5249_s12  ;;  %s47_s16 = sadd.s32 1, %s5245_s11 }
   0xe   : > { %9958 = sst [smem:[#allocation17_spill]] %s5306_s13  ;;  %s44_s17 = ssub.s32 %s5249_s12, %s5310_s15 }
   0xf   : > { %9959 = sst [smem:[#allocation18_spill]] %s5310_s15  ;;  %p54_p0 = scmp.ne.s32.totalorder %s5245_s11, %s5241_s10 }
  0x10   : > { %p45_p1 = scmp.eq.s32.totalorder %s44_s17, 0  ;;  %p55_p2 = scmp.eq.s32.totalorder %s5249_s12, 0 }
  0x11   : > { %p60_p3 = scmp.ne.s32.totalorder %s5241_s10, %s5237_s9  ;;  %p9869_p4 = scmp.eq.s32.totalorder %s5306_s13, 0 }
  0x12   : > { %s5322_s18 = scalar_select %p45_p1, %s5245_s11, %s47_s16  }
  0x13   : > { %p5324_p5 = por %p55_p2, %p54_p0  ;;  %p5330_p6 = por %p9869_p4, %p60_p3 }
  0x14   : > { %9960 = sst [smem:[#allocation19_spill]] %s5322_s18  ;;  %p84_p7 = scmp.eq.s32.totalorder %s5306_s13, 1 }
  0x15   : > { %s9962_s20 = scalar_select %p5330_p6, 1, 0 }
  0x16   : > { %p90_p8 = scmp.eq.s32.totalorder %s4338_s14, 1  ;;  %p4339_p9 = scmp.ge.s32.totalorder %s5249_s12, 1 }
  0x17   : > { %p97_p10 = scmp.lt.s32.totalorder %s5249_s12, 3  ;;  %p5337_p11 = por %p84_p7, %p54_p0 }
  0x18   : > { %p5341_p12 = por %p90_p8, %p60_p3  ;;  %p5070_p4 = scmp.lt.s32.totalorder %s5249_s12, 2 }
  0x19   : > { %s9963_s21 = scalar_select %p5337_p11, 1, 0 }
  0x1a   : > { %s9965_s22 = scalar_select %p5341_p12, 1, 0 }
  0x1b   : > { %9964 = sst [smem:[#allocation20_spill]] %s9963_s21  ;;  %p5345_p13 = pnand %p4339_p9, %p97_p10 }
  0x1c   : > { %9966 = sst [smem:[#allocation21_spill]] %s9965_s22  ;;  %s119_s24 = sand.u32 1, %s5245_s11  }
  0x1d   : > { %p5057_p2 = pneg %p5345_p13  ;;  %s5048_s25 = sshll.u32 %s5249_s12, 9 }
  0x1e   : > { %p9968_p6 = scmp.eq.s32.totalorder %s5306_s13, 0  ;;  %p5363_p3 = pnand %p5070_p4, %p5324_p5 }
  0x1f   : > { %s4342_s28 = sshll.u32 %s119_s24, 5  ;;  %s9971_s0 = sld [smem:[#allocation136_spill]] }
  0x20   : > { %p5357_p0 = pnand %p5057_p2, %p9968_p6 }
  0x22   : > { %p5138_p6 = pneg %p5357_p0 }
  0x25   : > { %s5136_s3 = scalar_lea.hbm %s9971_s0, 96  ;;  %s5141_s8 = scalar_lea.hbm %s9971_s0, 128 }
  0x26   : > { %p5137_p7 = scmp.ne.s32.totalorder %s9971_s0, %s5136_s3  ;;  %p5142_p4 = scmp.lt.u32.totalorder %s5141_s8, %s5136_s3 }
  0x27   : > { %p5143_p5 = scmp.lt.u32.totalorder %s5136_s3, %s9971_s0 }
  0x28   : > { %p5139_p8 = pnand %p5138_p6, %p5137_p7 }
  0x29   : > { %p5144_p10 = por %p5143_p5, %p5142_p4 }
  0x2a   : > { %p5140_p9 = pneg %p5139_p8 }
  0x2c   : > { %p5145_p2 = pnand %p5144_p10, %p5140_p9 }
  0x2e   : > { %5148 = shalt.err (!%p5145_p2)
}
  0x2f   : > { %s5251_s17 = smov [#allocation4]   ;;  %s9972_s1 = sld [smem:[#allocation137_spill]] }
  0x30   : > { %5060 = dma.hbm_to_smem (!%p5357_p0), %s9971_s0, 96, %s5251_s17, [#allocation7]  }
  0x31   : > { %s123_s3 = scalar_lea.vmem [#allocation8], %s4342_s28  ;;  %s5393_s26 = scalar_lea.sflag [#allocation5], %s119_s24 }
  0x32   : > { %s130_s6 = sshll.u32 %s123_s3, 4  ;;  %p5151_p6 = pneg %p5363_p3  ;;  %s5391_s6 = int_to_ptr.vmem [resolvable:$true] %s130_s6 }
  0x35   : > { %s5389_s5 = scalar_lea.hbm %s9972_s1, %s5048_s25  ;;  %s5154_s14 = scalar_lea.hbm %s9972_s1, 1024 }
  0x36   : > { %s5149_s7 = scalar_lea.hbm %s5389_s5, 512  ;;  %p5155_p9 = scmp.lt.u32.totalorder %s5389_s5, %s9972_s1 }
  0x37   : > { %p5150_p7 = scmp.ne.s32.totalorder %s5389_s5, %s5149_s7  ;;  %p5156_p4 = scmp.lt.u32.totalorder %s5154_s14, %s5149_s7 }
  0x38   : > { %p5158_p10 = scmp.lt.u32.totalorder %s5149_s7, %s5389_s5 }
  0x39   : > { %p5152_p0 = pnand %p5151_p6, %p5150_p7  ;;  %p5157_p5 = por %p5156_p4, %p5155_p9 }
  0x3b   : > { %p5153_p8 = pneg %p5152_p0  ;;  %p5159_p2 = por %p5158_p10, %p5157_p5 }
  0x3d   : > { %p5160_p1 = pnand %p5159_p2, %p5153_p8 }
  0x3f   : > { %5163 = shalt.err (!%p5160_p1)
}
  0x40   : > { %s5164_s24 = scalar_lea.vmem %s5391_s6, 512  ;;  %s5252_s28 = smov [#allocation8]  }
  0x41   : > { %p5165_p7 = scmp.ne.s32.totalorder %s5391_s6, %s5164_s24  ;;  %s5169_s19 = sshll.u32 %s5252_s28, 4  ;;  %s5170_s19 = int_to_ptr.vmem [resolvable:$false] %s5169_s19 }
  0x42   : > { %s5171_s29 = scalar_lea.vmem %s5170_s19, 1024  ;;  %p5172_p11 = scmp.lt.s32.totalorder %s5391_s6, %s5170_s19 }
  0x43   : > { %p5167_p0 = pnand %p5165_p7, %p5151_p6  ;;  %p5173_p9 = scmp.lt.s32.totalorder %s5171_s29, %s5164_s24 }
  0x45   : > { %p5168_p12 = pneg %p5167_p0  ;;  %p5174_p4 = por %p5173_p9, %p5172_p11 }
  0x47   : > { %p5175_p5 = pnand %p5174_p4, %p5168_p12 }
  0x49   : > { %5178 = shalt.err (!%p5175_p5)
}
  0x4a   : > { %s5253_s30 = smov 128   ;;  %s5254_s4 = smov 8  }
  0x4b   : > { %5064 = dma.hbm_to_vmem [thread:$0]  (!%p5363_p3), %s5389_s5, 512, %s5391_s6, %s5393_s26, %s5253_s30, %s5253_s30, %s5254_s4  }
  0x4c   : > { %142 = sbr.rel (%p5345_p13) target bundleno = 1094 (0x446), region = 28 }
  0x53   : > { %p9973_p1 = scmp.eq.s32.totalorder %s5306_s13, 0 }
  0x55   : > { %5224 = dma.done.wait (%p9973_p1), [#allocation7], 96   ;;  %p9974_p6 = pmov %p9973_p1 }
  0x56   : > { %s5428_s3 = sand.u32 1, %s5241_s10   ;;  %p9976_p11 = scmp.ne.s32.totalorder %s9962_s20, 0 }
  0x57   : > { %5226 = vsyncadd (%p9974_p6), [#allocation7], 4294967200  ;;  %9975 = sst [smem:[#allocation22_spill]] %s5428_s3  ;;  %s4347_s7 = sshll.u32 %s5428_s3, 5 }
  0x58   : > { %s149_s25 = scalar_lea.sflag [#allocation5], %s5428_s3  ;;  %s152_s8 = scalar_lea.vmem [#allocation8], %s4347_s7 }
  0x59   : > { %5228 = dma.done.wait (%p9976_p11), %s149_s25, 512  }
  0x5a   : > { %5230 = vsyncadd (%p9976_p11), %s149_s25, 4294966784 }
  0x5b   : > { %157 = sfence }
  0x5c   : > { %v174_v0 = vld [vmem:[%s152_s8] sm:$0xff]  ;;  %v4349_v1 = vld [vmem:[%s152_s8 + $0x8] sm:$0xff]  ;;  %v4350_v2 = vld [vmem:[%s152_s8 + $0x10] sm:$0xff]  ;;  %v9930_v5 = vmov 0.0   ;;  %s5256_s20 = smov 32   ;;  %s5440_s23 = sld [smem:[#allocation4 + $0x9]] }
  0x5d   : > { %v178_v3 = vmax.f32 %v174_v0, %v4349_v1  ;;  %v177_v4 = vadd.f32 %v4349_v1, %v174_v0  ;;  %190 = vst [vmem:[#allocation3] sm:$0xff] %v9930_v5  ;;  %191 = vst [vmem:[#allocation3 + $0x8] sm:$0x3f] %v9930_v5  ;;  %v4351_v6 = vld [vmem:[%s152_s8 + $0x18] sm:$0xff]  ;;  %s5442_s27 = sld [smem:[#allocation4 + $0x160]]  ;;  %s5444_s5 = sld [smem:[#allocation4 + $0x7]] }
  0x5e   : > { %188 = vst [vmem:[#allocation2] sm:$0xff] %v9930_v5  ;;  %189 = vst [vmem:[#allocation2 + $0x8] sm:$0x3f] %v9930_v5  ;;  %s5446_s6 = sld [smem:[#allocation4 + $0x15e]]  ;;  %s5448_s26 = sld [smem:[#allocation4 + $0xb]]  ;;  %vm196_vm0 = vcmask 785664  }
  0x5f   : > { %v182_v7 = vmax.f32 %v178_v3, %v4350_v2  ;;  %v181_v8 = vadd.f32 %v4350_v2, %v177_v4  ;;  %s5450_s14 = sld [smem:[#allocation4 + $0x162]]  ;;  %s5452_s16 = sld [smem:[#allocation4 + $0x8]]  ;;  %vm4240_vm7 = vcmask 523264  }
  0x60   : > { %s5454_s17 = sld [smem:[#allocation4 + $0x15f]]  ;;  %s5456_s24 = sld [smem:[#allocation4 + $0xd]] }
  0x61   : > { %v186_v9 = vmax.f32 %v182_v7, %v4351_v6  ;;  %v185_v10 = vadd.f32 %v4351_v6, %v181_v8  ;;  %s5458_s28 = sld [smem:[#allocation4 + $0x164]]  ;;  %s5460_s19 = sld [smem:[#allocation4 + $0xa]] }
  0x62   : > { %s5462_s29 = sld [smem:[#allocation4 + $0x161]]  ;;  %s5464_s30 = sld [smem:[#allocation4 + $0xf]]  ;;  %v342_v14 = vstv %s5440_s23 }
  0x63   : > { %199 = vrot.lane.b32.xlu0 %v186_v9, %s5256_s20  ;;  %v187_v11 = vmul.f32 0.25, %v185_v10  ;;  %s5466_s4 = sld [smem:[#allocation4 + $0x166]]  ;;  %s5468_s7 = sld [smem:[#allocation4 + $0xc]]  ;;  %v344_v15 = vstv %s5442_s27  ;;  %v318_v16 = vstv %s5444_s5 }
  0x64   : > { %s5470_s25 = sld [smem:[#allocation4 + $0x163]]  ;;  %s5472_s8 = sld [smem:[#allocation4 + $0x11]]  ;;  %v320_v17 = vstv %s5446_s6  ;;  %v366_v18 = vstv %s5448_s26 }
  0x65   : > { %s5476_s0 = sld [smem:[#allocation4 + $0xe]]  ;;  %s5478_s1 = sld [smem:[#allocation4 + $0x165]]  ;;  %v368_v19 = vstv %s5450_s14  ;;  %v330_v20 = vstv %s5452_s16 }
  0x66   : > { %9977 = sst [smem:[#allocation23_spill]] %s5456_s24  ;;  %s5480_s18 = sld [smem:[#allocation4 + $0x13]]  ;;  %v332_v21 = vstv %s5454_s17  ;;  %v390_v22 = vstv %s5456_s24 }
  0x67   : > { %193 = vrot.lane.b32.xlu0 %v187_v11, %s5256_s20  ;;  %9978 = sst [smem:[#allocation24_spill]] %s5458_s28  ;;  %s5474_s20 = sld [smem:[#allocation4 + $0x168]]  ;;  %v392_v23 = vstv %s5458_s28  ;;  %v354_v24 = vstv %s5460_s19 }
  0x68   : > { %9979 = sst [smem:[#allocation25_spill]] %s5460_s19  ;;  %s5482_s11 = sld [smem:[#allocation4 + $0x16a]]  ;;  %v356_v25 = vstv %s5462_s29  ;;  %v414_v26 = vstv %s5464_s30 }
  0x69   : > { %9980 = sst [smem:[#allocation26_spill]] %s5462_s29  ;;  %s5484_s10 = sld [smem:[#allocation4 + $0x10]]  ;;  %v416_v27 = vstv %s5466_s4  ;;  %v378_v28 = vstv %s5468_s7 }
  0x6a   : > { %9981 = sst [smem:[#allocation27_spill]] %s5464_s30  ;;  %s5486_s15 = sld [smem:[#allocation4 + $0x167]]  ;;  %v380_v29 = vstv %s5470_s25  ;;  %v438_v30 = vstv %s5472_s8 }
  0x6b   : > { %9982 = sst [smem:[#allocation28_spill]] %s5466_s4  ;;  %s5488_s12 = sld [smem:[#allocation4 + $0x15]]  ;;  %v402_v32 = vstv %s5476_s0  ;;  %v404_v33 = vstv %s5478_s1 }
  0x6c   : > { %9983 = sst [smem:[#allocation29_spill]] %s5468_s7  ;;  %s5490_s22 = sld [smem:[#allocation4 + $0x16c]]  ;;  %v462_v34 = vstv %s5480_s18 }
  0x6d   : > { %9984 = sst [smem:[#allocation30_spill]] %s5470_s25  ;;  %s5492_s9 = sld [smem:[#allocation4 + $0x12]]  ;;  %v440_v31 = vstv %s5474_s20 }
  0x6e   : > { %9985 = sst [smem:[#allocation31_spill]] %s5472_s8  ;;  %s5494_s2 = sld [smem:[#allocation4 + $0x169]]  ;;  %v464_v36 = vstv %s5482_s11 }
  0x6f   : > { %9986 = sst [smem:[#allocation32_spill]] %s5474_s20  ;;  %s5496_s21 = sld [smem:[#allocation4 + $0x17]]  ;;  %v426_v37 = vstv %s5484_s10 }
  0x70   : > { %9987 = sst [smem:[#allocation33_spill]] %s5476_s0  ;;  %s5498_s13 = sld [smem:[#allocation4 + $0x16e]]  ;;  %v428_v38 = vstv %s5486_s15 }
  0x71   : > { %9988 = sst [smem:[#allocation34_spill]] %s5478_s1  ;;  %s5500_s3 = sld [smem:[#allocation4 + $0x14]] }
  0x72   : > { %9989 = sst [smem:[#allocation35_spill]] %s5480_s18  ;;  %s5527_s23 = sld [smem:[#allocation4 + $0x1d]] }
  0x73   : > { %9990 = sst [smem:[#allocation36_spill]] %s5482_s11  ;;  %s5535_s27 = sld [smem:[#allocation4 + $0x1a]] }
  0x74   : > { %9991 = sst [smem:[#allocation37_spill]] %s5484_s10  ;;  %s5541_s5 = sld [smem:[#allocation4 + $0x171]] }
  0x75   : > { %9992 = sst [smem:[#allocation38_spill]] %s5486_s15  ;;  %s5543_s6 = sld [smem:[#allocation4 + $0x1f]] }
  0x76   : > { %9993 = sst [smem:[#allocation39_spill]] %s5488_s12  ;;  %s5503_s12 = sld [smem:[#allocation4 + $0x16b]] }
  0x77   : > { %9994 = sst [smem:[#allocation40_spill]] %s5490_s22  ;;  %s5505_s22 = sld [smem:[#allocation4 + $0x19]] }
  0x78   : > { %9995 = sst [smem:[#allocation41_spill]] %s5492_s9  ;;  %s5507_s9 = sld [smem:[#allocation4 + $0x170]]  ;;  %v582_v0 = vstv %s5527_s23 }
  0x79   : > { %9996 = sst [smem:[#allocation42_spill]] %s5494_s2  ;;  %s10014_s26 = sld [smem:[#allocation39_spill]] }
  0x7a   : > { %9997 = sst [smem:[#allocation43_spill]] %s5496_s21  ;;  %s5511_s2 = sld [smem:[#allocation4 + $0x16d]]  ;;  %v548_v6 = vstv %s5541_s5 }
  0x7b   : > { %9998 = sst [smem:[#allocation44_spill]] %s5498_s13  ;;  %s5509_s21 = sld [smem:[#allocation4 + $0x16]] }
  0x7c   : > { %9999 = sst [smem:[#allocation45_spill]] %s5500_s3  ;;  %s5513_s13 = sld [smem:[#allocation4 + $0x1b]] }
  0x7d   : > { %10000 = sst [smem:[#allocation46_spill]] %s5503_s12  ;;  %s5516_s3 = sld [smem:[#allocation4 + $0x172]]  ;;  %v534_v48 = vstv %s5505_s22 }
  0x7e   : > { %10001 = sst [smem:[#allocation47_spill]] %s5505_s22  ;;  %s5518_s12 = sld [smem:[#allocation4 + $0x18]]  ;;  %v536_v53 = vstv %s5507_s9 }
  0x7f   : > { %10002 = sst [smem:[#allocation48_spill]] %s5507_s9  ;;  %s5549_s24 = sld [smem:[#allocation4 + $0x176]]  ;;  %v486_v39 = vstv %s10014_s26 }
  0x80   : > { %10004 = sst [smem:[#allocation50_spill]] %s5511_s2  ;;  %s5525_s2 = sld [smem:[#allocation4 + $0x16f]] }
  0x81   : > { %10003 = sst [smem:[#allocation49_spill]] %s5509_s21  ;;  %s10015_s16 = sld [smem:[#allocation40_spill]]  ;;  %v498_v54 = vstv %s5509_s21 }
  0x82   : > { %10005 = sst [smem:[#allocation51_spill]] %s5513_s13  ;;  %s5551_s28 = sld [smem:[#allocation4 + $0x1c]]  ;;  %v558_v56 = vstv %s5513_s13 }
  0x83   : > { %10006 = sst [smem:[#allocation52_spill]] %s5516_s3  ;;  %s10019_s29 = sld [smem:[#allocation42_spill]]  ;;  %v560_v61 = vstv %s5516_s3 }
  0x84   : > { %10007 = sst [smem:[#allocation53_spill]] %s5518_s12  ;;  %s5533_s12 = sld [smem:[#allocation4 + $0x174]] }
  0x85   : > { %10009 = sst [smem:[#allocation55_spill]] %s5527_s23  ;;  %s10020_s30 = sld [smem:[#allocation43_spill]]  ;;  %v608_v8 = vstv %s5549_s24 }
  0x86   : > { %10008 = sst [smem:[#allocation54_spill]] %s5525_s2  ;;  %s5557_s19 = sld [smem:[#allocation4 + $0x173]]  ;;  %v524_v63 = vstv %s5525_s2 }
  0x87   : > { %10011 = sst [smem:[#allocation57_spill]] %s5535_s27  ;;  %s5559_s4 = sld [smem:[#allocation4 + $0x21]]  ;;  %v488_v40 = vstv %s10015_s16 }
  0x88   : > { %10012 = sst [smem:[#allocation58_spill]] %s5541_s5  ;;  %s10017_s27 = sld [smem:[#allocation41_spill]]  ;;  %v570_v9 = vstv %s5551_s28 }
  0x89   : > { %10013 = sst [smem:[#allocation59_spill]] %s5543_s6  ;;  %s10022_s6 = sld [smem:[#allocation44_spill]]  ;;  %v452_v42 = vstv %s10019_s29 }
  0x8a   : > { %10010 = sst [smem:[#allocation56_spill]] %s5533_s12  ;;  %s10024_s7 = sld [smem:[#allocation45_spill]]  ;;  %v584_v3 = vstv %s5533_s12 }
  0x8b   : > { %10016 = sst [smem:[#allocation60_spill]] %s5549_s24  ;;  %s10025_s8 = sld [smem:[#allocation46_spill]]  ;;  %v510_v43 = vstv %s10020_s30 }
  0x8c   : > { %10018 = sst [smem:[#allocation61_spill]] %s5551_s28  ;;  %s5569_s20 = sld [smem:[#allocation4 + $0x1e]] }
  0x8d   : > { %10021 = sst [smem:[#allocation62_spill]] %s5557_s19  ;;  %s5567_s25 = sld [smem:[#allocation4 + $0x178]] }
  0x8e   : > { %10023 = sst [smem:[#allocation63_spill]] %s5559_s4  ;;  %v450_v41 = vstv %s10017_s27  ;;  %s5575_s18 = sld [smem:[#allocation4 + $0x175]] }
  0x8f   : > { %s5577_s1 = sld [smem:[#allocation4 + $0x23]]  ;;  %s10028_s0 = sld [smem:[#allocation50_spill]]  ;;  %v512_v45 = vstv %s10022_s6 }
  0x90   : > { %v474_v46 = vstv %s10024_s7  ;;  %s5585_s26 = sld [smem:[#allocation4 + $0x17a]]  ;;  %s5587_s16 = sld [smem:[#allocation4 + $0x20]] }
  0x91   : > { %v476_v47 = vstv %s10025_s8  ;;  %s10031_s30 = sld [smem:[#allocation53_spill]]  ;;  %s5593_s29 = sld [smem:[#allocation4 + $0x177]] }
  0x92   : > { %10027 = sst [smem:[#allocation65_spill]] %s5569_s20  ;;  %s5595_s6 = sld [smem:[#allocation4 + $0x29]] }
  0x93   : > { %10026 = sst [smem:[#allocation64_spill]] %s5567_s25  ;;  %s5601_s22 = sld [smem:[#allocation4 + $0x180]] }
  0x94   : > { %s5603_s8 = sld [smem:[#allocation4 + $0x26]]  ;;  %s10033_s7 = sld [smem:[#allocation57_spill]] }
  0x95   : > { %v500_v55 = vstv %s10028_s0  ;;  %s5607_s27 = sld [smem:[#allocation4 + $0x17d]]  ;;  %s5609_s9 = sld [smem:[#allocation4 + $0x2b]] }
  0x96   : > { %10029 = sst [smem:[#allocation66_spill]] %s5585_s26  ;;  %s10034_s13 = sld [smem:[#allocation59_spill]] }
  0x97   : > { %10030 = sst [smem:[#allocation67_spill]] %s5587_s16  ;;  %v522_v62 = vstv %s10031_s30  ;;  %s5615_s0 = sld [smem:[#allocation4 + $0x182]] }
  0x98   : > { %10032 = sst [smem:[#allocation53_spill]] %s5593_s29  ;;  %s9919_s15 = smov 120  }
  0x99   : > { %s5617_s21 = sld [smem:[#allocation4 + $0x28]]  ;;  %s5629_s23 = sld [smem:[#allocation4 + $0x17f]] }
  0x9a   : > { %v546_v4 = vstv %s10033_s7  ;;  %s5631_s2 = sld [smem:[#allocation4 + $0x2d]]  ;;  %s5637_s14 = sld [smem:[#allocation4 + $0x184]] }
  0x9b   : > { %s5639_s3 = sld [smem:[#allocation4 + $0x2a]]  ;;  %s5649_s24 = sld [smem:[#allocation4 + $0x2f]] }
  0x9c   : > { %v606_v7 = vstv %s10034_s13  ;;  %s5647_s13 = sld [smem:[#allocation4 + $0x181]]  ;;  %s5655_s28 = sld [smem:[#allocation4 + $0x186]] }
  0x9d   : > { %s5657_s10 = sld [smem:[#allocation4 + $0x2c]]  ;;  %s10039_s5 = smov 120  }
  0x9e   : > { %s5699_s12 = sld [smem:[#allocation4 + $0x30]]  ;;  %s5768_s11 = sld [smem:[#allocation4 + $0x22]] }
  0x9f   : > { %s5777_s17 = sld [smem:[#allocation4 + $0x17e]]  ;;  %s5876_s29 = sld [smem:[#allocation4 + $0x1af]] }
  0xa0   : > { %s10070_s26 = smov 104   ;;  %s10071_s16 = smov 112  }
  0xa1   : > { %s5922_s30 = sld [smem:[#allocation4 + $0x1ae]]  ;;  %s5949_s7 = sld [smem:[#allocation4 + $0x1b3]] }
  0xa2   : > { %v800_v5 = vstv %s5655_s28  ;;  %s5762_s28 = sld [smem:[#allocation4 + $0x25]] }
  0xa4   : > { %10060 = sst [smem:[#allocation25_spill]] %s5768_s11 }
  0xa7   : > { %10076 = sst [smem:[#allocation27_spill]] %s5922_s30 }
  0xa8   : > { %10058 = sst [smem:[#allocation57_spill]] %s5762_s28 }
  0xa9   : > { %10081 = sst [smem:[#allocation28_spill]] %s5949_s7 }
  0xd5   : > { %v200_v12 = vpop.permute.xlu0 %199 }
  0xd6   : > { %202 = vst.msk [vmem:[#allocation3 + $0x3] sm:$0xff] %vm196_vm0, %v200_v12 }
  0xd9   : > { %v194_v13 = vpop.permute.xlu0 %193 }
  0xda   : > { %197 = vst.msk [vmem:[#allocation2 + $0x3] sm:$0xff] %vm196_vm0, %v194_v13 }
  0xdd   : > { %v5561_v35 = vld [vmem:[#allocation3] sm:$0xff] }
  0xde   : > { %v345_v50 = vmul.f32 %v344_v15, %v5561_v35  ;;  %v321_v52 = vmul.f32 %v320_v17, %v5561_v35  ;;  %v369_v1 = vmul.f32 %v368_v19, %v5561_v35  ;;  %v333_v2 = vmul.f32 %v332_v21, %v5561_v35 }
  0xdf   : > { %v630_v15 = vstv %s5559_s4  ;;  %v594_v17 = vstv %s5569_s20  ;;  %v357_v19 = vmul.f32 %v356_v25, %v5561_v35  ;;  %s5801_s20 = sld [smem:[#allocation4 + $0x159]]  ;;  %s5808_s4 = sld [smem:[#allocation4]] }
  0xe1   : > { %v5579_v44 = vld [vmem:[#allocation2] sm:$0xff] }
  0xe2   : > { %v343_v49 = vmul.f32 %v342_v14, %v5579_v44  ;;  %v319_v51 = vmul.f32 %v318_v16, %v5579_v44  ;;  %v367_v59 = vmul.f32 %v366_v18, %v5579_v44  ;;  %v331_v60 = vmul.f32 %v330_v20, %v5579_v44 }
  0xe3   : > { %v391_v12 = vmul.f32 %v390_v22, %v5579_v44  ;;  %v355_v13 = vmul.f32 %v354_v24, %v5579_v44  ;;  %v572_v14 = vstv %s5557_s19  ;;  %v632_v16 = vstv %s5567_s25  ;;  %s5669_s25 = sld [smem:[#allocation4 + $0x183]]  ;;  %s5677_s19 = sld [smem:[#allocation4 + $0x185]] }
  0xe4   : > { %v346_v57 = vadd.f32 %v345_v50, %v343_v49  ;;  %v322_v58 = vadd.f32 %v321_v52, %v319_v51  ;;  %v370_v10 = vadd.f32 %v369_v1, %v367_v59  ;;  %v334_v11 = vadd.f32 %v333_v2, %v331_v60 }
  0xe5   : > { %v393_v18 = vmul.f32 %v392_v23, %v5561_v35  ;;  %v596_v20 = vstv %s5575_s18  ;;  %v726_v50 = vstv %s5595_s6  ;;  %v358_v25 = vadd.f32 %v357_v19, %v355_v13  ;;  %s5775_s6 = sld [smem:[#allocation4 + $0x27]]  ;;  %s10091_s18 = sld [smem:[#allocation53_spill]] }
  0xe6   : > { %348 = vrot.lane.b32.xlu0 %v346_v57, %s9919_s15  ;;  %324 = vrot.lane.b32.xlu1 %v322_v58, %s9919_s15  ;;  %s5675_s15 = sld [smem:[#allocation4 + $0x2e]]  ;;  %v415_v51 = vmul.f32 %v414_v26, %v5579_v44  ;;  %v379_v52 = vmul.f32 %v378_v28, %v5579_v44  ;;  %v728_v57 = vstv %s5601_s22  ;;  %v690_v58 = vstv %s5603_s8  ;;  %s5784_s22 = sld [smem:[#allocation4 + $0x17b]] }
  0xe7   : > { %v394_v23 = vadd.f32 %v393_v18, %v391_v12  ;;  %v692_v59 = vstv %s5607_s27  ;;  %v750_v60 = vstv %s5609_s9  ;;  %v417_v26 = vmul.f32 %v416_v27, %v5561_v35  ;;  %s5799_s8 = sld [smem:[#allocation4 + $0x2]]  ;;  %s5830_s27 = sld [smem:[#allocation4 + $0x1]] }
  0xe8   : > { %v381_v28 = vmul.f32 %v380_v29, %v5561_v35  ;;  %v752_v1 = vstv %s5615_s0  ;;  %v714_v2 = vstv %s5617_s21  ;;  %v776_v12 = vstv %s5637_s14  ;;  %s9933_s21 = smov 112   ;;  %s5810_s0 = sld [smem:[#allocation4 + $0x157]] }
  0xe9   : > { %v738_v13 = vstv %s5639_s3  ;;  %v418_v18 = vadd.f32 %v417_v26, %v415_v51  ;;  %v439_v27 = vmul.f32 %v438_v30, %v5579_v44  ;;  %v403_v29 = vmul.f32 %v402_v32, %v5579_v44  ;;  %s5818_s3 = sld [smem:[#allocation4 + $0x4]]  ;;  %s9935_s14 = smov 104  }
  0xea   : > { %372 = vrot.lane.b32.xlu0 %v370_v10, %s10039_s5  ;;  %336 = vrot.lane.b32.xlu1 %v334_v11, %s10039_s5  ;;  %v716_v10 = vstv %s5629_s23  ;;  %v774_v11 = vstv %s5631_s2  ;;  %v382_v19 = vadd.f32 %v381_v28, %v379_v52  ;;  %v441_v30 = vmul.f32 %v440_v31, %v5561_v35  ;;  %s5820_s23 = sld [smem:[#allocation4 + $0x15b]]  ;;  %s5845_s9 = sld [smem:[#allocation4 + $0x6]] }
  0xeb   : > { %v762_v49 = vstv %s5657_s10  ;;  %v405_v32 = vmul.f32 %v404_v33, %v5561_v35  ;;  %v463_v51 = vmul.f32 %v462_v34, %v5579_v44  ;;  %v764_v52 = vstv %s5669_s25  ;;  %s5764_s25 = sld [smem:[#allocation4 + $0x17c]]  ;;  %10062 = sst [smem:[#allocation26_spill]] %s5775_s6 }
  0xec   : > { %v465_v26 = vmul.f32 %v464_v36, %v5561_v35  ;;  %v427_v28 = vmul.f32 %v426_v37, %v5579_v44  ;;  %v442_v31 = vadd.f32 %v441_v30, %v439_v27  ;;  %v429_v33 = vmul.f32 %v428_v38, %v5561_v35  ;;  %s5832_s10 = sld [smem:[#allocation4 + $0x158]]  ;;  %s5852_s2 = sld [smem:[#allocation4 + $0x3]] }
  0xed   : > { %v406_v22 = vadd.f32 %v405_v32, %v403_v29  ;;  %v487_v34 = vmul.f32 %v486_v39, %v5579_v44  ;;  %v489_v24 = vmul.f32 %v488_v40, %v5561_v35  ;;  %v451_v36 = vmul.f32 %v450_v41, %v5579_v44 }
  0xee   : > { %396 = vrot.lane.b32.xlu0 %v394_v23, %s10039_s5  ;;  %360 = vrot.lane.b32.xlu1 %v358_v25, %s10039_s5  ;;  %v740_v23 = vstv %s5647_s13  ;;  %v798_v25 = vstv %s5649_s24  ;;  %s5727_s13 = sld [smem:[#allocation4 + $0x187]]  ;;  %v453_v37 = vmul.f32 %v452_v42, %v5561_v35  ;;  %v511_v21 = vmul.f32 %v510_v43, %v5579_v44  ;;  %s9945_s24 = smov 96  }
  0xef   : > { %v466_v38 = vadd.f32 %v465_v26, %v463_v51  ;;  %v5760_v39 = vmul.f32 %v474_v46, %v5579_v44  ;;  %v727_v40 = vmul.f32 %v726_v50, %v5579_v44  ;;  %v810_v41 = vstv %s5699_s12  ;;  %s5782_s12 = sld [smem:[#allocation4 + $0x24]] }
  0xf0   : > { %v430_v42 = vadd.f32 %v429_v33, %v427_v28  ;;  %v729_v43 = vmul.f32 %v728_v57, %v5561_v35  ;;  %v693_v27 = vmul.f32 %v692_v59, %v5561_v35  ;;  %v490_v46 = vadd.f32 %v489_v24, %v487_v34 }
  0xf1   : > { %10059 = sst [smem:[#allocation23_spill]] %s5764_s25  ;;  %v751_v50 = vmul.f32 %v750_v60, %v5579_v44  ;;  %v753_v29 = vmul.f32 %v752_v1, %v5561_v35  ;;  %v715_v30 = vmul.f32 %v714_v2, %v5579_v44  ;;  %v717_v24 = vmul.f32 %v716_v10, %v5561_v35 }
  0xf2   : > { %420 = vrot.lane.b32.xlu0 %v418_v18, %s9933_s21  ;;  %384 = vrot.lane.b32.xlu1 %v382_v19, %s10039_s5  ;;  %v786_v18 = vstv %s5675_s15  ;;  %v788_v19 = vstv %s5677_s19  ;;  %s5770_s15 = sld [smem:[#allocation4 + $0x179]]  ;;  %v5786_v57 = vadd.f32 %v729_v43, %v727_v40  ;;  %v775_v59 = vmul.f32 %v774_v11, %v5579_v44  ;;  %s5847_s5 = sld [smem:[#allocation4 + $0x15d]] }
  0xf3   : > { %v5794_v60 = vadd.f32 %v753_v29, %v751_v50  ;;  %v777_v1 = vmul.f32 %v776_v12, %v5561_v35  ;;  %v739_v2 = vmul.f32 %v738_v13, %v5579_v44  ;;  %v5803_v10 = vadd.f32 %v717_v24, %v715_v30  ;;  %s5902_s19 = sld [smem:[#allocation4 + $0x5a]] }
  0xf4   : > { %v812_v32 = vstv %s5727_s13  ;;  %v741_v11 = vmul.f32 %v740_v23, %v5561_v35  ;;  %v799_v51 = vmul.f32 %v798_v25, %v5579_v44  ;;  %v801_v26 = vmul.f32 %v800_v5, %v5561_v35  ;;  %s5874_s13 = sld [smem:[#allocation4 + $0x58]] }
  0xf5   : > { %v454_v12 = vadd.f32 %v453_v37, %v451_v36  ;;  %v5812_v13 = vadd.f32 %v777_v1, %v775_v59  ;;  %v763_v28 = vmul.f32 %v762_v49, %v5579_v44  ;;  %v513_v5 = vmul.f32 %v512_v45, %v5561_v35 }
  0xf6   : > { %444 = vrot.lane.b32.xlu0 %v442_v31, %s9933_s21  ;;  %408 = vrot.lane.b32.xlu1 %v406_v22, %s9933_s21  ;;  %v691_v22 = vmul.f32 %v690_v58, %v5579_v44  ;;  %v765_v31 = vmul.f32 %v764_v52, %v5561_v35  ;;  %v5825_v23 = vadd.f32 %v741_v11, %v739_v2  ;;  %v678_v49 = vstv %s5762_s28  ;;  %s5867_s28 = sld [smem:[#allocation4 + $0x15c]] }
  0xf7   : > { %v5827_v25 = vadd.f32 %v801_v26, %v799_v51  ;;  %v787_v33 = vmul.f32 %v786_v18, %v5579_v44  ;;  %v477_v45 = vmul.f32 %v476_v47, %v5561_v35  ;;  %v789_v18 = vmul.f32 %v788_v19, %v5561_v35 }
  0xf8   : > { %10061 = sst [smem:[#allocation24_spill]] %s5770_s15  ;;  %v5788_v58 = vadd.f32 %v693_v27, %v691_v22  ;;  %v5840_v52 = vadd.f32 %v765_v31, %v763_v28  ;;  %v514_v34 = vadd.f32 %v513_v5, %v511_v21  ;;  %v680_v36 = vstv %s5764_s25  ;;  %s5865_s25 = sld [smem:[#allocation4 + $0x5]] }
  0xf9   : > { %v811_v37 = vmul.f32 %v810_v41, %v5579_v44  ;;  %v478_v47 = vadd.f32 %v477_v45, %v5760_v39  ;;  %v535_v19 = vmul.f32 %v534_v48, %v5579_v44  ;;  %v499_v21 = vmul.f32 %v498_v54, %v5579_v44 }
  0xfa   : > { %468 = vrot.lane.b32.xlu0 %v466_v38, %s9933_s21  ;;  %432 = vrot.lane.b32.xlu1 %v430_v42, %s9933_s21  ;;  %v813_v38 = vmul.f32 %v812_v32, %v5561_v35  ;;  %v5863_v40 = vadd.f32 %v789_v18, %v787_v33  ;;  %v642_v41 = vstv %s5768_s11  ;;  %v644_v42 = vstv %s5770_s15  ;;  %s5888_s15 = sld [smem:[#allocation4 + $0x55]]  ;;  %s5981_s11 = sld [smem:[#allocation4 + $0x5e]] }
  0xfb   : > { %v702_v39 = vstv %s5775_s6  ;;  %v537_v48 = vmul.f32 %v536_v53, %v5561_v35  ;;  %v501_v54 = vmul.f32 %v500_v55, %v5561_v35  ;;  %v704_v22 = vstv %s5777_s17  ;;  %s5890_s6 = sld [smem:[#allocation4 + $0x1ac]]  ;;  %s6291_s17 = sld [smem:[#allocation4 + $0x40]] }
  0xfc   : > { %v5872_v43 = vadd.f32 %v813_v38, %v811_v37  ;;  %v666_v27 = vstv %s5782_s12  ;;  %v278_v50 = vstv %s5799_s8  ;;  %v280_v29 = vstv %s5801_s20  ;;  %s5908_s8 = sld [smem:[#allocation4 + $0x1b1]]  ;;  %s5910_s20 = sld [smem:[#allocation4 + $0x57]] }
  0xfd   : > { %v262_v30 = vstv %s5808_s4  ;;  %v538_v53 = vadd.f32 %v537_v48, %v535_v19  ;;  %v502_v24 = vadd.f32 %v501_v54, %v499_v21  ;;  %v559_v55 = vmul.f32 %v558_v56, %v5579_v44  ;;  %s6021_s4 = sld [smem:[#allocation4 + $0x5d]]  ;;  %s6280_s12 = sld [smem:[#allocation4 + $0x192]] }
  0xfe   : > { %492 = vrot.lane.b32.xlu0 %v490_v46, %s9935_s14  ;;  %456 = vrot.lane.b32.xlu1 %v454_v12, %s9933_s21  ;;  %s5854_s14 = sld [smem:[#allocation4 + $0x15a]]  ;;  %v668_v46 = vstv %s5784_s22  ;;  %v523_v59 = vmul.f32 %v522_v62, %v5579_v44  ;;  %v264_v1 = vstv %s5810_s0  ;;  %v561_v56 = vmul.f32 %v560_v61, %v5561_v35  ;;  %s10087_s21 = smov 96  }
  0xff   : > { %v294_v2 = vstv %s5818_s3  ;;  %v296_v32 = vstv %s5820_s23  ;;  %v270_v11 = vstv %s5830_s27  ;;  %v525_v62 = vmul.f32 %v524_v63, %v5561_v35  ;;  %s5940_s3 = sld [smem:[#allocation4 + $0x5c]]  ;;  %s5956_s27 = sld [smem:[#allocation4 + $0x59]] }
 0x100   : > { %v272_v51 = vstv %s5832_s10  ;;  %v310_v26 = vstv %s5845_s9  ;;  %v583_v12 = vmul.f32 %v582_v0, %v5579_v44  ;;  %v312_v28 = vstv %s5847_s5  ;;  %s5968_s10 = sld [smem:[#allocation4 + $0x1b0]]  ;;  %s5989_s5 = sld [smem:[#allocation4 + $0x5b]] }
 0x101   : > { %v286_v31 = vstv %s5852_s2  ;;  %v562_v33 = vadd.f32 %v561_v56, %v559_v55  ;;  %v526_v61 = vadd.f32 %v525_v62, %v523_v59  ;;  %v547_v45 = vmul.f32 %v546_v4, %v5579_v44  ;;  %s5991_s23 = sld [smem:[#allocation4 + $0x1b2]]  ;;  %s6023_s0 = sld [smem:[#allocation4 + $0x1b4]] }
 0x102   : > { %516 = vrot.lane.b32.xlu0 %v514_v34, %s10070_s26  ;;  %480 = vrot.lane.b32.xlu1 %v478_v47, %s10071_s16  ;;  %v302_v63 = vstv %s5865_s25  ;;  %v585_v18 = vmul.f32 %v584_v3, %v5561_v35  ;;  %v304_v34 = vstv %s5867_s28  ;;  %v549_v0 = vmul.f32 %v548_v6, %v5561_v35  ;;  %s5983_s16 = sld [smem:[#allocation4 + $0x1b5]]  ;;  %s6035_s9 = sld [smem:[#allocation4 + $0x5f]] }
 0x103   : > { %v1264_v37 = vstv %s5874_s13  ;;  %v1266_v38 = vstv %s5876_s29  ;;  %v1228_v4 = vstv %s5888_s15  ;;  %v1230_v47 = vstv %s5890_s6  ;;  %s6061_s28 = sld [smem:[#allocation4 + $0x1b6]]  ;;  %s6154_s29 = sld [smem:[#allocation4 + $0x32]] }
 0x104   : > { %v288_v5 = vstv %s5854_s14  ;;  %v586_v3 = vadd.f32 %v585_v18, %v583_v12  ;;  %v607_v19 = vmul.f32 %v606_v7, %v5579_v44  ;;  %v281_v21 = vmul.f32 %v280_v29, %v5561_v35  ;;  %s6156_s15 = sld [smem:[#allocation4 + $0x189]]  ;;  %s6170_s6 = sld [smem:[#allocation4 + $0x34]] }
 0x105   : > { %10080 = sst [smem:[#allocation29_spill]] %s5940_s3  ;;  %v279_v48 = vmul.f32 %v278_v50, %v5579_v44  ;;  %v550_v54 = vadd.f32 %v549_v0, %v547_v45  ;;  %v571_v6 = vmul.f32 %v570_v9, %v5579_v44  ;;  %v1288_v7 = vstv %s5902_s19  ;;  %s6172_s22 = sld [smem:[#allocation4 + $0x18b]] }
 0x106   : > { %540 = vrot.lane.b32.xlu0 %v538_v53, %s10070_s26  ;;  %504 = vrot.lane.b32.xlu1 %v502_v24, %s10070_s26  ;;  %v265_v53 = vmul.f32 %v264_v1, %v5561_v35  ;;  %v263_v24 = vmul.f32 %v262_v30, %v5579_v44  ;;  %v1290_v59 = vstv %s5908_s8  ;;  %v1252_v56 = vstv %s5910_s20  ;;  %s6178_s13 = sld [smem:[#allocation4 + $0x31]]  ;;  %s6180_s19 = sld [smem:[#allocation4 + $0x188]] }
 0x107   : > { %v5963_v55 = vadd.f32 %v281_v21, %v279_v48  ;;  %v609_v9 = vmul.f32 %v608_v8, %v5561_v35  ;;  %v573_v50 = vmul.f32 %v572_v14, %v5561_v35  ;;  %v1254_v30 = vstv %s5922_s30  ;;  %s10088_s30 = sld [smem:[#allocation67_spill]]  ;;  %s6182_s8 = sld [smem:[#allocation4 + $0x38]] }
 0x108   : > { %v5978_v29 = vadd.f32 %v265_v53, %v263_v24  ;;  %v297_v1 = vmul.f32 %v296_v32, %v5561_v35  ;;  %v295_v62 = vmul.f32 %v294_v2, %v5579_v44  ;;  %v273_v12 = vmul.f32 %v272_v51, %v5561_v35  ;;  %s6184_s20 = sld [smem:[#allocation4 + $0x18f]]  ;;  %s6237_s14 = sld [smem:[#allocation4 + $0x39]] }
 0x109   : > { %v271_v8 = vmul.f32 %v270_v11, %v5579_v44  ;;  %v610_v14 = vadd.f32 %v609_v9, %v607_v19  ;;  %v595_v2 = vmul.f32 %v594_v17, %v5579_v44  ;;  %v633_v32 = vmul.f32 %v632_v16, %v5561_v35  ;;  %s6243_s2 = sld [smem:[#allocation4 + $0x193]]  ;;  %s6259_s25 = sld [smem:[#allocation4 + $0x3e]] }
 0x10a   : > { %564 = vrot.lane.b32.xlu0 %v562_v33, %s10070_s26  ;;  %528 = vrot.lane.b32.xlu1 %v526_v61, %s10070_s26  ;;  %v574_v33 = vadd.f32 %v573_v50, %v571_v6  ;;  %v631_v61 = vmul.f32 %v630_v15, %v5579_v44  ;;  %v6004_v11 = vadd.f32 %v297_v1, %v295_v62  ;;  %v1312_v45 = vstv %s5940_s3  ;;  %s10090_s3 = sld [smem:[#allocation66_spill]] }
 0x10b   : > { %v6006_v51 = vadd.f32 %v273_v12, %v271_v8  ;;  %v597_v15 = vmul.f32 %v596_v20, %v5561_v35  ;;  %v313_v17 = vmul.f32 %v312_v28, %v5561_v35  ;;  %v311_v16 = vmul.f32 %v310_v26, %v5579_v44 }
 0x10c   : > { %v1314_v18 = vstv %s5949_s7  ;;  %v10089_v0 = vstv %s5577_s1  ;;  %v289_v20 = vmul.f32 %v288_v5, %v5561_v35  ;;  %v287_v28 = vmul.f32 %v286_v31, %v5579_v44  ;;  %s6113_s7 = sld [smem:[#allocation4 + $0x1b8]]  ;;  %s6235_s1 = sld [smem:[#allocation4 + $0x3c]] }
 0x10d   : > { %v1276_v26 = vstv %s5956_s27  ;;  %v634_v19 = vadd.f32 %v633_v32, %v631_v61  ;;  %v598_v21 = vadd.f32 %v597_v15, %v595_v2  ;;  %v10093_v48 = vstv %s10088_s30  ;;  %s5261_s30 = smov 88   ;;  %s6196_s27 = sld [smem:[#allocation4 + $0x36]] }
 0x10e   : > { %588 = vrot.lane.b32.xlu0 %v586_v3, %s9945_s24  ;;  %552 = vrot.lane.b32.xlu1 %v550_v54, %s10070_s26  ;;  %s5999_s24 = sld [smem:[#allocation4 + $0x60]]  ;;  %s6009_s26 = sld [smem:[#allocation4 + $0x1b7]]  ;;  %v655_v3 = vmul.f32 %v10089_v0, %v5579_v44  ;;  %v619_v54 = vmul.f32 %v10093_v48, %v5579_v44  ;;  %v6040_v6 = vadd.f32 %v313_v17, %v311_v16  ;;  %v1278_v24 = vstv %s5968_s10  ;;  %v6074_v17 = vld [vmem:[#allocation3 + $0x1] sm:$0xff]  ;;  %v6076_v16 = vld [vmem:[#allocation2 + $0x1] sm:$0xff] }
 0x10f   : > { %v6042_v53 = vadd.f32 %v289_v20, %v287_v28  ;;  %v305_v5 = vmul.f32 %v304_v34, %v5561_v35  ;;  %v303_v31 = vmul.f32 %v302_v63, %v5579_v44  ;;  %v10097_v1 = vstv %s10091_s18  ;;  %s6198_s10 = sld [smem:[#allocation4 + $0x18d]]  ;;  %s6225_s18 = sld [smem:[#allocation4 + $0x37]] }
 0x110   : > { %v10095_v9 = vstv %s10090_s3  ;;  %v621_v62 = vmul.f32 %v10097_v1, %v5561_v35  ;;  %v1336_v34 = vstv %s5981_s11  ;;  %v1338_v12 = vstv %s5983_s16  ;;  %s6095_s3 = sld [smem:[#allocation4 + $0x61]]  ;;  %s6205_s11 = sld [smem:[#allocation4 + $0x3a]] }
 0x111   : > { %v657_v50 = vmul.f32 %v10095_v9, %v5561_v35  ;;  %v679_v63 = vmul.f32 %v678_v49, %v5579_v44  ;;  %v6066_v8 = vadd.f32 %v305_v5, %v303_v31  ;;  %v643_v32 = vmul.f32 %v642_v41, %v5579_v44  ;;  %s6207_s16 = sld [smem:[#allocation4 + $0x18a]] }
 0x112   : > { %612 = vrot.lane.b32.xlu0 %v610_v14, %s10087_s21  ;;  %576 = vrot.lane.b32.xlu1 %v574_v33, %s10087_s21  ;;  %v1300_v14 = vstv %s5989_s5  ;;  %v1302_v33 = vstv %s5991_s23  ;;  %v622_v2 = vadd.f32 %v621_v62, %v619_v54  ;;  %v681_v49 = vmul.f32 %v680_v36, %v5561_v35  ;;  %s6213_s5 = sld [smem:[#allocation4 + $0x35]]  ;;  %s5262_s23 = smov 80  }
 0x113   : > { %v658_v61 = vadd.f32 %v657_v50, %v655_v3  ;;  %v703_v0 = vmul.f32 %v702_v39, %v5579_v44  ;;  %v667_v3 = vmul.f32 %v666_v27, %v5579_v44  ;;  %v645_v20 = vmul.f32 %v644_v42, %v5561_v35 }
 0x114   : > { %v1360_v15 = vstv %s5999_s24  ;;  %v1362_v41 = vstv %s6009_s26  ;;  %v1324_v36 = vstv %s6021_s4  ;;  %v1326_v28 = vstv %s6023_s0  ;;  %s6203_s24 = sld [smem:[#allocation4 + $0x33]]  ;;  %s6219_s4 = sld [smem:[#allocation4 + $0x191]] }
 0x115   : > { %v682_v39 = vadd.f32 %v681_v49, %v679_v63  ;;  %v705_v44 = vmul.f32 %v704_v22, %v5561_v35  ;;  %v669_v27 = vmul.f32 %v668_v46, %v5561_v35  ;;  %v1265_v42 = vmul.f32 %v1264_v37, %v6076_v16  ;;  %s6221_s0 = sld [smem:[#allocation4 + $0x18c]]  ;;  %s6278_s26 = sld [smem:[#allocation4 + $0x195]] }
 0x116   : > { %636 = vrot.lane.b32.xlu0 %v634_v19, %s10087_s21  ;;  %600 = vrot.lane.b32.xlu1 %v598_v21, %s10087_s21  ;;  %v1348_v19 = vstv %s6035_s9  ;;  %v646_v21 = vadd.f32 %v645_v20, %v643_v32  ;;  %v1267_v48 = vmul.f32 %v1266_v38, %v6074_v17  ;;  %v1229_v54 = vmul.f32 %v1228_v4, %v6076_v16  ;;  %s6227_s9 = sld [smem:[#allocation4 + $0x18e]] }
 0x117   : > { %v706_v22 = vadd.f32 %v705_v44, %v703_v0  ;;  %v670_v5 = vadd.f32 %v669_v27, %v667_v3  ;;  %v1231_v35 = vmul.f32 %v1230_v47, %v6074_v17  ;;  %v1289_v46 = vmul.f32 %v1288_v7, %v6076_v16 }
 0x118   : > { %v6123_v37 = vadd.f32 %v1267_v48, %v1265_v42  ;;  %v1291_v38 = vmul.f32 %v1290_v59, %v6074_v17  ;;  %v1253_v4 = vmul.f32 %v1252_v56, %v6076_v16  ;;  %v1350_v31 = vstv %s6061_s28  ;;  %s6250_s28 = sld [smem:[#allocation4 + $0x190]] }
 0x119   : > { %v6132_v9 = vadd.f32 %v1231_v35, %v1229_v54  ;;  %v1255_v47 = vmul.f32 %v1254_v30, %v6074_v17  ;;  %v1313_v7 = vmul.f32 %v1312_v45, %v6076_v16  ;;  %v1315_v50 = vmul.f32 %v1314_v18, %v6074_v17 }
 0x11a   : > { %660 = vrot.lane.b32.xlu0 %v658_v61, %s5261_s30  ;;  %624 = vrot.lane.b32.xlu1 %v622_v2, %s10087_s21  ;;  %v6143_v1 = vadd.f32 %v1291_v38, %v1289_v46  ;;  %v1277_v59 = vmul.f32 %v1276_v26, %v6076_v16  ;;  %v1279_v62 = vmul.f32 %v1278_v24, %v6074_v17  ;;  %v848_v44 = vstv %s6170_s6  ;;  %s6306_s6 = sld [smem:[#allocation4 + $0x194]] }
 0x11b   : > { %v1337_v56 = vmul.f32 %v1336_v34, %v6076_v16  ;;  %v6148_v63 = vadd.f32 %v1255_v47, %v1253_v4  ;;  %v6150_v61 = vadd.f32 %v1315_v50, %v1313_v7  ;;  %v1339_v30 = vmul.f32 %v1338_v12, %v6074_v17 }
 0x11c   : > { %v1301_v45 = vmul.f32 %v1300_v14, %v6076_v16  ;;  %v6160_v18 = vadd.f32 %v1279_v62, %v1277_v59  ;;  %v1303_v26 = vmul.f32 %v1302_v33, %v6074_v17  ;;  %v1361_v24 = vmul.f32 %v1360_v15, %v6076_v16 }
 0x11d   : > { %v1372_v34 = vstv %s6095_s3  ;;  %v6165_v2 = vadd.f32 %v1339_v30, %v1337_v56  ;;  %v1363_v12 = vmul.f32 %v1362_v41, %v6074_v17  ;;  %v1325_v14 = vmul.f32 %v1324_v36, %v6076_v16  ;;  %s6261_s3 = sld [smem:[#allocation4 + $0x3b]] }
 0x11e   : > { %684 = vrot.lane.b32.xlu0 %v682_v39, %s5261_s30  ;;  %648 = vrot.lane.b32.xlu1 %v646_v21, %s10087_s21  ;;  %v1327_v32 = vmul.f32 %v1326_v28, %v6074_v17  ;;  %v6174_v49 = vadd.f32 %v1303_v26, %v1301_v45  ;;  %v1349_v0 = vmul.f32 %v1348_v19, %v6076_v16  ;;  %v1374_v33 = vstv %s6113_s7  ;;  %s6293_s7 = sld [smem:[#allocation4 + $0x3d]] }
 0x11f   : > { %v6186_v15 = vadd.f32 %v1363_v12, %v1361_v24  ;;  %v1351_v41 = vmul.f32 %v1350_v31, %v6074_v17  ;;  %v1373_v20 = vmul.f32 %v1372_v34, %v6076_v16  ;;  %v1375_v28 = vmul.f32 %v1374_v33, %v6074_v17 }
 0x120   : > { %v6188_v3 = vadd.f32 %v1327_v32, %v1325_v14  ;;  %v834_v39 = vstv %s6156_s15  ;;  %v850_v27 = vstv %s6172_s22  ;;  %v826_v42 = vstv %s6180_s19  ;;  %s6304_s15 = sld [smem:[#allocation4 + $0x197]]  ;;  %s6316_s22 = sld [smem:[#allocation4 + $0x42]] }
 0x121   : > { %v6200_v36 = vadd.f32 %v1351_v41, %v1349_v0  ;;  %v835_v21 = vmul.f32 %v834_v39, %v6074_v17  ;;  %v882_v48 = vstv %s6184_s20  ;;  %v866_v35 = vstv %s6198_s10  ;;  %s6329_s19 = sld [smem:[#allocation4 + $0x199]]  ;;  %s6337_s20 = sld [smem:[#allocation4 + $0x44]] }
 0x122   : > { %708 = vrot.lane.b32.xlu0 %v706_v22, %s5261_s30  ;;  %672 = vrot.lane.b32.xlu1 %v670_v5, %s5261_s30  ;;  %v849_v22 = vmul.f32 %v848_v44, %v6076_v16  ;;  %v864_v5 = vstv %s6196_s27  ;;  %v851_v46 = vmul.f32 %v850_v27, %v6074_v17  ;;  %v840_v4 = vstv %s6203_s24  ;;  %s6339_s27 = sld [smem:[#allocation4 + $0x41]]  ;;  %s6347_s10 = sld [smem:[#allocation4 + $0x19b]] }
 0x123   : > { %v904_v31 = vstv %s6205_s11  ;;  %v842_v47 = vstv %s6207_s16  ;;  %v865_v59 = vmul.f32 %v864_v5, %v6076_v16  ;;  %v856_v62 = vstv %s6213_s5  ;;  %s6349_s24 = sld [smem:[#allocation4 + $0x198]]  ;;  %s6355_s11 = sld [smem:[#allocation4 + $0x46]] }
 0x124   : > { %v6263_v7 = vadd.f32 %v851_v46, %v849_v22  ;;  %v883_v56 = vmul.f32 %v882_v48, %v6074_v17  ;;  %v867_v30 = vmul.f32 %v866_v35, %v6074_v17  ;;  %v841_v45 = vmul.f32 %v840_v4, %v6076_v16  ;;  %s6357_s16 = sld [smem:[#allocation4 + $0x43]]  ;;  %s6365_s5 = sld [smem:[#allocation4 + $0x19d]] }
 0x125   : > { %v858_v26 = vstv %s6221_s0  ;;  %v906_v24 = vstv %s6219_s4  ;;  %v843_v34 = vmul.f32 %v842_v47, %v6074_v17  ;;  %v874_v12 = vstv %s6227_s9  ;;  %s6367_s4 = sld [smem:[#allocation4 + $0x19a]]  ;;  %s6373_s0 = sld [smem:[#allocation4 + $0x48]] }
 0x126   : > { %732 = vrot.lane.b32.xlu0 %v5786_v57, %s5261_s30  ;;  %696 = vrot.lane.b32.xlu1 %v5788_v58, %s5261_s30  ;;  %v6209_v57 = vadd.f32 %v1375_v28, %v1373_v20  ;;  %v832_v58 = vstv %s6154_s29  ;;  %10103 = vst [vmem:[#allocation68_spill] sm:$0xff] %v6263_v7  ;;  %v905_v14 = vmul.f32 %v904_v31, %v6076_v16  ;;  %v928_v33 = vstv %s6235_s1  ;;  %s10107_s29 = smov 120   ;;  %s10110_s9 = smov 112  }
 0x127   : > { %v833_v19 = vmul.f32 %v832_v58, %v6076_v16  ;;  %v6286_v32 = vadd.f32 %v867_v30, %v865_v59  ;;  %v857_v0 = vmul.f32 %v856_v62, %v6076_v16  ;;  %v892_v41 = vstv %s6237_s14  ;;  %s6383_s1 = sld [smem:[#allocation4 + $0x19f]]  ;;  %s6385_s14 = sld [smem:[#allocation4 + $0x19c]] }
 0x128   : > { %v6295_v20 = vadd.f32 %v843_v34, %v841_v45  ;;  %v859_v28 = vmul.f32 %v858_v26, %v6074_v17  ;;  %v907_v58 = vmul.f32 %v906_v24, %v6074_v17  ;;  %v930_v39 = vstv %s6243_s2  ;;  %s6391_s2 = sld [smem:[#allocation4 + $0x4a]] }
 0x129   : > { %v6245_v54 = vadd.f32 %v835_v21, %v833_v19  ;;  %10105 = vst [vmem:[#allocation70_spill] sm:$0xff] %v6286_v32  ;;  %v894_v44 = vstv %s6250_s28  ;;  %v875_v21 = vmul.f32 %v874_v12, %v6074_v17  ;;  %v916_v48 = vstv %s6261_s3  ;;  %s6393_s28 = sld [smem:[#allocation4 + $0x47]]  ;;  %s6403_s3 = sld [smem:[#allocation4 + $0x19e]] }
 0x12a   : > { %756 = vrot.lane.b32.xlu0 %v5794_v60, %s5262_s23  ;;  %720 = vrot.lane.b32.xlu1 %v5803_v10, %s5261_s30  ;;  %v824_v60 = vstv %s6178_s13  ;;  %v880_v10 = vstv %s6182_s8  ;;  %10106 = vst [vmem:[#allocation71_spill] sm:$0xff] %v6295_v20  ;;  %v6308_v27 = vadd.f32 %v859_v28, %v857_v0  ;;  %s6318_s13 = sld [smem:[#allocation4 + $0x3f]]  ;;  %v931_v5 = vmul.f32 %v930_v39, %v6074_v17  ;;  %s6331_s8 = sld [smem:[#allocation4 + $0x196]] }
 0x12b   : > { %v825_v38 = vmul.f32 %v824_v60, %v6076_v16  ;;  %v908_v60 = vadd.f32 %v907_v58, %v905_v14  ;;  %v895_v35 = vmul.f32 %v894_v44, %v6074_v17  ;;  %v954_v46 = vstv %s6278_s26  ;;  %s6409_s26 = sld [smem:[#allocation4 + $0x4c]] }
 0x12c   : > { %10108 = vst [vmem:[#allocation72_spill] sm:$0xff] %v6308_v27  ;;  %v917_v31 = vmul.f32 %v916_v48, %v6076_v16  ;;  %v976_v47 = vstv %s6291_s17  ;;  %v955_v59 = vmul.f32 %v954_v46, %v6074_v17  ;;  %v942_v30 = vstv %s6306_s6  ;;  %s6419_s17 = sld [smem:[#allocation4 + $0x1a3]] }
 0x12d   : > { %v977_v24 = vmul.f32 %v976_v47, %v6076_v16  ;;  %v943_v14 = vmul.f32 %v942_v30, %v6074_v17  ;;  %v1002_v0 = vstv %s6329_s19  ;;  %v1024_v44 = vstv %s6337_s20  ;;  %s6429_s6 = sld [smem:[#allocation4 + $0x4b]]  ;;  %s6439_s19 = sld [smem:[#allocation4 + $0x1a2]] }
 0x12e   : > { %780 = vrot.lane.b32.xlu0 %v5812_v13, %s5262_s23  ;;  %744 = vrot.lane.b32.xlu1 %v5825_v23, %s5262_s23  ;;  %v827_v13 = vmul.f32 %v826_v42, %v6074_v17  ;;  %v881_v23 = vmul.f32 %v880_v10, %v6076_v16  ;;  %v929_v42 = vmul.f32 %v928_v33, %v6076_v16  ;;  %v952_v10 = vstv %s6259_s25  ;;  %s6401_s25 = sld [smem:[#allocation4 + $0x1a1]]  ;;  %s6447_s20 = sld [smem:[#allocation4 + $0x4d]] }
 0x12f   : > { %v1048_v46 = vstv %s6355_s11  ;;  %s6469_s11 = sld [smem:[#allocation4 + $0x4f]] }
 0x130   : > { %v6265_v50 = vadd.f32 %v827_v13, %v825_v38  ;;  %v918_v38 = vstv %s6280_s12  ;;  %v932_v13 = vadd.f32 %v931_v5, %v929_v42  ;;  %v964_v12 = vstv %s6318_s13  ;;  %s6411_s12 = sld [smem:[#allocation4 + $0x49]]  ;;  %s6437_s13 = sld [smem:[#allocation4 + $0x1a5]] }
 0x131   : > { %v919_v62 = vmul.f32 %v918_v38, %v6074_v17  ;;  %v966_v33 = vstv %s6331_s8  ;;  %v965_v39 = vmul.f32 %v964_v12, %v6076_v16  ;;  %v1026_v42 = vstv %s6347_s10  ;;  %s6445_s8 = sld [smem:[#allocation4 + $0x50]]  ;;  %s6457_s10 = sld [smem:[#allocation4 + $0x1a4]] }
 0x132   : > { %10104 = vst [vmem:[#allocation69_spill] sm:$0xff] %v6265_v50  ;;  %804 = vrot.lane.b32.xlu0 %v5827_v25, %s5262_s23  ;;  %768 = vrot.lane.b32.xlu1 %v5840_v52, %s5262_s23  ;;  %v872_v25 = vstv %s6225_s18  ;;  %v884_v52 = vadd.f32 %v883_v56, %v881_v23  ;;  %v953_v23 = vmul.f32 %v952_v10, %v6076_v16  ;;  %v978_v56 = vstv %s6304_s15  ;;  %s6375_s18 = sld [smem:[#allocation4 + $0x45]]  ;;  %s6427_s15 = sld [smem:[#allocation4 + $0x4e]] }
 0x133   : > { %v873_v19 = vmul.f32 %v872_v25, %v6076_v16  ;;  %v920_v26 = vadd.f32 %v919_v62, %v917_v31  ;;  %v1000_v25 = vstv %s6316_s22  ;;  %v1025_v5 = vmul.f32 %v1024_v44, %v6076_v16  ;;  %s10111_s22 = smov 104  }
 0x134   : > { %v956_v45 = vadd.f32 %v955_v59, %v953_v23  ;;  %v1001_v58 = vmul.f32 %v1000_v25, %v6076_v16  ;;  %v1012_v38 = vstv %s6357_s16  ;;  %v1050_v23 = vstv %s6365_s5  ;;  %s6477_s16 = sld [smem:[#allocation4 + $0x1a9]]  ;;  %s6479_s5 = sld [smem:[#allocation4 + $0x1a6]] }
 0x135   : > { %v6320_v22 = vadd.f32 %v875_v21, %v873_v19  ;;  %v988_v19 = vstv %s6339_s27  ;;  %v1003_v21 = vmul.f32 %v1002_v0, %v6074_v17  ;;  %v1014_v31 = vstv %s6367_s4  ;;  %s6455_s27 = sld [smem:[#allocation4 + $0x1a7]]  ;;  %s6489_s4 = sld [smem:[#allocation4 + $0x54]] }
 0x136   : > { %886 = vrot.lane.b32.xlu0 %v884_v52, %s10107_s29  ;;  %792 = vrot.lane.b32.xlu1 %v5863_v40, %s5262_s23  ;;  %v893_v40 = vmul.f32 %v892_v41, %v6076_v16  ;;  %v979_v52 = vmul.f32 %v978_v56, %v6074_v17  ;;  %v1049_v59 = vmul.f32 %v1048_v46, %v6076_v16  ;;  %v1072_v56 = vstv %s6373_s0  ;;  %s6491_s0 = sld [smem:[#allocation4 + $0x51]] }
 0x137   : > { %10109 = vst [vmem:[#allocation73_spill] sm:$0xff] %v6320_v22  ;;  %v1004_v10 = vadd.f32 %v1003_v21, %v1001_v58  ;;  %v1013_v62 = vmul.f32 %v1012_v38, %v6076_v16  ;;  %v1096_v0 = vstv %s6391_s2  ;;  %v1098_v58 = vstv %s6401_s25  ;;  %s6513_s2 = sld [smem:[#allocation4 + $0x53]]  ;;  %s6523_s25 = sld [smem:[#allocation4 + $0x1aa]] }
 0x138   : > { %v896_v4 = vadd.f32 %v895_v35, %v893_v40  ;;  %v980_v41 = vadd.f32 %v979_v52, %v977_v24  ;;  %v990_v40 = vstv %s6349_s24  ;;  %v989_v35 = vmul.f32 %v988_v19, %v6076_v16  ;;  %s6467_s24 = sld [smem:[#allocation4 + $0x52]] }
 0x139   : > { %v1036_v30 = vstv %s6375_s18  ;;  %v1074_v24 = vstv %s6383_s1  ;;  %v1073_v52 = vmul.f32 %v1072_v56, %v6076_v16  ;;  %v1097_v21 = vmul.f32 %v1096_v0, %v6076_v16  ;;  %s6499_s18 = sld [smem:[#allocation4 + $0x1ab]]  ;;  %s6501_s1 = sld [smem:[#allocation4 + $0x1a8]] }
 0x13a   : > { %910 = vrot.lane.b32.xlu0 %v908_v60, %s10107_s29  ;;  %816 = vrot.lane.b32.xlu1 %v5872_v43, %s5262_s23  ;;  %v940_v43 = vstv %s6293_s7  ;;  %v967_v60 = vmul.f32 %v966_v33, %v6074_v17  ;;  %s6421_s7 = sld [smem:[#allocation4 + $0x1a0]]  ;;  %v1060_v33 = vstv %s6393_s28  ;;  %s6521_s28 = sld [smem:[#allocation4 + $0x1ad]] }
 0x13b   : > { %v941_v34 = vmul.f32 %v940_v43, %v6076_v16  ;;  %v1146_v56 = vstv %s6437_s13  ;;  %s6615_s13 = sld [smem:[#allocation4 + $0x1c1]] }
 0x13c   : > { %v968_v48 = vadd.f32 %v967_v60, %v965_v39  ;;  %v1062_v39 = vstv %s6403_s3  ;;  %v1061_v60 = vmul.f32 %v1060_v33, %v6076_v16  ;;  %v1147_v0 = vmul.f32 %v1146_v56, %v6074_v17  ;;  %s4567_s3 = sld [smem:[#allocation4 + $0x69]] }
 0x13d   : > { %v944_v28 = vadd.f32 %v943_v14, %v941_v34  ;;  %v1038_v34 = vstv %s6385_s14  ;;  %v1037_v14 = vmul.f32 %v1036_v30, %v6076_v16  ;;  %v1110_v30 = vstv %s6439_s19  ;;  %s6511_s14 = sld [smem:[#allocation4 + $0x56]]  ;;  %s6617_s19 = sld [smem:[#allocation4 + $0x6f]] }
 0x13e   : > { %934 = vrot.lane.b32.xlu0 %v932_v13, %s10107_s29  ;;  %898 = vrot.lane.b32.xlu1 %v896_v4, %s10107_s29  ;;  %v1027_v13 = vmul.f32 %v1026_v42, %v6074_v17  ;;  %v991_v4 = vmul.f32 %v990_v40, %v6074_v17  ;;  %v1120_v42 = vstv %s6409_s26  ;;  %v1084_v40 = vstv %s6411_s12  ;;  %s6585_s26 = sld [smem:[#allocation4 + $0x1c0]]  ;;  %s6591_s12 = sld [smem:[#allocation4 + $0x6b]] }
 0x13f   : > { %v1111_v33 = vmul.f32 %v1110_v30, %v6074_v17 }
 0x140   : > { %v1028_v47 = vadd.f32 %v1027_v13, %v1025_v5  ;;  %v992_v43 = vadd.f32 %v991_v4, %v989_v35  ;;  %v1122_v5 = vstv %s6419_s17  ;;  %v1086_v35 = vstv %s6421_s7  ;;  %s6597_s17 = sld [smem:[#allocation4 + $0x1c2]]  ;;  %s6603_s7 = sld [smem:[#allocation4 + $0x6d]] }
 0x142   : > { %958 = vrot.lane.b32.xlu0 %v956_v45, %s10107_s29  ;;  %922 = vrot.lane.b32.xlu1 %v920_v26, %s10107_s29  ;;  %v1051_v45 = vmul.f32 %v1050_v23, %v6074_v17  ;;  %v1015_v26 = vmul.f32 %v1014_v31, %v6074_v17  ;;  %v1121_v23 = vmul.f32 %v1120_v42, %v6076_v16  ;;  %v1192_v42 = vstv %s6467_s24  ;;  %s6636_s24 = sld [smem:[#allocation4 + $0x1c8]] }
 0x143   : > { %v1085_v31 = vmul.f32 %v1084_v40, %v6076_v16  ;;  %v1156_v40 = vstv %s6469_s11  ;;  %s6638_s11 = sld [smem:[#allocation4 + $0x6e]] }
 0x144   : > { %v1052_v25 = vadd.f32 %v1051_v45, %v1049_v59  ;;  %v1016_v12 = vadd.f32 %v1015_v26, %v1013_v62  ;;  %v1123_v59 = vmul.f32 %v1122_v5, %v6074_v17  ;;  %v1087_v62 = vmul.f32 %v1086_v35, %v6074_v17 }
 0x145   : > { %v1194_v5 = vstv %s6477_s16  ;;  %v1158_v35 = vstv %s6479_s5  ;;  %s6645_s16 = sld [smem:[#allocation4 + $0x1c5]]  ;;  %s6647_s5 = sld [smem:[#allocation4 + $0x73]] }
 0x146   : > { %982 = vrot.lane.b32.xlu0 %v980_v41, %s10110_s9  ;;  %946 = vrot.lane.b32.xlu1 %v944_v28, %s10107_s29  ;;  %v1075_v41 = vmul.f32 %v1074_v24, %v6074_v17  ;;  %v1039_v28 = vmul.f32 %v1038_v34, %v6074_v17  ;;  %v1124_v24 = vadd.f32 %v1123_v59, %v1121_v23  ;;  %v1216_v59 = vstv %s6489_s4  ;;  %s6650_s4 = sld [smem:[#allocation4 + $0x1ca]] }
 0x147   : > { %v1088_v34 = vadd.f32 %v1087_v62, %v1085_v31  ;;  %v1180_v62 = vstv %s6491_s0  ;;  %v1195_v56 = vmul.f32 %v1194_v5, %v6074_v17  ;;  %v1159_v30 = vmul.f32 %v1158_v35, %v6074_v17  ;;  %s6652_s0 = sld [smem:[#allocation4 + $0x70]] }
 0x148   : > { %v1076_v44 = vadd.f32 %v1075_v41, %v1073_v52  ;;  %v1040_v19 = vadd.f32 %v1039_v28, %v1037_v14  ;;  %v1168_v52 = vstv %s6445_s8  ;;  %v1132_v14 = vstv %s6447_s20  ;;  %s6622_s8 = sld [smem:[#allocation4 + $0x1c6]]  ;;  %s6624_s20 = sld [smem:[#allocation4 + $0x6c]] }
 0x149   : > { %v1170_v41 = vstv %s6455_s27  ;;  %v1134_v28 = vstv %s6457_s10  ;;  %s6631_s27 = sld [smem:[#allocation4 + $0x1c3]]  ;;  %s6633_s10 = sld [smem:[#allocation4 + $0x71]] }
 0x14a   : > { %1006 = vrot.lane.b32.xlu0 %v1004_v10, %s10110_s9  ;;  %970 = vrot.lane.b32.xlu1 %v968_v48, %s10110_s9  ;;  %v1099_v10 = vmul.f32 %v1098_v58, %v6074_v17  ;;  %v1063_v48 = vmul.f32 %v1062_v39, %v6074_v17 }
 0x14c   : > { %v1100_v13 = vadd.f32 %v1099_v10, %v1097_v21  ;;  %v1064_v4 = vadd.f32 %v1063_v48, %v1061_v60  ;;  %v1169_v21 = vmul.f32 %v1168_v52, %v6076_v16  ;;  %v1133_v60 = vmul.f32 %v1132_v14, %v6076_v16 }
 0x14d   : > { %v1171_v10 = vmul.f32 %v1170_v41, %v6074_v17  ;;  %v1135_v48 = vmul.f32 %v1134_v28, %v6074_v17  ;;  %v1240_v41 = vstv %s6511_s14  ;;  %v1204_v28 = vstv %s6513_s2  ;;  %s6665_s14 = sld [smem:[#allocation4 + $0x1cc]]  ;;  %s6667_s2 = sld [smem:[#allocation4 + $0x72]] }
 0x14e   : > { %1030 = vrot.lane.b32.xlu0 %v1028_v47, %s10110_s9  ;;  %994 = vrot.lane.b32.xlu1 %v992_v43, %s10110_s9  ;;  %v1144_v47 = vstv %s6427_s15  ;;  %v1108_v43 = vstv %s6429_s6  ;;  %v1241_v5 = vmul.f32 %v1240_v41, %v6076_v16  ;;  %v1205_v35 = vmul.f32 %v1204_v28, %v6076_v16  ;;  %s6607_s15 = sld [smem:[#allocation4 + $0x1c4]]  ;;  %s6609_s6 = sld [smem:[#allocation4 + $0x6a]] }
 0x14f   : > { %v1172_v23 = vadd.f32 %v1171_v10, %v1169_v21  ;;  %v1136_v31 = vadd.f32 %v1135_v48, %v1133_v60  ;;  %v1242_v21 = vstv %s6521_s28  ;;  %v1206_v60 = vstv %s6523_s25  ;;  %s6673_s28 = sld [smem:[#allocation4 + $0x1c9]]  ;;  %s6675_s25 = sld [smem:[#allocation4 + $0x77]] }
 0x152   : > { %1054 = vrot.lane.b32.xlu0 %v1052_v25, %s10111_s22  ;;  %1018 = vrot.lane.b32.xlu1 %v1016_v12, %s10110_s9  ;;  %v1145_v25 = vmul.f32 %v1144_v47, %v6076_v16  ;;  %v1109_v12 = vmul.f32 %v1108_v43, %v6076_v16  ;;  %v1193_v47 = vmul.f32 %v1192_v42, %v6076_v16 }
 0x153   : > { %v1157_v43 = vmul.f32 %v1156_v40, %v6076_v16  ;;  %v1588_v32 = vstv %s6665_s14  ;;  %s6889_s14 = sld [smem:[#allocation4 + $0x1d8]] }
 0x154   : > { %v1196_v52 = vadd.f32 %v1195_v56, %v1193_v47 }
 0x155   : > { %v1160_v14 = vadd.f32 %v1159_v30, %v1157_v43 }
 0x156   : > { %1078 = vrot.lane.b32.xlu0 %v1076_v44, %s10111_s22  ;;  %1042 = vrot.lane.b32.xlu1 %v1040_v19, %s10110_s9  ;;  %v1148_v44 = vadd.f32 %v1147_v0, %v1145_v25  ;;  %v1112_v19 = vadd.f32 %v1111_v33, %v1109_v12  ;;  %v1217_v0 = vmul.f32 %v1216_v59, %v6076_v16 }
 0x157   : > { %v1181_v33 = vmul.f32 %v1180_v62, %v6076_v16 }
 0x158   : > { %v6459_v46 = vpop.permute.xlu0 %348  ;;  %v6461_v38 = vpop.permute.xlu1 %324 }
 0x15a   : > { %1102 = vrot.lane.b32.xlu0 %v1100_v13, %s10111_s22  ;;  %1066 = vrot.lane.b32.xlu1 %v1064_v4, %s10111_s22 }
 0x15c   : > { %v6481_v45 = vpop.permute.xlu0 %372  ;;  %v6483_v26 = vpop.permute.xlu1 %336 }
 0x15e   : > { %1126 = vrot.lane.b32.xlu0 %v1124_v24, %s10111_s22  ;;  %1090 = vrot.lane.b32.xlu1 %v1088_v34, %s10111_s22  ;;  %v1218_v24 = vstv %s6499_s18  ;;  %v1182_v34 = vstv %s6501_s1  ;;  %s6659_s18 = sld [smem:[#allocation4 + $0x1c7]]  ;;  %s6661_s1 = sld [smem:[#allocation4 + $0x75]] }
 0x160   : > { %v6503_v58 = vpop.permute.xlu0 %396  ;;  %v6505_v39 = vpop.permute.xlu1 %360 }
 0x162   : > { %1150 = vrot.lane.b32.xlu0 %v1148_v44, %s10087_s21  ;;  %1114 = vrot.lane.b32.xlu1 %v1112_v19, %s10111_s22  ;;  %v1219_v44 = vmul.f32 %v1218_v24, %v6074_v17  ;;  %v1183_v19 = vmul.f32 %v1182_v34, %v6074_v17 }
 0x164   : > { %v6525_v13 = vpop.permute.xlu0 %420  ;;  %v6527_v4 = vpop.permute.xlu1 %384  ;;  %v1220_v10 = vadd.f32 %v1219_v44, %v1217_v0  ;;  %v1184_v48 = vadd.f32 %v1183_v19, %v1181_v33  ;;  %v1468_v33 = vstv %s6597_s17  ;;  %v1490_v44 = vstv %s6603_s7  ;;  %s6696_s17 = sld [smem:[#allocation4 + $0x79]]  ;;  %s6705_s7 = sld [smem:[#allocation4 + $0x1d0]] }
 0x165   : > { %v1454_v19 = vstv %s6609_s6  ;;  %v1528_v27 = vstv %s6659_s18  ;;  %v1586_v20 = vstv %s6661_s1  ;;  %s6729_s6 = sld [smem:[#allocation4 + $0x1cd]]  ;;  %s6875_s18 = sld [smem:[#allocation4 + $0x81]] }
 0x166   : > { %1174 = vrot.lane.b32.xlu0 %v1172_v23, %s10087_s21  ;;  %1138 = vrot.lane.b32.xlu1 %v1136_v31, %s10087_s21  ;;  %v1243_v23 = vmul.f32 %v1242_v21, %v6074_v17  ;;  %v1207_v31 = vmul.f32 %v1206_v60, %v6074_v17  ;;  %v1492_v60 = vstv %s6607_s15  ;;  %s6707_s15 = sld [smem:[#allocation4 + $0x76]] }
 0x167   : > { %s6877_s1 = sld [smem:[#allocation4 + $0x7e]] }
 0x168   : > { %v6539_v25 = vpop.permute.xlu0 %444  ;;  %v6541_v12 = vpop.permute.xlu1 %408  ;;  %v1244_v59 = vadd.f32 %v1243_v23, %v1241_v5  ;;  %v1208_v62 = vadd.f32 %v1207_v31, %v1205_v35  ;;  %v1514_v31 = vstv %s6617_s19  ;;  %s6772_s19 = sld [smem:[#allocation4 + $0x78]] }
 0x16a   : > { %1198 = vrot.lane.b32.xlu0 %v1196_v52, %s10087_s21  ;;  %1162 = vrot.lane.b32.xlu1 %v1160_v14, %s10087_s21 }
 0x16c   : > { %v6553_v42 = vpop.permute.xlu0 %468  ;;  %v6555_v40 = vpop.permute.xlu1 %432 }
 0x16e   : > { %1222 = vrot.lane.b32.xlu0 %v1220_v10, %s5261_s30  ;;  %1186 = vrot.lane.b32.xlu1 %v1184_v48, %s10087_s21  ;;  %v1456_v10 = vstv %s6615_s13  ;;  %s6749_s13 = sld [smem:[#allocation4 + $0x7b]] }
 0x170   : > { %v6563_v47 = vpop.permute.xlu0 %492  ;;  %v6565_v43 = vpop.permute.xlu1 %456 }
 0x172   : > { %1246 = vrot.lane.b32.xlu0 %v1244_v59, %s5261_s30  ;;  %1210 = vrot.lane.b32.xlu1 %v1208_v62, %s10087_s21  ;;  %v1516_v59 = vstv %s6622_s8  ;;  %v1478_v62 = vstv %s6624_s20  ;;  %s6788_s8 = sld [smem:[#allocation4 + $0x1d2]]  ;;  %s6791_s20 = sld [smem:[#allocation4 + $0x1cf]] }
 0x174   : > { %v6569_v56 = vpop.permute.xlu0 %516  ;;  %v6571_v16 = vpop.permute.xlu1 %480 }
 0x175   : > { %10112 = vst [vmem:[#allocation74_spill] sm:$0xff] %v6571_v16 }
 0x176   : > { %1270 = vrot.lane.b32.xlu0 %v6123_v37, %s5261_s30  ;;  %1234 = vrot.lane.b32.xlu1 %v6132_v9, %s5261_s30 }
 0x178   : > { %v6577_v17 = vpop.permute.xlu0 %540  ;;  %v6579_v30 = vpop.permute.xlu1 %504 }
 0x17a   : > { %1294 = vrot.lane.b32.xlu0 %v6143_v1, %s5261_s30  ;;  %1258 = vrot.lane.b32.xlu1 %v6148_v63, %s5261_s30  ;;  %v6605_v1 = vld [vmem:[#allocation2 + $0x2] sm:$0xff]  ;;  %v1442_v63 = vstv %s4567_s3  ;;  %s6679_s3 = sld [smem:[#allocation4 + $0x1ce]] }
 0x17b   : > { %v1491_v35 = vmul.f32 %v1490_v44, %v6605_v1  ;;  %v1455_v23 = vmul.f32 %v1454_v19, %v6605_v1  ;;  %v1564_v44 = vstv %s6650_s4  ;;  %v1526_v19 = vstv %s6652_s0  ;;  %s6864_s4 = sld [smem:[#allocation4 + $0x1d6]]  ;;  %s6866_s0 = sld [smem:[#allocation4 + $0x1d3]] }
 0x17c   : > { %v6587_v24 = vpop.permute.xlu0 %564  ;;  %v6589_v34 = vpop.permute.xlu1 %528  ;;  %v1479_v22 = vmul.f32 %v1478_v62, %v6605_v1  ;;  %v339_v62 = vadd.f32 %v6483_v26, %v6006_v51  ;;  %v1634_v51 = vstv %s6696_s17  ;;  %s6926_s17 = sld [smem:[#allocation4 + $0x82]] }
 0x17d   : > { %10113 = vst [vmem:[#allocation75_spill] sm:$0xff] %v6587_v24  ;;  %v1550_v24 = vstv %s6667_s2  ;;  %s6891_s2 = sld [smem:[#allocation4 + $0x1d5]] }
 0x17e   : > { %1318 = vrot.lane.b32.xlu0 %v6150_v61, %s5262_s23  ;;  %1282 = vrot.lane.b32.xlu1 %v6160_v18, %s5261_s30  ;;  %v6619_v61 = vld [vmem:[#allocation3 + $0x2] sm:$0xff]  ;;  %v1444_v18 = vstv %s6585_s26  ;;  %s6681_s26 = sld [smem:[#allocation4 + $0x74]]  ;;  %v423_v50 = vadd.f32 %v6525_v13, %v339_v62  ;;  %v363_v13 = vadd.f32 %v6505_v39, %v6042_v53  ;;  %v351_v39 = vadd.f32 %v6459_v46, %v5963_v55 }
 0x17f   : > { %v1445_v0 = vmul.f32 %v1444_v18, %v6619_v61  ;;  %v1469_v21 = vmul.f32 %v1468_v33, %v6619_v61  ;;  %v1538_v18 = vstv %s6633_s10  ;;  %v1502_v33 = vstv %s6638_s11  ;;  %s6812_s10 = sld [smem:[#allocation4 + $0x7a]]  ;;  %s6832_s11 = sld [smem:[#allocation4 + $0x1d1]] }
 0x180   : > { %v6599_v37 = vpop.permute.xlu0 %588  ;;  %v6601_v9 = vpop.permute.xlu1 %552  ;;  %v435_v55 = vadd.f32 %v6555_v40, %v351_v39 }
 0x182   : > { %1342 = vrot.lane.b32.xlu0 %v6165_v2, %s5262_s23  ;;  %1306 = vrot.lane.b32.xlu1 %v6174_v49, %s5262_s23  ;;  %v1443_v2 = vmul.f32 %v1442_v63, %v6605_v1  ;;  %v1466_v49 = vstv %s6591_s12  ;;  %v1480_v63 = vstv %s6631_s27  ;;  %s6694_s12 = sld [smem:[#allocation4 + $0x1cb]]  ;;  %v519_v40 = vadd.f32 %v6569_v56, %v435_v55  ;;  %s6810_s27 = sld [smem:[#allocation4 + $0x7d]] }
 0x184   : > { %v6626_v52 = vpop.permute.xlu0 %612  ;;  %v6628_v14 = vpop.permute.xlu1 %576 }
 0x186   : > { %1366 = vrot.lane.b32.xlu0 %v6186_v15, %s5262_s23  ;;  %1330 = vrot.lane.b32.xlu1 %v6188_v3, %s5262_s23  ;;  %v1446_v15 = vadd.f32 %v1445_v0, %v1443_v2  ;;  %v1467_v3 = vmul.f32 %v1466_v49, %v6605_v1  ;;  %v1493_v2 = vmul.f32 %v1492_v60, %v6619_v61  ;;  %v1540_v0 = vstv %s6636_s24  ;;  %s6830_s24 = sld [smem:[#allocation4 + $0x1d4]] }
 0x187   : > { %v1457_v49 = vmul.f32 %v1456_v10, %v6619_v61  ;;  %v1541_v16 = vmul.f32 %v1540_v0, %v6619_v61  ;;  %v507_v0 = vadd.f32 %v6579_v30, %v423_v50  ;;  %v1589_v30 = vmul.f32 %v1588_v32, %v6619_v61 }
 0x188   : > { %v6654_v41 = vpop.permute.xlu0 %636  ;;  %v6656_v28 = vpop.permute.xlu1 %600  ;;  %v1494_v60 = vadd.f32 %v1493_v2, %v1491_v35  ;;  %v1481_v35 = vmul.f32 %v1480_v63, %v6619_v61  ;;  %v1610_v2 = vstv %s6675_s25  ;;  %s6901_s25 = sld [smem:[#allocation4 + $0x80]] }
 0x189   : > { %v1458_v10 = vadd.f32 %v1457_v49, %v1455_v23  ;;  %v1539_v23 = vmul.f32 %v1538_v18, %v6605_v1  ;;  %v1503_v18 = vmul.f32 %v1502_v33, %v6605_v1  ;;  %v1636_v49 = vstv %s6705_s7  ;;  %s6934_s7 = sld [smem:[#allocation4 + $0x1dc]] }
 0x18a   : > { %1448 = vrot.lane.b32.xlu0 %v1446_v15, %s10107_s29  ;;  %1354 = vrot.lane.b32.xlu1 %v6200_v36, %s5262_s23  ;;  %v1470_v36 = vadd.f32 %v1469_v21, %v1467_v3  ;;  %v1504_v15 = vstv %s6645_s16  ;;  %v1562_v3 = vstv %s6647_s5  ;;  %v1482_v63 = vadd.f32 %v1481_v35, %v1479_v22  ;;  %s6842_s16 = sld [smem:[#allocation4 + $0x7f]]  ;;  %s6844_s5 = sld [smem:[#allocation4 + $0x7c]] }
 0x18b   : > { %v1563_v7 = vmul.f32 %v1562_v3, %v6605_v1  ;;  %v1542_v26 = vadd.f32 %v1541_v16, %v1539_v23  ;;  %v327_v22 = vadd.f32 %v6461_v38, %v5978_v29  ;;  %v1565_v33 = vmul.f32 %v1564_v44, %v6619_v61 }
 0x18c   : > { %v6683_v48 = vpop.permute.xlu0 %660  ;;  %v6685_v5 = vpop.permute.xlu1 %624  ;;  %v1587_v35 = vmul.f32 %v1586_v20, %v6605_v1  ;;  %v447_v29 = vadd.f32 %v6539_v25, %v363_v13  ;;  %v591_v53 = vadd.f32 %v6599_v37, %v507_v0  ;;  %v1600_v44 = vstv %s6729_s6  ;;  %s6946_s6 = sld [smem:[#allocation4 + $0x87]] }
 0x18d   : > { %10114 = vst [vmem:[#allocation76_spill] sm:$0xff] %v6685_v5  ;;  %v1517_v5 = vmul.f32 %v1516_v59, %v6619_v61  ;;  %v411_v38 = vadd.f32 %v6541_v12, %v327_v22  ;;  %v1566_v50 = vadd.f32 %v1565_v33, %v1563_v7  ;;  %v387_v20 = vadd.f32 %v6527_v4, %v6066_v8 }
 0x18e   : > { %1472 = vrot.lane.b32.xlu0 %v1470_v36, %s10107_s29  ;;  %1378 = vrot.lane.b32.xlu1 %v6209_v57, %s5262_s23  ;;  %v1515_v36 = vmul.f32 %v1514_v31, %v6605_v1  ;;  %v1552_v31 = vstv %s6673_s28  ;;  %v531_v7 = vadd.f32 %v6589_v34, %v447_v29  ;;  %v1590_v32 = vadd.f32 %v1589_v30, %v1587_v35  ;;  %s6899_s28 = sld [smem:[#allocation4 + $0x83]] }
 0x18f   : > { %v495_v25 = vadd.f32 %v6563_v47, %v411_v38  ;;  %v471_v23 = vadd.f32 %v6553_v42, %v387_v20  ;;  %v375_v47 = vadd.f32 %v6481_v45, %v6004_v11  ;;  %v1658_v42 = vstv %s6749_s13  ;;  %s6948_s13 = sld [smem:[#allocation4 + $0x84]] }
 0x190   : > { %v6713_v57 = vpop.permute.xlu0 %684  ;;  %v6715_v21 = vpop.permute.xlu1 %648  ;;  %v615_v62 = vadd.f32 %v6626_v52, %v531_v7  ;;  %v1635_v29 = vmul.f32 %v1634_v51, %v6605_v1  ;;  %v1637_v51 = vmul.f32 %v1636_v49, %v6619_v61  ;;  %v1624_v7 = vstv %s6791_s20  ;;  %s6968_s20 = sld [smem:[#allocation4 + $0x89]] }
 0x191   : > { %10115 = vst [vmem:[#allocation77_spill] sm:$0xff] %v6713_v57  ;;  %10116 = vst [vmem:[#allocation78_spill] sm:$0xff] %v6715_v21  ;;  %v1518_v21 = vadd.f32 %v1517_v5, %v1515_v36  ;;  %v1576_v57 = vstv %s6694_s12  ;;  %v1598_v5 = vstv %s6707_s15  ;;  %v1529_v36 = vmul.f32 %v1528_v27, %v6619_v61  ;;  %s6924_s12 = sld [smem:[#allocation4 + $0x85]]  ;;  %s6936_s15 = sld [smem:[#allocation4 + $0x1d9]] }
 0x192   : > { %1496 = vrot.lane.b32.xlu0 %v1494_v60, %s10107_s29  ;;  %1460 = vrot.lane.b32.xlu1 %v1458_v10, %s10107_s29  ;;  %v1505_v60 = vmul.f32 %v1504_v15, %v6619_v61  ;;  %v1527_v15 = vmul.f32 %v1526_v19, %v6605_v1  ;;  %v1551_v27 = vmul.f32 %v1550_v24, %v6605_v1 }
 0x193   : > { %v1553_v24 = vmul.f32 %v1552_v31, %v6619_v61  ;;  %v579_v8 = vadd.f32 %v6628_v14, %v495_v25  ;;  %v555_v52 = vadd.f32 %v6601_v9, %v471_v23  ;;  %v459_v45 = vadd.f32 %v6565_v43, %v375_v47 }
 0x194   : > { %v6736_v10 = vpop.permute.xlu0 %708  ;;  %v673_v59 = vpop.permute.xlu1 %672  ;;  %v1530_v19 = vadd.f32 %v1529_v36, %v1527_v15  ;;  %v10118_v9 = vstv %s6681_s26  ;;  %v399_v43 = vadd.f32 %v6503_v58, %v6040_v6  ;;  %v10121_v36 = vld [vmem:[#allocation69_spill] sm:$0xff]  ;;  %v1599_v38 = vmul.f32 %v1598_v5, %v6605_v1  ;;  %v10123_v39 = vld [vmem:[#allocation76_spill] sm:$0xff]  ;;  %s6914_s26 = sld [smem:[#allocation4 + $0x1d7]] }
 0x195   : > { %v675_v12 = vadd.f32 %v673_v59, %v591_v53  ;;  %v1554_v34 = vadd.f32 %v1553_v24, %v1551_v27  ;;  %v663_v14 = vadd.f32 %v6683_v48, %v579_v8  ;;  %v1611_v59 = vmul.f32 %v1610_v2, %v6605_v1  ;;  %v10122_v53 = vld [vmem:[#allocation74_spill] sm:$0xff] }
 0x196   : > { %1520 = vrot.lane.b32.xlu0 %v1518_v21, %s10107_s29  ;;  %1484 = vrot.lane.b32.xlu1 %v1482_v63, %s10107_s29  ;;  %v1506_v21 = vadd.f32 %v1505_v60, %v1503_v18  ;;  %v10117_v63 = vstv %s6679_s3  ;;  %v639_v48 = vadd.f32 %v6654_v41, %v555_v52  ;;  %v543_v2 = vadd.f32 %v6577_v17, %v459_v45  ;;  %v10128_v45 = vld [vmem:[#allocation72_spill] sm:$0xff]  ;;  %s6912_s3 = sld [smem:[#allocation4 + $0x1da]] }
 0x197   : > { %v1613_v18 = vmul.f32 %v10117_v63, %v6619_v61  ;;  %v1577_v41 = vmul.f32 %v1576_v57, %v6619_v61  ;;  %v1601_v5 = vmul.f32 %v1600_v44, %v6619_v61  ;;  %v1660_v25 = vstv %s6788_s8  ;;  %s6958_s8 = sld [smem:[#allocation4 + $0x1db]] }
 0x198   : > { %v6757_v3 = vpop.permute.xlu0 %732  ;;  %v697_v16 = vpop.permute.xlu1 %696  ;;  %v10119_v0 = vld [vmem:[#allocation77_spill] sm:$0xff]  ;;  %v627_v30 = vadd.f32 %v10123_v39, %v543_v2  ;;  %v1638_v23 = vadd.f32 %v1637_v51, %v1635_v29  ;;  %v1659_v8 = vmul.f32 %v1658_v42, %v6605_v1  ;;  %v1646_v52 = vstv %s6812_s10  ;;  %s6976_s10 = sld [smem:[#allocation4 + $0x1e0]] }
 0x199   : > { %v699_v31 = vadd.f32 %v697_v16, %v615_v62  ;;  %v1614_v57 = vadd.f32 %v1613_v18, %v1611_v59  ;;  %v1602_v62 = vadd.f32 %v1601_v5, %v1599_v38  ;;  %v1625_v42 = vmul.f32 %v1624_v7, %v6619_v61 }
 0x19a   : > { %1544 = vrot.lane.b32.xlu0 %v1542_v26, %s10110_s9  ;;  %1508 = vrot.lane.b32.xlu1 %v1506_v21, %s10107_s29  ;;  %v1575_v26 = vmul.f32 %v10118_v9, %v6605_v1  ;;  %v10120_v21 = vld [vmem:[#allocation68_spill] sm:$0xff]  ;;  %v1648_v59 = vstv %s6832_s11  ;;  %v1694_v29 = vstv %s6877_s1  ;;  %s6982_s11 = sld [smem:[#allocation4 + $0x8b]]  ;;  %s7020_s1 = sld [smem:[#allocation4 + $0x1e4]] }
 0x19b   : > { %v1649_v2 = vmul.f32 %v1648_v59, %v6619_v61  ;;  %v1696_v39 = vstv %s6891_s2  ;;  %v1754_v7 = vstv %s6899_s28  ;;  %s7034_s2 = sld [smem:[#allocation4 + $0x8f]]  ;;  %s7036_s28 = sld [smem:[#allocation4 + $0x8c]] }
 0x19c   : > { %v757_v46 = vpop.permute.xlu0 %756  ;;  %v721_v37 = vpop.permute.xlu1 %720  ;;  %v1578_v35 = vadd.f32 %v1577_v41, %v1575_v26  ;;  %v10129_v41 = vld [vmem:[#allocation73_spill] sm:$0xff] }
 0x19d   : > { %v759_v4 = vadd.f32 %v757_v46, %v675_v12  ;;  %v723_v16 = vadd.f32 %v721_v37, %v639_v48  ;;  %v10124_v12 = vld [vmem:[#allocation75_spill] sm:$0xff]  ;;  %v711_v46 = vadd.f32 %v6736_v10, %v627_v30  ;;  %v10125_v37 = vld [vmem:[#allocation70_spill] sm:$0xff] }
 0x19e   : > { %1568 = vrot.lane.b32.xlu0 %v1566_v50, %s10110_s9  ;;  %1532 = vrot.lane.b32.xlu1 %v1530_v19, %s10110_s9  ;;  %v483_v50 = vadd.f32 %v10122_v53, %v399_v43 }
 0x19f   : > { %v6796_v11 = vadd.f32 %v6245_v54, %v759_v4  ;;  %v603_v54 = vadd.f32 %v6656_v28, %v519_v40  ;;  %v1622_v28 = vstv %s6772_s19  ;;  %v10127_v4 = vld [vmem:[#allocation78_spill] sm:$0xff]  ;;  %s6956_s19 = sld [smem:[#allocation4 + $0x1de]] }
 0x1a0   : > { %v781_v56 = vpop.permute.xlu0 %780  ;;  %v745_v60 = vpop.permute.xlu1 %744  ;;  %v567_v55 = vadd.f32 %v10124_v12, %v483_v50  ;;  %v1623_v10 = vmul.f32 %v1622_v28, %v6605_v1  ;;  %v1732_v50 = vstv %s6889_s14  ;;  %v1718_v12 = vstv %s6901_s25  ;;  %s7025_s14 = sld [smem:[#allocation4 + $0x1e1]]  ;;  %s7045_s25 = sld [smem:[#allocation4 + $0x1e6]] }
 0x1a1   : > { %v783_v22 = vadd.f32 %v781_v56, %v699_v31  ;;  %v747_v13 = vadd.f32 %v745_v60, %v663_v14  ;;  %v687_v33 = vadd.f32 %v10119_v0, %v603_v54  ;;  %v1661_v14 = vmul.f32 %v1660_v25, %v6619_v61 }
 0x1a2   : > { %1592 = vrot.lane.b32.xlu0 %v1590_v32, %s10110_s9  ;;  %1556 = vrot.lane.b32.xlu1 %v1554_v34, %s10110_s9  ;;  %v10126_v32 = vld [vmem:[#allocation71_spill] sm:$0xff]  ;;  %v651_v47 = vadd.f32 %v10127_v4, %v567_v55  ;;  %v1682_v34 = vstv %s6810_s27  ;;  %v1684_v60 = vstv %s6830_s24  ;;  %v1626_v26 = vadd.f32 %v1625_v42, %v1623_v10  ;;  %s6970_s27 = sld [smem:[#allocation4 + $0x86]]  ;;  %s6980_s24 = sld [smem:[#allocation4 + $0x1dd]] }
 0x1a3   : > { %v6825_v15 = vadd.f32 %v10120_v21, %v783_v22  ;;  %v6828_v6 = vadd.f32 %v10121_v36, %v747_v13  ;;  %v1662_v9 = vadd.f32 %v1661_v14, %v1659_v8  ;;  %v1683_v48 = vmul.f32 %v1682_v34, %v6605_v1 }
 0x1a4   : > { %v805_v58 = vpop.permute.xlu0 %804  ;;  %v769_v17 = vpop.permute.xlu1 %768  ;;  %v735_v31 = vadd.f32 %v6757_v3, %v651_v47  ;;  %v1647_v3 = vmul.f32 %v1646_v52, %v6605_v1  ;;  %v1706_v22 = vstv %s6842_s16  ;;  %v1670_v13 = vstv %s6844_s5  ;;  %s6992_s16 = sld [smem:[#allocation4 + $0x88]]  ;;  %s7000_s5 = sld [smem:[#allocation4 + $0x1e2]] }
 0x1a5   : > { %v807_v27 = vadd.f32 %v805_v58, %v723_v16  ;;  %v771_v20 = vadd.f32 %v769_v17, %v687_v33  ;;  %v1685_v43 = vmul.f32 %v1684_v60, %v6619_v61  ;;  %v1708_v0 = vstv %s6864_s4  ;;  %s7002_s4 = sld [smem:[#allocation4 + $0x1df]] }
 0x1a6   : > { %1616 = vrot.lane.b32.xlu0 %v1614_v57, %s10111_s22  ;;  %1580 = vrot.lane.b32.xlu1 %v1578_v35, %s10110_s9  ;;  %v1672_v33 = vstv %s6866_s0  ;;  %v1650_v58 = vadd.f32 %v1649_v2, %v1647_v3  ;;  %v1707_v17 = vmul.f32 %v1706_v22, %v6605_v1  ;;  %v1671_v57 = vmul.f32 %v1670_v13, %v6605_v1  ;;  %s7010_s0 = sld [smem:[#allocation4 + $0x8d]] }
 0x1a7   : > { %v6859_v19 = vadd.f32 %v10125_v37, %v807_v27  ;;  %v6862_v24 = vadd.f32 %v10126_v32, %v771_v20  ;;  %v1686_v36 = vadd.f32 %v1685_v43, %v1683_v48  ;;  %v1730_v35 = vstv %s6875_s18  ;;  %s7014_s18 = sld [smem:[#allocation4 + $0x8a]] }
 0x1a8   : > { %v6868_v49 = vpop.permute.xlu0 %886  ;;  %v793_v44 = vpop.permute.xlu1 %792  ;;  %v1709_v38 = vmul.f32 %v1708_v0, %v6619_v61  ;;  %v1673_v53 = vmul.f32 %v1672_v33, %v6619_v61  ;;  %v1731_v5 = vmul.f32 %v1730_v35, %v6605_v1  ;;  %v1695_v25 = vmul.f32 %v1694_v29, %v6605_v1 }
 0x1a9   : > { %v795_v40 = vadd.f32 %v793_v44, %v711_v46  ;;  %v1733_v55 = vmul.f32 %v1732_v50, %v6619_v61  ;;  %v1697_v46 = vmul.f32 %v1696_v39, %v6619_v61  ;;  %v1756_v37 = vstv %s6912_s3  ;;  %s7047_s3 = sld [smem:[#allocation4 + $0x1e3]] }
 0x1aa   : > { %1640 = vrot.lane.b32.xlu0 %v1638_v23, %s10111_s22  ;;  %1604 = vrot.lane.b32.xlu1 %v1602_v62, %s10110_s9  ;;  %v1710_v20 = vadd.f32 %v1709_v38, %v1707_v17  ;;  %v1674_v51 = vadd.f32 %v1673_v53, %v1671_v57  ;;  %v1720_v32 = vstv %s6914_s26  ;;  %v1755_v10 = vmul.f32 %v1754_v7, %v6605_v1  ;;  %s7055_s26 = sld [smem:[#allocation4 + $0x91]] }
 0x1ab   : > { %v6885_v56 = vadd.f32 %v10128_v45, %v795_v40  ;;  %v1734_v62 = vadd.f32 %v1733_v55, %v1731_v5  ;;  %v1698_v8 = vadd.f32 %v1697_v46, %v1695_v25  ;;  %v1719_v4 = vmul.f32 %v1718_v12, %v6605_v1 }
 0x1ac   : > { %v6893_v63 = vpop.permute.xlu0 %910  ;;  %v817_v18 = vpop.permute.xlu1 %816  ;;  %v1778_v47 = vstv %s6924_s12  ;;  %v1742_v40 = vstv %s6926_s17  ;;  %v1757_v34 = vmul.f32 %v1756_v37, %v6619_v61  ;;  %v1721_v52 = vmul.f32 %v1720_v32, %v6619_v61  ;;  %s7058_s12 = sld [smem:[#allocation4 + $0x8e]]  ;;  %s7065_s17 = sld [smem:[#allocation4 + $0x1e8]] }
 0x1ad   : > { %v819_v54 = vadd.f32 %v817_v18, %v735_v31  ;;  %v1780_v14 = vstv %s6934_s7  ;;  %v1744_v42 = vstv %s6936_s15  ;;  %v1779_v18 = vmul.f32 %v1778_v47, %v6605_v1  ;;  %s7069_s7 = sld [smem:[#allocation4 + $0x1e5]]  ;;  %s7079_s15 = sld [smem:[#allocation4 + $0x9a]] }
 0x1ae   : > { %1664 = vrot.lane.b32.xlu0 %v1662_v9, %s10111_s22  ;;  %1628 = vrot.lane.b32.xlu1 %v1626_v26, %s10111_s22  ;;  %v1758_v60 = vadd.f32 %v1757_v34, %v1755_v10  ;;  %v1722_v59 = vadd.f32 %v1721_v52, %v1719_v4  ;;  %v1743_v9 = vmul.f32 %v1742_v40, %v6605_v1  ;;  %v1802_v26 = vstv %s6946_s6  ;;  %s7081_s6 = sld [smem:[#allocation4 + $0x90]] }
 0x1af   : > { %v6908_v28 = vadd.f32 %v10129_v41, %v819_v54  ;;  %v1766_v48 = vstv %s6948_s13  ;;  %v1781_v3 = vmul.f32 %v1780_v14, %v6619_v61  ;;  %v1745_v54 = vmul.f32 %v1744_v42, %v6619_v61  ;;  %s7088_s13 = sld [smem:[#allocation4 + $0x1f1]] }
 0x1b0   : > { %v6916_v16 = vpop.permute.xlu0 %934  ;;  %v6918_v21 = vpop.permute.xlu1 %898  ;;  %v1804_v22 = vstv %s6956_s19  ;;  %v1768_v13 = vstv %s6958_s8  ;;  %v1803_v33 = vmul.f32 %v1802_v26, %v6605_v1  ;;  %v1790_v17 = vstv %s6970_s27  ;;  %s7090_s19 = sld [smem:[#allocation4 + $0x1e7]]  ;;  %s7099_s8 = sld [smem:[#allocation4 + $0x9c]] }
 0x1b1   : > { %v1782_v41 = vadd.f32 %v1781_v3, %v1779_v18  ;;  %v1746_v0 = vadd.f32 %v1745_v54, %v1743_v9  ;;  %v1805_v57 = vmul.f32 %v1804_v22, %v6619_v61  ;;  %v1769_v35 = vmul.f32 %v1768_v13, %v6619_v61  ;;  %s7109_s27 = sld [smem:[#allocation4 + $0x1f3]] }
 0x1b2   : > { %1688 = vrot.lane.b32.xlu0 %v1686_v36, %s10111_s22  ;;  %1652 = vrot.lane.b32.xlu1 %v1650_v58, %s10111_s22  ;;  %v1767_v36 = vmul.f32 %v1766_v48, %v6605_v1  ;;  %v1826_v58 = vstv %s6968_s20  ;;  %v1828_v29 = vstv %s6976_s10  ;;  %v1791_v25 = vmul.f32 %v1790_v17, %v6605_v1  ;;  %s7102_s20 = sld [smem:[#allocation4 + $0x92]]  ;;  %s7113_s10 = sld [smem:[#allocation4 + $0x1e9]] }
 0x1b3   : > { %v1792_v38 = vstv %s6980_s24  ;;  %v1850_v53 = vstv %s6982_s11  ;;  %v1827_v5 = vmul.f32 %v1826_v58, %v6605_v1  ;;  %v1814_v7 = vstv %s6992_s16  ;;  %s7125_s24 = sld [smem:[#allocation4 + $0x9e]]  ;;  %s7127_s11 = sld [smem:[#allocation4 + $0x9b]] }
 0x1b4   : > { %v6938_v30 = vpop.permute.xlu0 %958  ;;  %v6940_v27 = vpop.permute.xlu1 %922  ;;  %v1829_v12 = vmul.f32 %v1828_v29, %v6619_v61  ;;  %v1793_v55 = vmul.f32 %v1792_v38, %v6619_v61  ;;  %v1851_v46 = vmul.f32 %v1850_v53, %v6605_v1  ;;  %v1852_v37 = vstv %s7000_s5  ;;  %s7136_s16 = sld [smem:[#allocation4 + $0x1f5]]  ;;  %s7138_s5 = sld [smem:[#allocation4 + $0x1f2]] }
 0x1b5   : > { %v1816_v32 = vstv %s7002_s4  ;;  %v1815_v47 = vmul.f32 %v1814_v7, %v6605_v1  ;;  %v1874_v40 = vstv %s7010_s0  ;;  %v1838_v34 = vstv %s7014_s18  ;;  %s7147_s4 = sld [smem:[#allocation4 + $0xa0]]  ;;  %s7150_s0 = sld [smem:[#allocation4 + $0x9d]] }
 0x1b6   : > { %1712 = vrot.lane.b32.xlu0 %v1710_v20, %s10087_s21  ;;  %1676 = vrot.lane.b32.xlu1 %v1674_v51, %s10111_s22  ;;  %v1806_v20 = vadd.f32 %v1805_v57, %v1803_v33  ;;  %v1770_v51 = vadd.f32 %v1769_v35, %v1767_v36  ;;  %v1830_v10 = vadd.f32 %v1829_v12, %v1827_v5  ;;  %v1876_v42 = vstv %s7020_s1  ;;  %s7157_s18 = sld [smem:[#allocation4 + $0x1f7]]  ;;  %s7161_s1 = sld [smem:[#allocation4 + $0x1f4]] }
 0x1b7   : > { %v1794_v4 = vadd.f32 %v1793_v55, %v1791_v25  ;;  %v1853_v52 = vmul.f32 %v1852_v37, %v6619_v61  ;;  %v1817_v14 = vmul.f32 %v1816_v32, %v6619_v61  ;;  %v1839_v3 = vmul.f32 %v1838_v34, %v6605_v1 }
 0x1b8   : > { %v6960_v44 = vpop.permute.xlu0 %982  ;;  %v6962_v23 = vpop.permute.xlu1 %946  ;;  %v1877_v54 = vmul.f32 %v1876_v42, %v6619_v61  ;;  %v1898_v22 = vstv %s7034_s2  ;;  %v1862_v13 = vstv %s7036_s28  ;;  %v1900_v33 = vstv %s7045_s25  ;;  %s7173_s2 = sld [smem:[#allocation4 + $0x9f]]  ;;  %s7180_s28 = sld [smem:[#allocation4 + $0x1f9]] }
 0x1b9   : > { %v1854_v26 = vadd.f32 %v1853_v52, %v1851_v46  ;;  %v1818_v48 = vadd.f32 %v1817_v14, %v1815_v47  ;;  %v1864_v36 = vstv %s7047_s3  ;;  %v1899_v35 = vmul.f32 %v1898_v22, %v6605_v1  ;;  %v7132_v52 = vld [vmem:[#allocation3 + $0x3] sm:$0xff]  ;;  %s7182_s25 = sld [smem:[#allocation4 + $0x1f6]]  ;;  %s7191_s3 = sld [smem:[#allocation4 + $0xa4]] }
 0x1ba   : > { %1736 = vrot.lane.b32.xlu0 %v1734_v62, %s10087_s21  ;;  %1700 = vrot.lane.b32.xlu1 %v1698_v8, %s10087_s21  ;;  %v1863_v29 = vmul.f32 %v1862_v13, %v6605_v1  ;;  %v1922_v38 = vstv %s7055_s26  ;;  %v1886_v53 = vstv %s7058_s12  ;;  %s7194_s26 = sld [smem:[#allocation4 + $0xa1]]  ;;  %s7201_s12 = sld [smem:[#allocation4 + $0x1fb]] }
 0x1bb   : > { %v1924_v5 = vstv %s7065_s17  ;;  %v1923_v25 = vmul.f32 %v1922_v38, %v6605_v1  ;;  %v1888_v7 = vstv %s7069_s7  ;;  %v1887_v32 = vmul.f32 %v1886_v53, %v6605_v1  ;;  %s7205_s17 = sld [smem:[#allocation4 + $0x1f8]]  ;;  %s7215_s7 = sld [smem:[#allocation4 + $0xa6]] }
 0x1bc   : > { %v6984_v31 = vpop.permute.xlu0 %1006  ;;  %v6986_v45 = vpop.permute.xlu1 %970  ;;  %v2004_v47 = vstv %s7079_s15  ;;  %v1889_v34 = vmul.f32 %v1888_v7, %v6619_v61  ;;  %v2006_v42 = vstv %s7088_s13  ;;  %v2028_v22 = vstv %s7099_s8  ;;  %s7217_s15 = sld [smem:[#allocation4 + $0xa3]]  ;;  %s7226_s13 = sld [smem:[#allocation4 + $0x1fa]] }
 0x1bd   : > { %v1934_v13 = vstv %s7102_s20  ;;  %s7238_s8 = sld [smem:[#allocation4 + $0xa5]]  ;;  %s7245_s20 = sld [smem:[#allocation4 + $0x1ff]] }
 0x1be   : > { %1760 = vrot.lane.b32.xlu0 %v1758_v60, %s10087_s21  ;;  %1724 = vrot.lane.b32.xlu1 %v1722_v59, %s10087_s21  ;;  %v1875_v60 = vmul.f32 %v1874_v40, %v6605_v1  ;;  %v1840_v59 = vstv %s7025_s14  ;;  %v1910_v40 = vstv %s7081_s6  ;;  %s7171_s14 = sld [smem:[#allocation4 + $0xa2]]  ;;  %s7224_s6 = sld [smem:[#allocation4 + $0x1fd]] }
 0x1c0   : > { %v7004_v43 = vpop.permute.xlu0 %1030  ;;  %v7006_v2 = vpop.permute.xlu1 %994 }
 0x1c2   : > { %1784 = vrot.lane.b32.xlu0 %v1782_v41, %s5261_s30  ;;  %1748 = vrot.lane.b32.xlu1 %v1746_v0, %s10087_s21  ;;  %v1841_v41 = vmul.f32 %v1840_v59, %v6619_v61  ;;  %v1878_v0 = vadd.f32 %v1877_v54, %v1875_v60  ;;  %v1912_v60 = vstv %s7090_s19  ;;  %v1911_v54 = vmul.f32 %v1910_v40, %v6605_v1  ;;  %s7235_s19 = sld [smem:[#allocation4 + $0xa8]] }
 0x1c4   : > { %v7027_v50 = vpop.permute.xlu0 %1054  ;;  %v7029_v39 = vpop.permute.xlu1 %1018  ;;  %v1842_v57 = vadd.f32 %v1841_v41, %v1839_v3  ;;  %v2007_v41 = vmul.f32 %v2006_v42, %v7132_v52 }
 0x1c6   : > { %1808 = vrot.lane.b32.xlu0 %v1806_v20, %s5261_s30  ;;  %1772 = vrot.lane.b32.xlu1 %v1770_v51, %s10087_s21  ;;  %v1901_v20 = vmul.f32 %v1900_v33, %v6619_v61  ;;  %v1865_v51 = vmul.f32 %v1864_v36, %v6619_v61  ;;  %v2030_v33 = vstv %s7109_s27  ;;  %s7249_s27 = sld [smem:[#allocation4 + $0x1fc]] }
 0x1c8   : > { %v7049_v62 = vpop.permute.xlu0 %1078  ;;  %v7051_v8 = vpop.permute.xlu1 %1042  ;;  %v1902_v46 = vadd.f32 %v1901_v20, %v1899_v35  ;;  %v1866_v37 = vadd.f32 %v1865_v51, %v1863_v29  ;;  %v1935_v20 = vmul.f32 %v1934_v13, %v6605_v1  ;;  %v2031_v51 = vmul.f32 %v2030_v33, %v7132_v52 }
 0x1ca   : > { %1832 = vrot.lane.b32.xlu0 %v1830_v10, %s5261_s30  ;;  %1796 = vrot.lane.b32.xlu1 %v1794_v4, %s5261_s30  ;;  %v7120_v10 = vld [vmem:[#allocation2 + $0x3] sm:$0xff]  ;;  %v1925_v4 = vmul.f32 %v1924_v5, %v6619_v61  ;;  %v2052_v5 = vstv %s7125_s24  ;;  %s7261_s24 = sld [smem:[#allocation4 + $0xa7]] }
 0x1cb   : > { %v2005_v3 = vmul.f32 %v2004_v47, %v7120_v10  ;;  %v2029_v36 = vmul.f32 %v2028_v22, %v7120_v10  ;;  %v2053_v40 = vmul.f32 %v2052_v5, %v7120_v10  ;;  %v2066_v5 = vstv %s7182_s25  ;;  %s7323_s25 = sld [smem:[#allocation4 + $0xb0]] }
 0x1cc   : > { %v7071_v18 = vpop.permute.xlu0 %1102  ;;  %v7073_v9 = vpop.permute.xlu1 %1066  ;;  %v1926_v14 = vadd.f32 %v1925_v4, %v1923_v25  ;;  %v2016_v25 = vstv %s7127_s11  ;;  %s7268_s11 = sld [smem:[#allocation4 + $0x201]] }
 0x1cd   : > { %v2008_v38 = vadd.f32 %v2007_v41, %v2005_v3 }
 0x1ce   : > { %1856 = vrot.lane.b32.xlu0 %v1854_v26, %s5261_s30  ;;  %1820 = vrot.lane.b32.xlu1 %v1818_v48, %s5261_s30  ;;  %v1890_v48 = vadd.f32 %v1889_v34, %v1887_v32  ;;  %v2018_v32 = vstv %s7138_s5  ;;  %v2017_v34 = vmul.f32 %v2016_v25, %v7120_v10  ;;  %s7279_s5 = sld [smem:[#allocation4 + $0xac]] }
 0x1d0   : > { %v7092_v58 = vpop.permute.xlu0 %1126  ;;  %v7094_v17 = vpop.permute.xlu1 %1090 }
 0x1d2   : > { %1880 = vrot.lane.b32.xlu0 %v1878_v0, %s5262_s23  ;;  %1844 = vrot.lane.b32.xlu1 %v1842_v57, %s5261_s30  ;;  %v1913_v0 = vmul.f32 %v1912_v60, %v6619_v61  ;;  %v1936_v57 = vstv %s7113_s10  ;;  %v2019_v60 = vmul.f32 %v2018_v32, %v7132_v52  ;;  %s7259_s10 = sld [smem:[#allocation4 + $0xaa]] }
 0x1d3   : > { %v1937_v7 = vmul.f32 %v1936_v57, %v6619_v61  ;;  %v2040_v61 = vstv %s7150_s0  ;;  %v2100_v57 = vstv %s7171_s14  ;;  %s7289_s0 = sld [smem:[#allocation4 + $0x203]] }
 0x1d4   : > { %v7115_v12 = vpop.permute.xlu0 %1150  ;;  %v7117_v55 = vpop.permute.xlu1 %1114  ;;  %v1914_v53 = vadd.f32 %v1913_v0, %v1911_v54  ;;  %v2042_v54 = vstv %s7161_s1  ;;  %v2020_v0 = vadd.f32 %v2019_v60, %v2017_v34  ;;  %v2041_v33 = vmul.f32 %v2040_v61, %v7120_v10  ;;  %s7303_s1 = sld [smem:[#allocation4 + $0xae]]  ;;  %s7305_s14 = sld [smem:[#allocation4 + $0xab]] }
 0x1d5   : > { %v1938_v47 = vadd.f32 %v1937_v7, %v1935_v20  ;;  %v2126_v61 = vstv %s7201_s12  ;;  %v2090_v60 = vstv %s7205_s17  ;;  %s7337_s12 = sld [smem:[#allocation4 + $0x204]]  ;;  %s7344_s17 = sld [smem:[#allocation4 + $0xb2]] }
 0x1d6   : > { %1904 = vrot.lane.b32.xlu0 %v1902_v46, %s5262_s23  ;;  %1868 = vrot.lane.b32.xlu1 %v1866_v37, %s5262_s23  ;;  %v2032_v46 = vadd.f32 %v2031_v51, %v2029_v36  ;;  %v2054_v37 = vstv %s7136_s16  ;;  %v2102_v51 = vstv %s7180_s28  ;;  %s7270_s16 = sld [smem:[#allocation4 + $0x1fe]]  ;;  %s7314_s28 = sld [smem:[#allocation4 + $0x202]] }
 0x1d7   : > { %v2055_v42 = vmul.f32 %v2054_v37, %v7132_v52  ;;  %v2101_v37 = vmul.f32 %v2100_v57, %v7120_v10  ;;  %v2103_v34 = vmul.f32 %v2102_v51, %v7132_v52  ;;  %v2112_v57 = vstv %s7217_s15  ;;  %s7354_s15 = sld [smem:[#allocation4 + $0x209]] }
 0x1d8   : > { %v7140_v59 = vpop.permute.xlu0 %1174  ;;  %v7142_v26 = vpop.permute.xlu1 %1138  ;;  %v2114_v51 = vstv %s7226_s13  ;;  %s7368_s13 = sld [smem:[#allocation4 + $0xb4]] }
 0x1d9   : > { %v2056_v41 = vadd.f32 %v2055_v42, %v2053_v40  ;;  %v2088_v40 = vstv %s7194_s26  ;;  %s7335_s26 = sld [smem:[#allocation4 + $0x207]] }
 0x1da   : > { %1928 = vrot.lane.b32.xlu0 %v1926_v14, %s5262_s23  ;;  %1892 = vrot.lane.b32.xlu1 %v1890_v48, %s5262_s23  ;;  %v2076_v14 = vstv %s7147_s4  ;;  %v2078_v48 = vstv %s7157_s18  ;;  %s7282_s4 = sld [smem:[#allocation4 + $0xa9]]  ;;  %s7293_s18 = sld [smem:[#allocation4 + $0x200]] }
 0x1db   : > { %v2077_v3 = vmul.f32 %v2076_v14, %v7120_v10  ;;  %v2079_v36 = vmul.f32 %v2078_v48, %v7132_v52  ;;  %v2067_v14 = vmul.f32 %v2066_v5, %v7132_v52 }
 0x1dc   : > { %v7163_v35 = vpop.permute.xlu0 %1198  ;;  %v7165_v29 = vpop.permute.xlu1 %1162 }
 0x1dd   : > { %v2080_v20 = vadd.f32 %v2079_v36, %v2077_v3  ;;  %v2148_v36 = vstv %s7215_s7  ;;  %s7349_s7 = sld [smem:[#allocation4 + $0xaf]] }
 0x1de   : > { %2010 = vrot.lane.b32.xlu0 %v2008_v38, %s10107_s29  ;;  %1916 = vrot.lane.b32.xlu1 %v1914_v53, %s5262_s23  ;;  %v2064_v38 = vstv %s7173_s2  ;;  %v2043_v53 = vmul.f32 %v2042_v54, %v7132_v52  ;;  %v2104_v54 = vadd.f32 %v2103_v34, %v2101_v37  ;;  %v2136_v34 = vstv %s7238_s8  ;;  %s7312_s2 = sld [smem:[#allocation4 + $0x205]]  ;;  %s7379_s8 = sld [smem:[#allocation4 + $0x20b]] }
 0x1df   : > { %v2065_v32 = vmul.f32 %v2064_v38, %v7120_v10  ;;  %v2091_v38 = vmul.f32 %v2090_v60, %v7132_v52 }
 0x1e0   : > { %v7184_v1 = vpop.permute.xlu0 %1222  ;;  %v7186_v4 = vpop.permute.xlu1 %1186 }
 0x1e1   : > { %10130 = vst [vmem:[#allocation77_spill] sm:$0xff] %v7184_v1  ;;  %10131 = vst [vmem:[#allocation68_spill] sm:$0xff] %v7186_v4 }
 0x1e2   : > { %2034 = vrot.lane.b32.xlu0 %v2032_v46, %s10107_s29  ;;  %1940 = vrot.lane.b32.xlu1 %v1938_v47, %s5262_s23  ;;  %v2044_v46 = vadd.f32 %v2043_v53, %v2041_v33  ;;  %v2124_v47 = vstv %s7191_s3  ;;  %v2127_v33 = vmul.f32 %v2126_v61, %v7132_v52  ;;  %v2115_v61 = vmul.f32 %v2114_v51, %v7132_v52  ;;  %s7326_s3 = sld [smem:[#allocation4 + $0xad]] }
 0x1e3   : > { %v2125_v42 = vmul.f32 %v2124_v47, %v7120_v10  ;;  %v2113_v47 = vmul.f32 %v2112_v57, %v7120_v10  ;;  %v2137_v57 = vmul.f32 %v2136_v34, %v7120_v10 }
 0x1e4   : > { %v7207_v22 = vpop.permute.xlu0 %1246  ;;  %v7209_v13 = vpop.permute.xlu1 %1210 }
 0x1e5   : > { %10132 = vst [vmem:[#allocation69_spill] sm:$0xff] %v7207_v22  ;;  %10133 = vst [vmem:[#allocation74_spill] sm:$0xff] %v7209_v13  ;;  %v2128_v53 = vadd.f32 %v2127_v33, %v2125_v42  ;;  %v2174_v42 = vstv %s7245_s20  ;;  %s7381_s20 = sld [smem:[#allocation4 + $0x208]] }
 0x1e6   : > { %2058 = vrot.lane.b32.xlu0 %v2056_v41, %s10107_s29  ;;  %2022 = vrot.lane.b32.xlu1 %v2020_v0, %s10107_s29  ;;  %v2068_v41 = vadd.f32 %v2067_v14, %v2065_v32  ;;  %v2089_v0 = vmul.f32 %v2088_v40, %v7120_v10  ;;  %v2149_v32 = vmul.f32 %v2148_v36, %v7120_v10  ;;  %v2172_v40 = vstv %s7235_s19  ;;  %s7370_s19 = sld [smem:[#allocation4 + $0xb1]] }
 0x1e7   : > { %v2173_v60 = vmul.f32 %v2172_v40, %v7120_v10  ;;  %v2116_v36 = vadd.f32 %v2115_v61, %v2113_v47  ;;  %v2162_v47 = vstv %s7270_s16  ;;  %s7413_s16 = sld [smem:[#allocation4 + $0xb8]] }
 0x1e8   : > { %v7228_v25 = vpop.permute.xlu0 %1270  ;;  %v7230_v7 = vpop.permute.xlu1 %1234  ;;  %v2092_v37 = vadd.f32 %v2091_v38, %v2089_v0  ;;  %v2175_v38 = vmul.f32 %v2174_v42, %v7132_v52 }
 0x1e9   : > { %10134 = vst [vmem:[#allocation76_spill] sm:$0xff] %v7228_v25  ;;  %10135 = vst [vmem:[#allocation75_spill] sm:$0xff] %v7230_v7 }
 0x1ea   : > { %2082 = vrot.lane.b32.xlu0 %v2080_v20, %s10107_s29  ;;  %2046 = vrot.lane.b32.xlu1 %v2044_v46, %s10107_s29  ;;  %v2150_v20 = vstv %s7224_s6  ;;  %s7358_s6 = sld [smem:[#allocation4 + $0x206]] }
 0x1eb   : > { %v2151_v14 = vmul.f32 %v2150_v20, %v7132_v52  ;;  %v2160_v20 = vstv %s7261_s24  ;;  %s7399_s24 = sld [smem:[#allocation4 + $0x20d]] }
 0x1ec   : > { %v7251_v48 = vpop.permute.xlu0 %1294  ;;  %v7253_v3 = vpop.permute.xlu1 %1258  ;;  %v2161_v42 = vmul.f32 %v2160_v20, %v7120_v10 }
 0x1ed   : > { %10136 = vst [vmem:[#allocation70_spill] sm:$0xff] %v7251_v48  ;;  %10137 = vst [vmem:[#allocation71_spill] sm:$0xff] %v7253_v3  ;;  %v2152_v33 = vadd.f32 %v2151_v14, %v2149_v32  ;;  %v2198_v32 = vstv %s7268_s11  ;;  %s7403_s11 = sld [smem:[#allocation4 + $0x20a]] }
 0x1ee   : > { %2106 = vrot.lane.b32.xlu0 %v2104_v54, %s10110_s9  ;;  %2070 = vrot.lane.b32.xlu1 %v2068_v41, %s10107_s29  ;;  %v2138_v54 = vstv %s7249_s27  ;;  %s7389_s27 = sld [smem:[#allocation4 + $0xb6]] }
 0x1ef   : > { %v2139_v51 = vmul.f32 %v2138_v54, %v7132_v52  ;;  %v2199_v54 = vmul.f32 %v2198_v32, %v7132_v52 }
 0x1f0   : > { %v7272_v5 = vpop.permute.xlu0 %1318  ;;  %v7274_v46 = vpop.permute.xlu1 %1282 }
 0x1f1   : > { %10138 = vst [vmem:[#allocation78_spill] sm:$0xff] %v7272_v5  ;;  %10139 = vst [vmem:[#allocation72_spill] sm:$0xff] %v7274_v46  ;;  %v2140_v14 = vadd.f32 %v2139_v51, %v2137_v57  ;;  %v2222_v57 = vstv %s7289_s0  ;;  %s7424_s0 = sld [smem:[#allocation4 + $0x20c]] }
 0x1f2   : > { %2130 = vrot.lane.b32.xlu0 %v2128_v53, %s10110_s9  ;;  %2094 = vrot.lane.b32.xlu1 %v2092_v37, %s10110_s9  ;;  %v2196_v53 = vstv %s7259_s10  ;;  %v2176_v37 = vadd.f32 %v2175_v38, %v2173_v60  ;;  %v2184_v60 = vstv %s7282_s4  ;;  %s7392_s10 = sld [smem:[#allocation4 + $0xb3]]  ;;  %s7422_s4 = sld [smem:[#allocation4 + $0x20f]] }
 0x1f3   : > { %v2197_v61 = vmul.f32 %v2196_v53, %v7120_v10  ;;  %v2186_v53 = vstv %s7293_s18  ;;  %v2185_v32 = vmul.f32 %v2184_v60, %v7120_v10  ;;  %v2210_v60 = vstv %s7314_s28  ;;  %s7433_s18 = sld [smem:[#allocation4 + $0xba]]  ;;  %s7457_s28 = sld [smem:[#allocation4 + $0xbc]] }
 0x1f4   : > { %v7295_v41 = vpop.permute.xlu0 %1342  ;;  %v7297_v0 = vpop.permute.xlu1 %1306 }
 0x1f5   : > { %10140 = vst [vmem:[#allocation73_spill] sm:$0xff] %v7295_v41  ;;  %10141 = vst [vmem:[#allocation79_spill] sm:$0xff] %v7297_v0 }
 0x1f6   : > { %2154 = vrot.lane.b32.xlu0 %v2152_v33, %s10110_s9  ;;  %2118 = vrot.lane.b32.xlu1 %v2116_v36, %s10110_s9  ;;  %v2220_v33 = vstv %s7279_s5  ;;  %v2163_v36 = vmul.f32 %v2162_v47, %v7132_v52  ;;  %v2223_v47 = vmul.f32 %v2222_v57, %v7132_v52  ;;  %s7415_s5 = sld [smem:[#allocation4 + $0xb5]] }
 0x1f7   : > { %v2221_v38 = vmul.f32 %v2220_v33, %v7120_v10  ;;  %v2244_v33 = vstv %s7303_s1  ;;  %s7436_s1 = sld [smem:[#allocation4 + $0xb7]] }
 0x1f8   : > { %v7316_v40 = vpop.permute.xlu0 %1366  ;;  %v7318_v34 = vpop.permute.xlu1 %1330 }
 0x1f9   : > { %10142 = vst [vmem:[#allocation80_spill] sm:$0xff] %v7316_v40  ;;  %10143 = vst [vmem:[#allocation81_spill] sm:$0xff] %v7318_v34  ;;  %v2208_v34 = vstv %s7305_s14  ;;  %v2280_v40 = vstv %s7370_s19  ;;  %s7443_s14 = sld [smem:[#allocation4 + $0x211]]  ;;  %s7505_s19 = sld [smem:[#allocation4 + $0x65]] }
 0x1fa   : > { %2178 = vrot.lane.b32.xlu0 %v2176_v37, %s10111_s22  ;;  %2142 = vrot.lane.b32.xlu1 %v2140_v14, %s10110_s9  ;;  %v2200_v37 = vadd.f32 %v2199_v54, %v2197_v61  ;;  %v2164_v14 = vadd.f32 %v2163_v36, %v2161_v42  ;;  %v2224_v61 = vadd.f32 %v2223_v47, %v2221_v38  ;;  %v2246_v42 = vstv %s7312_s2  ;;  %s7447_s2 = sld [smem:[#allocation4 + $0x20e]] }
 0x1fb   : > { %v2247_v38 = vmul.f32 %v2246_v42, %v7132_v52  ;;  %v2270_v47 = vstv %s7335_s26  ;;  %s7468_s26 = sld [smem:[#allocation4 + $0x210]] }
 0x1fc   : > { %v7339_v20 = vpop.permute.xlu0 %1448  ;;  %v7341_v51 = vpop.permute.xlu1 %1354 }
 0x1fd   : > { %10144 = vst [vmem:[#allocation82_spill] sm:$0xff] %v7339_v20  ;;  %10145 = vst [vmem:[#allocation83_spill] sm:$0xff] %v7341_v51  ;;  %v2187_v20 = vmul.f32 %v2186_v53, %v7132_v52  ;;  %v2268_v51 = vstv %s7323_s25  ;;  %v2232_v53 = vstv %s7326_s3  ;;  %s7459_s25 = sld [smem:[#allocation4 + $0xb9]]  ;;  %s7466_s3 = sld [smem:[#allocation4 + $0x213]] }
 0x1fe   : > { %2202 = vrot.lane.b32.xlu0 %v2200_v37, %s10111_s22  ;;  %2166 = vrot.lane.b32.xlu1 %v2164_v14, %s10110_s9  ;;  %v2245_v37 = vmul.f32 %v2244_v33, %v7120_v10  ;;  %v2209_v14 = vmul.f32 %v2208_v34, %v7120_v10  ;;  %v2234_v34 = vstv %s7337_s12  ;;  %v2233_v42 = vmul.f32 %v2232_v53, %v7120_v10  ;;  %s7477_s12 = sld [smem:[#allocation4 + $0xbe]] }
 0x1ff   : > { %v2188_v57 = vadd.f32 %v2187_v20, %v2185_v32  ;;  %v2211_v20 = vmul.f32 %v2210_v60, %v7132_v52  ;;  %v2269_v32 = vmul.f32 %v2268_v51, %v7120_v10  ;;  %v2256_v51 = vstv %s7349_s7  ;;  %s7487_s7 = sld [smem:[#allocation4 + $0x215]] }
 0x200   : > { %v7360_v54 = vpop.permute.xlu0 %1472  ;;  %v7362_v36 = vpop.permute.xlu1 %1378  ;;  %v2271_v60 = vmul.f32 %v2270_v47, %v7132_v52  ;;  %v2258_v53 = vstv %s7358_s6  ;;  %v2257_v47 = vmul.f32 %v2256_v51, %v7120_v10  ;;  %s7501_s6 = sld [smem:[#allocation4 + $0xc0]] }
 0x201   : > { %10146 = vst [vmem:[#allocation84_spill] sm:$0xff] %v7360_v54  ;;  %10147 = vst [vmem:[#allocation85_spill] sm:$0xff] %v7362_v36  ;;  %v2248_v54 = vadd.f32 %v2247_v38, %v2245_v37  ;;  %v2292_v36 = vstv %s7344_s17  ;;  %v2294_v37 = vstv %s7354_s15  ;;  %s7480_s17 = sld [smem:[#allocation4 + $0xbb]]  ;;  %s7491_s15 = sld [smem:[#allocation4 + $0x212]] }
 0x202   : > { %2226 = vrot.lane.b32.xlu0 %v2224_v61, %s10111_s22  ;;  %2190 = vrot.lane.b32.xlu1 %v2188_v57, %s10111_s22  ;;  %v2212_v57 = vadd.f32 %v2211_v20, %v2209_v14  ;;  %v2293_v14 = vmul.f32 %v2292_v36, %v7120_v10  ;;  %v2272_v20 = vadd.f32 %v2271_v60, %v2269_v32 }
 0x203   : > { %v2259_v36 = vmul.f32 %v2258_v53, %v7132_v52 }
 0x204   : > { %v7383_v33 = vpop.permute.xlu0 %1496  ;;  %v7385_v61 = vpop.permute.xlu1 %1460 }
 0x205   : > { %10148 = vst [vmem:[#allocation86_spill] sm:$0xff] %v7383_v33  ;;  %10149 = vst [vmem:[#allocation87_spill] sm:$0xff] %v7385_v61  ;;  %v2235_v61 = vmul.f32 %v2234_v34, %v7132_v52  ;;  %v2295_v34 = vmul.f32 %v2294_v37, %v7132_v52  ;;  %v2316_v33 = vstv %s7368_s13  ;;  %v2260_v37 = vadd.f32 %v2259_v36, %v2257_v47  ;;  %s7503_s13 = sld [smem:[#allocation4 + $0xbd]] }
 0x206   : > { %2250 = vrot.lane.b32.xlu0 %v2248_v54, %s10111_s22  ;;  %2214 = vrot.lane.b32.xlu1 %v2212_v57, %s10111_s22 }
 0x207   : > { %v2236_v57 = vadd.f32 %v2235_v61, %v2233_v42  ;;  %v2296_v32 = vadd.f32 %v2295_v34, %v2293_v14  ;;  %v2318_v61 = vstv %s7379_s8  ;;  %v2282_v42 = vstv %s7381_s20  ;;  %s7507_s8 = sld [smem:[#allocation4 + $0x1bc]]  ;;  %s7514_s20 = sld [smem:[#allocation4 + $0x217]] }
 0x208   : > { %v7405_v38 = vpop.permute.xlu0 %1520  ;;  %v7407_v54 = vpop.permute.xlu1 %1484  ;;  %v2304_v14 = vstv %s7392_s10  ;;  %v2319_v53 = vmul.f32 %v2318_v61, %v7132_v52  ;;  %v2283_v47 = vmul.f32 %v2282_v42, %v7132_v52  ;;  %v2342_v34 = vstv %s7399_s24  ;;  %s7525_s10 = sld [smem:[#allocation4 + $0xc2]]  ;;  %s7528_s24 = sld [smem:[#allocation4 + $0xbf]] }
 0x209   : > { %10150 = vst [vmem:[#allocation88_spill] sm:$0xff] %v7405_v38  ;;  %10151 = vst [vmem:[#allocation89_spill] sm:$0xff] %v7407_v54  ;;  %v2340_v54 = vstv %s7389_s27  ;;  %v2305_v61 = vmul.f32 %v2304_v14, %v7120_v10  ;;  %v2343_v42 = vmul.f32 %v2342_v34, %v7132_v52  ;;  %v2328_v38 = vstv %s7415_s5  ;;  %s7516_s27 = sld [smem:[#allocation4 + $0x214]]  ;;  %s7541_s5 = sld [smem:[#allocation4 + $0x67]] }
 0x20a   : > { %2274 = vrot.lane.b32.xlu0 %v2272_v20, %s10087_s21  ;;  %2238 = vrot.lane.b32.xlu1 %v2236_v57, %s10111_s22  ;;  %v2317_v20 = vmul.f32 %v2316_v33, %v7120_v10  ;;  %v2281_v57 = vmul.f32 %v2280_v40, %v7120_v10  ;;  %v2341_v40 = vmul.f32 %v2340_v54, %v7120_v10  ;;  %v2306_v33 = vstv %s7403_s11  ;;  %s7535_s11 = sld [smem:[#allocation4 + $0x219]] }
 0x20b   : > { %v2307_v54 = vmul.f32 %v2306_v33, %v7132_v52 }
 0x20c   : > { %v7426_v51 = vpop.permute.xlu0 %1544  ;;  %v7428_v60 = vpop.permute.xlu1 %1508 }
 0x20d   : > { %10152 = vst [vmem:[#allocation90_spill] sm:$0xff] %v7426_v51  ;;  %10153 = vst [vmem:[#allocation91_spill] sm:$0xff] %v7428_v60  ;;  %v2320_v60 = vadd.f32 %v2319_v53, %v2317_v20  ;;  %v2364_v51 = vstv %s7413_s16  ;;  %v2344_v20 = vadd.f32 %v2343_v42, %v2341_v40  ;;  %v2330_v53 = vstv %s7424_s0  ;;  %s7539_s16 = sld [smem:[#allocation4 + $0x216]]  ;;  %s7553_s0 = sld [smem:[#allocation4 + $0xcb]] }
 0x20e   : > { %2298 = vrot.lane.b32.xlu0 %v2296_v32, %s10087_s21  ;;  %2262 = vrot.lane.b32.xlu1 %v2260_v37, %s10087_s21  ;;  %v2284_v37 = vadd.f32 %v2283_v47, %v2281_v57  ;;  %v2366_v57 = vstv %s7422_s4  ;;  %v2308_v34 = vadd.f32 %v2307_v54, %v2305_v61  ;;  %v2352_v40 = vstv %s7436_s1  ;;  %s7543_s4 = sld [smem:[#allocation4 + $0x1be]]  ;;  %s7558_s1 = sld [smem:[#allocation4 + $0x64]] }
 0x20f   : > { %v2367_v33 = vmul.f32 %v2366_v57, %v7132_v52  ;;  %v2331_v61 = vmul.f32 %v2330_v53, %v7132_v52  ;;  %v2390_v42 = vstv %s7443_s14  ;;  %v2353_v57 = vmul.f32 %v2352_v40, %v7120_v10  ;;  %s7560_s14 = sld [smem:[#allocation4 + $0x1bb]] }
 0x210   : > { %v7449_v36 = vpop.permute.xlu0 %1568  ;;  %v7451_v32 = vpop.permute.xlu1 %1532  ;;  %v2391_v53 = vmul.f32 %v2390_v42, %v7132_v52  ;;  %v2378_v40 = vstv %s7468_s26  ;;  %v2484_v0 = vstv %s7525_s10  ;;  %s7584_s26 = sld [smem:[#allocation4 + $0xc3]]  ;;  %s7643_s10 = sld [smem:[#allocation4 + $0x1bf]] }
 0x211   : > { %10154 = vst [vmem:[#allocation92_spill] sm:$0xff] %v7449_v36  ;;  %10155 = vst [vmem:[#allocation93_spill] sm:$0xff] %v7451_v32  ;;  %v2388_v32 = vstv %s7433_s18  ;;  %v2376_v36 = vstv %s7459_s25  ;;  %s7555_s18 = sld [smem:[#allocation4 + $0xc1]]  ;;  %s7579_s25 = sld [smem:[#allocation4 + $0xcd]] }
 0x212   : > { %2322 = vrot.lane.b32.xlu0 %v2320_v60, %s10087_s21  ;;  %2286 = vrot.lane.b32.xlu1 %v2284_v37, %s10087_s21  ;;  %v2365_v60 = vmul.f32 %v2364_v51, %v7120_v10  ;;  %v2329_v37 = vmul.f32 %v2328_v38, %v7120_v10  ;;  %v2389_v38 = vmul.f32 %v2388_v32, %v7120_v10  ;;  %v2354_v51 = vstv %s7447_s2  ;;  %s7568_s2 = sld [smem:[#allocation4 + $0x222]] }
 0x213   : > { %v2355_v32 = vmul.f32 %v2354_v51, %v7132_v52  ;;  %v2566_v3 = vstv %s7553_s0  ;;  %s7676_s0 = sld [smem:[#allocation4 + $0x225]] }
 0x214   : > { %v7470_v14 = vpop.permute.xlu0 %1592  ;;  %v7472_v47 = vpop.permute.xlu1 %1556  ;;  %v1428_v46 = vstv %s7543_s4  ;;  %s7674_s4 = sld [smem:[#allocation4 + $0x228]] }
 0x215   : > { %10156 = vst [vmem:[#allocation94_spill] sm:$0xff] %v7470_v14  ;;  %10157 = vst [vmem:[#allocation95_spill] sm:$0xff] %v7472_v47  ;;  %v2412_v14 = vstv %s7457_s28  ;;  %v2356_v42 = vadd.f32 %v2355_v32, %v2353_v57  ;;  %v2379_v57 = vmul.f32 %v2378_v40, %v7132_v52  ;;  %s7570_s28 = sld [smem:[#allocation4 + $0x218]] }
 0x216   : > { %2346 = vrot.lane.b32.xlu0 %v2344_v20, %s5261_s30  ;;  %2310 = vrot.lane.b32.xlu1 %v2308_v34, %s10087_s21  ;;  %v2368_v20 = vadd.f32 %v2367_v33, %v2365_v60  ;;  %v2332_v34 = vadd.f32 %v2331_v61, %v2329_v37  ;;  %v2392_v60 = vadd.f32 %v2391_v53, %v2389_v38  ;;  %v2414_v37 = vstv %s7466_s3  ;;  %s7581_s3 = sld [smem:[#allocation4 + $0x62]] }
 0x217   : > { %v2400_v38 = vstv %s7480_s17  ;;  %v2415_v51 = vmul.f32 %v2414_v37, %v7132_v52  ;;  %v2438_v53 = vstv %s7487_s7  ;;  %s7591_s17 = sld [smem:[#allocation4 + $0x66]]  ;;  %s7603_s7 = sld [smem:[#allocation4 + $0x224]]  ;;  %v2472_v48 = vstv %s7555_s18 }
 0x218   : > { %v7493_v54 = vpop.permute.xlu0 %1616  ;;  %v7495_v47 = vpop.permute.xlu1 %1580  ;;  %v2496_v25 = vstv %s7584_s26  ;;  %s7684_s18 = sld [smem:[#allocation4 + $0xd3]]  ;;  %s7731_s26 = sld [smem:[#allocation4 + $0x229]] }
 0x219   : > { %10158 = vst [vmem:[#allocation96_spill] sm:$0xff] %v7493_v54  ;;  %10159 = vst [vmem:[#allocation97_spill] sm:$0xff] %v7495_v47  ;;  %v2436_v47 = vstv %s7477_s12  ;;  %v1410_v54 = vstv %s7505_s19  ;;  %s7589_s12 = sld [smem:[#allocation4 + $0x1b9]]  ;;  %s7623_s19 = sld [smem:[#allocation4 + $0xcc]] }
 0x21a   : > { %2370 = vrot.lane.b32.xlu0 %v2368_v20, %s5261_s30  ;;  %2334 = vrot.lane.b32.xlu1 %v2332_v34, %s10087_s21  ;;  %v2413_v20 = vmul.f32 %v2412_v14, %v7120_v10  ;;  %v2377_v34 = vmul.f32 %v2376_v36, %v7120_v10  ;;  %v2437_v36 = vmul.f32 %v2436_v47, %v7120_v10  ;;  %v2402_v14 = vstv %s7491_s15  ;;  %s7605_s15 = sld [smem:[#allocation4 + $0x21a]] }
 0x21b   : > { %v2439_v47 = vmul.f32 %v2438_v53, %v7132_v52 }
 0x21c   : > { %v7518_v33 = vpop.permute.xlu0 %1640  ;;  %v7520_v61 = vpop.permute.xlu1 %1604  ;;  %v2416_v37 = vadd.f32 %v2415_v51, %v2413_v20  ;;  %v2380_v40 = vadd.f32 %v2379_v57, %v2377_v34  ;;  %v2403_v20 = vmul.f32 %v2402_v14, %v7132_v52  ;;  %v1412_v34 = vstv %s7507_s8  ;;  %v7586_v14 = vld [vmem:[#allocation2 + $0x2] sm:$0xff]  ;;  %s7632_s8 = sld [smem:[#allocation4 + $0x226]] }
 0x21d   : > { %10160 = vst [vmem:[#allocation98_spill] sm:$0xff] %v7518_v33  ;;  %10161 = vst [vmem:[#allocation99_spill] sm:$0xff] %v7520_v61  ;;  %v2460_v61 = vstv %s7501_s6  ;;  %v2424_v33 = vstv %s7503_s13  ;;  %v2462_v51 = vstv %s7514_s20  ;;  %v2426_v57 = vstv %s7516_s27  ;;  %s7613_s6 = sld [smem:[#allocation4 + $0xcf]]  ;;  %s7618_s13 = sld [smem:[#allocation4 + $0x1bd]] }
 0x21e   : > { %2394 = vrot.lane.b32.xlu0 %v2392_v60, %s5261_s30  ;;  %2358 = vrot.lane.b32.xlu1 %v2356_v42, %s5261_s30  ;;  %v2401_v42 = vmul.f32 %v2400_v38, %v7120_v10  ;;  %v2440_v38 = vadd.f32 %v2439_v47, %v2437_v36  ;;  %v2448_v36 = vstv %s7528_s24  ;;  %v1411_v47 = vmul.f32 %v7586_v14, %v1410_v54  ;;  %s7639_s20 = sld [smem:[#allocation4 + $0x223]]  ;;  %s7641_s27 = sld [smem:[#allocation4 + $0x68]] }
 0x21f   : > { %v2485_v54 = vmul.f32 %v2484_v0, %v7120_v10  ;;  %v7615_v0 = vld [vmem:[#allocation2 + $0x4] sm:$0xff]  ;;  %s7656_s24 = sld [smem:[#allocation4 + $0xd1]]  ;;  %v2578_v1 = vstv %s7623_s19  ;;  %s7760_s19 = sld [smem:[#allocation4 + $0xd6]] }
 0x220   : > { %v7545_v32 = vpop.permute.xlu0 %1664  ;;  %v7547_v60 = vpop.permute.xlu1 %1628 }
 0x221   : > { %10162 = vst [vmem:[#allocation100_spill] sm:$0xff] %v7545_v32  ;;  %10163 = vst [vmem:[#allocation101_spill] sm:$0xff] %v7547_v60  ;;  %v2404_v32 = vadd.f32 %v2403_v20, %v2401_v42  ;;  %v2486_v42 = vstv %s7535_s11  ;;  %v7598_v20 = vld [vmem:[#allocation3 + $0x2] sm:$0xff]  ;;  %s7658_s11 = sld [smem:[#allocation4 + $0xce]] }
 0x222   : > { %2418 = vrot.lane.b32.xlu0 %v2416_v37, %s5261_s30  ;;  %2382 = vrot.lane.b32.xlu1 %v2380_v40, %s5261_s30  ;;  %v2461_v37 = vmul.f32 %v2460_v61, %v7120_v10  ;;  %v2425_v40 = vmul.f32 %v2424_v33, %v7120_v10  ;;  %v2463_v33 = vmul.f32 %v2462_v51, %v7132_v52 }
 0x223   : > { %v2427_v61 = vmul.f32 %v2426_v57, %v7132_v52  ;;  %v2487_v5 = vmul.f32 %v2486_v42, %v7132_v52  ;;  %v2614_v13 = vstv %s7613_s6  ;;  %v1420_v4 = vstv %s7618_s13  ;;  %s7751_s6 = sld [smem:[#allocation4 + $0x22b]]  ;;  %s7758_s13 = sld [smem:[#allocation4 + $0x230]] }
 0x224   : > { %v7572_v53 = vpop.permute.xlu0 %1688  ;;  %v7574_v60 = vpop.permute.xlu1 %1652  ;;  %v2464_v57 = vadd.f32 %v2463_v33, %v2461_v37  ;;  %v1402_v37 = vstv %s7558_s1  ;;  %v7634_v33 = vld [vmem:[#allocation3 + $0x4] sm:$0xff]  ;;  %s7692_s1 = sld [smem:[#allocation4 + $0xd0]] }
 0x225   : > { %10164 = vst [vmem:[#allocation102_spill] sm:$0xff] %v7572_v53  ;;  %10165 = vst [vmem:[#allocation103_spill] sm:$0xff] %v7574_v60  ;;  %v1413_v60 = vmul.f32 %v7598_v20, %v1412_v34  ;;  %v2450_v53 = vstv %s7539_s16  ;;  %v2428_v41 = vadd.f32 %v2427_v61, %v2425_v40  ;;  %v2449_v34 = vmul.f32 %v2448_v36, %v7120_v10  ;;  %s7662_s16 = sld [smem:[#allocation4 + $0x63]] }
 0x226   : > { %2442 = vrot.lane.b32.xlu0 %v2440_v38, %s5262_s23  ;;  %2406 = vrot.lane.b32.xlu1 %v2404_v32, %s5261_s30  ;;  %v1426_v32 = vstv %s7541_s5  ;;  %v1404_v40 = vstv %s7560_s14  ;;  %v2451_v36 = vmul.f32 %v2450_v53, %v7132_v52  ;;  %v2488_v42 = vadd.f32 %v2487_v5, %v2485_v54  ;;  %s7664_s5 = sld [smem:[#allocation4 + $0x1ba]] }
 0x227   : > { %v1427_v61 = vmul.f32 %v7586_v14, %v1426_v32  ;;  %v2473_v32 = vmul.f32 %v2472_v48, %v7120_v10  ;;  %v2590_v5 = vstv %s7579_s25  ;;  %v1429_v54 = vmul.f32 %v7598_v20, %v1428_v46  ;;  %s7700_s14 = sld [smem:[#allocation4 + $0x22a]] }
 0x228   : > { %v7608_v38 = vpop.permute.xlu0 %1712  ;;  %v7610_v51 = vpop.permute.xlu1 %1676  ;;  %v1405_v7 = vmul.f32 %v7598_v20, %v1404_v40  ;;  %v1418_v46 = vstv %s7591_s17  ;;  %v2592_v40 = vstv %s7603_s7  ;;  %s7716_s25 = sld [smem:[#allocation4 + $0xd2]]  ;;  %s7738_s17 = sld [smem:[#allocation4 + $0xd4]] }
 0x229   : > { %10166 = vst [vmem:[#allocation104_spill] sm:$0xff] %v7608_v38  ;;  %10167 = vst [vmem:[#allocation105_spill] sm:$0xff] %v7610_v51  ;;  %v7625_v51 = vadd.f32 %v1413_v60, %v1411_v47  ;;  %v2568_v38 = vstv %s7568_s2  ;;  %v2474_v60 = vstv %s7570_s28  ;;  %v2452_v47 = vadd.f32 %v2451_v36, %v2449_v34  ;;  %s7706_s2 = sld [smem:[#allocation4 + $0x227]]  ;;  %s7708_s28 = sld [smem:[#allocation4 + $0xd5]] }
 0x22a   : > { %2466 = vrot.lane.b32.xlu0 %v2464_v57, %s5262_s23  ;;  %2430 = vrot.lane.b32.xlu1 %v2428_v41, %s5262_s23  ;;  %v2567_v57 = vmul.f32 %v2566_v3, %v7615_v0  ;;  %v1386_v34 = vstv %s7581_s3  ;;  %v1388_v36 = vstv %s7589_s12  ;;  %v2569_v48 = vmul.f32 %v2568_v38, %v7634_v33  ;;  %s7722_s3 = sld [smem:[#allocation4 + $0x22c]]  ;;  %s7733_s12 = sld [smem:[#allocation4 + $0xd7]] }
 0x22b   : > { %10168 = vst [vmem:[#allocation106_spill] sm:$0xff] %v7625_v51  ;;  %v1403_v51 = vmul.f32 %v7586_v14, %v1402_v37  ;;  %v2475_v3 = vmul.f32 %v2474_v60, %v7132_v52  ;;  %v2591_v37 = vmul.f32 %v2590_v5, %v7615_v0  ;;  %v2497_v60 = vmul.f32 %v2496_v25, %v7120_v10  ;;  %s7740_s7 = sld [smem:[#allocation4 + $0xd9]] }
 0x22c   : > { %v7645_v41 = vpop.permute.xlu0 %1736  ;;  %v7647_v53 = vpop.permute.xlu1 %1700  ;;  %v7686_v5 = vadd.f32 %v1429_v54, %v1427_v61  ;;  %v2593_v10 = vmul.f32 %v2592_v40, %v7634_v33  ;;  %v2615_v61 = vmul.f32 %v2614_v13, %v7615_v0  ;;  %v1434_v13 = vstv %s7641_s27  ;;  %s7782_s27 = sld [smem:[#allocation4 + $0x1ea]] }
 0x22d   : > { %10169 = vst [vmem:[#allocation107_spill] sm:$0xff] %v7645_v41  ;;  %10170 = vst [vmem:[#allocation108_spill] sm:$0xff] %v7647_v53  ;;  %v2498_v53 = vstv %s7605_s15  ;;  %v2476_v38 = vadd.f32 %v2475_v3, %v2473_v32  ;;  %v7688_v22 = vadd.f32 %v1405_v7, %v1403_v51  ;;  %v1389_v7 = vmul.f32 %v7598_v20, %v1388_v36  ;;  %s7749_s15 = sld [smem:[#allocation4 + $0x22e]] }
 0x22e   : > { %2490 = vrot.lane.b32.xlu0 %v2488_v42, %s5262_s23  ;;  %2454 = vrot.lane.b32.xlu1 %v2452_v47, %s5262_s23  ;;  %v2570_v47 = vadd.f32 %v2569_v48, %v2567_v57  ;;  %v2499_v25 = vmul.f32 %v2498_v53, %v7132_v52  ;;  %v2616_v57 = vstv %s7632_s8  ;;  %v1419_v51 = vmul.f32 %v7586_v14, %v1418_v46  ;;  %s7768_s8 = sld [smem:[#allocation4 + $0x93]] }
 0x22f   : > { %v2580_v32 = vstv %s7639_s20  ;;  %v1421_v52 = vmul.f32 %v7598_v20, %v1420_v4  ;;  %v2579_v48 = vmul.f32 %v2578_v1, %v7615_v0  ;;  %v2617_v3 = vmul.f32 %v2616_v57, %v7634_v33  ;;  %s7774_s20 = sld [smem:[#allocation4 + $0x22d]] }
 0x230   : > { %v7678_v41 = vpop.permute.xlu0 %1760  ;;  %v7680_v42 = vpop.permute.xlu1 %1724  ;;  %v2500_v36 = vadd.f32 %v2499_v25, %v2497_v60  ;;  %v2638_v46 = vstv %s7656_s24  ;;  %v2602_v40 = vstv %s7658_s11  ;;  %v2581_v1 = vmul.f32 %v2580_v32, %v7634_v33  ;;  %s7798_s24 = sld [smem:[#allocation4 + $0x232]]  ;;  %s7803_s11 = sld [smem:[#allocation4 + $0xd8]] }
 0x231   : > { %10171 = vst [vmem:[#allocation109_spill] sm:$0xff] %v7678_v41  ;;  %v1387_v41 = vmul.f32 %v7586_v14, %v1386_v34  ;;  %v2594_v34 = vadd.f32 %v2593_v10, %v2591_v37  ;;  %v1396_v37 = vstv %s7664_s5  ;;  %v2618_v60 = vadd.f32 %v2617_v3, %v2615_v61  ;;  %s7814_s5 = sld [smem:[#allocation4 + $0x22f]] }
 0x232   : > { %2572 = vrot.lane.b32.xlu0 %v2570_v47, %s10107_s29  ;;  %2478 = vrot.lane.b32.xlu1 %v2476_v38, %s5262_s23  ;;  %v1436_v47 = vstv %s7643_s10  ;;  %v1394_v38 = vstv %s7662_s16  ;;  %v2639_v32 = vmul.f32 %v2638_v46, %v7615_v0  ;;  %v7753_v61 = vadd.f32 %v1421_v52, %v1419_v51  ;;  %s7784_s10 = sld [smem:[#allocation4 + $0xdb]]  ;;  %s7805_s16 = sld [smem:[#allocation4 + $0x95]] }
 0x233   : > { %v7724_v4 = vadd.f32 %v1389_v7, %v1387_v41  ;;  %v2640_v10 = vstv %s7674_s4  ;;  %v2604_v25 = vstv %s7676_s0  ;;  %v2582_v7 = vadd.f32 %v2581_v1, %v2579_v48  ;;  %s7816_s4 = sld [smem:[#allocation4 + $0xdd]]  ;;  %s7822_s0 = sld [smem:[#allocation4 + $0x1ec]] }
 0x234   : > { %v7711_v53 = vpop.permute.xlu0 %1784  ;;  %v7713_v54 = vpop.permute.xlu1 %1748  ;;  %v1435_v3 = vmul.f32 %v7586_v14, %v1434_v13  ;;  %v1437_v48 = vmul.f32 %v7598_v20, %v1436_v47  ;;  %v2641_v51 = vmul.f32 %v2640_v10, %v7634_v33  ;;  %v2605_v52 = vmul.f32 %v2604_v25, %v7634_v33 }
 0x235   : > { %10172 = vst [vmem:[#allocation110_spill] sm:$0xff] %v7711_v53  ;;  %10173 = vst [vmem:[#allocation111_spill] sm:$0xff] %v7713_v54  ;;  %v2664_v46 = vstv %s7700_s14  ;;  %v2698_v54 = vstv %s7760_s19  ;;  %s7836_s14 = sld [smem:[#allocation4 + $0x97]]  ;;  %s7926_s19 = sld [smem:[#allocation4 + $0xe1]] }
 0x236   : > { %2596 = vrot.lane.b32.xlu0 %v2594_v34, %s10107_s29  ;;  %2502 = vrot.lane.b32.xlu1 %v2500_v36, %s5262_s23  ;;  %v2603_v34 = vmul.f32 %v2602_v40, %v7615_v0  ;;  %v2662_v36 = vstv %s7684_s18  ;;  %v2628_v40 = vstv %s7706_s2  ;;  %s7829_s18 = sld [smem:[#allocation4 + $0x234]]  ;;  %s7846_s2 = sld [smem:[#allocation4 + $0x231]] }
 0x237   : > { %v2663_v13 = vmul.f32 %v2662_v36, %v7615_v0  ;;  %v2665_v36 = vmul.f32 %v2664_v46, %v7634_v33 }
 0x238   : > { %v7742_v41 = vpop.permute.xlu0 %1808  ;;  %v7744_v57 = vpop.permute.xlu1 %1772  ;;  %v2606_v10 = vadd.f32 %v2605_v52, %v2603_v34  ;;  %v2652_v34 = vstv %s7731_s26  ;;  %v2734_v52 = vstv %s7740_s7  ;;  %v2758_v53 = vstv %s7784_s10  ;;  %s7875_s26 = sld [smem:[#allocation4 + $0xdf]]  ;;  %s7897_s7 = sld [smem:[#allocation4 + $0x233]] }
 0x239   : > { %10174 = vst [vmem:[#allocation112_spill] sm:$0xff] %v7742_v41  ;;  %10175 = vst [vmem:[#allocation113_spill] sm:$0xff] %v7744_v57  ;;  %v1395_v41 = vmul.f32 %v7586_v14, %v1394_v38  ;;  %v2626_v57 = vstv %s7692_s1  ;;  %v1397_v14 = vmul.f32 %v7598_v20, %v1396_v37  ;;  %v2686_v38 = vstv %s7708_s28  ;;  %s7831_s1 = sld [smem:[#allocation4 + $0xda]]  ;;  %s7859_s28 = sld [smem:[#allocation4 + $0x1ee]] }
 0x23a   : > { %2620 = vrot.lane.b32.xlu0 %v2618_v60, %s10107_s29  ;;  %2584 = vrot.lane.b32.xlu1 %v2582_v7, %s10107_s29  ;;  %v2642_v60 = vadd.f32 %v2641_v51, %v2639_v32  ;;  %v2627_v25 = vmul.f32 %v2626_v57, %v7615_v0  ;;  %v2650_v7 = vstv %s7716_s25  ;;  %v7786_v20 = vadd.f32 %v1437_v48, %v1435_v3  ;;  %s7861_s25 = sld [smem:[#allocation4 + $0x94]]  ;;  %s7946_s10 = sld [smem:[#allocation4 + $0x235]] }
 0x23b   : > { %v7788_v37 = vadd.f32 %v1397_v14, %v1395_v41  ;;  %v2629_v57 = vmul.f32 %v2628_v40, %v7634_v33  ;;  %v2687_v32 = vmul.f32 %v2686_v38, %v7615_v0  ;;  %v2710_v51 = vstv %s7733_s12  ;;  %s7887_s12 = sld [smem:[#allocation4 + $0x236]] }
 0x23c   : > { %v7776_v47 = vpop.permute.xlu0 %1832  ;;  %v7778_v1 = vpop.permute.xlu1 %1796  ;;  %v2666_v3 = vadd.f32 %v2665_v36, %v2663_v13  ;;  %v2651_v41 = vmul.f32 %v2650_v7, %v7615_v0  ;;  %v2674_v48 = vstv %s7738_s17  ;;  %v2676_v13 = vstv %s7751_s6  ;;  %s7889_s17 = sld [smem:[#allocation4 + $0xdc]]  ;;  %s7910_s6 = sld [smem:[#allocation4 + $0x96]] }
 0x23d   : > { %10176 = vst [vmem:[#allocation114_spill] sm:$0xff] %v7776_v47  ;;  %v2688_v47 = vstv %s7722_s3  ;;  %v2630_v40 = vadd.f32 %v2629_v57, %v2627_v25  ;;  %v2711_v7 = vmul.f32 %v2710_v51, %v7615_v0  ;;  %v2736_v36 = vstv %s7758_s13  ;;  %s7873_s3 = sld [smem:[#allocation4 + $0x1eb]]  ;;  %s7924_s13 = sld [smem:[#allocation4 + $0x1f0]] }
 0x23e   : > { %2644 = vrot.lane.b32.xlu0 %v2642_v60, %s10107_s29  ;;  %2608 = vrot.lane.b32.xlu1 %v2606_v10, %s10107_s29  ;;  %v2689_v38 = vmul.f32 %v2688_v47, %v7634_v33  ;;  %v2712_v60 = vstv %s7749_s15  ;;  %v2653_v10 = vmul.f32 %v2652_v34, %v7634_v33  ;;  %v2675_v25 = vmul.f32 %v2674_v48, %v7615_v0  ;;  %s7908_s15 = sld [smem:[#allocation4 + $0x99]] }
 0x23f   : > { %v2735_v57 = vmul.f32 %v2734_v52, %v7615_v0  ;;  %v2713_v51 = vmul.f32 %v2712_v60, %v7634_v33  ;;  %v2737_v48 = vmul.f32 %v2736_v36, %v7634_v33  ;;  %v2699_v52 = vmul.f32 %v2698_v54, %v7615_v0 }
 0x240   : > { %v7807_v46 = vpop.permute.xlu0 %1856  ;;  %v7809_v14 = vpop.permute.xlu1 %1820  ;;  %v2690_v47 = vadd.f32 %v2689_v38, %v2687_v32  ;;  %v2654_v34 = vadd.f32 %v2653_v10, %v2651_v41  ;;  %v1950_v38 = vstv %s7782_s27  ;;  %v7850_v41 = vadd.f32 %v6868_v49, %v6828_v6  ;;  %v7856_v10 = vld [vmem:[#allocation2 + $0x3] sm:$0xff]  ;;  %s7941_s27 = sld [smem:[#allocation4 + $0x238]] }
 0x241   : > { %10177 = vst [vmem:[#allocation115_spill] sm:$0xff] %v7807_v46  ;;  %10178 = vst [vmem:[#allocation116_spill] sm:$0xff] %v7809_v14  ;;  %v1948_v46 = vstv %s7768_s8  ;;  %v2677_v14 = vmul.f32 %v2676_v13, %v7634_v33  ;;  %v7854_v60 = vadd.f32 %v6893_v63, %v6862_v24  ;;  %v2714_v13 = vadd.f32 %v2713_v51, %v2711_v7  ;;  %v7867_v7 = vld [vmem:[#allocation3 + $0x3] sm:$0xff]  ;;  %s7932_s8 = sld [smem:[#allocation4 + $0x1ed]] }
 0x242   : > { %2668 = vrot.lane.b32.xlu0 %v2666_v3, %s10110_s9  ;;  %2632 = vrot.lane.b32.xlu1 %v2630_v40, %s10107_s29  ;;  %v2700_v3 = vstv %s7774_s20  ;;  %v1949_v54 = vmul.f32 %v7856_v10, %v1948_v46  ;;  %v2738_v49 = vadd.f32 %v2737_v48, %v2735_v57  ;;  %v2760_v63 = vstv %s7798_s24  ;;  %s7934_s20 = sld [smem:[#allocation4 + $0xde]]  ;;  %s7956_s24 = sld [smem:[#allocation4 + $0x98]] }
 0x243   : > { %v2678_v6 = vadd.f32 %v2677_v14, %v2675_v25  ;;  %v2701_v24 = vmul.f32 %v2700_v3, %v7634_v33  ;;  %v1951_v36 = vmul.f32 %v7867_v7, %v1950_v38  ;;  %v2759_v46 = vmul.f32 %v2758_v53, %v7615_v0 }
 0x244   : > { %v7838_v40 = vpop.permute.xlu0 %1880  ;;  %v7840_v32 = vpop.permute.xlu1 %1844  ;;  %v2722_v51 = vstv %s7803_s11  ;;  %v7879_v14 = vadd.f32 %v6916_v16, %v6885_v56  ;;  %v2782_v53 = vstv %s7816_s4  ;;  %v901_v3 = vadd.f32 %v6918_v21, %v6796_v11  ;;  %s7964_s11 = sld [smem:[#allocation4 + $0xe3]]  ;;  %s7980_s4 = sld [smem:[#allocation4 + $0x23a]] }
 0x245   : > { %10179 = vst [vmem:[#allocation117_spill] sm:$0xff] %v7840_v32  ;;  %v1964_v32 = vstv %s7805_s16  ;;  %v2702_v57 = vadd.f32 %v2701_v24, %v2699_v52  ;;  %v7893_v48 = vadd.f32 %v1951_v36, %v1949_v54  ;;  %v2761_v56 = vmul.f32 %v2760_v63, %v7634_v33  ;;  %s7966_s16 = sld [smem:[#allocation4 + $0xe0]] }
 0x246   : > { %2692 = vrot.lane.b32.xlu0 %v2690_v47, %s10110_s9  ;;  %2656 = vrot.lane.b32.xlu1 %v2654_v34, %s10110_s9  ;;  %v2724_v34 = vstv %s7814_s5  ;;  %v1966_v16 = vstv %s7822_s0  ;;  %v2723_v52 = vmul.f32 %v2722_v51, %v7615_v0  ;;  %v1965_v38 = vmul.f32 %v7856_v10, %v1964_v32  ;;  %s7974_s5 = sld [smem:[#allocation4 + $0x1ef]] }
 0x247   : > { %10182 = vst [vmem:[#allocation120_spill] sm:$0xff] %v7893_v48  ;;  %v2784_v24 = vstv %s7829_s18  ;;  %v2725_v11 = vmul.f32 %v2724_v34, %v7634_v33  ;;  %v2783_v21 = vmul.f32 %v2782_v53, %v7615_v0  ;;  %v1980_v54 = vstv %s7836_s14  ;;  %s7982_s0 = sld [smem:[#allocation4 + $0x237]]  ;;  %s7993_s18 = sld [smem:[#allocation4 + $0xe5]] }
 0x248   : > { %v7881_v47 = vpop.permute.xlu0 %1904  ;;  %v7883_v25 = vpop.permute.xlu1 %1868  ;;  %v925_v32 = vadd.f32 %v6940_v27, %v6825_v15  ;;  %v1967_v36 = vmul.f32 %v7867_v7, %v1966_v16  ;;  %v2785_v51 = vmul.f32 %v2784_v24, %v7634_v33  ;;  %v1956_v34 = vstv %s7861_s25  ;;  %s8009_s14 = sld [smem:[#allocation4 + $0x23c]] }
 0x249   : > { %10180 = vst [vmem:[#allocation118_spill] sm:$0xff] %v7881_v47  ;;  %10181 = vst [vmem:[#allocation119_spill] sm:$0xff] %v7883_v25  ;;  %v2746_v25 = vstv %s7831_s1  ;;  %v2762_v47 = vadd.f32 %v2761_v56, %v2759_v46  ;;  %v2748_v46 = vstv %s7846_s2  ;;  %v2726_v15 = vadd.f32 %v2725_v11, %v2723_v52  ;;  %s8002_s1 = sld [smem:[#allocation4 + $0xe2]]  ;;  %s8011_s2 = sld [smem:[#allocation4 + $0x239]] }
 0x24a   : > { %2716 = vrot.lane.b32.xlu0 %v2714_v13, %s10110_s9  ;;  %2680 = vrot.lane.b32.xlu1 %v2678_v6, %s10110_s9  ;;  %v7914_v13 = vadd.f32 %v6938_v30, %v6908_v28  ;;  %v2747_v28 = vmul.f32 %v2746_v25, %v7615_v0  ;;  %v1982_v30 = vstv %s7859_s28  ;;  %v7938_v27 = vadd.f32 %v1967_v36, %v1965_v38  ;;  %s8016_s28 = sld [smem:[#allocation4 + $0xe7]]  ;;  %s8018_s25 = sld [smem:[#allocation4 + $0xe4]] }
 0x24b   : > { %v1981_v53 = vmul.f32 %v7856_v10, %v1980_v54  ;;  %v2786_v25 = vadd.f32 %v2785_v51, %v2783_v21  ;;  %v2749_v56 = vmul.f32 %v2748_v46, %v7634_v33  ;;  %v1958_v16 = vstv %s7873_s3  ;;  %s8030_s3 = sld [smem:[#allocation4 + $0x23e]] }
 0x24c   : > { %v7918_v6 = vpop.permute.xlu0 %1928  ;;  %v7920_v63 = vpop.permute.xlu1 %1892  ;;  %v2806_v24 = vstv %s7875_s26  ;;  %v1957_v52 = vmul.f32 %v7856_v10, %v1956_v34  ;;  %v2808_v38 = vstv %s7887_s12  ;;  %v2770_v11 = vstv %s7889_s17  ;;  %s8037_s26 = sld [smem:[#allocation4 + $0x23b]]  ;;  %s8047_s12 = sld [smem:[#allocation4 + $0xe9]] }
 0x24d   : > { %v7959_v21 = vadd.f32 %v6960_v44, %v901_v3  ;;  %v949_v54 = vadd.f32 %v6962_v23, %v6859_v19  ;;  %v2750_v36 = vadd.f32 %v2749_v56, %v2747_v28  ;;  %v2772_v46 = vstv %s7897_s7  ;;  %s8049_s17 = sld [smem:[#allocation4 + $0xe6]]  ;;  %s8054_s7 = sld [smem:[#allocation4 + $0x240]] }
 0x24e   : > { %2740 = vrot.lane.b32.xlu0 %v2738_v49, %s10111_s22  ;;  %2704 = vrot.lane.b32.xlu1 %v2702_v57, %s10110_s9  ;;  %v1983_v57 = vmul.f32 %v7867_v7, %v1982_v30  ;;  %v1959_v44 = vmul.f32 %v7867_v7, %v1958_v16  ;;  %v2807_v3 = vmul.f32 %v2806_v24, %v7615_v0  ;;  %v1996_v28 = vstv %s7908_s15  ;;  %s8063_s15 = sld [smem:[#allocation4 + $0x23d]] }
 0x24f   : > { %v2809_v19 = vmul.f32 %v2808_v38, %v7634_v33  ;;  %v2771_v23 = vmul.f32 %v2770_v11, %v7615_v0  ;;  %v1998_v56 = vstv %s7924_s13  ;;  %v2830_v16 = vstv %s7926_s19  ;;  %s8080_s13 = sld [smem:[#allocation4 + $0x242]]  ;;  %s8087_s19 = sld [smem:[#allocation4 + $0xe8]] }
 0x250   : > { %v7948_v48 = vpop.permute.xlu0 %2010  ;;  %v7950_v49 = vpop.permute.xlu1 %1916  ;;  %v7970_v51 = vadd.f32 %v1983_v57, %v1981_v53  ;;  %v2773_v53 = vmul.f32 %v2772_v46, %v7634_v33  ;;  %v7996_v24 = vadd.f32 %v6984_v31, %v925_v32  ;;  %v973_v57 = vadd.f32 %v6986_v45, %v7850_v41 }
 0x251   : > { %v1974_v38 = vstv %s7932_s8  ;;  %v2794_v11 = vstv %s7934_s20  ;;  %v1997_v46 = vmul.f32 %v7856_v10, %v1996_v28  ;;  %v2832_v31 = vstv %s7941_s27  ;;  %s8089_s8 = sld [smem:[#allocation4 + $0xed]]  ;;  %s8097_s20 = sld [smem:[#allocation4 + $0x23f]] }
 0x252   : > { %2764 = vrot.lane.b32.xlu0 %v2762_v47, %s10111_s22  ;;  %2728 = vrot.lane.b32.xlu1 %v2726_v15, %s10110_s9  ;;  %10183 = vst [vmem:[#allocation121_spill] sm:$0xff] %v7970_v51  ;;  %v1972_v47 = vstv %s7910_s6  ;;  %v7988_v15 = vadd.f32 %v1959_v44, %v1957_v52  ;;  %v2810_v52 = vadd.f32 %v2809_v19, %v2807_v3  ;;  %s8065_s6 = sld [smem:[#allocation4 + $0xeb]]  ;;  %s8099_s27 = sld [smem:[#allocation4 + $0xea]] }
 0x253   : > { %v1973_v44 = vmul.f32 %v7856_v10, %v1972_v47  ;;  %v2774_v45 = vadd.f32 %v2773_v53, %v2771_v23  ;;  %v1999_v41 = vmul.f32 %v7867_v7, %v1998_v56  ;;  %v2831_v32 = vmul.f32 %v2830_v16, %v7615_v0 }
 0x254   : > { %v7984_v30 = vpop.permute.xlu0 %2034  ;;  %v7986_v34 = vpop.permute.xlu1 %1940  ;;  %v1975_v23 = vmul.f32 %v7867_v7, %v1974_v38  ;;  %v2795_v28 = vmul.f32 %v2794_v11, %v7615_v0  ;;  %v1988_v47 = vstv %s7956_s24  ;;  %v997_v53 = vadd.f32 %v7006_v2, %v7854_v60  ;;  %s8115_s24 = sld [smem:[#allocation4 + $0x241]] }
 0x255   : > { %10184 = vst [vmem:[#allocation122_spill] sm:$0xff] %v7986_v34  ;;  %v2818_v56 = vstv %s7966_s16  ;;  %v8041_v16 = vadd.f32 %v1999_v41, %v1997_v46  ;;  %v1989_v60 = vmul.f32 %v7856_v10, %v1988_v47  ;;  %v8068_v10 = vadd.f32 %v7027_v50, %v973_v57  ;;  %s8123_s16 = sld [smem:[#allocation4 + $0xec]]  ;;  %v10205_v34 = vld [vmem:[#allocation75_spill] sm:$0xff] }
 0x256   : > { %2788 = vrot.lane.b32.xlu0 %v2786_v25, %s10111_s22  ;;  %2752 = vrot.lane.b32.xlu1 %v2750_v36, %s10111_s22  ;;  %v2796_v25 = vstv %s7946_s10  ;;  %v8021_v36 = vadd.f32 %v7004_v43, %v949_v54  ;;  %v2833_v43 = vmul.f32 %v2832_v31, %v7634_v33  ;;  %v2854_v54 = vstv %s7964_s11  ;;  %s8107_s10 = sld [smem:[#allocation4 + $0x244]]  ;;  %s8117_s11 = sld [smem:[#allocation4 + $0xef]] }
 0x257   : > { %10186 = vst [vmem:[#allocation124_spill] sm:$0xff] %v8041_v16  ;;  %v8043_v38 = vadd.f32 %v1975_v23, %v1973_v44  ;;  %v2797_v11 = vmul.f32 %v2796_v25, %v7634_v33  ;;  %v2856_v31 = vstv %s7980_s4  ;;  %v2855_v41 = vmul.f32 %v2854_v54, %v7615_v0  ;;  %s8141_s4 = sld [smem:[#allocation4 + $0x243]] }
 0x258   : > { %v8023_v3 = vpop.permute.xlu0 %2058  ;;  %v8025_v19 = vpop.permute.xlu1 %2022  ;;  %v2834_v2 = vadd.f32 %v2833_v43, %v2831_v32  ;;  %v2819_v25 = vmul.f32 %v2818_v56, %v7615_v0  ;;  %v2878_v23 = vstv %s7993_s18  ;;  %v1021_v32 = vadd.f32 %v7029_v39, %v7879_v14  ;;  %s8153_s18 = sld [smem:[#allocation4 + $0x248]] }
 0x259   : > { %10185 = vst [vmem:[#allocation123_spill] sm:$0xff] %v8023_v3  ;;  %v1990_v3 = vstv %s7974_s5  ;;  %v2857_v43 = vmul.f32 %v2856_v31, %v7634_v33  ;;  %v2880_v56 = vstv %s8009_s14  ;;  %v2879_v39 = vmul.f32 %v2878_v23, %v7615_v0  ;;  %s8132_s5 = sld [smem:[#allocation4 + $0x246]]  ;;  %s8168_s14 = sld [smem:[#allocation4 + $0x245]] }
 0x25a   : > { %2812 = vrot.lane.b32.xlu0 %v2810_v52, %s10111_s22  ;;  %2776 = vrot.lane.b32.xlu1 %v2774_v45, %s10111_s22  ;;  %v2820_v52 = vstv %s7982_s0  ;;  %v2798_v45 = vadd.f32 %v2797_v11, %v2795_v28  ;;  %v1991_v47 = vmul.f32 %v7867_v7, %v1990_v3  ;;  %v2842_v28 = vstv %s8002_s1  ;;  %s8143_s0 = sld [smem:[#allocation4 + $0xf1]]  ;;  %s8155_s1 = sld [smem:[#allocation4 + $0xee]] }
 0x25b   : > { %v2821_v54 = vmul.f32 %v2820_v52, %v7634_v33  ;;  %v2844_v11 = vstv %s8011_s2  ;;  %v2902_v7 = vstv %s8016_s28  ;;  %v2866_v14 = vstv %s8018_s25  ;;  %s8170_s2 = sld [smem:[#allocation4 + $0xf3]]  ;;  %s8174_s28 = sld [smem:[#allocation4 + $0x24a]] }
 0x25c   : > { %v8056_v46 = vpop.permute.xlu0 %2082  ;;  %v8058_v44 = vpop.permute.xlu1 %2046  ;;  %v8082_v50 = vadd.f32 %v1991_v47, %v1989_v60  ;;  %v2843_v60 = vmul.f32 %v2842_v28, %v7615_v0  ;;  %v2904_v52 = vstv %s8030_s3  ;;  %v2881_v23 = vmul.f32 %v2880_v56, %v7634_v33  ;;  %s8182_s25 = sld [smem:[#allocation4 + $0xf0]]  ;;  %s8187_s3 = sld [smem:[#allocation4 + $0xfc]] }
 0x25d   : > { %10187 = vst [vmem:[#allocation125_spill] sm:$0xff] %v8056_v46  ;;  %v2822_v31 = vadd.f32 %v2821_v54, %v2819_v25  ;;  %v2845_v47 = vmul.f32 %v2844_v11, %v7634_v33  ;;  %v2868_v46 = vstv %s8037_s26  ;;  %v2867_v25 = vmul.f32 %v2866_v14, %v7615_v0  ;;  %s8189_s26 = sld [smem:[#allocation4 + $0xf2]] }
 0x25e   : > { %2836 = vrot.lane.b32.xlu0 %v2834_v2, %s10087_s21  ;;  %2800 = vrot.lane.b32.xlu1 %v2798_v45, %s10111_s22  ;;  %v2858_v2 = vadd.f32 %v2857_v43, %v2855_v41  ;;  %v8102_v45 = vadd.f32 %v7049_v62, %v997_v53  ;;  %v2903_v41 = vmul.f32 %v2902_v7, %v7615_v0  ;;  %v2926_v62 = vstv %s8047_s12  ;;  %s8202_s12 = sld [smem:[#allocation4 + $0x247]] }
 0x25f   : > { %v2890_v53 = vstv %s8049_s17  ;;  %v1045_v28 = vadd.f32 %v7051_v8, %v7914_v13  ;;  %v2882_v43 = vadd.f32 %v2881_v23, %v2879_v39  ;;  %v2905_v54 = vmul.f32 %v2904_v52, %v7634_v33  ;;  %s8204_s17 = sld [smem:[#allocation4 + $0x253]] }
 0x260   : > { %v8091_v57 = vpop.permute.xlu0 %2106  ;;  %v8093_v3 = vpop.permute.xlu1 %2070  ;;  %v2928_v56 = vstv %s8054_s7  ;;  %v2846_v14 = vadd.f32 %v2845_v47, %v2843_v60  ;;  %v2950_v16 = vstv %s8065_s6  ;;  %v8135_v8 = vadd.f32 %v7071_v18, %v1021_v32  ;;  %s8210_s7 = sld [smem:[#allocation4 + $0x249]]  ;;  %s8220_s6 = sld [smem:[#allocation4 + $0xf4]] }
 0x261   : > { %v1069_v13 = vadd.f32 %v7073_v9, %v7959_v21  ;;  %v2927_v39 = vmul.f32 %v2926_v62, %v7615_v0  ;;  %v2891_v52 = vmul.f32 %v2890_v53, %v7615_v0  ;;  %v2929_v32 = vmul.f32 %v2928_v56, %v7634_v33 }
 0x262   : > { %2860 = vrot.lane.b32.xlu0 %v2858_v2, %s10087_s21  ;;  %2824 = vrot.lane.b32.xlu1 %v2822_v31, %s10087_s21  ;;  %v2869_v2 = vmul.f32 %v2868_v46, %v7634_v33  ;;  %v2892_v31 = vstv %s8063_s15  ;;  %v2906_v46 = vadd.f32 %v2905_v54, %v2903_v41  ;;  %v2952_v60 = vstv %s8080_s13  ;;  %s8215_s15 = sld [smem:[#allocation4 + $0xfe]]  ;;  %s8230_s13 = sld [smem:[#allocation4 + $0x255]] }
 0x263   : > { %v2893_v9 = vmul.f32 %v2892_v31, %v7634_v33  ;;  %v2951_v21 = vmul.f32 %v2950_v16, %v7615_v0  ;;  %v2914_v23 = vstv %s8087_s19  ;;  %v2974_v47 = vstv %s8089_s8  ;;  %s8232_s19 = sld [smem:[#allocation4 + $0x24b]]  ;;  %s8240_s8 = sld [smem:[#allocation4 + $0x104]] }
 0x264   : > { %v8125_v11 = vpop.permute.xlu0 %2130  ;;  %v8127_v7 = vpop.permute.xlu1 %2094  ;;  %v2870_v18 = vadd.f32 %v2869_v2, %v2867_v25  ;;  %v8158_v62 = vadd.f32 %v7092_v58, %v1045_v28  ;;  %v1093_v41 = vadd.f32 %v7094_v17, %v7996_v24  ;;  %v2916_v16 = vstv %s8097_s20  ;;  %s8253_s20 = sld [smem:[#allocation4 + $0x25b]] }
 0x265   : > { %v2930_v54 = vadd.f32 %v2929_v32, %v2927_v39  ;;  %v2894_v56 = vadd.f32 %v2893_v9, %v2891_v52  ;;  %v2953_v58 = vmul.f32 %v2952_v60, %v7634_v33  ;;  %v2976_v28 = vstv %s8107_s10  ;;  %s8268_s10 = sld [smem:[#allocation4 + $0x10a]] }
 0x266   : > { %2884 = vrot.lane.b32.xlu0 %v2882_v43, %s10087_s21  ;;  %2848 = vrot.lane.b32.xlu1 %v2846_v14, %s10087_s21  ;;  %v2938_v43 = vstv %s8099_s27  ;;  %v2915_v17 = vmul.f32 %v2914_v23, %v7615_v0  ;;  %v2975_v24 = vmul.f32 %v2974_v47, %v7615_v0  ;;  %v2940_v14 = vstv %s8115_s24  ;;  %s8255_s27 = sld [smem:[#allocation4 + $0xfd]]  ;;  %s8270_s24 = sld [smem:[#allocation4 + $0x103]] }
 0x267   : > { %v2998_v2 = vstv %s8117_s11  ;;  %v2954_v31 = vadd.f32 %v2953_v58, %v2951_v21  ;;  %v2917_v39 = vmul.f32 %v2916_v16, %v7634_v33  ;;  %v2939_v52 = vmul.f32 %v2938_v43, %v7615_v0  ;;  %s8279_s11 = sld [smem:[#allocation4 + $0x254]] }
 0x268   : > { %v8162_v25 = vpop.permute.xlu0 %2154  ;;  %v8164_v53 = vpop.permute.xlu1 %2118  ;;  %v2962_v32 = vstv %s8123_s16  ;;  %v2977_v21 = vmul.f32 %v2976_v28, %v7634_v33  ;;  %v3000_v23 = vstv %s8132_s5  ;;  %v2941_v47 = vmul.f32 %v2940_v14, %v7634_v33  ;;  %s8281_s16 = sld [smem:[#allocation4 + $0x261]]  ;;  %s8288_s5 = sld [smem:[#allocation4 + $0x25a]] }
 0x269   : > { %10188 = vst [vmem:[#allocation126_spill] sm:$0xff] %v8162_v25  ;;  %10189 = vst [vmem:[#allocation127_spill] sm:$0xff] %v8164_v53  ;;  %v3022_v16 = vstv %s8143_s0  ;;  %v2963_v43 = vmul.f32 %v2962_v32, %v7615_v0  ;;  %v3001_v28 = vmul.f32 %v3000_v23, %v7634_v33  ;;  %v3024_v14 = vstv %s8153_s18  ;;  %s8297_s0 = sld [smem:[#allocation4 + $0x105]]  ;;  %s8309_s18 = sld [smem:[#allocation4 + $0x256]] }
 0x26a   : > { %2908 = vrot.lane.b32.xlu0 %v2906_v46, %s5261_s30  ;;  %2872 = vrot.lane.b32.xlu1 %v2870_v18, %s10087_s21  ;;  %v8192_v46 = vadd.f32 %v7115_v12, %v1069_v13  ;;  %v1117_v18 = vadd.f32 %v7117_v55, %v8021_v36  ;;  %v2999_v12 = vmul.f32 %v2998_v2, %v7615_v0  ;;  %v2964_v13 = vstv %s8141_s4  ;;  %s8295_s4 = sld [smem:[#allocation4 + $0xff]] }
 0x26b   : > { %v2918_v55 = vadd.f32 %v2917_v39, %v2915_v17  ;;  %v2978_v36 = vadd.f32 %v2977_v21, %v2975_v24  ;;  %v2942_v58 = vadd.f32 %v2941_v47, %v2939_v52  ;;  %v2986_v2 = vstv %s8155_s1  ;;  %s8315_s1 = sld [smem:[#allocation4 + $0x25c]] }
 0x26c   : > { %v8196_v60 = vpop.permute.xlu0 %2178  ;;  %v8198_v9 = vpop.permute.xlu1 %2142  ;;  %v3023_v17 = vmul.f32 %v3022_v16, %v7615_v0  ;;  %v2988_v24 = vstv %s8168_s14  ;;  %v3046_v39 = vstv %s8170_s2  ;;  %v8235_v52 = vadd.f32 %v7140_v59, %v1093_v41  ;;  %v8247_v41 = vld [vmem:[#allocation2 + $0x5] sm:$0xff]  ;;  %s8326_s14 = sld [smem:[#allocation4 + $0x10c]]  ;;  %s8334_s2 = sld [smem:[#allocation4 + $0x10b]] }
 0x26d   : > { %10190 = vst [vmem:[#allocation128_spill] sm:$0xff] %v8196_v60  ;;  %10191 = vst [vmem:[#allocation129_spill] sm:$0xff] %v8198_v9  ;;  %v1141_v32 = vadd.f32 %v7142_v26, %v8068_v10  ;;  %v3002_v21 = vadd.f32 %v3001_v28, %v2999_v12  ;;  %v3048_v23 = vstv %s8174_s28  ;;  %v2987_v16 = vmul.f32 %v2986_v2, %v7615_v0  ;;  %s8346_s28 = sld [smem:[#allocation4 + $0x263]] }
 0x26e   : > { %2932 = vrot.lane.b32.xlu0 %v2930_v54, %s5261_s30  ;;  %2896 = vrot.lane.b32.xlu1 %v2894_v56, %s10087_s21  ;;  %v2965_v56 = vmul.f32 %v2964_v13, %v7634_v33  ;;  %v3025_v13 = vmul.f32 %v3024_v14, %v7634_v33  ;;  %v3010_v59 = vstv %s8182_s25  ;;  %v2989_v26 = vmul.f32 %v2988_v24, %v7634_v33  ;;  %s8348_s25 = sld [smem:[#allocation4 + $0x262]] }
 0x26f   : > { %v3047_v10 = vmul.f32 %v3046_v39, %v7615_v0  ;;  %v3128_v12 = vstv %s8187_s3  ;;  %v3034_v28 = vstv %s8189_s26  ;;  %v3049_v2 = vmul.f32 %v3048_v23, %v7634_v33  ;;  %s8356_s3 = sld [smem:[#allocation4 + $0x112]]  ;;  %s8358_s26 = sld [smem:[#allocation4 + $0x100]] }
 0x270   : > { %v8222_v9 = vpop.permute.xlu0 %2202  ;;  %v8224_v54 = vpop.permute.xlu1 %2166  ;;  %v2966_v47 = vadd.f32 %v2965_v56, %v2963_v43  ;;  %v8263_v14 = vadd.f32 %v3025_v13, %v3023_v17  ;;  %v3012_v56 = vstv %s8202_s12  ;;  %v3130_v24 = vstv %s8204_s17  ;;  %s8368_s12 = sld [smem:[#allocation4 + $0x269]]  ;;  %s8374_s17 = sld [smem:[#allocation4 + $0x257]] }
 0x271   : > { %10192 = vst [vmem:[#allocation130_spill] sm:$0xff] %v8222_v9  ;;  %10193 = vst [vmem:[#allocation131_spill] sm:$0xff] %v8224_v54  ;;  %v8273_v39 = vadd.f32 %v7163_v35, %v1117_v18  ;;  %v1165_v54 = vadd.f32 %v7165_v29, %v8102_v45  ;;  %v3036_v17 = vstv %s8210_s7  ;;  %v2990_v23 = vadd.f32 %v2989_v26, %v2987_v16  ;;  %s8385_s7 = sld [smem:[#allocation4 + $0x106]] }
 0x272   : > { %2956 = vrot.lane.b32.xlu0 %v2954_v31, %s5261_s30  ;;  %2920 = vrot.lane.b32.xlu1 %v2918_v55, %s5261_s30  ;;  %v8257_v31 = vld [vmem:[#allocation3 + $0x5] sm:$0xff]  ;;  %v3129_v35 = vmul.f32 %v3128_v12, %v8247_v41  ;;  %v3035_v18 = vmul.f32 %v3034_v28, %v7615_v0  ;;  %v3152_v13 = vstv %s8215_s15  ;;  %v8290_v29 = vadd.f32 %v3049_v2, %v3047_v10  ;;  %s8394_s15 = sld [smem:[#allocation4 + $0x25d]] }
 0x273   : > { %v3013_v45 = vmul.f32 %v3012_v56, %v7634_v33  ;;  %v3037_v10 = vmul.f32 %v3036_v17, %v7634_v33  ;;  %v3154_v12 = vstv %s8230_s13  ;;  %v3060_v28 = vstv %s8232_s19  ;;  %v10198_v2 = vld [vmem:[#allocation68_spill] sm:$0xff]  ;;  %s8406_s13 = sld [smem:[#allocation4 + $0x268]]  ;;  %s8408_s19 = sld [smem:[#allocation4 + $0xc4]] }
 0x274   : > { %v8259_v55 = vpop.permute.xlu0 %2226  ;;  %v8261_v43 = vpop.permute.xlu1 %2190  ;;  %v1189_v56 = vadd.f32 %v10198_v2, %v8135_v8  ;;  %v3153_v9 = vmul.f32 %v3152_v13, %v8247_v41  ;;  %v8329_v13 = vld [vmem:[#allocation3 + $0x4] sm:$0xff]  ;;  %v3212_v2 = vstv %s8270_s24  ;;  %v3298_v53 = vstv %s8281_s16  ;;  %s8462_s24 = sld [smem:[#allocation4 + $0x258]]  ;;  %s8471_s16 = sld [smem:[#allocation4 + $0x119]] }
 0x275   : > { %10194 = vst [vmem:[#allocation132_spill] sm:$0xff] %v8259_v55  ;;  %v3011_v55 = vmul.f32 %v3010_v59, %v7615_v0  ;;  %v3131_v59 = vmul.f32 %v3130_v24, %v8257_v31  ;;  %v8321_v17 = vadd.f32 %v3037_v10, %v3035_v18  ;;  %v10199_v18 = vld [vmem:[#allocation69_spill] sm:$0xff]  ;;  %v3164_v25 = vstv %s8295_s4  ;;  %s8484_s4 = sld [smem:[#allocation4 + $0x270]] }
 0x276   : > { %2980 = vrot.lane.b32.xlu0 %v2978_v36, %s5261_s30  ;;  %2944 = vrot.lane.b32.xlu1 %v2942_v58, %s5261_s30  ;;  %v3058_v36 = vstv %s8220_s6  ;;  %v10195_v58 = vld [vmem:[#allocation77_spill] sm:$0xff]  ;;  %v3236_v51 = vstv %s8297_s0  ;;  %s8396_s6 = sld [smem:[#allocation4 + $0x111]]  ;;  %s8493_s0 = sld [smem:[#allocation4 + $0x107]] }
 0x277   : > { %v8300_v16 = vadd.f32 %v10195_v58, %v1141_v32  ;;  %v3014_v24 = vadd.f32 %v3013_v45, %v3011_v55  ;;  %v3224_v32 = vstv %s8240_s8  ;;  %v8319_v33 = vadd.f32 %v3131_v59, %v3129_v35  ;;  %v8323_v58 = vld [vmem:[#allocation2 + $0x4] sm:$0xff]  ;;  %s8426_s8 = sld [smem:[#allocation4 + $0x21b]] }
 0x278   : > { %v8302_v26 = vpop.permute.xlu0 %2250  ;;  %v8304_v0 = vpop.permute.xlu1 %2214  ;;  %v3059_v8 = vmul.f32 %v8323_v58, %v3058_v36  ;;  %v3155_v55 = vmul.f32 %v3154_v12, %v8257_v31  ;;  %v3140_v35 = vstv %s8255_s27  ;;  %v8337_v45 = vadd.f32 %v10199_v18, %v1165_v54  ;;  %s8445_s27 = sld [smem:[#allocation4 + $0x26a]] }
 0x279   : > { %10196 = vst [vmem:[#allocation77_spill] sm:$0xff] %v8302_v26  ;;  %10197 = vst [vmem:[#allocation133_spill] sm:$0xff] %v8304_v0  ;;  %v3225_v10 = vmul.f32 %v3224_v32, %v8247_v41  ;;  %v3296_v12 = vstv %s8268_s10  ;;  %v3142_v18 = vstv %s8279_s11  ;;  %v1237_v0 = vadd.f32 %v10205_v34, %v8192_v46  ;;  %s8447_s10 = sld [smem:[#allocation4 + $0x101]]  ;;  %s8464_s11 = sld [smem:[#allocation4 + $0xc6]] }
 0x27a   : > { %3004 = vrot.lane.b32.xlu0 %v3002_v21, %s5262_s23  ;;  %2968 = vrot.lane.b32.xlu1 %v2966_v47, %s5261_s30  ;;  %v3061_v21 = vmul.f32 %v8329_v13, %v3060_v28  ;;  %v3226_v47 = vstv %s8253_s20  ;;  %v10201_v28 = vld [vmem:[#allocation74_spill] sm:$0xff]  ;;  %v8352_v54 = vadd.f32 %v3155_v55, %v3153_v9  ;;  %v3214_v9 = vstv %s8288_s5  ;;  %s8433_s20 = sld [smem:[#allocation4 + $0x113]]  ;;  %s8482_s5 = sld [smem:[#allocation4 + $0x21d]] }
 0x27b   : > { %v1213_v26 = vadd.f32 %v10201_v28, %v8158_v62  ;;  %v3141_v62 = vmul.f32 %v3140_v35, %v8247_v41  ;;  %v3297_v55 = vmul.f32 %v3296_v12, %v8247_v41  ;;  %v3213_v28 = vmul.f32 %v3212_v2, %v8247_v41  ;;  %v10204_v12 = vld [vmem:[#allocation76_spill] sm:$0xff] }
 0x27c   : > { %v8339_v59 = vpop.permute.xlu0 %2274  ;;  %v8341_v36 = vpop.permute.xlu1 %2238  ;;  %v8363_v32 = vadd.f32 %v3061_v21, %v3059_v8  ;;  %v3143_v21 = vmul.f32 %v3142_v18, %v8257_v31  ;;  %v3166_v35 = vstv %s8309_s18  ;;  %v8388_v2 = vadd.f32 %v10204_v12, %v1189_v56  ;;  %v10206_v18 = vld [vmem:[#allocation70_spill] sm:$0xff]  ;;  %s8505_s18 = sld [smem:[#allocation4 + $0xc8]] }
 0x27d   : > { %10200 = vst [vmem:[#allocation68_spill] sm:$0xff] %v8341_v36  ;;  %v3227_v36 = vmul.f32 %v3226_v47, %v8257_v31  ;;  %v3299_v47 = vmul.f32 %v3298_v53, %v8257_v31  ;;  %v3165_v56 = vmul.f32 %v3164_v25, %v8247_v41  ;;  %v3237_v34 = vmul.f32 %v3236_v51, %v8247_v41 }
 0x27e   : > { %3028 = vrot.lane.b32.xlu0 %v8263_v14, %s5262_s23  ;;  %2992 = vrot.lane.b32.xlu1 %v2990_v23, %s5262_s23  ;;  %v8401_v53 = vadd.f32 %v3143_v21, %v3141_v62  ;;  %v3320_v46 = vstv %s8326_s14  ;;  %v8417_v62 = vadd.f32 %v10206_v18, %v1213_v26  ;;  %v3322_v21 = vstv %s8346_s28  ;;  %s8522_s14 = sld [smem:[#allocation4 + $0x21f]]  ;;  %s8533_s28 = sld [smem:[#allocation4 + $0x108]] }
 0x27f   : > { %v8380_v8 = vadd.f32 %v3227_v36, %v3225_v10  ;;  %v8410_v36 = vadd.f32 %v3299_v47, %v3297_v55  ;;  %v3308_v10 = vstv %s8334_s2  ;;  %v3310_v12 = vstv %s8348_s25  ;;  %v10209_v55 = vld [vmem:[#allocation71_spill] sm:$0xff]  ;;  %s8524_s2 = sld [smem:[#allocation4 + $0xc5]]  ;;  %s8544_s25 = sld [smem:[#allocation4 + $0x21c]] }
 0x280   : > { %v8376_v14 = vpop.permute.xlu0 %2298  ;;  %v8378_v23 = vpop.permute.xlu1 %2262  ;;  %v3392_v47 = vstv %s8356_s3  ;;  %v3176_v26 = vstv %s8358_s26  ;;  %v3394_v18 = vstv %s8368_s12  ;;  %v3248_v60 = vstv %s8385_s7  ;;  %s8551_s3 = sld [smem:[#allocation4 + $0x25f]]  ;;  %s8553_s26 = sld [smem:[#allocation4 + $0x118]] }
 0x281   : > { %10202 = vst [vmem:[#allocation69_spill] sm:$0xff] %v8376_v14  ;;  %10203 = vst [vmem:[#allocation74_spill] sm:$0xff] %v8378_v23  ;;  %v3215_v14 = vmul.f32 %v3214_v9, %v8257_v31  ;;  %v3238_v23 = vstv %s8315_s1  ;;  %s8511_s1 = sld [smem:[#allocation4 + $0x25e]]  ;;  %s8570_s12 = sld [smem:[#allocation4 + $0x26f]] }
 0x282   : > { %3052 = vrot.lane.b32.xlu0 %v8290_v29, %s5262_s23  ;;  %3016 = vrot.lane.b32.xlu1 %v3014_v24, %s5262_s23  ;;  %v3167_v24 = vmul.f32 %v3166_v35, %v8257_v31  ;;  %v3239_v9 = vmul.f32 %v3238_v23, %v8257_v31  ;;  %s8585_s7 = sld [smem:[#allocation4 + $0x221]] }
 0x283   : > { %v8412_v29 = vadd.f32 %v3215_v14, %v3213_v28  ;;  %v1261_v28 = vadd.f32 %v10209_v55, %v8235_v52  ;;  %v3321_v14 = vmul.f32 %v3320_v46, %v8247_v41  ;;  %v3309_v52 = vmul.f32 %v3308_v10, %v8247_v41  ;;  %v10210_v46 = vld [vmem:[#allocation78_spill] sm:$0xff] }
 0x284   : > { %v8419_v25 = vpop.permute.xlu0 %2322  ;;  %v8421_v51 = vpop.permute.xlu1 %2286  ;;  %v8439_v23 = vadd.f32 %v3167_v24, %v3165_v56  ;;  %v8441_v35 = vadd.f32 %v3239_v9, %v3237_v34  ;;  %v1321_v55 = vadd.f32 %v10210_v46, %v1237_v0  ;;  %v10211_v56 = vld [vmem:[#allocation72_spill] sm:$0xff]  ;;  %v3393_v9 = vmul.f32 %v3392_v47, %v8247_v41 }
 0x285   : > { %10207 = vst [vmem:[#allocation76_spill] sm:$0xff] %v8419_v25  ;;  %10208 = vst [vmem:[#allocation75_spill] sm:$0xff] %v8421_v51  ;;  %v3178_v51 = vstv %s8374_s17  ;;  %v1285_v34 = vadd.f32 %v10211_v56, %v8273_v39  ;;  %v3177_v25 = vmul.f32 %v3176_v26, %v8247_v41  ;;  %v3250_v39 = vstv %s8394_s15  ;;  %v10215_v56 = vld [vmem:[#allocation79_spill] sm:$0xff]  ;;  %s8572_s17 = sld [smem:[#allocation4 + $0xca]]  ;;  %s8587_s15 = sld [smem:[#allocation4 + $0xc7]] }
 0x286   : > { %3134 = vrot.lane.b32.xlu0 %v8319_v33, %s10107_s29  ;;  %3040 = vrot.lane.b32.xlu1 %v8321_v17, %s5262_s23  ;;  %v3323_v33 = vmul.f32 %v3322_v21, %v8257_v31  ;;  %v3311_v17 = vmul.f32 %v3310_v12, %v8257_v31  ;;  %v3395_v21 = vmul.f32 %v3394_v18, %v8257_v31  ;;  %v3380_v12 = vstv %s8396_s6  ;;  %v10214_v18 = vld [vmem:[#allocation73_spill] sm:$0xff]  ;;  %s8594_s6 = sld [smem:[#allocation4 + $0x21e]] }
 0x287   : > { %v3179_v26 = vmul.f32 %v3178_v51, %v8257_v31  ;;  %v3382_v46 = vstv %s8406_s13  ;;  %s8605_s13 = sld [smem:[#allocation4 + $0x10e]] }
 0x288   : > { %v8455_v24 = vpop.permute.xlu0 %2346  ;;  %v8457_v10 = vpop.permute.xlu1 %2310  ;;  %v8466_v0 = vadd.f32 %v3323_v33, %v3321_v14  ;;  %v8477_v47 = vadd.f32 %v3311_v17, %v3309_v52  ;;  %v2510_v14 = vstv %s8408_s19  ;;  %v1345_v33 = vadd.f32 %v10214_v18, %v1261_v28  ;;  %s8612_s19 = sld [smem:[#allocation4 + $0x102]] }
 0x289   : > { %10212 = vst [vmem:[#allocation70_spill] sm:$0xff] %v8455_v24  ;;  %10213 = vst [vmem:[#allocation71_spill] sm:$0xff] %v8457_v10  ;;  %v8490_v10 = vadd.f32 %v7788_v37, %v1321_v55  ;;  %v8499_v17 = vadd.f32 %v3395_v21, %v3393_v9  ;;  %v8501_v24 = vadd.f32 %v3179_v26, %v3177_v25  ;;  %v3404_v18 = vstv %s8433_s20  ;;  %v10219_v9 = vld [vmem:[#allocation81_spill] sm:$0xff]  ;;  %s8627_s20 = sld [smem:[#allocation4 + $0x265]] }
 0x28a   : > { %3158 = vrot.lane.b32.xlu0 %v8352_v54, %s10107_s29  ;;  %3064 = vrot.lane.b32.xlu1 %v8363_v32, %s5262_s23  ;;  %v1309_v54 = vadd.f32 %v10215_v56, %v8300_v16  ;;  %v3249_v32 = vmul.f32 %v3248_v60, %v8247_v41  ;;  %v3381_v28 = vmul.f32 %v3380_v12, %v8247_v41  ;;  %v2512_v16 = vstv %s8426_s8  ;;  %v10218_v56 = vld [vmem:[#allocation80_spill] sm:$0xff]  ;;  %v10220_v12 = vld [vmem:[#allocation106_spill] sm:$0xff]  ;;  %s8614_s8 = sld [smem:[#allocation4 + $0xc9]] }
 0x28b   : > { %v3251_v37 = vmul.f32 %v3250_v39, %v8257_v31  ;;  %v3383_v60 = vmul.f32 %v3382_v46, %v8257_v31  ;;  %v2511_v55 = vmul.f32 %v8323_v58, %v2510_v14  ;;  %v1333_v25 = vadd.f32 %v10219_v9, %v8337_v45 }
 0x28c   : > { %v8495_v51 = vpop.permute.xlu0 %2370  ;;  %v8497_v52 = vpop.permute.xlu1 %2334  ;;  %v3406_v21 = vstv %s8445_s27  ;;  %v3188_v39 = vstv %s8447_s10  ;;  %v1391_v45 = vadd.f32 %v7724_v4, %v1309_v54  ;;  %v2526_v9 = vstv %s8464_s11  ;;  %s8629_s27 = sld [smem:[#allocation4 + $0x259]]  ;;  %s8635_s10 = sld [smem:[#allocation4 + $0x220]] }
 0x28d   : > { %10216 = vst [vmem:[#allocation78_spill] sm:$0xff] %v8495_v51  ;;  %10217 = vst [vmem:[#allocation72_spill] sm:$0xff] %v8497_v52  ;;  %v1369_v52 = vadd.f32 %v10218_v56, %v1285_v34  ;;  %v8527_v34 = vadd.f32 %v10220_v12, %v1345_v33  ;;  %v8530_v26 = vadd.f32 %v3251_v37, %v3249_v32  ;;  %v3190_v33 = vstv %s8462_s24  ;;  %s8645_s24 = sld [smem:[#allocation4 + $0x11f]]  ;;  %s8652_s11 = sld [smem:[#allocation4 + $0x10d]] }
 0x28e   : > { %3230 = vrot.lane.b32.xlu0 %v8380_v8, %s10110_s9  ;;  %3146 = vrot.lane.b32.xlu1 %v8401_v53, %s10107_s29  ;;  %v2513_v8 = vmul.f32 %v8329_v13, %v2512_v16  ;;  %v8539_v14 = vadd.f32 %v3383_v60, %v3381_v28  ;;  %v3405_v56 = vmul.f32 %v3404_v18, %v8247_v41  ;;  %v3476_v16 = vstv %s8471_s16  ;;  %v10223_v18 = vld [vmem:[#allocation83_spill] sm:$0xff]  ;;  %s8662_s16 = sld [smem:[#allocation4 + $0x276]] }
 0x28f   : > { %v3407_v54 = vmul.f32 %v3406_v21, %v8257_v31  ;;  %v3189_v32 = vmul.f32 %v3188_v39, %v8247_v41  ;;  %v8556_v28 = vadd.f32 %v7686_v5, %v1369_v52  ;;  %v1407_v37 = vadd.f32 %v7688_v22, %v1333_v25  ;;  %v10224_v22 = vld [vmem:[#allocation82_spill] sm:$0xff] }
 0x290   : > { %v8535_v46 = vpop.permute.xlu0 %2394  ;;  %v8537_v53 = vpop.permute.xlu1 %2358  ;;  %v8546_v4 = vadd.f32 %v2513_v8, %v2511_v55  ;;  %v2528_v60 = vstv %s8482_s5  ;;  %v3478_v55 = vstv %s8484_s4  ;;  %v1357_v21 = vadd.f32 %v10223_v18, %v8388_v2  ;;  %s8664_s5 = sld [smem:[#allocation4 + $0x264]]  ;;  %s8674_s4 = sld [smem:[#allocation4 + $0x109]] }
 0x291   : > { %10221 = vst [vmem:[#allocation73_spill] sm:$0xff] %v8535_v46  ;;  %v3191_v39 = vmul.f32 %v3190_v33, %v8257_v31  ;;  %v2527_v5 = vmul.f32 %v8323_v58, %v2526_v9  ;;  %v3260_v52 = vstv %s8493_s0  ;;  %v8581_v2 = vadd.f32 %v3407_v54, %v3405_v56  ;;  %v10226_v56 = vld [vmem:[#allocation85_spill] sm:$0xff]  ;;  %s8685_s0 = sld [smem:[#allocation4 + $0x11a]] }
 0x292   : > { %10222 = vst [vmem:[#allocation79_spill] sm:$0xff] %v8546_v4  ;;  %3302 = vrot.lane.b32.xlu0 %v8410_v36, %s10111_s22  ;;  %3218 = vrot.lane.b32.xlu1 %v8412_v29, %s10110_s9  ;;  %v8575_v36 = vadd.f32 %v10224_v22, %v1391_v45  ;;  %v3477_v12 = vmul.f32 %v3476_v16, %v8247_v41  ;;  %v2542_v8 = vstv %s8505_s18  ;;  %v3262_v18 = vstv %s8511_s1  ;;  %s8691_s18 = sld [smem:[#allocation4 + $0x260]]  ;;  %s8693_s1 = sld [smem:[#allocation4 + $0x271]]  ;;  %v10238_v4 = vld [vmem:[#allocation89_spill] sm:$0xff] }
 0x293   : > { %v8589_v33 = vadd.f32 %v3191_v39, %v3189_v32  ;;  %v2529_v45 = vmul.f32 %v8329_v13, %v2528_v60  ;;  %v3479_v9 = vmul.f32 %v3478_v55, %v8257_v31  ;;  %v1381_v54 = vadd.f32 %v10226_v56, %v8417_v62 }
 0x294   : > { %v8577_v25 = vpop.permute.xlu0 %2418  ;;  %v8579_v29 = vpop.permute.xlu1 %2382  ;;  %v3261_v32 = vmul.f32 %v3260_v52, %v8247_v41  ;;  %v2544_v16 = vstv %s8522_s14  ;;  %v2518_v39 = vstv %s8524_s2  ;;  %v1423_v60 = vadd.f32 %v7753_v61, %v1357_v21  ;;  %s8704_s14 = sld [smem:[#allocation4 + $0x114]]  ;;  %s8706_s2 = sld [smem:[#allocation4 + $0x120]] }
 0x295   : > { %10225 = vst [vmem:[#allocation80_spill] sm:$0xff] %v8577_v25  ;;  %v8608_v55 = vadd.f32 %v2529_v45, %v2527_v5  ;;  %v2543_v62 = vmul.f32 %v8323_v58, %v2542_v8  ;;  %v3272_v22 = vstv %s8533_s28  ;;  %v8623_v25 = vadd.f32 %v3479_v9, %v3477_v12  ;;  %s8715_s28 = sld [smem:[#allocation4 + $0x26b]] }
 0x296   : > { %3170 = vrot.lane.b32.xlu0 %v8439_v23, %s10107_s29  ;;  %3242 = vrot.lane.b32.xlu1 %v8441_v35, %s10110_s9  ;;  %v10228_v23 = vld [vmem:[#allocation84_spill] sm:$0xff]  ;;  %v3263_v61 = vmul.f32 %v3262_v18, %v8257_v31  ;;  %v2520_v21 = vstv %s8544_s25  ;;  %v2545_v5 = vmul.f32 %v8329_v13, %v2544_v16  ;;  %v3274_v8 = vstv %s8551_s3  ;;  %s8726_s25 = sld [smem:[#allocation4 + $0x277]]  ;;  %s8733_s3 = sld [smem:[#allocation4 + $0x121]] }
 0x297   : > { %10227 = vst [vmem:[#allocation81_spill] sm:$0xff] %v8608_v55  ;;  %v8617_v35 = vadd.f32 %v10228_v23, %v1407_v37  ;;  %v2519_v37 = vmul.f32 %v8323_v58, %v2518_v39  ;;  %v3464_v45 = vstv %s8553_s26  ;;  %v1439_v12 = vadd.f32 %v7786_v20, %v1381_v54  ;;  %s8735_s26 = sld [smem:[#allocation4 + $0x10f]] }
 0x298   : > { %v8619_v52 = vpop.permute.xlu0 %2442  ;;  %v8621_v56 = vpop.permute.xlu1 %2406  ;;  %v8642_v9 = vadd.f32 %v3263_v61, %v3261_v32  ;;  %v3273_v18 = vmul.f32 %v3272_v22, %v8247_v41  ;;  %v8647_v16 = vadd.f32 %v2545_v5, %v2543_v62  ;;  %v2521_v39 = vmul.f32 %v8329_v13, %v2520_v21  ;;  %v10232_v62 = vld [vmem:[#allocation86_spill] sm:$0xff]  ;;  %v10233_v5 = vld [vmem:[#allocation87_spill] sm:$0xff] }
 0x299   : > { %10229 = vst [vmem:[#allocation106_spill] sm:$0xff] %v8621_v56  ;;  %v3466_v23 = vstv %s8570_s12  ;;  %v2558_v20 = vstv %s8572_s17  ;;  %v3465_v32 = vmul.f32 %v3464_v45, %v8247_v41  ;;  %v2560_v22 = vstv %s8585_s7  ;;  %s8747_s12 = sld [smem:[#allocation4 + $0x278]]  ;;  %s8755_s17 = sld [smem:[#allocation4 + $0x266]] }
 0x29a   : > { %3326 = vrot.lane.b32.xlu0 %v8466_v0, %s10111_s22  ;;  %3314 = vrot.lane.b32.xlu1 %v8477_v47, %s10111_s22  ;;  %10230 = vst [vmem:[#allocation83_spill] sm:$0xff] %v8647_v16  ;;  %v3275_v47 = vmul.f32 %v3274_v8, %v8257_v31  ;;  %v2534_v61 = vstv %s8587_s15  ;;  %v8667_v21 = vadd.f32 %v10232_v62, %v1423_v60  ;;  %v2536_v8 = vstv %s8594_s6  ;;  %s8767_s7 = sld [smem:[#allocation4 + $0x116]]  ;;  %s8769_s15 = sld [smem:[#allocation4 + $0x115]] }
 0x29b   : > { %v1463_v16 = vadd.f32 %v10233_v5, %v8490_v10  ;;  %v8671_v55 = vadd.f32 %v2521_v39, %v2519_v37  ;;  %v3467_v60 = vmul.f32 %v3466_v23, %v8257_v31  ;;  %v2559_v62 = vmul.f32 %v8323_v58, %v2558_v20  ;;  %s8775_s6 = sld [smem:[#allocation4 + $0x11c]] }
 0x29c   : > { %v8654_v54 = vpop.permute.xlu0 %2466  ;;  %v8656_v0 = vpop.permute.xlu1 %2430  ;;  %v8680_v45 = vadd.f32 %v3275_v47, %v3273_v18  ;;  %v3344_v10 = vstv %s8605_s13  ;;  %v2561_v37 = vmul.f32 %v8329_v13, %v2560_v22  ;;  %v2535_v39 = vmul.f32 %v8323_v58, %v2534_v61  ;;  %v10237_v61 = vld [vmem:[#allocation88_spill] sm:$0xff]  ;;  %s8787_s13 = sld [smem:[#allocation4 + $0x26d]] }
 0x29d   : > { %10231 = vst [vmem:[#allocation82_spill] sm:$0xff] %v8656_v0  ;;  %10234 = vst [vmem:[#allocation85_spill] sm:$0xff] %v8671_v55  ;;  %v2550_v5 = vstv %s8614_s8  ;;  %v8699_v23 = vadd.f32 %v3467_v60, %v3465_v32  ;;  %v2537_v20 = vmul.f32 %v8329_v13, %v2536_v8  ;;  %v3346_v47 = vstv %s8627_s20  ;;  %s8797_s8 = sld [smem:[#allocation4 + $0x273]]  ;;  %s8808_s20 = sld [smem:[#allocation4 + $0x110]] }
 0x29e   : > { %3398 = vrot.lane.b32.xlu0 %v8499_v17, %s10087_s21  ;;  %3182 = vrot.lane.b32.xlu1 %v8501_v24, %s10107_s29  ;;  %v3200_v17 = vstv %s8612_s19  ;;  %v3202_v22 = vstv %s8629_s27  ;;  %v8709_v46 = vadd.f32 %v10237_v61, %v1439_v12  ;;  %v8721_v8 = vadd.f32 %v2561_v37, %v2559_v62  ;;  %s8789_s19 = sld [smem:[#allocation4 + $0x26c]]  ;;  %s8814_s27 = sld [smem:[#allocation4 + $0x267]] }
 0x29f   : > { %v2552_v32 = vstv %s8635_s10  ;;  %v3201_v12 = vmul.f32 %v3200_v17, %v8247_v41  ;;  %v2551_v60 = vmul.f32 %v8323_v58, %v2550_v5  ;;  %v3332_v61 = vstv %s8652_s11  ;;  %s8816_s10 = sld [smem:[#allocation4 + $0x12e]]  ;;  %s8837_s11 = sld [smem:[#allocation4 + $0x11b]] }
 0x2a0   : > { %v8695_v24 = vpop.permute.xlu0 %2490  ;;  %v8697_v18 = vpop.permute.xlu1 %2454  ;;  %10239 = vst [vmem:[#allocation87_spill] sm:$0xff] %v8721_v8  ;;  %v3550_v17 = vstv %s8662_s16  ;;  %v3334_v5 = vstv %s8664_s5  ;;  %v3560_v8 = vstv %s8706_s2  ;;  %s8847_s16 = sld [smem:[#allocation4 + $0x272]]  ;;  %s8855_s5 = sld [smem:[#allocation4 + $0x11d]] }
 0x2a1   : > { %10235 = vst [vmem:[#allocation84_spill] sm:$0xff] %v8695_v24  ;;  %10236 = vst [vmem:[#allocation86_spill] sm:$0xff] %v8697_v18  ;;  %v1487_v24 = vadd.f32 %v10238_v4, %v8527_v34  ;;  %v3345_v18 = vmul.f32 %v3344_v10, %v8247_v41  ;;  %v3548_v34 = vstv %s8645_s24  ;;  %v8728_v4 = vadd.f32 %v2537_v20, %v2535_v39  ;;  %v10244_v20 = vld [vmem:[#allocation91_spill] sm:$0xff]  ;;  %s8829_s24 = sld [smem:[#allocation4 + $0x285]]  ;;  %s8892_s2 = sld [smem:[#allocation4 + $0x117]] }
 0x2a2   : > { %3254 = vrot.lane.b32.xlu0 %v8530_v26, %s10110_s9  ;;  %3386 = vrot.lane.b32.xlu1 %v8539_v14, %s10087_s21  ;;  %v3347_v10 = vmul.f32 %v3346_v47, %v8257_v31  ;;  %v3203_v26 = vmul.f32 %v3202_v22, %v8257_v31  ;;  %v10241_v14 = vld [vmem:[#allocation90_spill] sm:$0xff]  ;;  %v2553_v39 = vmul.f32 %v8329_v13, %v2552_v32 }
 0x2a3   : > { %10240 = vst [vmem:[#allocation88_spill] sm:$0xff] %v8728_v4  ;;  %v8738_v62 = vadd.f32 %v10241_v14, %v1463_v16  ;;  %v1511_v47 = vadd.f32 %v10244_v20, %v8556_v28  ;;  %v3549_v16 = vmul.f32 %v3548_v34, %v8247_v41  ;;  %v3284_v14 = vstv %s8674_s4  ;;  %s8857_s4 = sld [smem:[#allocation4 + $0x12d]] }
 0x2a4   : > { %v8740_v37 = vpop.permute.xlu0 %2572  ;;  %v8742_v58 = vpop.permute.xlu1 %2478  ;;  %v8751_v22 = vadd.f32 %v3347_v10, %v3345_v18  ;;  %v8761_v13 = vadd.f32 %v3203_v26, %v3201_v12  ;;  %v8763_v32 = vadd.f32 %v2553_v39, %v2551_v60  ;;  %v3333_v28 = vmul.f32 %v3332_v61, %v8247_v41  ;;  %v10246_v12 = vld [vmem:[#allocation92_spill] sm:$0xff] }
 0x2a5   : > { %10242 = vst [vmem:[#allocation89_spill] sm:$0xff] %v8740_v37  ;;  %10243 = vst [vmem:[#allocation90_spill] sm:$0xff] %v8742_v58  ;;  %v3488_v18 = vstv %s8685_s0  ;;  %v3551_v34 = vmul.f32 %v3550_v17, %v8257_v31  ;;  %v3286_v10 = vstv %s8691_s18  ;;  %v8778_v26 = vadd.f32 %v10246_v12, %v1487_v24  ;;  %v10249_v17 = vld [vmem:[#allocation93_spill] sm:$0xff]  ;;  %s8869_s0 = sld [smem:[#allocation4 + $0x274]]  ;;  %s8871_s18 = sld [smem:[#allocation4 + $0x123]] }
 0x2a6   : > { %3410 = vrot.lane.b32.xlu0 %v8581_v2, %s10087_s21  ;;  %3194 = vrot.lane.b32.xlu1 %v8589_v33, %s10107_s29  ;;  %10245 = vst [vmem:[#allocation91_spill] sm:$0xff] %v8763_v32  ;;  %v3335_v2 = vmul.f32 %v3334_v5, %v8257_v31  ;;  %v3490_v33 = vstv %s8693_s1  ;;  %v3285_v39 = vmul.f32 %v3284_v14, %v8247_v41  ;;  %v3416_v20 = vstv %s8704_s14  ;;  %v10253_v32 = vld [vmem:[#allocation95_spill] sm:$0xff]  ;;  %s8878_s1 = sld [smem:[#allocation4 + $0x284]]  ;;  %s8880_s14 = sld [smem:[#allocation4 + $0x27a]] }
 0x2a7   : > { %v1535_v5 = vadd.f32 %v10249_v17, %v8575_v36  ;;  %v8793_v24 = vadd.f32 %v3551_v34, %v3549_v16  ;;  %v3489_v12 = vmul.f32 %v3488_v18, %v8247_v41  ;;  %v3491_v36 = vmul.f32 %v3490_v33, %v8257_v31 }
 0x2a8   : > { %v8780_v60 = vpop.permute.xlu0 %2596  ;;  %v8782_v61 = vpop.permute.xlu1 %2502  ;;  %v8803_v14 = vadd.f32 %v3335_v2, %v3333_v28  ;;  %v3562_v16 = vstv %s8726_s25  ;;  %v3417_v18 = vmul.f32 %v3416_v20, %v8247_v41  ;;  %v3561_v34 = vmul.f32 %v3560_v8, %v8247_v41  ;;  %s8902_s25 = sld [smem:[#allocation4 + $0x26e]] }
 0x2a9   : > { %10247 = vst [vmem:[#allocation92_spill] sm:$0xff] %v8780_v60  ;;  %10248 = vst [vmem:[#allocation134_spill] sm:$0xff] %v8782_v61  ;;  %v3418_v60 = vstv %s8715_s28  ;;  %v3287_v61 = vmul.f32 %v3286_v10, %v8257_v31  ;;  %v3572_v17 = vstv %s8733_s3  ;;  %v3574_v8 = vstv %s8747_s12  ;;  %s8894_s28 = sld [smem:[#allocation4 + $0x134]]  ;;  %s8917_s3 = sld [smem:[#allocation4 + $0x28b]] }
 0x2aa   : > { %3482 = vrot.lane.b32.xlu0 %v8623_v25, %s5261_s30  ;;  %3266 = vrot.lane.b32.xlu1 %v8642_v9, %s10110_s9  ;;  %v3356_v25 = vstv %s8735_s26  ;;  %v10250_v9 = vld [vmem:[#allocation94_spill] sm:$0xff]  ;;  %v3419_v20 = vmul.f32 %v3418_v60, %v8257_v31  ;;  %v1559_v58 = vadd.f32 %v10253_v32, %v8617_v35  ;;  %v8833_v37 = vadd.f32 %v3491_v36, %v3489_v12  ;;  %s8934_s26 = sld [smem:[#allocation4 + $0x122]]  ;;  %s8942_s12 = sld [smem:[#allocation4 + $0x11e]] }
 0x2ab   : > { %v8819_v28 = vadd.f32 %v10250_v9, %v1511_v47  ;;  %v8825_v33 = vadd.f32 %v3287_v61, %v3285_v39  ;;  %v3563_v47 = vmul.f32 %v3562_v16, %v8257_v31  ;;  %v3358_v9 = vstv %s8755_s17  ;;  %s8944_s17 = sld [smem:[#allocation4 + $0x12f]] }
 0x2ac   : > { %v8821_v2 = vpop.permute.xlu0 %2620  ;;  %v8823_v10 = vpop.permute.xlu1 %2584  ;;  %v3573_v60 = vmul.f32 %v3572_v17, %v8247_v41  ;;  %v3357_v61 = vmul.f32 %v3356_v25, %v8247_v41  ;;  %v3440_v35 = vstv %s8767_s7  ;;  %v3428_v32 = vstv %s8769_s15  ;;  %s8955_s7 = sld [smem:[#allocation4 + $0x279]]  ;;  %s8957_s15 = sld [smem:[#allocation4 + $0x275]] }
 0x2ad   : > { %10251 = vst [vmem:[#allocation93_spill] sm:$0xff] %v8821_v2  ;;  %10252 = vst [vmem:[#allocation94_spill] sm:$0xff] %v8823_v10  ;;  %v8849_v39 = vadd.f32 %v3419_v20, %v3417_v18  ;;  %v8851_v12 = vadd.f32 %v3563_v47, %v3561_v34  ;;  %v3512_v36 = vstv %s8775_s6  ;;  %v3359_v18 = vmul.f32 %v3358_v9, %v8257_v31  ;;  %s8964_s6 = sld [smem:[#allocation4 + $0x286]] }
 0x2ae   : > { %3278 = vrot.lane.b32.xlu0 %v8680_v45, %s10110_s9  ;;  %3470 = vrot.lane.b32.xlu1 %v8699_v23, %s5261_s30  ;;  %v3575_v45 = vmul.f32 %v3574_v8, %v8257_v31  ;;  %v10254_v23 = vld [vmem:[#allocation96_spill] sm:$0xff]  ;;  %v3442_v34 = vstv %s8787_s13  ;;  %v3430_v20 = vstv %s8789_s19  ;;  %v10257_v8 = vld [vmem:[#allocation97_spill] sm:$0xff]  ;;  %v3441_v2 = vmul.f32 %v3440_v35, %v8247_v41  ;;  %s8974_s13 = sld [smem:[#allocation4 + $0x136]]  ;;  %s8976_s19 = sld [smem:[#allocation4 + $0x135]] }
 0x2af   : > { %v8860_v16 = vadd.f32 %v10254_v23, %v1535_v5  ;;  %v1583_v47 = vadd.f32 %v10257_v8, %v8667_v21  ;;  %v3429_v5 = vmul.f32 %v3428_v32, %v8247_v41  ;;  %v3514_v23 = vstv %s8797_s8  ;;  %v8896_v8 = vld [vmem:[#allocation2 + $0x6] sm:$0xff]  ;;  %s8983_s8 = sld [smem:[#allocation4 + $0x13c]] }
 0x2b0   : > { %v8862_v17 = vpop.permute.xlu0 %2644  ;;  %v8864_v25 = vpop.permute.xlu1 %2608  ;;  %v8886_v9 = vadd.f32 %v3575_v45, %v3573_v60  ;;  %v8888_v21 = vadd.f32 %v3359_v18, %v3357_v61  ;;  %v3513_v35 = vmul.f32 %v3512_v36, %v8247_v41  ;;  %v3368_v32 = vstv %s8808_s20  ;;  %v8904_v61 = vld [vmem:[#allocation3 + $0x6] sm:$0xff]  ;;  %v10258_v45 = vld [vmem:[#allocation98_spill] sm:$0xff]  ;;  %v10259_v18 = vld [vmem:[#allocation99_spill] sm:$0xff]  ;;  %s8996_s20 = sld [smem:[#allocation4 + $0x28d]] }
 0x2b1   : > { %10255 = vst [vmem:[#allocation95_spill] sm:$0xff] %v8862_v17  ;;  %10256 = vst [vmem:[#allocation96_spill] sm:$0xff] %v8864_v25  ;;  %v3443_v17 = vmul.f32 %v3442_v34, %v8257_v31  ;;  %v3702_v60 = vstv %s8816_s10  ;;  %v8907_v36 = vadd.f32 %v10258_v45, %v1559_v58  ;;  %v1607_v25 = vadd.f32 %v10259_v18, %v8709_v46  ;;  %s9005_s10 = sld [smem:[#allocation4 + $0x293]] }
 0x2b2   : > { %3350 = vrot.lane.b32.xlu0 %v8751_v22, %s10111_s22  ;;  %3206 = vrot.lane.b32.xlu1 %v8761_v13, %s10107_s29  ;;  %v3431_v22 = vmul.f32 %v3430_v20, %v8257_v31  ;;  %v3370_v13 = vstv %s8814_s27  ;;  %v3515_v34 = vmul.f32 %v3514_v23, %v8257_v31  ;;  %v3704_v20 = vstv %s8829_s24  ;;  %s8998_s27 = sld [smem:[#allocation4 + $0x28c]] }
 0x2b3   : > { %v8919_v51 = vadd.f32 %v3443_v17, %v3441_v2  ;;  %v3369_v58 = vmul.f32 %v3368_v32, %v8247_v41  ;;  %v3500_v45 = vstv %s8837_s11  ;;  %v3371_v23 = vmul.f32 %v3370_v13, %v8257_v31  ;;  %s9017_s24 = sld [smem:[#allocation4 + $0x124]]  ;;  %s9024_s11 = sld [smem:[#allocation4 + $0x27b]] }
 0x2b4   : > { %v8911_v4 = vpop.permute.xlu0 %2668  ;;  %v8913_v10 = vpop.permute.xlu1 %2632  ;;  %v8921_v56 = vadd.f32 %v3431_v22, %v3429_v5  ;;  %v8929_v46 = vadd.f32 %v3515_v34, %v3513_v35  ;;  %v3703_v2 = vmul.f32 %v3702_v60, %v8896_v8  ;;  %v3502_v17 = vstv %s8847_s16  ;;  %v10262_v5 = vld [vmem:[#allocation100_spill] sm:$0xff]  ;;  %v10263_v35 = vld [vmem:[#allocation101_spill] sm:$0xff]  ;;  %s9026_s16 = sld [smem:[#allocation4 + $0x130]] }
 0x2b5   : > { %10260 = vst [vmem:[#allocation97_spill] sm:$0xff] %v8911_v4  ;;  %10261 = vst [vmem:[#allocation98_spill] sm:$0xff] %v8913_v10  ;;  %v8937_v32 = vadd.f32 %v10262_v5, %v1583_v47  ;;  %v3524_v22 = vstv %s8855_s5  ;;  %v1631_v13 = vadd.f32 %v10263_v35, %v8738_v62  ;;  %v3501_v47 = vmul.f32 %v3500_v45, %v8247_v41  ;;  %s9039_s5 = sld [smem:[#allocation4 + $0x13b]] }
 0x2b6   : > { %3554 = vrot.lane.b32.xlu0 %v8793_v24, %s5262_s23  ;;  %3338 = vrot.lane.b32.xlu1 %v8803_v14, %s10111_s22  ;;  %v3705_v24 = vmul.f32 %v3704_v20, %v8904_v61  ;;  %v3690_v14 = vstv %s8857_s4  ;;  %v3526_v34 = vstv %s8869_s0  ;;  %v8959_v5 = vadd.f32 %v3371_v23, %v3369_v58  ;;  %s9047_s4 = sld [smem:[#allocation4 + $0x287]]  ;;  %s9057_s0 = sld [smem:[#allocation4 + $0x292]] }
 0x2b7   : > { %v3596_v20 = vstv %s8871_s18  ;;  %v3503_v10 = vmul.f32 %v3502_v17, %v8257_v31  ;;  %v3692_v62 = vstv %s8878_s1  ;;  %v3598_v35 = vstv %s8880_s14  ;;  %s9065_s18 = sld [smem:[#allocation4 + $0x13d]]  ;;  %s9067_s1 = sld [smem:[#allocation4 + $0x294]] }
 0x2b8   : > { %v8948_v60 = vpop.permute.xlu0 %2692  ;;  %v8950_v18 = vpop.permute.xlu1 %2656  ;;  %v3525_v45 = vmul.f32 %v3524_v22, %v8247_v41  ;;  %v3452_v58 = vstv %s8892_s2  ;;  %v3774_v23 = vstv %s8894_s28  ;;  %v8978_v17 = vadd.f32 %v3705_v24, %v3703_v2  ;;  %s9078_s14 = sld [smem:[#allocation4 + $0x125]]  ;;  %s9085_s2 = sld [smem:[#allocation4 + $0x27c]] }
 0x2b9   : > { %10264 = vst [vmem:[#allocation99_spill] sm:$0xff] %v8948_v60  ;;  %10265 = vst [vmem:[#allocation100_spill] sm:$0xff] %v8950_v18  ;;  %v3691_v18 = vmul.f32 %v3690_v14, %v8896_v8  ;;  %v3527_v60 = vmul.f32 %v3526_v34, %v8257_v31  ;;  %v3454_v4 = vstv %s8902_s25  ;;  %v8992_v0 = vadd.f32 %v3503_v10, %v3501_v47  ;;  %v10269_v34 = vld [vmem:[#allocation103_spill] sm:$0xff]  ;;  %s9101_s28 = sld [smem:[#allocation4 + $0x143]]  ;;  %s9112_s25 = sld [smem:[#allocation4 + $0x29a]] }
 0x2ba   : > { %3290 = vrot.lane.b32.xlu0 %v8825_v33, %s10110_s9  ;;  %3494 = vrot.lane.b32.xlu1 %v8833_v37, %s5261_s30  ;;  %v3597_v33 = vmul.f32 %v3596_v20, %v8247_v41  ;;  %v10266_v37 = vld [vmem:[#allocation102_spill] sm:$0xff]  ;;  %v3693_v2 = vmul.f32 %v3692_v62, %v8904_v61  ;;  %v3776_v24 = vstv %s8917_s3  ;;  %v3599_v20 = vmul.f32 %v3598_v35, %v8257_v31  ;;  %s9122_s3 = sld [smem:[#allocation4 + $0x131]] }
 0x2bb   : > { %v8986_v22 = vadd.f32 %v10266_v37, %v1607_v25  ;;  %v1655_v25 = vadd.f32 %v10269_v34, %v8778_v26  ;;  %v3453_v37 = vmul.f32 %v3452_v58, %v8247_v41  ;;  %v9011_v10 = vadd.f32 %v3527_v60, %v3525_v45 }
 0x2bc   : > { %v8988_v55 = vpop.permute.xlu0 %2716  ;;  %v8990_v14 = vpop.permute.xlu1 %2680  ;;  %v9013_v47 = vadd.f32 %v3693_v2, %v3691_v18  ;;  %v3455_v26 = vmul.f32 %v3454_v4, %v8257_v31  ;;  %v3584_v62 = vstv %s8934_s26  ;;  %v9019_v35 = vadd.f32 %v3599_v20, %v3597_v33  ;;  %v10271_v18 = vld [vmem:[#allocation105_spill] sm:$0xff]  ;;  %s9140_s26 = sld [smem:[#allocation4 + $0x288]] }
 0x2bd   : > { %10267 = vst [vmem:[#allocation101_spill] sm:$0xff] %v8988_v55  ;;  %10268 = vst [vmem:[#allocation102_spill] sm:$0xff] %v8990_v14  ;;  %v3775_v14 = vmul.f32 %v3774_v23, %v8896_v8  ;;  %v3777_v58 = vmul.f32 %v3776_v24, %v8904_v61  ;;  %v3714_v23 = vstv %s8944_s17  ;;  %v1679_v4 = vadd.f32 %v10271_v18, %v8819_v28  ;;  %s9153_s17 = sld [smem:[#allocation4 + $0x28e]] }
 0x2be   : > { %3422 = vrot.lane.b32.xlu0 %v8849_v39, %s10087_s21  ;;  %3566 = vrot.lane.b32.xlu1 %v8851_v12, %s5262_s23  ;;  %v3536_v39 = vstv %s8942_s12  ;;  %v10270_v12 = vld [vmem:[#allocation104_spill] sm:$0xff]  ;;  %v3586_v2 = vstv %s8955_s7  ;;  %v9041_v34 = vadd.f32 %v3455_v26, %v3453_v37  ;;  %v3715_v37 = vmul.f32 %v3714_v23, %v8896_v8  ;;  %s9142_s12 = sld [smem:[#allocation4 + $0x137]]  ;;  %s9168_s7 = sld [smem:[#allocation4 + $0x142]] }
 0x2bf   : > { %v9029_v60 = vadd.f32 %v10270_v12, %v1631_v13  ;;  %v3538_v24 = vstv %s8957_s15  ;;  %v9043_v20 = vadd.f32 %v3777_v58, %v3775_v14  ;;  %v3585_v13 = vmul.f32 %v3584_v62, %v8247_v41  ;;  %v10274_v62 = vld [vmem:[#allocation107_spill] sm:$0xff]  ;;  %s9210_s15 = sld [smem:[#allocation4 + $0x299]] }
 0x2c0   : > { %v9033_v45 = vpop.permute.xlu0 %2740  ;;  %v9035_v33 = vpop.permute.xlu1 %2704  ;;  %v3716_v12 = vstv %s8964_s6  ;;  %v3537_v28 = vmul.f32 %v3536_v39, %v8247_v41  ;;  %v3798_v26 = vstv %s8974_s13  ;;  %v3786_v14 = vstv %s8976_s19  ;;  %v10275_v41 = vld [vmem:[#allocation108_spill] sm:$0xff]  ;;  %s9224_s6 = sld [smem:[#allocation4 + $0xf5]]  ;;  %s9240_s13 = sld [smem:[#allocation4 + $0x24c]] }
 0x2c1   : > { %10272 = vst [vmem:[#allocation103_spill] sm:$0xff] %v9033_v45  ;;  %10273 = vst [vmem:[#allocation104_spill] sm:$0xff] %v9035_v33  ;;  %v9060_v58 = vadd.f32 %v10274_v62, %v1655_v25  ;;  %v3587_v18 = vmul.f32 %v3586_v2, %v8257_v31  ;;  %v3870_v33 = vstv %s8983_s8  ;;  %v3717_v25 = vmul.f32 %v3716_v12, %v8904_v61  ;;  %s9265_s19 = sld [smem:[#allocation4 + $0x144]]  ;;  %s9280_s8 = sld [smem:[#allocation4 + $0x29b]] }
 0x2c2   : > { %3578 = vrot.lane.b32.xlu0 %v8886_v9, %s5262_s23  ;;  %3362 = vrot.lane.b32.xlu1 %v8888_v21, %s10111_s22  ;;  %v3539_v9 = vmul.f32 %v3538_v24, %v8257_v31  ;;  %v1703_v21 = vadd.f32 %v10275_v41, %v8860_v16  ;;  %v3800_v62 = vstv %s8996_s20  ;;  %v3788_v2 = vstv %s8998_s27  ;;  %s9305_s20 = sld [smem:[#allocation4 + $0x132]]  ;;  %s9317_s27 = sld [smem:[#allocation4 + $0x289]] }
 0x2c3   : > { %v9080_v31 = vadd.f32 %v3587_v18, %v3585_v13  ;;  %v3799_v24 = vmul.f32 %v3798_v26, %v8896_v8  ;;  %v3787_v55 = vmul.f32 %v3786_v14, %v8896_v8  ;;  %v3872_v16 = vstv %s9005_s10  ;;  %s9332_s10 = sld [smem:[#allocation4 + $0xf7]] }
 0x2c4   : > { %v9071_v39 = vpop.permute.xlu0 %2764  ;;  %v9073_v23 = vpop.permute.xlu1 %2728  ;;  %v9091_v12 = vadd.f32 %v3539_v9, %v3537_v28  ;;  %v9093_v41 = vadd.f32 %v3717_v25, %v3715_v37  ;;  %v3871_v13 = vmul.f32 %v3870_v33, %v8896_v8  ;;  %v3608_v18 = vstv %s9017_s24  ;;  %s9334_s24 = sld [smem:[#allocation4 + $0x24e]] }
 0x2c5   : > { %10276 = vst [vmem:[#allocation105_spill] sm:$0xff] %v9071_v39  ;;  %10277 = vst [vmem:[#allocation107_spill] sm:$0xff] %v9073_v23  ;;  %v3801_v26 = vmul.f32 %v3800_v62, %v8904_v61  ;;  %v3789_v14 = vmul.f32 %v3788_v2, %v8904_v61  ;;  %v3610_v23 = vstv %s9024_s11  ;;  %v3726_v39 = vstv %s9026_s16  ;;  %s9347_s11 = sld [smem:[#allocation4 + $0x14a]]  ;;  %s9361_s16 = sld [smem:[#allocation4 + $0x138]] }
 0x2c6   : > { %3446 = vrot.lane.b32.xlu0 %v8919_v51, %s10087_s21  ;;  %3434 = vrot.lane.b32.xlu1 %v8921_v56, %s10087_s21  ;;  %v10278_v51 = vld [vmem:[#allocation109_spill] sm:$0xff]  ;;  %v1727_v56 = vadd.f32 %v7680_v42, %v8907_v36  ;;  %v3873_v33 = vmul.f32 %v3872_v16, %v8904_v61  ;;  %v3858_v9 = vstv %s9039_s5  ;;  %v3728_v36 = vstv %s9047_s4  ;;  %s9366_s5 = sld [smem:[#allocation4 + $0x2a1]]  ;;  %s9372_s4 = sld [smem:[#allocation4 + $0x28f]] }
 0x2c7   : > { %v1763_v45 = vadd.f32 %v10278_v51, %v1679_v4  ;;  %v9114_v25 = vadd.f32 %v3801_v26, %v3799_v24  ;;  %v9116_v62 = vadd.f32 %v3789_v14, %v3787_v55  ;;  %v9118_v4 = vld [vmem:[#allocation2 + $0x5] sm:$0xff]  ;;  %v9130_v24 = vld [vmem:[#allocation3 + $0x5] sm:$0xff]  ;;  %v3727_v16 = vmul.f32 %v3726_v39, %v8896_v8 }
 0x2c8   : > { %v9106_v28 = vpop.permute.xlu0 %2788  ;;  %v9108_v37 = vpop.permute.xlu1 %2752  ;;  %v3609_v42 = vmul.f32 %v9118_v4, %v3608_v18  ;;  %v9128_v2 = vadd.f32 %v3873_v33, %v3871_v13  ;;  %v3611_v55 = vmul.f32 %v9130_v24, %v3610_v23  ;;  %v3860_v26 = vstv %s9057_s0  ;;  %v10283_v33 = vld [vmem:[#allocation111_spill] sm:$0xff]  ;;  %s9374_s0 = sld [smem:[#allocation4 + $0xf6]] }
 0x2c9   : > { %10279 = vst [vmem:[#allocation108_spill] sm:$0xff] %v9106_v28  ;;  %10280 = vst [vmem:[#allocation109_spill] sm:$0xff] %v9108_v37  ;;  %v1799_v18 = vadd.f32 %v7778_v1, %v9029_v60  ;;  %v3859_v14 = vmul.f32 %v3858_v9, %v8896_v8  ;;  %v3884_v51 = vstv %s9067_s1  ;;  %v1751_v23 = vadd.f32 %v10283_v33, %v8937_v32  ;;  %s9394_s1 = sld [smem:[#allocation4 + $0x139]] }
 0x2ca   : > { %3518 = vrot.lane.b32.xlu0 %v8929_v46, %s5261_s30  ;;  %3374 = vrot.lane.b32.xlu1 %v8959_v5, %s10111_s22  ;;  %10281 = vst [vmem:[#allocation135_spill] sm:$0xff] %v9128_v2  ;;  %v3882_v46 = vstv %s9065_s18  ;;  %v10282_v5 = vld [vmem:[#allocation110_spill] sm:$0xff]  ;;  %v3729_v1 = vmul.f32 %v3728_v36, %v8904_v61  ;;  %v3620_v60 = vstv %s9078_s14  ;;  %v9156_v37 = vadd.f32 %v3611_v55, %v3609_v42  ;;  %s9389_s18 = sld [smem:[#allocation4 + $0x24d]]  ;;  %s9400_s14 = sld [smem:[#allocation4 + $0x290]] }
 0x2cb   : > { %v1787_v13 = vadd.f32 %v10282_v5, %v1703_v21  ;;  %v1883_v9 = vadd.f32 %v7838_v40, %v1799_v18  ;;  %v3861_v2 = vmul.f32 %v3860_v26, %v8904_v61  ;;  %v3622_v21 = vstv %s9085_s2  ;;  %v10286_v40 = vld [vmem:[#allocation116_spill] sm:$0xff]  ;;  %s9406_s2 = sld [smem:[#allocation4 + $0x149]] }
 0x2cc   : > { %v9147_v28 = vpop.permute.xlu0 %2812  ;;  %v9149_v39 = vpop.permute.xlu1 %2776  ;;  %v9164_v32 = vadd.f32 %v3729_v1, %v3727_v16  ;;  %v3883_v36 = vmul.f32 %v3882_v46, %v8896_v8  ;;  %v3885_v5 = vmul.f32 %v3884_v51, %v8904_v61  ;;  %v1823_v42 = vadd.f32 %v10286_v40, %v9060_v58  ;;  %v10287_v18 = vld [vmem:[#allocation112_spill] sm:$0xff]  ;;  %v10289_v58 = vld [vmem:[#allocation118_spill] sm:$0xff] }
 0x2cd   : > { %10284 = vst [vmem:[#allocation110_spill] sm:$0xff] %v9147_v28  ;;  %10285 = vst [vmem:[#allocation111_spill] sm:$0xff] %v9149_v39  ;;  %v9172_v55 = vadd.f32 %v3861_v2, %v3859_v14  ;;  %v3621_v26 = vmul.f32 %v9118_v4, %v3620_v60  ;;  %v1811_v33 = vadd.f32 %v10287_v18, %v1727_v56  ;;  %v3956_v28 = vstv %s9112_s25  ;;  %v10290_v14 = vld [vmem:[#allocation119_spill] sm:$0xff]  ;;  %v10291_v18 = vld [vmem:[#allocation117_spill] sm:$0xff]  ;;  %s9424_s25 = sld [smem:[#allocation4 + $0x13f]] }
 0x2ce   : > { %3708 = vrot.lane.b32.xlu0 %v8978_v17, %s10107_s29  ;;  %3506 = vrot.lane.b32.xlu1 %v8992_v0, %s5261_s30  ;;  %v3954_v17 = vstv %s9101_s28  ;;  %v10288_v0 = vld [vmem:[#allocation113_spill] sm:$0xff]  ;;  %v3623_v1 = vmul.f32 %v9130_v24, %v3622_v21  ;;  %v1907_v2 = vadd.f32 %v10289_v58, %v1823_v42  ;;  %v1871_v40 = vadd.f32 %v10290_v14, %v1787_v13  ;;  %s9418_s28 = sld [smem:[#allocation4 + $0x2a0]] }
 0x2cf   : > { %v1775_v16 = vadd.f32 %v10288_v0, %v8986_v22  ;;  %v1961_v60 = vadd.f32 %v7988_v15, %v1883_v9  ;;  %v3738_v56 = vstv %s9122_s3  ;;  %v1847_v39 = vadd.f32 %v10291_v18, %v1763_v45  ;;  %s9426_s3 = sld [smem:[#allocation4 + $0x296]] }
 0x2d0   : > { %v9179_v46 = vpop.permute.xlu0 %2836  ;;  %v9181_v51 = vpop.permute.xlu1 %2800  ;;  %v9194_v22 = vadd.f32 %v3885_v5, %v3883_v36  ;;  %v3955_v21 = vmul.f32 %v3954_v17, %v8896_v8  ;;  %v9198_v0 = vadd.f32 %v3623_v1, %v3621_v26  ;;  %v3740_v13 = vstv %s9140_s26  ;;  %v10292_v5 = vld [vmem:[#allocation120_spill] sm:$0xff]  ;;  %s9432_s26 = sld [smem:[#allocation4 + $0x133]] }
 0x2d1   : > { %v2025_v42 = vadd.f32 %v8025_v19, %v1961_v60  ;;  %v3810_v15 = vstv %s9142_s12  ;;  %v1931_v9 = vadd.f32 %v7918_v6, %v1847_v39  ;;  %v3812_v36 = vstv %s9153_s17  ;;  %v10293_v39 = vld [vmem:[#allocation114_spill] sm:$0xff]  ;;  %s9434_s12 = sld [smem:[#allocation4 + $0xf8]]  ;;  %s9442_s17 = sld [smem:[#allocation4 + $0x28a]] }
 0x2d2   : > { %3530 = vrot.lane.b32.xlu0 %v9011_v10, %s5261_s30  ;;  %3696 = vrot.lane.b32.xlu1 %v9013_v47, %s10107_s29  ;;  %v3957_v10 = vmul.f32 %v3956_v28, %v8904_v61  ;;  %v3739_v47 = vmul.f32 %v3738_v56, %v8896_v8  ;;  %v1895_v19 = vadd.f32 %v7920_v63, %v1811_v33  ;;  %v3942_v60 = vstv %s9168_s7  ;;  %s9444_s7 = sld [smem:[#allocation4 + $0x150]] }
 0x2d3   : > { %v1953_v26 = vadd.f32 %v10292_v5, %v1871_v40  ;;  %v1977_v17 = vadd.f32 %v8043_v38, %v1907_v2  ;;  %v2109_v6 = vadd.f32 %v8091_v57, %v2025_v42  ;;  %v1835_v1 = vadd.f32 %v10293_v39, %v1751_v23 }
 0x2d4   : > { %v9203_v45 = vpop.permute.xlu0 %2860  ;;  %v9205_v58 = vpop.permute.xlu1 %2824  ;;  %v3741_v28 = vmul.f32 %v3740_v13, %v8904_v61  ;;  %v3811_v14 = vmul.f32 %v3810_v15, %v8896_v8  ;;  %v9229_v23 = vadd.f32 %v3957_v10, %v3955_v21  ;;  %v1993_v33 = vadd.f32 %v8082_v50, %v1931_v9  ;;  %v10294_v50 = vld [vmem:[#allocation115_spill] sm:$0xff]  ;;  %v10297_v9 = vld [vmem:[#allocation122_spill] sm:$0xff]  ;;  %v10298_v10 = vld [vmem:[#allocation121_spill] sm:$0xff] }
 0x2d5   : > { %v2013_v63 = vadd.f32 %v7948_v48, %v1953_v26  ;;  %v2049_v38 = vadd.f32 %v8058_v44, %v1977_v17  ;;  %v2193_v57 = vadd.f32 %v8261_v43, %v2109_v6  ;;  %v3813_v56 = vmul.f32 %v3812_v36, %v8904_v61  ;;  %v10301_v26 = vld [vmem:[#allocation69_spill] sm:$0xff]  ;;  %v10302_v6 = vld [vmem:[#allocation74_spill] sm:$0xff] }
 0x2d6   : > { %3602 = vrot.lane.b32.xlu0 %v9019_v35, %s5262_s23  ;;  %3458 = vrot.lane.b32.xlu1 %v9041_v34, %s10087_s21  ;;  %v1919_v35 = vadd.f32 %v7950_v49, %v1835_v1  ;;  %v9237_v40 = vadd.f32 %v3741_v28, %v3739_v47  ;;  %v1969_v48 = vadd.f32 %v7938_v27, %v1895_v19  ;;  %v10299_v47 = vld [vmem:[#allocation126_spill] sm:$0xff]  ;;  %v3944_v19 = vstv %s9210_s15  ;;  %v10303_v1 = vld [vmem:[#allocation123_spill] sm:$0xff]  ;;  %s9450_s15 = sld [smem:[#allocation4 + $0x24f]] }
 0x2d7   : > { %v2133_v44 = vadd.f32 %v8125_v11, %v2049_v38  ;;  %v2097_v43 = vadd.f32 %v8127_v7, %v2013_v63  ;;  %v2277_v49 = vadd.f32 %v8339_v59, %v2193_v57  ;;  %v1859_v18 = vadd.f32 %v10294_v50, %v1775_v16  ;;  %v10295_v11 = vld [vmem:[#allocation128_spill] sm:$0xff]  ;;  %v10296_v7 = vld [vmem:[#allocation133_spill] sm:$0xff] }
 0x2d8   : > { %v9233_v34 = vpop.permute.xlu0 %2884  ;;  %v9235_v2 = vpop.permute.xlu1 %2848  ;;  %v2073_v21 = vadd.f32 %v8093_v3, %v1993_v33  ;;  %v3943_v42 = vmul.f32 %v3942_v60, %v8896_v8  ;;  %v2037_v27 = vadd.f32 %v7984_v30, %v1969_v48  ;;  %v1985_v3 = vadd.f32 %v10298_v10, %v1919_v35  ;;  %v10300_v30 = vld [vmem:[#allocation127_spill] sm:$0xff]  ;;  %v10304_v60 = vld [vmem:[#allocation68_spill] sm:$0xff]  ;;  %v10305_v35 = vld [vmem:[#allocation130_spill] sm:$0xff] }
 0x2d9   : > { %v2181_v13 = vadd.f32 %v10295_v11, %v2097_v43  ;;  %v2217_v15 = vadd.f32 %v10296_v7, %v2133_v44  ;;  %v2361_v59 = vadd.f32 %v8537_v53, %v2277_v49  ;;  %v1943_v16 = vadd.f32 %v10297_v9, %v1859_v18  ;;  %v10306_v48 = vld [vmem:[#allocation70_spill] sm:$0xff]  ;;  %v10307_v49 = vld [vmem:[#allocation124_spill] sm:$0xff]  ;;  %v10308_v18 = vld [vmem:[#allocation129_spill] sm:$0xff] }
 0x2da   : > { %3780 = vrot.lane.b32.xlu0 %v9043_v20, %s10110_s9  ;;  %3590 = vrot.lane.b32.xlu1 %v9080_v31, %s5262_s23  ;;  %v2157_v20 = vadd.f32 %v10299_v47, %v2073_v21  ;;  %v2121_v5 = vadd.f32 %v10300_v30, %v2037_v27  ;;  %v2061_v28 = vadd.f32 %v10303_v1, %v1985_v3  ;;  %v3072_v57 = vstv %s9224_s6  ;;  %v10309_v21 = vld [vmem:[#allocation76_spill] sm:$0xff]  ;;  %v10310_v11 = vld [vmem:[#allocation75_spill] sm:$0xff]  ;;  %v10313_v10 = vld [vmem:[#allocation125_spill] sm:$0xff]  ;;  %s9452_s6 = sld [smem:[#allocation4 + $0x2a7]] }
 0x2db   : > { %v2301_v17 = vadd.f32 %v10301_v26, %v2217_v15  ;;  %v2265_v53 = vadd.f32 %v10302_v6, %v2181_v13  ;;  %v2445_v39 = vadd.f32 %v8619_v52, %v2361_v59  ;;  %v9277_v38 = vadd.f32 %v3813_v56, %v3811_v14  ;;  %v10311_v15 = vld [vmem:[#allocation82_spill] sm:$0xff]  ;;  %v10314_v3 = vld [vmem:[#allocation132_spill] sm:$0xff]  ;;  %v10319_v1 = vld [vmem:[#allocation71_spill] sm:$0xff] }
 0x2dc   : > { %v9260_v36 = vpop.permute.xlu0 %2908  ;;  %v9262_v31 = vpop.permute.xlu1 %2872  ;;  %v2241_v63 = vadd.f32 %v10304_v60, %v2157_v20  ;;  %v2205_v33 = vadd.f32 %v10305_v35, %v2121_v5  ;;  %v3945_v43 = vmul.f32 %v3944_v19, %v8904_v61  ;;  %v2001_v50 = vadd.f32 %v10307_v49, %v1943_v16  ;;  %v10315_v20 = vld [vmem:[#allocation106_spill] sm:$0xff]  ;;  %v10320_v60 = vld [vmem:[#allocation84_spill] sm:$0xff] }
 0x2dd   : > { %v2349_v52 = vadd.f32 %v10306_v48, %v2265_v53  ;;  %v2385_v44 = vadd.f32 %v8579_v29, %v2301_v17  ;;  %v3074_v56 = vstv %s9240_s13  ;;  %v10312_v29 = vld [vmem:[#allocation85_spill] sm:$0xff]  ;;  %v10317_v5 = vld [vmem:[#allocation94_spill] sm:$0xff]  ;;  %v3073_v17 = vmul.f32 %v9118_v4, %v3072_v57  ;;  %v10318_v53 = vld [vmem:[#allocation131_spill] sm:$0xff]  ;;  %s9464_s13 = sld [smem:[#allocation4 + $0x13e]] }
 0x2de   : > { %3542 = vrot.lane.b32.xlu0 %v9091_v12, %s5261_s30  ;;  %3720 = vrot.lane.b32.xlu1 %v9093_v41, %s10107_s29  ;;  %v2145_v12 = vadd.f32 %v10308_v18, %v2061_v28  ;;  %v2325_v27 = vadd.f32 %v10309_v21, %v2241_v63  ;;  %v2289_v13 = vadd.f32 %v10310_v11, %v2205_v33  ;;  %v3966_v35 = vstv %s9265_s19  ;;  %v10321_v33 = vld [vmem:[#allocation86_spill] sm:$0xff]  ;;  %v10323_v57 = vld [vmem:[#allocation88_spill] sm:$0xff]  ;;  %v10327_v11 = vld [vmem:[#allocation135_spill] sm:$0xff]  ;;  %s9470_s19 = sld [smem:[#allocation4 + $0x295]] }
 0x2df   : > { %v2469_v7 = vadd.f32 %v8654_v54, %v2385_v44  ;;  %v2433_v59 = vadd.f32 %v10311_v15, %v2349_v52  ;;  %v2523_v9 = vadd.f32 %v10312_v29, %v2445_v39  ;;  %v2085_v16 = vadd.f32 %v10313_v10, %v2001_v50  ;;  %v10316_v54 = vld [vmem:[#allocation78_spill] sm:$0xff]  ;;  %v10322_v52 = vld [vmem:[#allocation79_spill] sm:$0xff]  ;;  %v10324_v50 = vld [vmem:[#allocation97_spill] sm:$0xff] }
 0x2e0   : > { %v9289_v41 = vpop.permute.xlu0 %2932  ;;  %v9291_v14 = vpop.permute.xlu1 %2896  ;;  %v2229_v47 = vadd.f32 %v10314_v3, %v2145_v12  ;;  %v2409_v19 = vadd.f32 %v10315_v20, %v2325_v27  ;;  %v2373_v30 = vadd.f32 %v10316_v54, %v2289_v13  ;;  %v3075_v6 = vmul.f32 %v9130_v24, %v3074_v56  ;;  %v10325_v12 = vld [vmem:[#allocation77_spill] sm:$0xff]  ;;  %v10329_v29 = vld [vmem:[#allocation96_spill] sm:$0xff] }
 0x2e1   : > { %v2587_v26 = vadd.f32 %v10317_v5, %v2523_v9  ;;  %v2169_v39 = vadd.f32 %v10318_v53, %v2085_v16  ;;  %v2515_v44 = vadd.f32 %v10322_v52, %v2433_v59  ;;  %v2539_v49 = vadd.f32 %v10323_v57, %v2469_v7  ;;  %v10326_v27 = vld [vmem:[#allocation73_spill] sm:$0xff] }
 0x2e2   : > { %3804 = vrot.lane.b32.xlu0 %v9114_v25, %s10110_s9  ;;  %3792 = vrot.lane.b32.xlu1 %v9116_v62, %s10110_s9  ;;  %v2313_v28 = vadd.f32 %v10319_v1, %v2229_v47  ;;  %v2493_v25 = vadd.f32 %v10320_v60, %v2409_v19  ;;  %v2457_v48 = vadd.f32 %v10321_v33, %v2373_v30  ;;  %v3968_v15 = vstv %s9280_s8  ;;  %v10328_v7 = vld [vmem:[#allocation89_spill] sm:$0xff]  ;;  %v10331_v47 = vld [vmem:[#allocation72_spill] sm:$0xff]  ;;  %v10332_v19 = vld [vmem:[#allocation90_spill] sm:$0xff]  ;;  %s9474_s8 = sld [smem:[#allocation4 + $0x13a]] }
 0x2e3   : > { %v2671_v18 = vadd.f32 %v10324_v50, %v2587_v26  ;;  %v2253_v21 = vadd.f32 %v10325_v12, %v2169_v39  ;;  %v9329_v13 = vadd.f32 %v3945_v43, %v3943_v42  ;;  %v2575_v59 = vadd.f32 %v10328_v7, %v2515_v44  ;;  %v10330_v10 = vld [vmem:[#allocation109_spill] sm:$0xff]  ;;  %v10333_v42 = vld [vmem:[#allocation91_spill] sm:$0xff]  ;;  %v10337_v33 = vld [vmem:[#allocation80_spill] sm:$0xff] }
 0x2e4   : > { %v9314_v63 = vpop.permute.xlu0 %2956  ;;  %v2921_v62 = vpop.permute.xlu1 %2920  ;;  %v2397_v56 = vadd.f32 %v10326_v27, %v2313_v28  ;;  %v2611_v9 = vadd.f32 %v10329_v29, %v2539_v49  ;;  %v3967_v3 = vmul.f32 %v3966_v35, %v8896_v8  ;;  %v2555_v43 = vadd.f32 %v10333_v42, %v2493_v25  ;;  %v10334_v26 = vld [vmem:[#allocation81_spill] sm:$0xff]  ;;  %v10335_v39 = vld [vmem:[#allocation99_spill] sm:$0xff]  ;;  %v10336_v28 = vld [vmem:[#allocation100_spill] sm:$0xff] }
 0x2e5   : > { %v2755_v16 = vadd.f32 %v10330_v10, %v2671_v18  ;;  %v2337_v20 = vadd.f32 %v10331_v47, %v2253_v21  ;;  %v9345_v5 = vadd.f32 %v3075_v6, %v3073_v17  ;;  %v2531_v53 = vadd.f32 %v10334_v26, %v2457_v48  ;;  %v10338_v44 = vld [vmem:[#allocation98_spill] sm:$0xff]  ;;  %v10339_v25 = vld [vmem:[#allocation92_spill] sm:$0xff]  ;;  %v10340_v49 = vld [vmem:[#allocation103_spill] sm:$0xff] }
 0x2e6   : > { %3876 = vrot.lane.b32.xlu0 %v10327_v11, %s10111_s22  ;;  %3614 = vrot.lane.b32.xlu1 %v9156_v37, %s5262_s23  ;;  %v2481_v37 = vadd.f32 %v10332_v19, %v2397_v56  ;;  %v2695_v1 = vadd.f32 %v10335_v39, %v2611_v9  ;;  %v2659_v60 = vadd.f32 %v10336_v28, %v2575_v59  ;;  %v3750_v6 = vstv %s9305_s20  ;;  %v10341_v50 = vld [vmem:[#allocation111_spill] sm:$0xff]  ;;  %v10342_v21 = vld [vmem:[#allocation134_spill] sm:$0xff]  ;;  %v10346_v47 = vld [vmem:[#allocation93_spill] sm:$0xff]  ;;  %s9476_s20 = sld [smem:[#allocation4 + $0x291]] }
 0x2e7   : > { %v2839_v35 = vadd.f32 %v9179_v46, %v2755_v16  ;;  %v2421_v52 = vadd.f32 %v10337_v33, %v2337_v20  ;;  %v2635_v57 = vadd.f32 %v10338_v44, %v2555_v43  ;;  %v3969_v17 = vmul.f32 %v3968_v15, %v8904_v61  ;;  %v10345_v29 = vld [vmem:[#allocation102_spill] sm:$0xff] }
 0x2e8   : > { %v9343_v54 = vpop.permute.xlu0 %2980  ;;  %v2945_v30 = vpop.permute.xlu1 %2944  ;;  %v2599_v48 = vadd.f32 %v10339_v25, %v2531_v53  ;;  %v2743_v46 = vadd.f32 %v10340_v49, %v2659_v60  ;;  %v2779_v18 = vadd.f32 %v10341_v50, %v2695_v1  ;;  %v3752_v59 = vstv %s9317_s27  ;;  %v10349_v1 = vld [vmem:[#allocation104_spill] sm:$0xff]  ;;  %s9487_s27 = sld [smem:[#allocation4 + $0x14b]] }
 0x2e9   : > { %v2923_v12 = vadd.f32 %v2921_v62, %v2839_v35  ;;  %v2505_v27 = vadd.f32 %v10342_v21, %v2421_v52  ;;  %v3751_v19 = vmul.f32 %v3750_v6, %v8896_v8  ;;  %v3090_v42 = vstv %s9334_s24  ;;  %v10350_v6 = vld [vmem:[#allocation95_spill] sm:$0xff]  ;;  %s9500_s24 = sld [smem:[#allocation4 + $0x2a2]] }
 0x2ea   : > { %3732 = vrot.lane.b32.xlu0 %v9164_v32, %s10107_s29  ;;  %3864 = vrot.lane.b32.xlu1 %v9172_v55, %s10111_s22  ;;  %v10343_v32 = vld [vmem:[#allocation83_spill] sm:$0xff]  ;;  %v10344_v55 = vld [vmem:[#allocation101_spill] sm:$0xff]  ;;  %v2683_v9 = vadd.f32 %v10345_v29, %v2599_v48  ;;  %v2863_v62 = vadd.f32 %v9203_v45, %v2779_v18  ;;  %v2827_v10 = vadd.f32 %v9205_v58, %v2743_v46  ;;  %v4038_v33 = vstv %s9347_s11  ;;  %v10351_v48 = vld [vmem:[#allocation108_spill] sm:$0xff]  ;;  %s9502_s11 = sld [smem:[#allocation4 + $0x250]] }
 0x2eb   : > { %v2547_v56 = vadd.f32 %v10343_v32, %v2481_v37  ;;  %v2719_v11 = vadd.f32 %v10344_v55, %v2635_v57  ;;  %v3088_v37 = vstv %s9332_s10  ;;  %v10347_v45 = vld [vmem:[#allocation105_spill] sm:$0xff]  ;;  %v3753_v35 = vmul.f32 %v3752_v59, %v8904_v61  ;;  %v10352_v21 = vld [vmem:[#allocation107_spill] sm:$0xff]  ;;  %s9489_s10 = sld [smem:[#allocation4 + $0xf9]] }
 0x2ec   : > { %v3005_v15 = vpop.permute.xlu0 %3004  ;;  %v2969_v7 = vpop.permute.xlu1 %2968  ;;  %v2767_v43 = vadd.f32 %v10347_v45, %v2683_v9  ;;  %v2911_v26 = vadd.f32 %v9260_v36, %v2827_v10  ;;  %v2947_v53 = vadd.f32 %v2945_v30, %v2863_v62  ;;  %v3970_v44 = vadd.f32 %v3969_v17, %v3967_v3 }
 0x2ed   : > { %v9379_v16 = vadd.f32 %v3005_v15, %v2923_v12  ;;  %v2623_v20 = vadd.f32 %v10346_v47, %v2547_v56  ;;  %v2803_v58 = vadd.f32 %v9181_v51, %v2719_v11  ;;  %v3089_v57 = vmul.f32 %v9118_v4, %v3088_v37 }
 0x2ee   : > { %3888 = vrot.lane.b32.xlu0 %v9194_v22, %s10111_s22  ;;  %3626 = vrot.lane.b32.xlu1 %v9198_v0, %s5262_s23  ;;  %v10348_v22 = vld [vmem:[#allocation87_spill] sm:$0xff]  ;;  %v2851_v51 = vadd.f32 %v9235_v2, %v2767_v43  ;;  %v3822_v2 = vstv %s9361_s16  ;;  %v4039_v12 = vmul.f32 %v4038_v33, %v8896_v8  ;;  %v3824_v3 = vstv %s9372_s4  ;;  %s9507_s16 = sld [smem:[#allocation4 + $0x145]]  ;;  %s9514_s4 = sld [smem:[#allocation4 + $0x151]] }
 0x2ef   : > { %v2563_v39 = vadd.f32 %v10348_v22, %v2505_v27  ;;  %v2707_v28 = vadd.f32 %v10349_v1, %v2623_v20  ;;  %v2887_v52 = vadd.f32 %v9233_v34, %v2803_v58  ;;  %v3091_v34 = vmul.f32 %v9130_v24, %v3090_v42 }
 0x2f0   : > { %v3029_v0 = vpop.permute.xlu0 %3028  ;;  %v2993_v60 = vpop.permute.xlu1 %2992  ;;  %v2935_v46 = vadd.f32 %v9289_v41, %v2851_v51  ;;  %v3080_v17 = vstv %s9374_s0  ;;  %v3754_v55 = vadd.f32 %v3753_v35, %v3751_v19  ;;  %v3823_v15 = vmul.f32 %v3822_v2, %v8896_v8  ;;  %s9524_s0 = sld [smem:[#allocation4 + $0x2a8]] }
 0x2f1   : > { %v9404_v36 = vadd.f32 %v3029_v0, %v2947_v53  ;;  %v2995_v30 = vadd.f32 %v2993_v60, %v2911_v26  ;;  %v2647_v25 = vadd.f32 %v10350_v6, %v2563_v39  ;;  %v2791_v49 = vadd.f32 %v10351_v48, %v2707_v28 }
 0x2f2   : > { %3960 = vrot.lane.b32.xlu0 %v9229_v23, %s10087_s21  ;;  %3744 = vrot.lane.b32.xlu1 %v9237_v40, %s10107_s29  ;;  %v2971_v50 = vadd.f32 %v2969_v7, %v2887_v52  ;;  %v4040_v40 = vstv %s9366_s5  ;;  %v3092_v11 = vadd.f32 %v3091_v34, %v3089_v57  ;;  %v10353_v7 = vld [vmem:[#allocation110_spill] sm:$0xff]  ;;  %v3834_v9 = vstv %s9394_s1  ;;  %s9512_s5 = sld [smem:[#allocation4 + $0x29c]]  ;;  %s9532_s1 = sld [smem:[#allocation4 + $0x140]] }
 0x2f3   : > { %v2731_v27 = vadd.f32 %v10352_v21, %v2647_v25  ;;  %v2875_v32 = vadd.f32 %v9262_v31, %v2791_v49  ;;  %v3082_v31 = vstv %s9389_s18  ;;  %v4041_v10 = vmul.f32 %v4040_v40, %v8904_v61  ;;  %s9526_s18 = sld [smem:[#allocation4 + $0x152]] }
 0x2f4   : > { %v3053_v23 = vpop.permute.xlu0 %3052  ;;  %v3017_v18 = vpop.permute.xlu1 %3016  ;;  %v3825_v47 = vmul.f32 %v3824_v3, %v8904_v61  ;;  %v3081_v20 = vmul.f32 %v9118_v4, %v3080_v17  ;;  %v3836_v19 = vstv %s9400_s14  ;;  %v4026_v42 = vstv %s9406_s2  ;;  %s9534_s14 = sld [smem:[#allocation4 + $0xfa]]  ;;  %s9541_s2 = sld [smem:[#allocation4 + $0x2a9]] }
 0x2f5   : > { %v9430_v41 = vadd.f32 %v3053_v23, %v2971_v50  ;;  %v3019_v56 = vadd.f32 %v3017_v18, %v2935_v46  ;;  %v2815_v59 = vadd.f32 %v10353_v7, %v2731_v27  ;;  %v2959_v29 = vadd.f32 %v9314_v63, %v2875_v32 }
 0x2f6   : > { %3816 = vrot.lane.b32.xlu0 %v9277_v38, %s10110_s9  ;;  %3948 = vrot.lane.b32.xlu1 %v9329_v13, %s10087_s21  ;;  %v3077_v38 = vadd.f32 %v9345_v5, %v2995_v30  ;;  %v4042_v45 = vadd.f32 %v4041_v10, %v4039_v12  ;;  %v3083_v43 = vmul.f32 %v9130_v24, %v3082_v31  ;;  %v4028_v22 = vstv %s9418_s28  ;;  %s9548_s28 = sld [smem:[#allocation4 + $0x297]] }
 0x2f7   : > { %v2899_v37 = vadd.f32 %v9291_v14, %v2815_v59  ;;  %v3835_v58 = vmul.f32 %v3834_v9, %v8896_v8  ;;  %v3093_v26 = vadd.f32 %v3092_v11, %v3019_v56  ;;  %v3826_v53 = vadd.f32 %v3825_v47, %v3823_v15 }
 0x2f8   : > { %v3135_v13 = vpop.permute.xlu0 %3134  ;;  %v3041_v62 = vpop.permute.xlu1 %3040  ;;  %v3084_v28 = vadd.f32 %v3083_v43, %v3081_v20  ;;  %v3837_v0 = vmul.f32 %v3836_v19, %v8904_v61  ;;  %v4027_v60 = vmul.f32 %v4026_v42, %v8896_v8  ;;  %v3906_v35 = vstv %s9424_s25  ;;  %s9550_s25 = sld [smem:[#allocation4 + $0x251]] }
 0x2f9   : > { %v9459_v63 = vadd.f32 %v3135_v13, %v3077_v38  ;;  %v9461_v5 = vadd.f32 %v3041_v62, %v2959_v29  ;;  %v2983_v14 = vadd.f32 %v9343_v54, %v2899_v37  ;;  %v3762_v52 = vstv %s9432_s26  ;;  %s9562_s26 = sld [smem:[#allocation4 + $0x146]] }
 0x2fa   : > { %3972 = vrot.lane.b32.xlu0 %v3970_v44, %s10087_s21  ;;  %3756 = vrot.lane.b32.xlu1 %v3754_v55, %s10107_s29  ;;  %v3096_v51 = vstv %s9434_s12  ;;  %v3838_v30 = vadd.f32 %v3837_v0, %v3835_v58  ;;  %v4029_v44 = vmul.f32 %v4028_v22, %v8904_v61  ;;  %v3908_v57 = vstv %s9426_s3  ;;  %s9555_s3 = sld [smem:[#allocation4 + $0x147]]  ;;  %s9568_s12 = sld [smem:[#allocation4 + $0x29e]] }
 0x2fb   : > { %v4110_v34 = vstv %s9444_s7  ;;  %v3085_v2 = vadd.f32 %v3084_v28, %v9379_v16  ;;  %v3764_v6 = vstv %s9442_s17  ;;  %v3098_v25 = vstv %s9450_s15  ;;  %s9575_s17 = sld [smem:[#allocation4 + $0x29d]]  ;;  %s9583_s15 = sld [smem:[#allocation4 + $0x2a4]] }
 0x2fc   : > { %v3159_v39 = vpop.permute.xlu0 %3158  ;;  %v3065_v1 = vpop.permute.xlu1 %3064  ;;  %v4112_v48 = vstv %s9452_s6  ;;  %v4030_v50 = vadd.f32 %v4029_v44, %v4027_v60  ;;  %v3907_v23 = vmul.f32 %v3906_v35, %v8896_v8  ;;  %v3763_v18 = vmul.f32 %v3762_v52, %v8896_v8  ;;  %v9570_v52 = vld [vmem:[#allocation2 + $0x6] sm:$0xff]  ;;  %s9577_s7 = sld [smem:[#allocation4 + $0x14d]]  ;;  %s9589_s6 = sld [smem:[#allocation4 + $0x141]] }
 0x2fd   : > { %v9481_v54 = vadd.f32 %v3159_v39, %v3093_v26  ;;  %v9483_v33 = vadd.f32 %v3065_v1, %v2983_v14  ;;  %v3097_v12 = vmul.f32 %v9118_v4, %v3096_v51  ;;  %v3909_v40 = vmul.f32 %v3908_v57, %v8904_v61 }
 0x2fe   : > { %4044 = vrot.lane.b32.xlu0 %v4042_v45, %s5261_s30  ;;  %3828 = vrot.lane.b32.xlu1 %v3826_v53, %s10110_s9  ;;  %v4111_v3 = vmul.f32 %v4110_v34, %v8896_v8  ;;  %v3894_v17 = vstv %s9464_s13  ;;  %v3765_v21 = vmul.f32 %v3764_v6, %v8904_v61  ;;  %v3099_v27 = vmul.f32 %v9130_v24, %v3098_v25  ;;  %s9599_s13 = sld [smem:[#allocation4 + $0x298]] }
 0x2ff   : > { %v4113_v32 = vmul.f32 %v4112_v48, %v8904_v61  ;;  %v3896_v56 = vstv %s9470_s19  ;;  %v3846_v11 = vstv %s9474_s8  ;;  %v3848_v15 = vstv %s9476_s20  ;;  %s9606_s19 = sld [smem:[#allocation4 + $0x2a5]]  ;;  %s9614_s8 = sld [smem:[#allocation4 + $0x14c]] }
 0x300   : > { %v3231_v49 = vpop.permute.xlu0 %3230  ;;  %v3147_v46 = vpop.permute.xlu1 %3146  ;;  %v3910_v59 = vadd.f32 %v3909_v40, %v3907_v23  ;;  %v3766_v29 = vadd.f32 %v3765_v21, %v3763_v18  ;;  %v3100_v38 = vadd.f32 %v3099_v27, %v3097_v12  ;;  %v3895_v9 = vmul.f32 %v3894_v17, %v8896_v8  ;;  %s9616_s20 = sld [smem:[#allocation4 + $0xfb]] }
 0x301   : > { %v3149_v16 = vadd.f32 %v3147_v46, %v3085_v2  ;;  %v4114_v62 = vadd.f32 %v4113_v32, %v4111_v3  ;;  %v4050_v10 = vstv %s9487_s27  ;;  %v3104_v47 = vstv %s9489_s10  ;;  %v9579_v2 = vld [vmem:[#allocation3 + $0x6] sm:$0xff]  ;;  %s9626_s27 = sld [smem:[#allocation4 + $0x2a3]]  ;;  %s9628_s10 = sld [smem:[#allocation4 + $0x252]] }
 0x302   : > { %3840 = vrot.lane.b32.xlu0 %v3838_v30, %s10110_s9  ;;  %4032 = vrot.lane.b32.xlu1 %v4030_v50, %s5261_s30  ;;  %v3897_v20 = vmul.f32 %v3896_v56, %v8904_v61  ;;  %v3847_v19 = vmul.f32 %v3846_v11, %v8896_v8  ;;  %v3849_v37 = vmul.f32 %v3848_v15, %v8904_v61  ;;  %v4052_v42 = vstv %s9500_s24  ;;  %s9638_s24 = sld [smem:[#allocation4 + $0x154]] }
 0x303   : > { %v3233_v55 = vadd.f32 %v3231_v49, %v3149_v16  ;;  %v3106_v45 = vstv %s9502_s11  ;;  %v4051_v53 = vmul.f32 %v4050_v10, %v8896_v8  ;;  %v3105_v22 = vmul.f32 %v9118_v4, %v3104_v47  ;;  %s9640_s11 = sld [smem:[#allocation4 + $0x148]] }
 0x304   : > { %v3303_v31 = vpop.permute.xlu0 %3302  ;;  %v3219_v7 = vpop.permute.xlu1 %3218  ;;  %v3898_v26 = vadd.f32 %v3897_v20, %v3895_v9  ;;  %v3978_v39 = vstv %s9507_s16  ;;  %v3980_v28 = vstv %s9512_s5  ;;  %v4122_v0 = vstv %s9514_s4  ;;  %s9649_s16 = sld [smem:[#allocation4 + $0x2ab]]  ;;  %s9651_s5 = sld [smem:[#allocation4 + $0x29f]] }
 0x305   : > { %v3221_v13 = vadd.f32 %v3219_v7, %v9459_v63  ;;  %v3101_v63 = vadd.f32 %v3100_v38, %v9404_v36  ;;  %v4053_v8 = vmul.f32 %v4052_v42, %v8904_v61  ;;  %v3107_v60 = vmul.f32 %v9130_v24, %v3106_v45  ;;  %s9661_s4 = sld [smem:[#allocation4 + $0x155]] }
 0x306   : > { %3912 = vrot.lane.b32.xlu0 %v3910_v59, %s10111_s22  ;;  %3768 = vrot.lane.b32.xlu1 %v3766_v29, %s10107_s29  ;;  %v3850_v35 = vadd.f32 %v3849_v37, %v3847_v19  ;;  %v4124_v51 = vstv %s9524_s0  ;;  %v4134_v30 = vstv %s9526_s18  ;;  %v3981_v6 = vmul.f32 %v9579_v2, %v3980_v28  ;;  %s9663_s0 = sld [smem:[#allocation4 + $0x153]]  ;;  %s9671_s18 = sld [smem:[#allocation4 + $0x2ac]] }
 0x307   : > { %v9546_v43 = vadd.f32 %v3303_v31, %v3221_v13  ;;  %v4054_v61 = vadd.f32 %v4053_v8, %v4051_v53  ;;  %v3108_v34 = vadd.f32 %v3107_v60, %v3105_v22  ;;  %v4123_v25 = vmul.f32 %v9570_v52, %v4122_v0 }
 0x308   : > { %v3171_v58 = vpop.permute.xlu0 %3170  ;;  %v3243_v14 = vpop.permute.xlu1 %3242  ;;  %v3918_v46 = vstv %s9532_s1  ;;  %v3112_v50 = vstv %s9534_s14  ;;  %v4125_v23 = vmul.f32 %v9579_v2, %v4124_v51  ;;  %v4135_v18 = vmul.f32 %v9570_v52, %v4134_v30  ;;  %s9673_s1 = sld [smem:[#allocation4 + $0x2aa]]  ;;  %s9684_s14 = sld [smem:[#allocation4 + $0x14f]] }
 0x309   : > { %v9557_v36 = vadd.f32 %v3171_v58, %v3101_v63  ;;  %v3245_v1 = vadd.f32 %v3243_v14, %v9481_v54  ;;  %v3979_v54 = vmul.f32 %v9570_v52, %v3978_v39  ;;  %v4136_v12 = vstv %s9541_s2  ;;  %s9692_s2 = sld [smem:[#allocation4 + $0x2a6]] }
 0x30a   : > { %4116 = vrot.lane.b32.xlu0 %v4114_v62, %s5262_s23  ;;  %3900 = vrot.lane.b32.xlu1 %v3898_v26, %s10111_s22  ;;  %v3109_v16 = vadd.f32 %v3108_v34, %v9461_v5  ;;  %v3920_v3 = vstv %s9548_s28  ;;  %v3114_v17 = vstv %s9550_s25  ;;  %v4126_v32 = vadd.f32 %v4125_v23, %v4123_v25  ;;  %s9707_s28 = sld [smem:[#allocation4 + $0x2ad]]  ;;  %s4948_s25 = sld [smem:[#allocation4 + $0x27e]] }
 0x30b   : > { %v3982_v40 = vadd.f32 %v3981_v6, %v3979_v54  ;;  %v3919_v56 = vmul.f32 %v9570_v52, %v3918_v46  ;;  %v4002_v11 = vstv %s9555_s3  ;;  %v4137_v31 = vmul.f32 %v9579_v2, %v4136_v12  ;;  %s4949_s3 = sld [smem:[#allocation4 + $0x128]] }
 0x30c   : > { %v3327_v44 = vpop.permute.xlu0 %3326  ;;  %v3315_v57 = vpop.permute.xlu1 %3314  ;;  %v3990_v7 = vstv %s9562_s26  ;;  %v3921_v59 = vmul.f32 %v9579_v2, %v3920_v3  ;;  %v3115_v29 = vmul.f32 %v9130_v24, %v3114_v17  ;;  %v4004_v38 = vstv %s9568_s12  ;;  %s4950_s26 = sld [smem:[#allocation4 + $0x27f]]  ;;  %s4953_s12 = sld [smem:[#allocation4 + $0x12a]] }
 0x30d   : > { %v9585_v48 = vadd.f32 %v3327_v44, %v3245_v1  ;;  %v3317_v49 = vadd.f32 %v3315_v57, %v3233_v55  ;;  %v3113_v55 = vmul.f32 %v9118_v4, %v3112_v50  ;;  %v4138_v9 = vadd.f32 %v4137_v31, %v4135_v18 }
 0x30e   : > { %3852 = vrot.lane.b32.xlu0 %v3850_v35, %s10110_s9  ;;  %4056 = vrot.lane.b32.xlu1 %v4054_v61, %s5261_s30  ;;  %s9604_s9 = sld [smem:[#allocation4 + $0x14e]]  ;;  %v4003_v13 = vmul.f32 %v9570_v52, %v4002_v11  ;;  %v3992_v62 = vstv %s9575_s17  ;;  %v4074_v10 = vstv %s9577_s7  ;;  %v3922_v19 = vadd.f32 %v3921_v59, %v3919_v56  ;;  %s4954_s17 = sld [smem:[#allocation4 + $0x281]] }
 0x30f   : > { %v3116_v37 = vadd.f32 %v3115_v29, %v3113_v55  ;;  %v3991_v63 = vmul.f32 %v9570_v52, %v3990_v7  ;;  %v4076_v42 = vstv %s9583_s15  ;;  %v4005_v14 = vmul.f32 %v9579_v2, %v4004_v38  ;;  %s5263_s7 = smov 123   ;;  %s4951_s15 = sld [smem:[#allocation4 + $0x129]] }
 0x310   : > { %v3399_v21 = vpop.permute.xlu0 %3398  ;;  %v3183_v27 = vpop.permute.xlu1 %3182  ;;  %v3930_v26 = vstv %s9589_s6  ;;  %v3993_v53 = vmul.f32 %v9579_v2, %v3992_v62  ;;  %v4075_v22 = vmul.f32 %v9570_v52, %v4074_v10  ;;  %v3932_v1 = vstv %s9599_s13  ;;  %s4952_s6 = sld [smem:[#allocation4 + $0x280]]  ;;  %s9780_s13 = sld [smem:[#allocation4 + $0x12b]] }
 0x311   : > { %v9608_v5 = vadd.f32 %v3399_v21, %v3317_v49  ;;  %v9610_v15 = vadd.f32 %v3183_v27, %v3109_v16  ;;  %v4006_v39 = vadd.f32 %v4005_v14, %v4003_v13  ;;  %v3931_v60 = vmul.f32 %v9570_v52, %v3930_v26 }
 0x312   : > { %3984 = vrot.lane.b32.xlu0 %v3982_v40, %s10087_s21  ;;  %4128 = vrot.lane.b32.xlu1 %v4126_v32, %s5262_s23  ;;  %v3994_v8 = vadd.f32 %v3993_v53, %v3991_v63  ;;  %v4088_v54 = vstv %s9606_s19  ;;  %v4062_v30 = vstv %s9614_s8  ;;  %v3933_v57 = vmul.f32 %v9579_v2, %v3932_v1  ;;  %s5264_s19 = smov 122   ;;  %s9783_s8 = sld [smem:[#allocation4 + $0x12c]] }
 0x313   : > { %v3120_v44 = vstv %s9616_s20  ;;  %v4064_v6 = vstv %s9626_s27  ;;  %v3122_v25 = vstv %s9628_s10  ;;  %v4089_v50 = vmul.f32 %v9579_v2, %v4088_v54  ;;  %s4958_s20 = sld [smem:[#allocation4 + $0x283]]  ;;  %s5265_s27 = smov 121  }
 0x314   : > { %v3255_v47 = vpop.permute.xlu0 %3254  ;;  %v3387_v20 = vpop.permute.xlu1 %3386  ;;  %v4086_v35 = vstv %s9604_s9  ;;  %v3934_v46 = vadd.f32 %v3933_v57, %v3931_v60  ;;  %v4063_v23 = vmul.f32 %v9570_v52, %v4062_v30  ;;  %v3121_v18 = vmul.f32 %v9118_v4, %v3120_v44  ;;  %s4956_s9 = sld [smem:[#allocation4 + $0x282]]  ;;  %s5266_s10 = smov 119  }
 0x315   : > { %v9633_v45 = vadd.f32 %v3255_v47, %v9557_v36  ;;  %v3389_v58 = vadd.f32 %v3387_v20, %v9546_v43  ;;  %v3117_v43 = vadd.f32 %v3116_v37, %v9430_v41  ;;  %v4077_v36 = vmul.f32 %v9579_v2, %v4076_v42 }
 0x316   : > { %4140 = vrot.lane.b32.xlu0 %v4138_v9, %s5262_s23  ;;  %3924 = vrot.lane.b32.xlu1 %v3922_v19, %s10111_s22  ;;  %v4087_v34 = vmul.f32 %v9570_v52, %v4086_v35  ;;  %v4158_v40 = vstv %s9638_s24  ;;  %v4014_v3 = vstv %s9640_s11  ;;  %v4065_v17 = vmul.f32 %v9579_v2, %v4064_v6  ;;  %s5267_s24 = smov 118   ;;  %s5268_s11 = smov 117  }
 0x317   : > { %v4078_v61 = vadd.f32 %v4077_v36, %v4075_v22  ;;  %v3123_v21 = vmul.f32 %v9130_v24, %v3122_v25  ;;  %v4160_v27 = vstv %s9649_s16  ;;  %v4016_v32 = vstv %s9651_s5  ;;  %s10356_s16 = sld [smem:[#allocation17_spill]]  ;;  %s10357_s5 = sld [smem:[#allocation20_spill]] }
 0x318   : > { %v3411_v28 = vpop.permute.xlu0 %3410  ;;  %v3195_v0 = vpop.permute.xlu1 %3194  ;;  %v4090_v4 = vadd.f32 %v4089_v50, %v4087_v34  ;;  %v4066_v11 = vadd.f32 %v4065_v17, %v4063_v23  ;;  %v4015_v31 = vmul.f32 %v9570_v52, %v4014_v3  ;;  %v4170_v29 = vstv %s9661_s4 }
 0x319   : > { %v9657_v51 = vadd.f32 %v3411_v28, %v9585_v48  ;;  %v3197_v41 = vadd.f32 %v3195_v0, %v3117_v43  ;;  %v4146_v38 = vstv %s9663_s0  ;;  %v4161_v24 = vmul.f32 %v9579_v2, %v4160_v27 }
 0x31a   : > { %4008 = vrot.lane.b32.xlu0 %v4006_v39, %s10087_s21  ;;  %3996 = vrot.lane.b32.xlu1 %v3994_v8, %s10087_s21  ;;  %v4017_v9 = vmul.f32 %v9579_v2, %v4016_v32  ;;  %v4172_v62 = vstv %s9671_s18  ;;  %v4148_v10 = vstv %s9673_s1  ;;  %v4171_v63 = vmul.f32 %v9570_v52, %v4170_v29 }
 0x31b   : > { %v4147_v42 = vmul.f32 %v9570_v52, %v4146_v38  ;;  %v4098_v26 = vstv %s9684_s14  ;;  %v4149_v53 = vmul.f32 %v9579_v2, %v4148_v10  ;;  %v4100_v22 = vstv %s9692_s2 }
 0x31c   : > { %v3483_v48 = vpop.permute.xlu0 %3482  ;;  %v3267_v49 = vpop.permute.xlu1 %3266  ;;  %v4018_v37 = vadd.f32 %v4017_v9, %v4015_v31  ;;  %v4099_v28 = vmul.f32 %v9570_v52, %v4098_v26  ;;  %v4101_v35 = vmul.f32 %v9579_v2, %v4100_v22  ;;  %v4184_v54 = vstv %s9707_s28 }
 0x31d   : > { %v9679_v12 = vadd.f32 %v3483_v48, %v9608_v5  ;;  %v3269_v16 = vadd.f32 %v3267_v49, %v9610_v15  ;;  %v3124_v5 = vadd.f32 %v3123_v21, %v3121_v18  ;;  %v4159_v15 = vmul.f32 %v9570_v52, %v4158_v40  ;;  %s5045_s0 = sshll.u32 %s10356_s16, 7  ;;  %p10359_p13 = scmp.ne.s32.totalorder %s10357_s5, 0 }
 0x31e   : > { %4080 = vrot.lane.b32.xlu0 %v4078_v61, %s5261_s30  ;;  %3936 = vrot.lane.b32.xlu1 %v3934_v46, %s10111_s22  ;;  %s9698_s22 = sld [smem:[#allocation4 + $0x156]]  ;;  %v4150_v1 = vadd.f32 %v4149_v53, %v4147_v42  ;;  %v4102_v44 = vadd.f32 %v4101_v35, %v4099_v28 }
 0x31f   : > { %v3125_v13 = vadd.f32 %v3124_v5, %v9483_v33  ;;  %v4162_v19 = vadd.f32 %v4161_v24, %v4159_v15  ;;  %v4173_v33 = vmul.f32 %v9579_v2, %v4172_v62 }
 0x320   : > { %v3279_v56 = vpop.permute.xlu0 %3278  ;;  %v3471_v55 = vpop.permute.xlu1 %3470 }
 0x321   : > { %v3281_v7 = vadd.f32 %v3279_v56, %v3197_v41  ;;  %v3473_v59 = vadd.f32 %v3471_v55, %v3389_v58  ;;  %v4174_v36 = vadd.f32 %v4173_v33, %v4171_v63 }
 0x322   : > { %4092 = vrot.lane.b32.xlu0 %v4090_v4, %s5261_s30  ;;  %4068 = vrot.lane.b32.xlu1 %v4066_v11, %s5261_s30 }
 0x324   : > { %v3351_v47 = vpop.permute.xlu0 %3350  ;;  %v3207_v20 = vpop.permute.xlu1 %3206  ;;  %v4182_v60 = vstv %s9698_s22  ;;  %s10358_s22 = sld [smem:[#allocation138_spill]] }
 0x325   : > { %v3353_v58 = vadd.f32 %v3351_v47, %v3269_v16  ;;  %v3209_v14 = vadd.f32 %v3207_v20, %v3125_v13  ;;  %v4183_v57 = vmul.f32 %v9570_v52, %v4182_v60 }
 0x326   : > { %4164 = vrot.lane.b32.xlu0 %v4162_v19, %s5262_s23  ;;  %4020 = vrot.lane.b32.xlu1 %v4018_v37, %s10087_s21  ;;  %s4945_s21 = sld [smem:[#allocation4 + $0x126]] }
 0x328   : > { %v3555_v43 = vpop.permute.xlu0 %3554  ;;  %v3339_v39 = vpop.permute.xlu1 %3338 }
 0x329   : > { %v9718_v0 = vadd.f32 %v3555_v43, %v3473_v59  ;;  %v3341_v8 = vadd.f32 %v3339_v39, %v9633_v45  ;;  %v4185_v45 = vmul.f32 %v9579_v2, %v4184_v54 }
 0x32a   : > { %4176 = vrot.lane.b32.xlu0 %v4174_v36, %s5262_s23  ;;  %4152 = vrot.lane.b32.xlu1 %v4150_v1, %s5262_s23  ;;  %s9822_s28 = scalar_lea.hbm %s10358_s22, %s5045_s0 }
 0x32b   : > { %v4186_v48 = vadd.f32 %v4185_v45, %v4183_v57 }
 0x32c   : > { %v3291_v41 = vpop.permute.xlu0 %3290  ;;  %v3495_v30 = vpop.permute.xlu1 %3494  ;;  %v3634_v53 = vstv %s4945_s21 }
 0x32d   : > { %v3293_v61 = vadd.f32 %v3291_v41, %v3209_v14  ;;  %v3497_v34 = vadd.f32 %v3495_v30, %v9657_v51  ;;  %v3635_v36 = vmul.f32 %v9570_v52, %v3634_v53 }
 0x32e   : > { %4104 = vrot.lane.b32.xlu1 %v4102_v44, %s5261_s30  ;;  %s4946_s30 = sld [smem:[#allocation4 + $0x27d]]  ;;  %v3644_v44 = vstv %s4948_s25 }
 0x330   : > { %v3423_v6 = vpop.permute.xlu0 %3422  ;;  %v3567_v25 = vpop.permute.xlu1 %3566 }
 0x331   : > { %v3425_v49 = vadd.f32 %v3423_v6, %v3341_v8  ;;  %v9731_v46 = vadd.f32 %v3567_v25, %v9679_v12  ;;  %v3645_v25 = vmul.f32 %v9579_v2, %v3644_v44 }
 0x332   : > { %4188 = vrot.lane.b32.xlu1 %v4186_v48, %s5262_s23  ;;  %s4947_s23 = sld [smem:[#allocation4 + $0x127]] }
 0x334   : > { %v3579_v50 = vpop.permute.xlu0 %3578  ;;  %v3363_v23 = vpop.permute.xlu1 %3362  ;;  %v3636_v39 = vstv %s4946_s30 }
 0x335   : > { %v9734_v18 = vadd.f32 %v3579_v50, %v3497_v34  ;;  %v3365_v16 = vadd.f32 %v3363_v23, %v3281_v7  ;;  %v3637_v8 = vmul.f32 %v9579_v2, %v3636_v39  ;;  %v3650_v34 = vstv %s4949_s3 }
 0x336   : > { %v3651_v23 = vmul.f32 %v9570_v52, %v3650_v34  ;;  %v3676_v34 = vstv %s4956_s9 }
 0x337   : > { %v3638_v60 = vadd.f32 %v3637_v8, %v3635_v36 }
 0x338   : > { %v3447_v40 = vpop.permute.xlu0 %3446  ;;  %v3435_v51 = vpop.permute.xlu1 %3434  ;;  %v3642_v35 = vstv %s4947_s23  ;;  %s5269_s23 = smov [#allocation9]  }
 0x339   : > { %v3449_v3 = vadd.f32 %v3447_v40, %v3365_v16  ;;  %v3437_v17 = vadd.f32 %v3435_v51, %v3353_v58  ;;  %v3639_v30 = vadd.f32 %v3638_v60, %v9718_v0  ;;  %v3643_v57 = vmul.f32 %v9570_v52, %v3642_v35  ;;  %s5183_s25 = sshll.u32 %s5269_s23, 4  ;;  %s5184_s25 = int_to_ptr.vmem [resolvable:$false] %s5183_s25 }
 0x33a   : > { %s5185_s3 = scalar_lea.vmem %s5184_s25, 256 }
 0x33b   : > { %v3646_v50 = vadd.f32 %v3645_v25, %v3643_v57 }
 0x33c   : > { %v3519_v21 = vpop.permute.xlu0 %3518  ;;  %v3375_v4 = vpop.permute.xlu1 %3374 }
 0x33d   : > { %v3521_v27 = vadd.f32 %v3519_v21, %v3437_v17  ;;  %v3377_v32 = vadd.f32 %v3375_v4, %v3293_v61  ;;  %v3647_v0 = vadd.f32 %v3646_v50, %v9731_v46  ;;  %v3682_v50 = vstv %s9783_s8 }
 0x340   : > { %v3709_v56 = vpop.permute.xlu0 %3708  ;;  %v3507_v55 = vpop.permute.xlu1 %3506 }
 0x341   : > { %v3509_v11 = vadd.f32 %v3507_v55, %v3425_v49  ;;  %v3652_v49 = vstv %s4950_s26  ;;  %v3711_v21 = vadd.f32 %v3709_v56, %v3647_v0 }
 0x344   : > { %v3531_v12 = vpop.permute.xlu0 %3530  ;;  %v3697_v5 = vpop.permute.xlu1 %3696 }
 0x345   : > { %v9736_v15 = vadd.f32 %v3531_v12, %v3449_v3  ;;  %v3699_v61 = vadd.f32 %v3697_v5, %v3639_v30  ;;  %v3653_v3 = vmul.f32 %v9579_v2, %v3652_v49  ;;  %v3677_v49 = vmul.f32 %v9579_v2, %v3676_v34 }
 0x347   : > { %v3654_v4 = vadd.f32 %v3653_v3, %v3651_v23 }
 0x348   : > { %v3603_v31 = vpop.permute.xlu0 %3602  ;;  %v3459_v59 = vpop.permute.xlu1 %3458 }
 0x349   : > { %v9738_v29 = vadd.f32 %v3603_v31, %v3521_v27  ;;  %v3461_v7 = vadd.f32 %v3459_v59, %v3377_v32 }
 0x34c   : > { %v3781_v38 = vpop.permute.xlu0 %3780  ;;  %v3591_v24 = vpop.permute.xlu1 %3590 }
 0x34d   : > { %v9740_v9 = vadd.f32 %v3591_v24, %v3509_v11  ;;  %v3783_v48 = vadd.f32 %v3781_v38, %v3699_v61  ;;  %v3655_v11 = vadd.f32 %v3654_v4, %v9734_v18 }
 0x350   : > { %v3543_v13 = vpop.permute.xlu0 %3542  ;;  %v3721_v62 = vpop.permute.xlu1 %3720 }
 0x351   : > { %v9742_v10 = vadd.f32 %v3543_v13, %v3461_v7  ;;  %v3723_v31 = vadd.f32 %v3721_v62, %v3655_v11 }
 0x354   : > { %v9744_v47 = vpop.permute.xlu0 %3804  ;;  %v3793_v20 = vpop.permute.xlu1 %3792 }
 0x355   : > { %v3795_v12 = vadd.f32 %v3793_v20, %v3711_v21  ;;  %v3807_v56 = vadd.f32 %v9744_v47, %v3723_v31  ;;  %v3658_v47 = vstv %s4951_s15  ;;  %v3684_v21 = vstv %s4958_s20 }
 0x356   : > { %v3659_v60 = vmul.f32 %v9570_v52, %v3658_v47 }
 0x358   : > { %v3877_v19 = vpop.permute.xlu0 %3876  ;;  %v9746_v37 = vpop.permute.xlu1 %3614 }
 0x359   : > { %v3879_v59 = vadd.f32 %v3877_v19, %v3795_v12  ;;  %v3668_v19 = vstv %s4954_s17  ;;  %v3617_v0 = vadd.f32 %v9746_v37, %v9736_v15 }
 0x35a   : > { %v3669_v36 = vmul.f32 %v9579_v2, %v3668_v19 }
 0x35c   : > { %v9748_v63 = vpop.permute.xlu0 %3732  ;;  %v3865_v42 = vpop.permute.xlu1 %3864 }
 0x35d   : > { %v3867_v16 = vadd.f32 %v3865_v42, %v3783_v48  ;;  %v3666_v42 = vstv %s4953_s12 }
 0x360   : > { %v3889_v58 = vpop.permute.xlu0 %3888  ;;  %v9750_v14 = vpop.permute.xlu1 %3626 }
 0x361   : > { %v3891_v24 = vadd.f32 %v3889_v58, %v3807_v56 }
 0x364   : > { %v3961_v26 = vpop.permute.xlu0 %3960  ;;  %v9752_v33 = vpop.permute.xlu1 %3744 }
 0x365   : > { %v3963_v38 = vadd.f32 %v3961_v26, %v3879_v59 }
 0x368   : > { %v9754_v22 = vpop.permute.xlu0 %3816  ;;  %v3949_v43 = vpop.permute.xlu1 %3948 }
 0x369   : > { %v3951_v17 = vadd.f32 %v3949_v43, %v3867_v16  ;;  %v3667_v43 = vmul.f32 %v9570_v52, %v3666_v42 }
 0x36b   : > { %v3670_v35 = vadd.f32 %v3669_v36, %v3667_v43 }
 0x36c   : > { %v3973_v1 = vpop.permute.xlu0 %3972  ;;  %v9757_v28 = vpop.permute.xlu1 %3756 }
 0x36d   : > { %v3975_v53 = vadd.f32 %v3973_v1, %v3891_v24  ;;  %v3660_v1 = vstv %s4952_s6  ;;  %v3671_v61 = vadd.f32 %v3670_v35, %v9738_v29 }
 0x36e   : > { %v3661_v57 = vmul.f32 %v9579_v2, %v3660_v1  ;;  %v10354_v1 = vmov 0.0  }
 0x36f   : > { %v3747_v25 = vadd.f32 %v9752_v33, %v3671_v61 }
 0x370   : > { %v4045_v54 = vpop.permute.xlu0 %4044  ;;  %v9760_v41 = vpop.permute.xlu1 %3828 }
 0x371   : > { %v4047_v13 = vadd.f32 %v4045_v54, %v3963_v38  ;;  %v3674_v54 = vstv %s9780_s13 }
 0x372   : > { %v3675_v48 = vmul.f32 %v9570_v52, %v3674_v54 }
 0x374   : > { %v9764_v45 = vpop.permute.xlu0 %3840  ;;  %v4033_v6 = vpop.permute.xlu1 %4032  ;;  %v3678_v4 = vadd.f32 %v3677_v49, %v3675_v48 }
 0x375   : > { %v4035_v27 = vadd.f32 %v4033_v6, %v3951_v17  ;;  %v3662_v6 = vadd.f32 %v3661_v57, %v3659_v60  ;;  %v3831_v17 = vadd.f32 %v9760_v41, %v3747_v25 }
 0x377   : > { %v3663_v3 = vadd.f32 %v3662_v6, %v9740_v9  ;;  %v3679_v9 = vadd.f32 %v3678_v4, %v3617_v0 }
 0x378   : > { %v9768_v40 = vpop.permute.xlu0 %3912  ;;  %v9770_v51 = vpop.permute.xlu1 %3768 }
 0x379   : > { %v3735_v29 = vadd.f32 %v9748_v63, %v3663_v3  ;;  %v3915_v33 = vadd.f32 %v9768_v40, %v3831_v17  ;;  %v3759_v41 = vadd.f32 %v9757_v28, %v3679_v9 }
 0x37b   : > { %v3819_v15 = vadd.f32 %v9754_v22, %v3735_v29 }
 0x37c   : > { %v4117_v32 = vpop.permute.xlu0 %4116  ;;  %v9774_v55 = vpop.permute.xlu1 %3900 }
 0x37d   : > { %v4119_v5 = vadd.f32 %v4117_v32, %v4035_v27  ;;  %v3683_v27 = vmul.f32 %v9570_v52, %v3682_v50  ;;  %v3685_v32 = vmul.f32 %v9579_v2, %v3684_v21  ;;  %v3903_v63 = vadd.f32 %v9774_v55, %v3819_v15 }
 0x37e   : > { %v3843_v52 = vadd.f32 %v9764_v45, %v3759_v41 }
 0x37f   : > { %4193 = vrot.lane.b32.xlu0 %v4119_v5, %s5263_s7  ;;  %v3629_v5 = vadd.f32 %v9750_v14, %v9742_v10  ;;  %v3686_v31 = vadd.f32 %v3685_v32, %v3683_v27 }
 0x380   : > { %v9777_v46 = vpop.permute.xlu0 %3852  ;;  %v4057_v7 = vpop.permute.xlu1 %4056 }
 0x381   : > { %v4059_v39 = vadd.f32 %v4057_v7, %v3975_v53  ;;  %v3687_v2 = vadd.f32 %v3686_v31, %v3629_v5 }
 0x383   : > { %v3771_v24 = vadd.f32 %v9770_v51, %v3687_v2 }
 0x384   : > { %v3985_v18 = vpop.permute.xlu0 %3984  ;;  %v4129_v20 = vpop.permute.xlu1 %4128 }
 0x385   : > { %v4131_v62 = vadd.f32 %v4129_v20, %v4047_v13  ;;  %v3987_v56 = vadd.f32 %v3985_v18, %v3903_v63  ;;  %v3855_v28 = vadd.f32 %v9777_v46, %v3771_v24 }
 0x387   : > { %4199 = vrot.lane.b32.xlu1 %v4131_v62, %s5264_s19 }
 0x388   : > { %v4141_v58 = vpop.permute.xlu0 %4140  ;;  %v3925_v26 = vpop.permute.xlu1 %3924 }
 0x389   : > { %v4143_v8 = vadd.f32 %v4141_v58, %v4059_v39  ;;  %v3927_v10 = vadd.f32 %v3925_v26, %v3843_v52  ;;  %v203_v39 = vlaneseq }
 0x38b   : > { %4205 = vrot.lane.b32.xlu0 %v4143_v8, %s5265_s27  ;;  %v204_v47 = vand.u32 127, %v203_v39 }
 0x38c   : > { %v4009_v30 = vpop.permute.xlu0 %4008  ;;  %v3997_v44 = vpop.permute.xlu1 %3996 }
 0x38d   : > { %v3999_v37 = vadd.f32 %v3997_v44, %v3915_v33  ;;  %v4011_v13 = vadd.f32 %v4009_v30, %v3927_v10  ;;  %v209_v46 = vand.u32 7, %v204_v47 }
 0x38f   : > { %v223_v58 = vadd.s32 4294967294, %v209_v46  ;;  %v217_v26 = vadd.s32 4294967293, %v209_v46  ;;  %v229_v36 = vadd.s32 4294967295, %v209_v46  ;;  %v240_v61 = vadd.s32 1, %v209_v46 }
 0x390   : > { %v4081_v23 = vpop.permute.xlu0 %4080  ;;  %v3937_v16 = vpop.permute.xlu1 %3936  ;;  %v246_v34 = vadd.s32 2, %v209_v46  ;;  %v252_v49 = vadd.s32 3, %v209_v46 }
 0x391   : > { %v4083_v59 = vadd.f32 %v4081_v23, %v3999_v37  ;;  %v3939_v20 = vadd.f32 %v3937_v16, %v3855_v28  ;;  %vm224_vm1 = vcmp.ge.s32.totalorder %v223_v58, 0  ;;  %vm218_vm2 = vcmp.ge.s32.totalorder %v217_v26, 0 }
 0x392   : > { %vm230_vm3 = vcmp.ge.s32.totalorder %v229_v36, 0  ;;  %v4353_v60 = vsel %vm224_vm1, 1.0, %v10354_v1  ;;  %v4352_v54 = vsel %vm218_vm2, 1.0, %v10354_v1  ;;  %vm242_vm4 = vcmp.lt.s32.totalorder %v240_v61, 8 }
 0x393   : > { %v4354_v30 = vsel %vm230_vm3, 1.0, %v10354_v1  ;;  %vm248_vm5 = vcmp.lt.s32.totalorder %v246_v34, 8  ;;  %v4355_v16 = vsel %vm242_vm4, 1.0, %v10354_v1  ;;  %vm254_vm6 = vcmp.lt.s32.totalorder %v252_v49, 8 }
 0x394   : > { %v4093_v11 = vpop.permute.xlu0 %4092  ;;  %v4069_v12 = vpop.permute.xlu1 %4068  ;;  %v4356_v3 = vsel %vm248_vm5, 1.0, %v10354_v1  ;;  %v4357_v33 = vsel %vm254_vm6, 1.0, %v10354_v1 }
 0x395   : > { %v4071_v14 = vadd.f32 %v4069_v12, %v3987_v56  ;;  %v4095_v53 = vadd.f32 %v4093_v11, %v4011_v13 }
 0x398   : > { %v4165_v40 = vpop.permute.xlu0 %4164  ;;  %v4021_v7 = vpop.permute.xlu1 %4020 }
 0x399   : > { %v4167_v38 = vadd.f32 %v4165_v40, %v4083_v59  ;;  %v4023_v62 = vadd.f32 %v4021_v7, %v3939_v20 }
 0x39b   : > { %4217 = vrot.lane.b32.xlu0 %v4167_v38, %s5266_s10 }
 0x39c   : > { %v4153_v22 = vpop.permute.xlu1 %4152  ;;  %v4177_v55 = vpop.permute.xlu0 %4176 }
 0x39d   : > { %v4155_v42 = vadd.f32 %v4153_v22, %v4071_v14  ;;  %v4179_v18 = vadd.f32 %v4177_v55, %v4095_v53 }
 0x39f   : > { %4211 = vrot.lane.b32.xlu1 %v4155_v42, %s10107_s29  ;;  %s10355_s29 = sld [smem:[#allocation22_spill]] }
 0x3a0   : > { %v4105_v45 = vpop.permute.xlu1 %4104 }
 0x3a1   : > { %v4107_v19 = vadd.f32 %v4105_v45, %v4023_v62 }
 0x3a3   : > { %4223 = vrot.lane.b32.xlu1 %v4179_v18, %s5267_s24 }
 0x3a4   : > { %v4189_v51 = vpop.permute.xlu1 %4188 }
 0x3a5   : > { %v4191_v43 = vadd.f32 %v4189_v51, %v4107_v19  ;;  %s4348_s4 = sshll.u32 %s10355_s29, 3  ;;  %s4243_s21 = scalar_lea.sflag [#allocation6], %s10355_s29 }
 0x3a6   : > { %s173_s18 = scalar_lea.vmem [#allocation9], %s4348_s4 }
 0x3a7   : > { %4229 = vrot.lane.b32.xlu0 %v4191_v43, %s5268_s11  ;;  %s4256_s1 = sshll.u32 %s173_s18, 4  ;;  %s9824_s1 = int_to_ptr.vmem [resolvable:$true] %s4256_s1 }
 0x3a8   : > { %s5179_s30 = scalar_lea.vmem %s9824_s1, 128  ;;  %p5186_p10 = scmp.lt.s32.totalorder %s9824_s1, %s5184_s25 }
 0x3a9   : > { %p5180_p12 = scmp.ne.s32.totalorder %s9824_s1, %s5179_s30  ;;  %p5187_p2 = scmp.lt.s32.totalorder %s5185_s3, %s5179_s30 }
 0x3ab   : > { %p5181_p3 = pnand %p5180_p12, %p10359_p13  ;;  %p5188_p7 = por %p5187_p2, %p5186_p10 }
 0x3ad   : > { %p5182_p8 = pneg %p5181_p3 }
 0x3af   : > { %p5189_p0 = pnand %p5188_p7, %p5182_p8 }
 0x3f1   : > { %v4194_v8 = vpop.permute.xlu0 %4193 }
 0x3f2   : > { %v4196_v6 = vmul.f32 %v4352_v54, %v4194_v8 }
 0x3f9   : > { %v4200_v35 = vpop.permute.xlu1 %4199 }
 0x3fa   : > { %v4202_v57 = vmul.f32 %v4353_v60, %v4200_v35 }
 0x3fc   : > { %v4203_v48 = vadd.f32 %v4202_v57, %v4196_v6 }
 0x3fd   : > { %v4206_v44 = vpop.permute.xlu0 %4205 }
 0x3fe   : > { %v4208_v25 = vmul.f32 %v4354_v30, %v4206_v44 }
 0x400   : > { %v4209_v23 = vadd.f32 %v4208_v25, %v4203_v48 }
 0x40d   : > { %v4218_v0 = vpop.permute.xlu0 %4217 }
 0x40e   : > { %v4220_v29 = vmul.f32 %v4355_v16, %v4218_v0 }
 0x411   : > { %v4212_v50 = vpop.permute.xlu1 %4211 }
 0x412   : > { %v4215_v17 = vadd.f32 %v4212_v50, %v4209_v23 }
 0x414   : > { %v4221_v27 = vadd.f32 %v4220_v29, %v4215_v17 }
 0x415   : > { %v4224_v21 = vpop.permute.xlu1 %4223 }
 0x416   : > { %v4226_v4 = vmul.f32 %v4356_v3, %v4224_v21 }
 0x418   : > { %v4227_v11 = vadd.f32 %v4226_v4, %v4221_v27 }
 0x419   : > { %v4230_v32 = vpop.permute.xlu0 %4229 }
 0x41a   : > { %v4232_v12 = vmul.f32 %v4357_v33, %v4230_v32 }
 0x41c   : > { %v4233_v5 = vadd.f32 %v4232_v12, %v4227_v11 }
 0x41e   : > { %v5043_v15 = vmul.f32 -1.442695, %v4233_v5 }
 0x420   : > { %5122 = vpow2.f32 %v5043_v15 }
 0x42a   : > { %v5123_v9 = vpop.eup %5122 }
 0x42b   : > { %v4237_v37 = vadd.f32 1.0, %v5123_v9 }
 0x42d   : > { %5124 = vrcp.f32 %v4237_v37 }
 0x437   : > { %v5125_v41 = vpop.eup %5124 }
 0x438   : > { %4241 = vst.msk [vmem:[%s173_s18] sm:$0xff] %vm4240_vm7, %v5125_v41 }
 0x439   : > { %5192 = shalt.err (!%p5189_p0)
}
 0x43a   : > { %s5193_s26 = scalar_lea.hbm %s9822_s28, 128  ;;  %s5197_s7 = scalar_lea.hbm %s10358_s22, 256 }
 0x43b   : > { %p5194_p9 = scmp.ne.s32.totalorder %s9822_s28, %s5193_s26  ;;  %p5198_p1 = scmp.lt.u32.totalorder %s9822_s28, %s10358_s22 }
 0x43c   : > { %p5199_p6 = scmp.lt.u32.totalorder %s5197_s7, %s5193_s26  ;;  %p5201_p12 = scmp.lt.u32.totalorder %s5193_s26, %s9822_s28 }
 0x43d   : > { %p5195_p4 = pnand %p5194_p9, %p10359_p13 }
 0x43e   : > { %p5200_p11 = por %p5199_p6, %p5198_p1 }
 0x43f   : > { %p5196_p5 = pneg %p5195_p4 }
 0x440   : > { %p5202_p3 = por %p5201_p12, %p5200_p11 }
 0x442   : > { %p5203_p8 = pnand %p5202_p3, %p5196_p5 }
 0x444   : > { %5206 = shalt.err (!%p5203_p8)
}
 0x445   : > { %5055 = dma.vmem_to_hbm [thread:$0]  (%p10359_p13), %s9824_s1, 128, %s9822_s28, %s4243_s21  }
 0x446 PF: > { %s10360_s13 = sld [smem:[#allocation13_spill]]  ;;  %s10361_s9 = sld [smem:[#allocation21_spill]] }
 0x447   : > { %s10362_s19 = sld [smem:[#allocation16_spill]] }
 0x44c   : > { %s4268_s8 = sand.u32 1, %s10360_s13   ;;  %p10363_p10 = scmp.ne.s32.totalorder %s10361_s9, 0 }
 0x44d   : > { %p10364_p2 = scmp.ge.s32.totalorder %s10362_s19, 2  ;;  %s4269_s20 = scalar_lea.sflag [#allocation6], %s4268_s8 }
 0x44f   : > { %p5066_p7 = pnand %p10364_p2, %p10363_p10 }
 0x451   : > { %5232 = dma.done.wait (!%p5066_p7), %s4269_s20, 128  }
 0x452   : > { %5234 = vsyncadd (!%p5066_p7), %s4269_s20, 4294967168  ;;  %s10365_s12 = sld [smem:[#allocation18_spill]]  ;;  %s10366_s9 = sld [smem:[#allocation14_spill]] }
 0x453   : > { %s10367_s10 = sld [smem:[#allocation15_spill]]  ;;  %s10368_s11 = sld [smem:[#allocation19_spill]] }
 0x458   : > { %p16_p0 = scmp.ge.s32.totalorder %s10365_s12, 4  }
 0x45a   :  { %18 = sbr.rel (!%p16_p0) target bundleno = 10 (0xa), region = 81 }
 0x461   :  { %4274 = vsyncpa [#allocation5], 1 }
 0x462   :  { %4276 = vsyncpa [#allocation5 + $0x1], 1 }
 0x463   :  { %4277 = vsyncpa [#allocation6], 1 }
 0x464   :  { %4279 = vsyncpa [#allocation6 + $0x1], 1 }
 0x465   :  { %4280 = vsyncpa [#allocation7], 1 }
 0x466   :  { %4282 = vsyncpa [#allocation7 + $0x1], 1 }

</bundles_post_ra>
